<compile_context>
chip_gen: v7x
topology: tpu7x:2x2x1
jax: 0.10.0
libtpu: 0.0.40
codegen_flags: <defaults>
</compile_context>

<pallas_src>
import functools

import jax
import jax.numpy as jnp
import numpy as np
from jax.experimental import pallas as pl
from jax.experimental.pallas import tpu as pltpu


# --------------------------------- kernel -------------------------------------

def _fused_resnet_block_kernel(x_ref, w1_ref, w2_ref, wres_ref, m_ref,
                               b1_ref, g1_ref, bt1_ref, b2_ref, g2_ref, bt2_ref,
                               bres_ref, o_ref, h1c_ref, *, H, W):
    EPS = 1e-5
    Wcx = x_ref.shape[2]            # x-canvas width  (>= W+1, multiple of 16)
    Wch = h1c_ref.shape[1]          # h1-canvas width (>= W+1, multiple of 16)
    Cin = x_ref.shape[-1]           # lane-dense (padded) input channels
    C = o_ref.shape[-1]             # lane-dense (padded) output channels
    HW = H * W

    m_fold = m_ref[...]             # (C, C) f32 group-averaging matrix

    def gn_silu(y, bias, gamma, beta):
        # y: (HW, C) f32 conv output over interior pixels only.
        y = y + bias
        s = jnp.sum(y, axis=0, keepdims=True)                        # (1, C)
        sq = jnp.sum(y * y, axis=0, keepdims=True)                   # (1, C)
        mean = jnp.dot(s, m_fold, preferred_element_type=jnp.float32)
        ex2 = jnp.dot(sq, m_fold, preferred_element_type=jnp.float32)
        var = jnp.maximum(ex2 - mean * mean, 0.0)   # clamp: cancellation can go < 0
        yn = (y - mean) * jax.lax.rsqrt(var + EPS) * gamma + beta
        return yn * jax.nn.sigmoid(yn)                               # SiLU

    def interior(y, wc):
        # (H*wc, C) -> (HW, C): keep the W interior columns of each row group.
        return y.reshape(H, wc, C)[:, :W, :].reshape(HW, C)

    def conv3x3(slab_fn, w_ref_, wc, res_w=None):
        """3x3 conv as 3 contiguous-slab MXU dots against kj-tap-packed weights.

        slab_fn(ki) -> (H*wc, cin) bf16 slab = canvas rows [ki, ki+H).
        w_ref_[ki]  -> (cin, 3*C): columns [kj*C:(kj+1)*C] hold tap (ki, kj).
        Horizontal tap alignment uses pltpu.roll (XLU) on the flat sublane axis;
        the wrapped-in elements always come from zeroed pad columns, so they act
        as the conv's left/right zero halo.
        """
        nrow = H * wc
        y = None
        res = None
        for ki in range(3):
            slab = slab_fn(ki)
            r = jnp.dot(slab, w_ref_[ki], preferred_element_type=jnp.float32)
            t = (pltpu.roll(r[:, :C], 1, axis=0)                 # kj = 0 (left)
                 + r[:, C:2 * C]                                 # kj = 1 (center)
                 + pltpu.roll(r[:, 2 * C:], nrow - 1, axis=0))   # kj = 2 (right)
            y = t if y is None else y + t
            if res_w is not None and ki == 1:
                # 1x1 residual conv reuses the already-loaded center slab.
                res = jnp.dot(slab, res_w, preferred_element_type=jnp.float32)
        return y, res

    # ---------------- Block 1: 3x3 conv + GN + SiLU (+ residual dot) ------------
    def x_slab(ki):
        return x_ref[0, ki:ki + H].reshape(H * Wcx, Cin)

    y1, res = conv3x3(x_slab, w1_ref, Wcx, res_w=wres_ref[...])
    h1 = gn_silu(interior(y1, Wcx), b1_ref[...], g1_ref[...], bt1_ref[...])  # (HW,C)

    # ---- block-1 activation -> bf16 VMEM canvas (interior at column 0, aligned).
    #      Re-zero only the halo strips each step; the interior is fully rewritten.
    zrow = jnp.zeros((1, Wch, C), jnp.bfloat16)
    h1c_ref[0:1] = zrow                                           # top halo row
    h1c_ref[H + 1:H + 2] = zrow                                   # bottom halo row
    h1c_ref[1:H + 1, W:Wch, :] = jnp.zeros((H, Wch - W, C), jnp.bfloat16)
    h1c_ref[1:H + 1, 0:W, :] = h1.astype(jnp.bfloat16).reshape(H, W, C)

    # ---------------- Block 2: 3x3 conv + GN + SiLU ------------------------------
    def h_slab(ki):
        return h1c_ref[ki:ki + H].reshape(H * Wch, C)

    y2, _ = conv3x3(h_slab, w2_ref, Wch)
    h2 = gn_silu(interior(y2, Wch), b2_ref[...], g2_ref[...], bt2_ref[...])  # (HW,C)

    # ---------------- residual add ------------------------------------------------
    res = interior(res, Wcx) + bres_ref[...]
    o_ref[0] = (h2 + res).astype(o_ref.dtype)


# ------------------------------ pallas wrapper --------------------------------

def _round_up(v, m):
    return ((v + m - 1) // m) * m


def _vmem_limit_bytes():
    """Generation-aware VMEM budget with headroom below the physical ceiling."""
    cap = 64 * 1024 * 1024
    try:
        info = pltpu.get_tpu_info()
        cap = int(getattr(info, "vmem_capacity_bytes", cap)) or cap
    except Exception:
        pass
    return int(min(max(cap - 8 * 1024 * 1024, 32 * 1024 * 1024),
                   100 * 1024 * 1024))


def _pack_conv3x3(w_oihw, cin_p, cout_p):
    """PyTorch (Cout,Cin,3,3) -> (3, cin_p, 3*cout_p) bf16.

    Row ki holds the three kj taps of kernel row ki packed along the output (lane)
    axis, so one MXU dot per ki covers all three horizontal taps and the dot width
    (3*cout_p >= 384) fills the 256-wide MXUs on v6e/v7x.
    """
    cout, cin = w_oihw.shape[0], w_oihw.shape[1]
    w = jnp.transpose(w_oihw, (2, 3, 1, 0))                    # (3,3,Cin,Cout)
    w = jnp.pad(w, ((0, 0), (0, 0), (0, cin_p - cin), (0, cout_p - cout)))
    w = jnp.transpose(w, (0, 2, 1, 3)).reshape(3, cin_p, 3 * cout_p)
    return w.astype(jnp.bfloat16)


def resnet_block_pallas(x_nchw, params, groups):
    N, Cin, H, W = x_nchw.shape
    Cout = params["w1"].shape[0]
    Cin_p = _round_up(Cin, 128)
    Cout_p = _round_up(Cout, 128)
    # Canvas widths: >= W+1 zero columns on the right provide both the right conv
    # halo and (via roll wrap-around) the left halo; multiples of 16 keep the
    # (rows, width, C) -> (rows*width, C) reshapes layout-free for bf16.
    Wcx = _round_up(W + 1, 16)
    Wch = _round_up(W + 1, 16)

    # NHWC canvas: rows [1, H+1) x columns [0, W) hold the image, rest is zero.
    x_nhwc = jnp.transpose(x_nchw, (0, 2, 3, 1)).astype(jnp.float32)
    x_pad = jnp.pad(x_nhwc, ((0, 0), (1, 1), (0, Wcx - W), (0, Cin_p - Cin)))
    x_pad = x_pad.astype(jnp.bfloat16)

    w1 = _pack_conv3x3(params["w1"], Cin_p, Cout_p)
    w2 = _pack_conv3x3(params["w2"], Cout_p, Cout_p)
    wres = jnp.pad(jnp.transpose(params["wres"][:, :, 0, 0], (1, 0)),
                   ((0, Cin_p - Cin), (0, Cout_p - Cout))).astype(jnp.bfloat16)

    def _row(v):
        return jnp.pad(v.astype(jnp.float32), (0, Cout_p - Cout)).reshape(1, Cout_p)

    b1, g1, bt1 = _row(params["b1"]), _row(params["g1"]), _row(params["bt1"])
    b2, g2, bt2 = _row(params["b2"]), _row(params["g2"]), _row(params["bt2"])
    bres = _row(params["bres"])

    # Group-averaging matrix: (1,C) per-channel sums @ M -> per-channel group mean.
    cg = Cout // groups
    m_np = np.zeros((Cout_p, Cout_p), np.float32)
    for g in range(groups):
        lo, hi = g * cg, (g + 1) * cg
        m_np[lo:hi, lo:hi] = 1.0 / float(H * W * cg)
    m_fold = jnp.asarray(m_np)

    kernel = functools.partial(_fused_resnet_block_kernel, H=H, W=W)
    vec_spec = pl.BlockSpec((1, Cout_p), lambda n: (0, 0))
    out = pl.pallas_call(
        kernel,
        out_shape=jax.ShapeDtypeStruct((N, H * W, Cout_p), jnp.float32),
        grid=(N,),
        in_specs=[
            pl.BlockSpec((1, H + 2, Wcx, Cin_p), lambda n: (n, 0, 0, 0)),
            pl.BlockSpec((3, Cin_p, 3 * Cout_p), lambda n: (0, 0, 0)),
            pl.BlockSpec((3, Cout_p, 3 * Cout_p), lambda n: (0, 0, 0)),
            pl.BlockSpec((Cin_p, Cout_p), lambda n: (0, 0)),
            pl.BlockSpec((Cout_p, Cout_p), lambda n: (0, 0)),
            vec_spec, vec_spec, vec_spec, vec_spec, vec_spec, vec_spec, vec_spec,
        ],
        out_specs=pl.BlockSpec((1, H * W, Cout_p), lambda n: (n, 0, 0)),
        scratch_shapes=[
            pltpu.VMEM((H + 2, Wch, Cout_p), jnp.bfloat16),   # block-1 activation
        ],
        compiler_params=pltpu.CompilerParams(
            dimension_semantics=("parallel",),
            vmem_limit_bytes=_vmem_limit_bytes(),
        ),
    )(x_pad, w1, w2, wres, m_fold, b1, g1, bt1, b2, g2, bt2, bres)

    out = out.reshape(N, H, W, Cout_p)[..., :Cout]
    return jnp.transpose(out, (0, 3, 1, 2))  # back to NCHW


# --------------------------- pure-JAX reference (check) ------------------------

def _conv3x3_ref(x_nhwc, w_oihw, b):
    w_hwio = jnp.transpose(w_oihw, (2, 3, 1, 0))
    y = jax.lax.conv_general_dilated(x_nhwc, w_hwio, (1, 1), "SAME",
                                     dimension_numbers=("NHWC", "HWIO", "NHWC"))
    return y + b


def _groupnorm_ref(x_nhwc, gamma, beta, groups, eps=1e-5):
    N, H, W, C = x_nhwc.shape
    xg = x_nhwc.reshape(N, H * W, groups, C // groups)
    mean = xg.mean(axis=(1, 3), keepdims=True)
    var = ((xg - mean) ** 2).mean(axis=(1, 3), keepdims=True)
    xn = ((xg - mean) * jax.lax.rsqrt(var + eps)).reshape(N, H, W, C)
    return xn * gamma + beta


def resnet_block_ref(x_nchw, params, groups):
    x = jnp.transpose(x_nchw, (0, 2, 3, 1))
    silu = lambda v: v * jax.nn.sigmoid(v)
    h = silu(_groupnorm_ref(_conv3x3_ref(x, params["w1"], params["b1"]),
                            params["g1"], params["bt1"], groups))
    h = silu(_groupnorm_ref(_conv3x3_ref(h, params["w2"], params["b2"]),
                            params["g2"], params["bt2"], groups))
    res = jnp.einsum("nhwc,oc->nhwo", x, params["wres"][:, :, 0, 0]) + params["bres"]
    return jnp.transpose(h + res, (0, 3, 1, 2))


# ------------------------------------ main -------------------------------------

if __name__ == "__main__":
    N, Cin, Cout, H, W, G = 2, 4, 8, 16, 16, 2  # ResnetBlock(dim=4, dim_out=8, groups=2)
    key = jax.random.PRNGKey(0)
    ks = jax.random.split(key, 12)

    x = jax.random.normal(ks[0], (N, Cin, H, W), jnp.float32)
    params = {
        "w1":   0.2 * jax.random.normal(ks[1], (Cout, Cin, 3, 3), jnp.float32),
        "b1":   0.1 * jax.random.normal(ks[2], (Cout,), jnp.float32),
        "g1":   1.0 + 0.1 * jax.random.normal(ks[3], (Cout,), jnp.float32),
        "bt1":  0.1 * jax.random.normal(ks[4], (Cout,), jnp.float32),
        "w2":   0.2 * jax.random.normal(ks[5], (Cout, Cout, 3, 3), jnp.float32),
        "b2":   0.1 * jax.random.normal(ks[6], (Cout,), jnp.float32),
        "g2":   1.0 + 0.1 * jax.random.normal(ks[7], (Cout,), jnp.float32),
        "bt2":  0.1 * jax.random.normal(ks[8], (Cout,), jnp.float32),
        "wres": 0.2 * jax.random.normal(ks[9], (Cout, Cin, 1, 1), jnp.float32),
        "bres": 0.1 * jax.random.normal(ks[10], (Cout,), jnp.float32),
    }

    out = jax.block_until_ready(resnet_block_pallas(x, params, G))
    ref = resnet_block_ref(x, params, G)

    # Matmul operands are bf16 (f32 accumulation, f32 GroupNorm stats), so compare
    # against the f32 reference with a bf16-appropriate tolerance.
    np.testing.assert_allclose(np.asarray(out), np.asarray(ref), rtol=5e-2, atol=5e-2)

    print("KERNEL_OK")
</pallas_src>

<mosaic_0001>
module attributes {stable_mosaic.version = 11 : i64} {
  func.func @_fused_resnet_block_kernel(%arg0: i32, %arg1: memref<1x18x32x128xbf16, #tpu.memory_space<vmem>>, %arg2: memref<3x128x384xbf16, #tpu.memory_space<vmem>>, %arg3: memref<3x128x384xbf16, #tpu.memory_space<vmem>>, %arg4: memref<128x128xbf16, #tpu.memory_space<vmem>>, %arg5: memref<128x128xf32, #tpu.memory_space<vmem>>, %arg6: memref<1x128xf32, #tpu.memory_space<vmem>>, %arg7: memref<1x128xf32, #tpu.memory_space<vmem>>, %arg8: memref<1x128xf32, #tpu.memory_space<vmem>>, %arg9: memref<1x128xf32, #tpu.memory_space<vmem>>, %arg10: memref<1x128xf32, #tpu.memory_space<vmem>>, %arg11: memref<1x128xf32, #tpu.memory_space<vmem>>, %arg12: memref<1x128xf32, #tpu.memory_space<vmem>>, %arg13: memref<1x256x128xf32, #tpu.memory_space<vmem>>, %arg14: memref<18x32x128xbf16, #tpu.memory_space<vmem>>) attributes {dimension_semantics = [#tpu.dimension_semantics<parallel>], iteration_bounds = array<i64: 2>, scalar_prefetch = 0 : i64, scratch_operands = 1 : i64, tpu.core_type = #tpu.core_type<tc>, window_params = [{transform_indices = @transform_0, window_bounds = array<i64: 1, 18, 32, 128>}, {pipeline_mode = #tpu.pipeline_mode<synchronous>, transform_indices = @transform_1, window_bounds = array<i64: 3, 128, 384>}, {pipeline_mode = #tpu.pipeline_mode<synchronous>, transform_indices = @transform_2, window_bounds = array<i64: 3, 128, 384>}, {pipeline_mode = #tpu.pipeline_mode<synchronous>, transform_indices = @transform_3, window_bounds = array<i64: 128, 128>}, {pipeline_mode = #tpu.pipeline_mode<synchronous>, transform_indices = @transform_4, window_bounds = array<i64: 128, 128>}, {pipeline_mode = #tpu.pipeline_mode<synchronous>, transform_indices = @transform_5, window_bounds = array<i64: 1, 128>}, {pipeline_mode = #tpu.pipeline_mode<synchronous>, transform_indices = @transform_6, window_bounds = array<i64: 1, 128>}, {pipeline_mode = #tpu.pipeline_mode<synchronous>, transform_indices = @transform_7, window_bounds = array<i64: 1, 128>}, {pipeline_mode = #tpu.pipeline_mode<synchronous>, transform_indices = @transform_8, window_bounds = array<i64: 1, 128>}, {pipeline_mode = #tpu.pipeline_mode<synchronous>, transform_indices = @transform_9, window_bounds = array<i64: 1, 128>}, {pipeline_mode = #tpu.pipeline_mode<synchronous>, transform_indices = @transform_10, window_bounds = array<i64: 1, 128>}, {pipeline_mode = #tpu.pipeline_mode<synchronous>, transform_indices = @transform_11, window_bounds = array<i64: 1, 128>}, {transform_indices = @transform_12, window_bounds = array<i64: 1, 256, 128>}]} {
    %c0 = arith.constant 0 : index
    %c0_0 = arith.constant 0 : index
    %0 = vector.load %arg5[%c0, %c0_0] : memref<128x128xf32, #tpu.memory_space<vmem>>, vector<128x128xf32>
    %c0_1 = arith.constant 0 : index
    %c0_2 = arith.constant 0 : index
    %1 = vector.load %arg4[%c0_1, %c0_2] : memref<128x128xbf16, #tpu.memory_space<vmem>>, vector<128x128xbf16>
    %c0_3 = arith.constant 0 : index
    %c0_4 = arith.constant 0 : index
    %c0_5 = arith.constant 0 : index
    %c0_6 = arith.constant 0 : index
    %2 = vector.load %arg1[%c0_3, %c0_4, %c0_5, %c0_6] : memref<1x18x32x128xbf16, #tpu.memory_space<vmem>>, vector<1x16x32x128xbf16>
    %3 = vector.shape_cast %2 : vector<1x16x32x128xbf16> to vector<16x32x128xbf16>
    %4 = vector.shape_cast %3 : vector<16x32x128xbf16> to vector<512x128xbf16>
    %c0_7 = arith.constant 0 : index
    %c0_8 = arith.constant 0 : index
    %c0_9 = arith.constant 0 : index
    %5 = vector.load %arg2[%c0_7, %c0_8, %c0_9] : memref<3x128x384xbf16, #tpu.memory_space<vmem>>, vector<1x128x384xbf16>
    %6 = vector.shape_cast %5 : vector<1x128x384xbf16> to vector<128x384xbf16>
    %cst = arith.constant dense<0.000000e+00> : vector<512x384xf32>
    %7 = tpu.matmul %4, %6, %cst {dimension_numbers = #tpu.dot_dimension_numbers<[1], [0], [0], [1], [0, 0, 1, 1], [], []>} : vector<512x128xbf16>, vector<128x384xbf16>, vector<512x384xf32> -> vector<512x384xf32>
    %8 = vector.extract_strided_slice %7 {offsets = [0, 0], sizes = [512, 128], strides = [1, 1]} : vector<512x384xf32> to vector<512x128xf32>
    %c1_i32 = arith.constant 1 : i32
    %9 = tpu.dynamic_rotate %8 by %c1_i32 dim 0 : vector<512x128xf32>, i32 -> vector<512x128xf32>
    %10 = vector.extract_strided_slice %7 {offsets = [0, 128], sizes = [512, 128], strides = [1, 1]} : vector<512x384xf32> to vector<512x128xf32>
    %11 = arith.addf %9, %10 : vector<512x128xf32>
    %12 = vector.extract_strided_slice %7 {offsets = [0, 256], sizes = [512, 128], strides = [1, 1]} : vector<512x384xf32> to vector<512x128xf32>
    %c511_i32 = arith.constant 511 : i32
    %13 = tpu.dynamic_rotate %12 by %c511_i32 dim 0 : vector<512x128xf32>, i32 -> vector<512x128xf32>
    %14 = arith.addf %11, %13 : vector<512x128xf32>
    %c0_10 = arith.constant 0 : index
    %c1 = arith.constant 1 : index
    %c0_11 = arith.constant 0 : index
    %c0_12 = arith.constant 0 : index
    %15 = vector.load %arg1[%c0_10, %c1, %c0_11, %c0_12] : memref<1x18x32x128xbf16, #tpu.memory_space<vmem>>, vector<1x16x32x128xbf16>
    %16 = vector.shape_cast %15 : vector<1x16x32x128xbf16> to vector<16x32x128xbf16>
    %17 = vector.shape_cast %16 : vector<16x32x128xbf16> to vector<512x128xbf16>
    %c1_13 = arith.constant 1 : index
    %c0_14 = arith.constant 0 : index
    %c0_15 = arith.constant 0 : index
    %18 = vector.load %arg2[%c1_13, %c0_14, %c0_15] : memref<3x128x384xbf16, #tpu.memory_space<vmem>>, vector<1x128x384xbf16>
    %19 = vector.shape_cast %18 : vector<1x128x384xbf16> to vector<128x384xbf16>
    %cst_16 = arith.constant dense<0.000000e+00> : vector<512x384xf32>
    %20 = tpu.matmul %17, %19, %cst_16 {dimension_numbers = #tpu.dot_dimension_numbers<[1], [0], [0], [1], [0, 0, 1, 1], [], []>} : vector<512x128xbf16>, vector<128x384xbf16>, vector<512x384xf32> -> vector<512x384xf32>
    %21 = vector.extract_strided_slice %20 {offsets = [0, 0], sizes = [512, 128], strides = [1, 1]} : vector<512x384xf32> to vector<512x128xf32>
    %c1_i32_17 = arith.constant 1 : i32
    %22 = tpu.dynamic_rotate %21 by %c1_i32_17 dim 0 : vector<512x128xf32>, i32 -> vector<512x128xf32>
    %23 = vector.extract_strided_slice %20 {offsets = [0, 128], sizes = [512, 128], strides = [1, 1]} : vector<512x384xf32> to vector<512x128xf32>
    %24 = arith.addf %22, %23 : vector<512x128xf32>
    %25 = vector.extract_strided_slice %20 {offsets = [0, 256], sizes = [512, 128], strides = [1, 1]} : vector<512x384xf32> to vector<512x128xf32>
    %c511_i32_18 = arith.constant 511 : i32
    %26 = tpu.dynamic_rotate %25 by %c511_i32_18 dim 0 : vector<512x128xf32>, i32 -> vector<512x128xf32>
    %27 = arith.addf %24, %26 : vector<512x128xf32>
    %28 = arith.addf %14, %27 : vector<512x128xf32>
    %cst_19 = arith.constant dense<0.000000e+00> : vector<512x128xf32>
    %29 = tpu.matmul %17, %1, %cst_19 {dimension_numbers = #tpu.dot_dimension_numbers<[1], [0], [0], [1], [0, 0, 1, 1], [], []>} : vector<512x128xbf16>, vector<128x128xbf16>, vector<512x128xf32> -> vector<512x128xf32>
    %c0_20 = arith.constant 0 : index
    %c2 = arith.constant 2 : index
    %c0_21 = arith.constant 0 : index
    %c0_22 = arith.constant 0 : index
    %30 = vector.load %arg1[%c0_20, %c2, %c0_21, %c0_22] : memref<1x18x32x128xbf16, #tpu.memory_space<vmem>>, vector<1x16x32x128xbf16>
    %31 = vector.shape_cast %30 : vector<1x16x32x128xbf16> to vector<16x32x128xbf16>
    %32 = vector.shape_cast %31 : vector<16x32x128xbf16> to vector<512x128xbf16>
    %c2_23 = arith.constant 2 : index
    %c0_24 = arith.constant 0 : index
    %c0_25 = arith.constant 0 : index
    %33 = vector.load %arg2[%c2_23, %c0_24, %c0_25] : memref<3x128x384xbf16, #tpu.memory_space<vmem>>, vector<1x128x384xbf16>
    %34 = vector.shape_cast %33 : vector<1x128x384xbf16> to vector<128x384xbf16>
    %cst_26 = arith.constant dense<0.000000e+00> : vector<512x384xf32>
    %35 = tpu.matmul %32, %34, %cst_26 {dimension_numbers = #tpu.dot_dimension_numbers<[1], [0], [0], [1], [0, 0, 1, 1], [], []>} : vector<512x128xbf16>, vector<128x384xbf16>, vector<512x384xf32> -> vector<512x384xf32>
    %36 = vector.extract_strided_slice %35 {offsets = [0, 0], sizes = [512, 128], strides = [1, 1]} : vector<512x384xf32> to vector<512x128xf32>
    %c1_i32_27 = arith.constant 1 : i32
    %37 = tpu.dynamic_rotate %36 by %c1_i32_27 dim 0 : vector<512x128xf32>, i32 -> vector<512x128xf32>
    %38 = vector.extract_strided_slice %35 {offsets = [0, 128], sizes = [512, 128], strides = [1, 1]} : vector<512x384xf32> to vector<512x128xf32>
    %39 = arith.addf %37, %38 : vector<512x128xf32>
    %40 = vector.extract_strided_slice %35 {offsets = [0, 256], sizes = [512, 128], strides = [1, 1]} : vector<512x384xf32> to vector<512x128xf32>
    %c511_i32_28 = arith.constant 511 : i32
    %41 = tpu.dynamic_rotate %40 by %c511_i32_28 dim 0 : vector<512x128xf32>, i32 -> vector<512x128xf32>
    %42 = arith.addf %39, %41 : vector<512x128xf32>
    %43 = arith.addf %28, %42 : vector<512x128xf32>
    %44 = vector.shape_cast %43 : vector<512x128xf32> to vector<16x32x128xf32>
    %45 = vector.extract_strided_slice %44 {offsets = [0, 0, 0], sizes = [16, 16, 128], strides = [1, 1, 1]} : vector<16x32x128xf32> to vector<16x16x128xf32>
    %46 = vector.shape_cast %45 : vector<16x16x128xf32> to vector<256x128xf32>
    %c0_29 = arith.constant 0 : index
    %c0_30 = arith.constant 0 : index
    %47 = vector.load %arg6[%c0_29, %c0_30] : memref<1x128xf32, #tpu.memory_space<vmem>>, vector<1x128xf32>
    %c0_31 = arith.constant 0 : index
    %c0_32 = arith.constant 0 : index
    %48 = vector.load %arg7[%c0_31, %c0_32] : memref<1x128xf32, #tpu.memory_space<vmem>>, vector<1x128xf32>
    %c0_33 = arith.constant 0 : index
    %c0_34 = arith.constant 0 : index
    %49 = vector.load %arg8[%c0_33, %c0_34] : memref<1x128xf32, #tpu.memory_space<vmem>>, vector<1x128xf32>
    %50 = vector.broadcast %47 : vector<1x128xf32> to vector<256x128xf32>
    %51 = arith.addf %46, %50 : vector<256x128xf32>
    %cst_35 = arith.constant dense<0.000000e+00> : vector<128xf32>
    %52 = vector.multi_reduction <add>, %51, %cst_35 [0] : vector<256x128xf32> to vector<128xf32>
    %53 = vector.shape_cast %52 : vector<128xf32> to vector<1x128xf32>
    %54 = arith.mulf %51, %51 : vector<256x128xf32>
    %cst_36 = arith.constant dense<0.000000e+00> : vector<128xf32>
    %55 = vector.multi_reduction <add>, %54, %cst_36 [0] : vector<256x128xf32> to vector<128xf32>
    %56 = vector.shape_cast %55 : vector<128xf32> to vector<1x128xf32>
    %cst_37 = arith.constant dense<0.000000e+00> : vector<1x128xf32>
    %57 = tpu.matmul %53, %0, %cst_37 {dimension_numbers = #tpu.dot_dimension_numbers<[1], [0], [0], [1], [0, 0, 1, 1], [], []>} : vector<1x128xf32>, vector<128x128xf32>, vector<1x128xf32> -> vector<1x128xf32>
    %cst_38 = arith.constant dense<0.000000e+00> : vector<1x128xf32>
    %58 = tpu.matmul %56, %0, %cst_38 {dimension_numbers = #tpu.dot_dimension_numbers<[1], [0], [0], [1], [0, 0, 1, 1], [], []>} : vector<1x128xf32>, vector<128x128xf32>, vector<1x128xf32> -> vector<1x128xf32>
    %59 = arith.mulf %57, %57 : vector<1x128xf32>
    %60 = arith.subf %58, %59 : vector<1x128xf32>
    %cst_39 = arith.constant 0.000000e+00 : f32
    %61 = vector.broadcast %cst_39 : f32 to vector<1x128xf32>
    %62 = arith.maximumf %60, %61 : vector<1x128xf32>
    %63 = vector.broadcast %57 : vector<1x128xf32> to vector<256x128xf32>
    %64 = arith.subf %51, %63 : vector<256x128xf32>
    %cst_40 = arith.constant 9.99999974E-6 : f32
    %65 = vector.broadcast %cst_40 : f32 to vector<1x128xf32>
    %66 = arith.addf %62, %65 : vector<1x128xf32>
    %67 = math.rsqrt %66 : vector<1x128xf32>
    %68 = vector.broadcast %67 : vector<1x128xf32> to vector<256x128xf32>
    %69 = arith.mulf %64, %68 : vector<256x128xf32>
    %70 = vector.broadcast %48 : vector<1x128xf32> to vector<256x128xf32>
    %71 = arith.mulf %69, %70 : vector<256x128xf32>
    %72 = vector.broadcast %49 : vector<1x128xf32> to vector<256x128xf32>
    %73 = arith.addf %71, %72 : vector<256x128xf32>
    %74 = arith.negf %73 : vector<256x128xf32>
    %75 = math.exp %74 : vector<256x128xf32>
    %cst_41 = arith.constant 1.000000e+00 : f32
    %76 = vector.broadcast %cst_41 : f32 to vector<256x128xf32>
    %77 = arith.addf %76, %75 : vector<256x128xf32>
    %78 = arith.divf %76, %77 : vector<256x128xf32>
    %79 = arith.mulf %73, %78 : vector<256x128xf32>
    %cst_42 = arith.constant 0.000000e+00 : bf16
    %80 = vector.broadcast %cst_42 : bf16 to vector<1x32x128xbf16>
    %c0_43 = arith.constant 0 : index
    %c0_44 = arith.constant 0 : index
    %c0_45 = arith.constant 0 : index
    %81 = vector.load %arg14[%c0_43, %c0_44, %c0_45] : memref<18x32x128xbf16, #tpu.memory_space<vmem>>, vector<1x32x128xbf16>
    tpu.vector_store %arg14[%c0_43, %c0_44, %c0_45], %80 {strides = array<i32>} : memref<18x32x128xbf16, #tpu.memory_space<vmem>>, vector<1x32x128xbf16>,
    %c17 = arith.constant 17 : index
    %c0_46 = arith.constant 0 : index
    %c0_47 = arith.constant 0 : index
    %82 = vector.load %arg14[%c17, %c0_46, %c0_47] : memref<18x32x128xbf16, #tpu.memory_space<vmem>>, vector<1x32x128xbf16>
    tpu.vector_store %arg14[%c17, %c0_46, %c0_47], %80 {strides = array<i32>} : memref<18x32x128xbf16, #tpu.memory_space<vmem>>, vector<1x32x128xbf16>,
    %cst_48 = arith.constant 0.000000e+00 : bf16
    %83 = vector.broadcast %cst_48 : bf16 to vector<16x16x128xbf16>
    %c1_49 = arith.constant 1 : index
    %c16 = arith.constant 16 : index
    %c0_50 = arith.constant 0 : index
    %84 = vector.load %arg14[%c1_49, %c16, %c0_50] : memref<18x32x128xbf16, #tpu.memory_space<vmem>>, vector<16x16x128xbf16>
    tpu.vector_store %arg14[%c1_49, %c16, %c0_50], %83 {strides = array<i32>} : memref<18x32x128xbf16, #tpu.memory_space<vmem>>, vector<16x16x128xbf16>,
    %85 = arith.truncf %79 : vector<256x128xf32> to vector<256x128xbf16>
    %86 = vector.shape_cast %85 : vector<256x128xbf16> to vector<16x16x128xbf16>
    %c1_51 = arith.constant 1 : index
    %c0_52 = arith.constant 0 : index
    %c0_53 = arith.constant 0 : index
    %87 = vector.load %arg14[%c1_51, %c0_52, %c0_53] : memref<18x32x128xbf16, #tpu.memory_space<vmem>>, vector<16x16x128xbf16>
    tpu.vector_store %arg14[%c1_51, %c0_52, %c0_53], %86 {strides = array<i32>} : memref<18x32x128xbf16, #tpu.memory_space<vmem>>, vector<16x16x128xbf16>,
    %c0_54 = arith.constant 0 : index
    %c0_55 = arith.constant 0 : index
    %c0_56 = arith.constant 0 : index
    %88 = vector.load %arg14[%c0_54, %c0_55, %c0_56] : memref<18x32x128xbf16, #tpu.memory_space<vmem>>, vector<16x32x128xbf16>
    %89 = vector.shape_cast %88 : vector<16x32x128xbf16> to vector<512x128xbf16>
    %c0_57 = arith.constant 0 : index
    %c0_58 = arith.constant 0 : index
    %c0_59 = arith.constant 0 : index
    %90 = vector.load %arg3[%c0_57, %c0_58, %c0_59] : memref<3x128x384xbf16, #tpu.memory_space<vmem>>, vector<1x128x384xbf16>
    %91 = vector.shape_cast %90 : vector<1x128x384xbf16> to vector<128x384xbf16>
    %cst_60 = arith.constant dense<0.000000e+00> : vector<512x384xf32>
    %92 = tpu.matmul %89, %91, %cst_60 {dimension_numbers = #tpu.dot_dimension_numbers<[1], [0], [0], [1], [0, 0, 1, 1], [], []>} : vector<512x128xbf16>, vector<128x384xbf16>, vector<512x384xf32> -> vector<512x384xf32>
    %93 = vector.extract_strided_slice %92 {offsets = [0, 0], sizes = [512, 128], strides = [1, 1]} : vector<512x384xf32> to vector<512x128xf32>
    %c1_i32_61 = arith.constant 1 : i32
    %94 = tpu.dynamic_rotate %93 by %c1_i32_61 dim 0 : vector<512x128xf32>, i32 -> vector<512x128xf32>
    %95 = vector.extract_strided_slice %92 {offsets = [0, 128], sizes = [512, 128], strides = [1, 1]} : vector<512x384xf32> to vector<512x128xf32>
    %96 = arith.addf %94, %95 : vector<512x128xf32>
    %97 = vector.extract_strided_slice %92 {offsets = [0, 256], sizes = [512, 128], strides = [1, 1]} : vector<512x384xf32> to vector<512x128xf32>
    %c511_i32_62 = arith.constant 511 : i32
    %98 = tpu.dynamic_rotate %97 by %c511_i32_62 dim 0 : vector<512x128xf32>, i32 -> vector<512x128xf32>
    %99 = arith.addf %96, %98 : vector<512x128xf32>
    %c1_63 = arith.constant 1 : index
    %c0_64 = arith.constant 0 : index
    %c0_65 = arith.constant 0 : index
    %100 = vector.load %arg14[%c1_63, %c0_64, %c0_65] : memref<18x32x128xbf16, #tpu.memory_space<vmem>>, vector<16x32x128xbf16>
    %101 = vector.shape_cast %100 : vector<16x32x128xbf16> to vector<512x128xbf16>
    %c1_66 = arith.constant 1 : index
    %c0_67 = arith.constant 0 : index
    %c0_68 = arith.constant 0 : index
    %102 = vector.load %arg3[%c1_66, %c0_67, %c0_68] : memref<3x128x384xbf16, #tpu.memory_space<vmem>>, vector<1x128x384xbf16>
    %103 = vector.shape_cast %102 : vector<1x128x384xbf16> to vector<128x384xbf16>
    %cst_69 = arith.constant dense<0.000000e+00> : vector<512x384xf32>
    %104 = tpu.matmul %101, %103, %cst_69 {dimension_numbers = #tpu.dot_dimension_numbers<[1], [0], [0], [1], [0, 0, 1, 1], [], []>} : vector<512x128xbf16>, vector<128x384xbf16>, vector<512x384xf32> -> vector<512x384xf32>
    %105 = vector.extract_strided_slice %104 {offsets = [0, 0], sizes = [512, 128], strides = [1, 1]} : vector<512x384xf32> to vector<512x128xf32>
    %c1_i32_70 = arith.constant 1 : i32
    %106 = tpu.dynamic_rotate %105 by %c1_i32_70 dim 0 : vector<512x128xf32>, i32 -> vector<512x128xf32>
    %107 = vector.extract_strided_slice %104 {offsets = [0, 128], sizes = [512, 128], strides = [1, 1]} : vector<512x384xf32> to vector<512x128xf32>
    %108 = arith.addf %106, %107 : vector<512x128xf32>
    %109 = vector.extract_strided_slice %104 {offsets = [0, 256], sizes = [512, 128], strides = [1, 1]} : vector<512x384xf32> to vector<512x128xf32>
    %c511_i32_71 = arith.constant 511 : i32
    %110 = tpu.dynamic_rotate %109 by %c511_i32_71 dim 0 : vector<512x128xf32>, i32 -> vector<512x128xf32>
    %111 = arith.addf %108, %110 : vector<512x128xf32>
    %112 = arith.addf %99, %111 : vector<512x128xf32>
    %c2_72 = arith.constant 2 : index
    %c0_73 = arith.constant 0 : index
    %c0_74 = arith.constant 0 : index
    %113 = vector.load %arg14[%c2_72, %c0_73, %c0_74] : memref<18x32x128xbf16, #tpu.memory_space<vmem>>, vector<16x32x128xbf16>
    %114 = vector.shape_cast %113 : vector<16x32x128xbf16> to vector<512x128xbf16>
    %c2_75 = arith.constant 2 : index
    %c0_76 = arith.constant 0 : index
    %c0_77 = arith.constant 0 : index
    %115 = vector.load %arg3[%c2_75, %c0_76, %c0_77] : memref<3x128x384xbf16, #tpu.memory_space<vmem>>, vector<1x128x384xbf16>
    %116 = vector.shape_cast %115 : vector<1x128x384xbf16> to vector<128x384xbf16>
    %cst_78 = arith.constant dense<0.000000e+00> : vector<512x384xf32>
    %117 = tpu.matmul %114, %116, %cst_78 {dimension_numbers = #tpu.dot_dimension_numbers<[1], [0], [0], [1], [0, 0, 1, 1], [], []>} : vector<512x128xbf16>, vector<128x384xbf16>, vector<512x384xf32> -> vector<512x384xf32>
    %118 = vector.extract_strided_slice %117 {offsets = [0, 0], sizes = [512, 128], strides = [1, 1]} : vector<512x384xf32> to vector<512x128xf32>
    %c1_i32_79 = arith.constant 1 : i32
    %119 = tpu.dynamic_rotate %118 by %c1_i32_79 dim 0 : vector<512x128xf32>, i32 -> vector<512x128xf32>
    %120 = vector.extract_strided_slice %117 {offsets = [0, 128], sizes = [512, 128], strides = [1, 1]} : vector<512x384xf32> to vector<512x128xf32>
    %121 = arith.addf %119, %120 : vector<512x128xf32>
    %122 = vector.extract_strided_slice %117 {offsets = [0, 256], sizes = [512, 128], strides = [1, 1]} : vector<512x384xf32> to vector<512x128xf32>
    %c511_i32_80 = arith.constant 511 : i32
    %123 = tpu.dynamic_rotate %122 by %c511_i32_80 dim 0 : vector<512x128xf32>, i32 -> vector<512x128xf32>
    %124 = arith.addf %121, %123 : vector<512x128xf32>
    %125 = arith.addf %112, %124 : vector<512x128xf32>
    %126 = vector.shape_cast %125 : vector<512x128xf32> to vector<16x32x128xf32>
    %127 = vector.extract_strided_slice %126 {offsets = [0, 0, 0], sizes = [16, 16, 128], strides = [1, 1, 1]} : vector<16x32x128xf32> to vector<16x16x128xf32>
    %128 = vector.shape_cast %127 : vector<16x16x128xf32> to vector<256x128xf32>
    %c0_81 = arith.constant 0 : index
    %c0_82 = arith.constant 0 : index
    %129 = vector.load %arg9[%c0_81, %c0_82] : memref<1x128xf32, #tpu.memory_space<vmem>>, vector<1x128xf32>
    %c0_83 = arith.constant 0 : index
    %c0_84 = arith.constant 0 : index
    %130 = vector.load %arg10[%c0_83, %c0_84] : memref<1x128xf32, #tpu.memory_space<vmem>>, vector<1x128xf32>
    %c0_85 = arith.constant 0 : index
    %c0_86 = arith.constant 0 : index
    %131 = vector.load %arg11[%c0_85, %c0_86] : memref<1x128xf32, #tpu.memory_space<vmem>>, vector<1x128xf32>
    %132 = vector.broadcast %129 : vector<1x128xf32> to vector<256x128xf32>
    %133 = arith.addf %128, %132 : vector<256x128xf32>
    %cst_87 = arith.constant dense<0.000000e+00> : vector<128xf32>
    %134 = vector.multi_reduction <add>, %133, %cst_87 [0] : vector<256x128xf32> to vector<128xf32>
    %135 = vector.shape_cast %134 : vector<128xf32> to vector<1x128xf32>
    %136 = arith.mulf %133, %133 : vector<256x128xf32>
    %cst_88 = arith.constant dense<0.000000e+00> : vector<128xf32>
    %137 = vector.multi_reduction <add>, %136, %cst_88 [0] : vector<256x128xf32> to vector<128xf32>
    %138 = vector.shape_cast %137 : vector<128xf32> to vector<1x128xf32>
    %cst_89 = arith.constant dense<0.000000e+00> : vector<1x128xf32>
    %139 = tpu.matmul %135, %0, %cst_89 {dimension_numbers = #tpu.dot_dimension_numbers<[1], [0], [0], [1], [0, 0, 1, 1], [], []>} : vector<1x128xf32>, vector<128x128xf32>, vector<1x128xf32> -> vector<1x128xf32>
    %cst_90 = arith.constant dense<0.000000e+00> : vector<1x128xf32>
    %140 = tpu.matmul %138, %0, %cst_90 {dimension_numbers = #tpu.dot_dimension_numbers<[1], [0], [0], [1], [0, 0, 1, 1], [], []>} : vector<1x128xf32>, vector<128x128xf32>, vector<1x128xf32> -> vector<1x128xf32>
    %141 = arith.mulf %139, %139 : vector<1x128xf32>
    %142 = arith.subf %140, %141 : vector<1x128xf32>
    %cst_91 = arith.constant 0.000000e+00 : f32
    %143 = vector.broadcast %cst_91 : f32 to vector<1x128xf32>
    %144 = arith.maximumf %142, %143 : vector<1x128xf32>
    %145 = vector.broadcast %139 : vector<1x128xf32> to vector<256x128xf32>
    %146 = arith.subf %133, %145 : vector<256x128xf32>
    %cst_92 = arith.constant 9.99999974E-6 : f32
    %147 = vector.broadcast %cst_92 : f32 to vector<1x128xf32>
    %148 = arith.addf %144, %147 : vector<1x128xf32>
    %149 = math.rsqrt %148 : vector<1x128xf32>
    %150 = vector.broadcast %149 : vector<1x128xf32> to vector<256x128xf32>
    %151 = arith.mulf %146, %150 : vector<256x128xf32>
    %152 = vector.broadcast %130 : vector<1x128xf32> to vector<256x128xf32>
    %153 = arith.mulf %151, %152 : vector<256x128xf32>
    %154 = vector.broadcast %131 : vector<1x128xf32> to vector<256x128xf32>
    %155 = arith.addf %153, %154 : vector<256x128xf32>
    %156 = arith.negf %155 : vector<256x128xf32>
    %157 = math.exp %156 : vector<256x128xf32>
    %cst_93 = arith.constant 1.000000e+00 : f32
    %158 = vector.broadcast %cst_93 : f32 to vector<256x128xf32>
    %159 = arith.addf %158, %157 : vector<256x128xf32>
    %160 = arith.divf %158, %159 : vector<256x128xf32>
    %161 = arith.mulf %155, %160 : vector<256x128xf32>
    %162 = vector.shape_cast %29 : vector<512x128xf32> to vector<16x32x128xf32>
    %163 = vector.extract_strided_slice %162 {offsets = [0, 0, 0], sizes = [16, 16, 128], strides = [1, 1, 1]} : vector<16x32x128xf32> to vector<16x16x128xf32>
    %164 = vector.shape_cast %163 : vector<16x16x128xf32> to vector<256x128xf32>
    %c0_94 = arith.constant 0 : index
    %c0_95 = arith.constant 0 : index
    %165 = vector.load %arg12[%c0_94, %c0_95] : memref<1x128xf32, #tpu.memory_space<vmem>>, vector<1x128xf32>
    %166 = vector.broadcast %165 : vector<1x128xf32> to vector<256x128xf32>
    %167 = arith.addf %164, %166 : vector<256x128xf32>
    %168 = arith.addf %161, %167 : vector<256x128xf32>
    %c0_96 = arith.constant 0 : index
    %c0_97 = arith.constant 0 : index
    %c0_98 = arith.constant 0 : index
    %169 = vector.load %arg13[%c0_96, %c0_97, %c0_98] : memref<1x256x128xf32, #tpu.memory_space<vmem>>, vector<1x256x128xf32>
    %170 = vector.shape_cast %169 : vector<1x256x128xf32> to vector<256x128xf32>
    %171 = vector.shape_cast %168 : vector<256x128xf32> to vector<1x256x128xf32>
    tpu.vector_store %arg13[%c0_96, %c0_97, %c0_98], %171 {strides = array<i32>} : memref<1x256x128xf32, #tpu.memory_space<vmem>>, vector<1x256x128xf32>,
    return
  }
  func.func @transform_0(%arg0: i32) -> (i32, i32, i32, i32) {
    %c0_i32 = arith.constant 0 : i32
    %c0_i32_0 = arith.constant 0 : i32
    %c0_i32_1 = arith.constant 0 : i32
    %c0_i32_2 = arith.constant 0 : i32
    return %arg0, %c0_i32, %c0_i32_0, %c0_i32_1 : i32, i32, i32, i32
  }
  func.func @transform_1(%arg0: i32) -> (i32, i32, i32) {
    %c0_i32 = arith.constant 0 : i32
    %c0_i32_0 = arith.constant 0 : i32
    %c0_i32_1 = arith.constant 0 : i32
    %c0_i32_2 = arith.constant 0 : i32
    return %c0_i32, %c0_i32_0, %c0_i32_1 : i32, i32, i32
  }
  func.func @transform_2(%arg0: i32) -> (i32, i32, i32) {
    %c0_i32 = arith.constant 0 : i32
    %c0_i32_0 = arith.constant 0 : i32
    %c0_i32_1 = arith.constant 0 : i32
    %c0_i32_2 = arith.constant 0 : i32
    return %c0_i32, %c0_i32_0, %c0_i32_1 : i32, i32, i32
  }
  func.func @transform_3(%arg0: i32) -> (i32, i32) {
    %c0_i32 = arith.constant 0 : i32
    %c0_i32_0 = arith.constant 0 : i32
    %c0_i32_1 = arith.constant 0 : i32
    return %c0_i32, %c0_i32_0 : i32, i32
  }
  func.func @transform_4(%arg0: i32) -> (i32, i32) {
    %c0_i32 = arith.constant 0 : i32
    %c0_i32_0 = arith.constant 0 : i32
    %c0_i32_1 = arith.constant 0 : i32
    return %c0_i32, %c0_i32_0 : i32, i32
  }
  func.func @transform_5(%arg0: i32) -> (i32, i32) {
    %c0_i32 = arith.constant 0 : i32
    %c0_i32_0 = arith.constant 0 : i32
    %c0_i32_1 = arith.constant 0 : i32
    return %c0_i32, %c0_i32_0 : i32, i32
  }
  func.func @transform_6(%arg0: i32) -> (i32, i32) {
    %c0_i32 = arith.constant 0 : i32
    %c0_i32_0 = arith.constant 0 : i32
    %c0_i32_1 = arith.constant 0 : i32
    return %c0_i32, %c0_i32_0 : i32, i32
  }
  func.func @transform_7(%arg0: i32) -> (i32, i32) {
    %c0_i32 = arith.constant 0 : i32
    %c0_i32_0 = arith.constant 0 : i32
    %c0_i32_1 = arith.constant 0 : i32
    return %c0_i32, %c0_i32_0 : i32, i32
  }
  func.func @transform_8(%arg0: i32) -> (i32, i32) {
    %c0_i32 = arith.constant 0 : i32
    %c0_i32_0 = arith.constant 0 : i32
    %c0_i32_1 = arith.constant 0 : i32
    return %c0_i32, %c0_i32_0 : i32, i32
  }
  func.func @transform_9(%arg0: i32) -> (i32, i32) {
    %c0_i32 = arith.constant 0 : i32
    %c0_i32_0 = arith.constant 0 : i32
    %c0_i32_1 = arith.constant 0 : i32
    return %c0_i32, %c0_i32_0 : i32, i32
  }
  func.func @transform_10(%arg0: i32) -> (i32, i32) {
    %c0_i32 = arith.constant 0 : i32
    %c0_i32_0 = arith.constant 0 : i32
    %c0_i32_1 = arith.constant 0 : i32
    return %c0_i32, %c0_i32_0 : i32, i32
  }
  func.func @transform_11(%arg0: i32) -> (i32, i32) {
    %c0_i32 = arith.constant 0 : i32
    %c0_i32_0 = arith.constant 0 : i32
    %c0_i32_1 = arith.constant 0 : i32
    return %c0_i32, %c0_i32_0 : i32, i32
  }
  func.func @transform_12(%arg0: i32) -> (i32, i32, i32) {
    %c0_i32 = arith.constant 0 : i32
    %c0_i32_0 = arith.constant 0 : i32
    %c0_i32_1 = arith.constant 0 : i32
    return %arg0, %c0_i32, %c0_i32_0 : i32, i32, i32
  }
}

</mosaic_0001>

<bundles_post_ra>
// kernel: tpu_custom_call.1
= control target key start
LH: loop header
LB: loop body
LE: loop exit
PB: predicated region body
PF: predicated region fallthrough
CT: control target
= control target key end

     0   :  { %s16174_s0 = inlined_call_operand.hbm [shape: bf16[2,18,32,128], index: 0, kind: input, shape index: {}]   ;;  %s16175_s1 = inlined_call_operand.hbm [shape: bf16[3,128,384], index: 1, kind: input, shape index: {}]   ;;  %s16176_s2 = inlined_call_operand.hbm [shape: bf16[3,128,384], index: 2, kind: input, shape index: {}]   ;;  %s16177_s3 = inlined_call_operand.hbm [shape: bf16[128,128], index: 3, kind: input, shape index: {}]   ;;  %s16178_s4 = inlined_call_operand.hbm [shape: f32[128,128], index: 4, kind: input, shape index: {}]   ;;  %s16179_s5 = inlined_call_operand.vmem [shape: f32[1,128], index: 5, kind: input, shape index: {}]   ;;  %s16180_s6 = inlined_call_operand.vmem [shape: f32[1,128], index: 6, kind: input, shape index: {}]   ;;  %s16181_s7 = inlined_call_operand.vmem [shape: f32[1,128], index: 7, kind: input, shape index: {}]   ;;  %s16182_s8 = inlined_call_operand.vmem [shape: f32[1,128], index: 8, kind: input, shape index: {}]   ;;  %s16183_s9 = inlined_call_operand.vmem [shape: f32[1,128], index: 9, kind: input, shape index: {}]   ;;  %s16184_s10 = inlined_call_operand.vmem [shape: f32[1,128], index: 10, kind: input, shape index: {}]   ;;  %s16185_s11 = inlined_call_operand.vmem [shape: f32[1,128], index: 11, kind: input, shape index: {}]   ;;  %s16186_s12 = inlined_call_operand.hbm [shape: f32[2,256,128], index: 12, kind: output, shape index: {}]  }
   0x1   :  { %16246 = sst [smem:[#allocation74_spill]] %s16175_s1 }
   0x2   :  { %16247 = sst [smem:[#allocation75_spill]] %s16184_s10 }
   0x3   :  { %16248 = sst [smem:[#allocation76_spill]] %s16185_s11 }
   0x4   :  { %16249 = sst [smem:[#allocation77_spill]] %s16186_s12 }
   0x5   :  { %17 = vsyncpa [#allocation4], 0 }
   0x6   :  { %19 = vsyncpa [#allocation4 + $0x1], 0 }
   0x7   :  { %20 = vsyncpa [#allocation7], 0 }
   0x8   :  { %21 = vsyncpa [#allocation10], 0 }
   0x9   :  { %22 = vsyncpa [#allocation5], 0 }
   0xa   :  { %24 = vsyncpa [#allocation5 + $0x1], 0  ;;  %s11800_s21 = smov 0   ;;  %s11802_s22 = smov 0  }
   0xb   :  { %s11804_s23 = smov 0   ;;  %s11806_s24 = smov 0  }
   0xc LB: > { %16250 = sst [smem:[#allocation17_spill]] %s11703_s21  ;;  %s11821_s25 = sadd.s32 4294967295, %s11715_s24   ;;  %s11715_s24 = sphi %s11806_s24, %s16493_s24   ;;  %s11711_s23 = sphi %s11804_s23, %s16492_s23   ;;  %s11707_s22 = sphi %s11802_s22, %s16491_s22   ;;  %s11703_s21 = sphi %s11800_s21, %s16490_s21  }
   0xd   : > { %s9213_s26 = sadd.s32 4294967294, %s11715_s24   ;;  %p50_p0 = scmp.ne.s32.totalorder %s11707_s22, %s11703_s21 }
   0xe   : > { %p16188_p1 = scmp.eq.s32.totalorder %s11821_s25, 0  ;;  %p311_p3 = scmp.eq.s32.totalorder %s9213_s26, 1 }
   0xf   : > { %p9214_p5 = scmp.ge.s32.totalorder %s11715_s24, 1  ;;  %p318_p7 = scmp.lt.s32.totalorder %s11715_s24, 3 }
  0x10   : > { %p11830_p4 = por %p16188_p1, %p50_p0  ;;  %p11835_p6 = por %p311_p3, %p50_p0 }
  0x11   : > { %p11840_p8 = pnand %p9214_p5, %p318_p7  ;;  %s11717_s30 = smov [#allocation6]  }
  0x12   : > { %s16251_s27 = scalar_select %p11830_p4, 1, 0 }
  0x13   : > { %s16252_s28 = scalar_select %p11835_p6, 1, 0 }
  0x14   : > { %s16254_s29 = scalar_select %p11840_p8, 1, 0 }
  0x15   : > { %16253 = sst [smem:[#allocation18_spill]] %s16252_s28  ;;  %s330_s13 = sshll.u32 %s11717_s30, 4  ;;  %s11844_s13 = int_to_ptr.vmem [resolvable:$true] %s330_s13 }
  0x16   : > { %p10863_p9 = pneg %p11840_p8  ;;  %s11718_s15 = smov [#allocation9]  }
  0x17   : > { %s356_s16 = sshll.u32 %s11718_s15, 4  ;;  %s16256_s1 = sld [smem:[#allocation74_spill]]  ;;  %s11855_s16 = int_to_ptr.vmem [resolvable:$true] %s356_s16 }
  0x18   : > { %p11851_p11 = pnand %p10863_p9, %p16188_p1 }
  0x1a   : > { %p11865_p13 = pneg %p11851_p11 }
  0x1d   : > { %s11499_s19 = scalar_lea.hbm %s16256_s1, 9216 }
  0x1e   : > { %p11500_p12 = scmp.ne.s32.totalorder %s16256_s1, %s11499_s19  ;;  %p11506_p5 = scmp.lt.u32.totalorder %s11499_s19, %s16256_s1 }
  0x20   : > { %p11502_p0 = pnand %p11865_p13, %p11500_p12 }
  0x22   : > { %p11503_p3 = pneg %p11502_p0 }
  0x24   : > { %p11508_p7 = pnand %p11506_p5, %p11503_p3 }
  0x26   : > { %11511 = shalt.err (!%p11508_p7)
}
  0x27   : > { %s11512_s17 = scalar_lea.vmem %s11844_s13, 9216  ;;  %p11520_p2 = scmp.lt.s32.totalorder %s11844_s13, %s11844_s13 }
  0x28   : > { %p11513_p9 = scmp.ne.s32.totalorder %s11844_s13, %s11512_s17  ;;  %p11521_p6 = scmp.lt.s32.totalorder %s11512_s17, %s11512_s17 }
  0x2a   : > { %p11515_p10 = pnand %p11513_p9, %p11865_p13  ;;  %p11522_p12 = por %p11521_p6, %p11520_p2 }
  0x2c   : > { %p11516_p1 = pneg %p11515_p10 }
  0x2e   : > { %p11523_p0 = pnand %p11522_p12, %p11516_p1 }
  0x30   : > { %11526 = shalt.err (!%p11523_p0)
}
  0x31   : > { %s16191_s18 = smov 192   ;;  %s16192_s28 = smov 12  }
  0x32   : > { %10866 = dma.hbm_to_vmem [thread:$0]  (!%p11851_p11), %s16256_s1, 9216, %s11844_s13, [#allocation7], %s16191_s18, %s16191_s18, %s16192_s28  }
  0x33   : > { %s11527_s17 = scalar_lea.hbm %s16177_s3, 1024 }
  0x34   : > { %p11528_p1 = scmp.ne.s32.totalorder %s16177_s3, %s11527_s17  ;;  %p11534_p10 = scmp.lt.u32.totalorder %s11527_s17, %s16177_s3 }
  0x36   : > { %p11530_p2 = pnand %p11528_p1, %p11865_p13 }
  0x38   : > { %p11531_p6 = pneg %p11530_p2 }
  0x3a   : > { %p11536_p3 = pnand %p11534_p10, %p11531_p6 }
  0x3c   : > { %11539 = shalt.err (!%p11536_p3)
}
  0x3d   : > { %s11540_s13 = scalar_lea.vmem %s11855_s16, 1024  ;;  %p11548_p12 = scmp.lt.s32.totalorder %s11855_s16, %s11855_s16 }
  0x3e   : > { %p11541_p5 = scmp.ne.s32.totalorder %s11855_s16, %s11540_s13  ;;  %p11549_p0 = scmp.lt.s32.totalorder %s11540_s13, %s11540_s13 }
  0x40   : > { %p11543_p7 = pnand %p11541_p5, %p11865_p13  ;;  %p11550_p1 = por %p11549_p0, %p11548_p12 }
  0x42   : > { %p11544_p9 = pneg %p11543_p7 }
  0x44   : > { %p11551_p2 = pnand %p11550_p1, %p11544_p9 }
  0x46   : > { %11554 = shalt.err (!%p11551_p2)
}
  0x47   : > { %s16195_s12 = smov 64   ;;  %s16196_s10 = smov 4  }
  0x48   : > { %10872 = dma.hbm_to_vmem [thread:$0]  (!%p11851_p11), %s16177_s3, 1024, %s11855_s16, [#allocation10], %s16195_s12, %s16195_s12, %s16196_s10  }
  0x49   : > { %s11723_s19 = smov [#allocation8]   ;;  %s11724_s26 = smov [#allocation11]  }
  0x4a   : > { %s343_s20 = sshll.u32 %s11723_s19, 4  ;;  %s369_s15 = sshll.u32 %s11724_s26, 4  ;;  %s344_s20 = int_to_ptr.vmem [resolvable:$true] %s343_s20  ;;  %s11915_s15 = int_to_ptr.vmem [resolvable:$true] %s369_s15 }
  0x4b   : > { %s11555_s18 = scalar_lea.hbm %s16176_s2, 9216 }
  0x4c   : > { %p11556_p6 = scmp.ne.s32.totalorder %s16176_s2, %s11555_s18  ;;  %p11562_p5 = scmp.lt.u32.totalorder %s11555_s18, %s16176_s2 }
  0x4e   : > { %p11558_p10 = pnand %p11556_p6, %p11865_p13 }
  0x50   : > { %p11559_p3 = pneg %p11558_p10 }
  0x52   : > { %p11564_p7 = pnand %p11562_p5, %p11559_p3 }
  0x54   : > { %11567 = shalt.err (!%p11564_p7)
}
  0x55   : > { %s11568_s21 = scalar_lea.vmem %s344_s20, 9216  ;;  %p11576_p1 = scmp.lt.s32.totalorder %s344_s20, %s344_s20 }
  0x56   : > { %p11569_p9 = scmp.ne.s32.totalorder %s344_s20, %s11568_s21  ;;  %p11577_p2 = scmp.lt.s32.totalorder %s11568_s21, %s11568_s21 }
  0x58   : > { %p11571_p12 = pnand %p11569_p9, %p11865_p13  ;;  %p11578_p4 = por %p11577_p2, %p11576_p1 }
  0x5a   : > { %p11572_p0 = pneg %p11571_p12 }
  0x5c   : > { %p11579_p8 = pnand %p11578_p4, %p11572_p0 }
  0x5e   : > { %11582 = shalt.err (!%p11579_p8)
}
  0x5f   : > { %s16258_s1 = smov 12   ;;  %s16259_s28 = smov 192  }
  0x60   : > { %10869 = dma.hbm_to_vmem [thread:$0]  (!%p11851_p11), %s16176_s2, 9216, %s344_s20, [#allocation7], %s16259_s28, %s16259_s28, %s16258_s1  }
  0x61   : > { %s11583_s13 = scalar_lea.hbm %s16178_s4, 2048 }
  0x62   : > { %p11584_p6 = scmp.ne.s32.totalorder %s16178_s4, %s11583_s13  ;;  %p11590_p10 = scmp.lt.u32.totalorder %s11583_s13, %s16178_s4 }
  0x64   : > { %p11586_p4 = pnand %p11584_p6, %p11865_p13 }
  0x66   : > { %p11587_p8 = pneg %p11586_p4 }
  0x68   : > { %p11592_p3 = pnand %p11590_p10, %p11587_p8 }
  0x6a   : > { %11595 = shalt.err (!%p11592_p3)
}
  0x6b   : > { %s11596_s20 = scalar_lea.vmem %s11915_s15, 2048  ;;  %p11604_p12 = scmp.lt.s32.totalorder %s11915_s15, %s11915_s15 }
  0x6c   : > { %p11597_p5 = scmp.ne.s32.totalorder %s11915_s15, %s11596_s20  ;;  %p11605_p0 = scmp.lt.s32.totalorder %s11596_s20, %s11596_s20 }
  0x6e   : > { %p11599_p7 = pnand %p11597_p5, %p11865_p13  ;;  %p11606_p1 = por %p11605_p0, %p11604_p12 }
  0x70   : > { %p11600_p9 = pneg %p11599_p7 }
  0x72   : > { %p11607_p2 = pnand %p11606_p1, %p11600_p9 }
  0x74   : > { %11610 = shalt.err (!%p11607_p2)
}
  0x75   : > { %s11725_s1 = smov 128   ;;  %s11726_s30 = smov 8  }
  0x76   : > { %10875 = dma.hbm_to_vmem [thread:$0]  (!%p11851_p11), %s16178_s4, 2048, %s11915_s15, [#allocation10], %s11725_s1, %s11725_s1, %s11726_s30  }
  0x77   : > { %s11962_s19 = sadd.s32 1, %s11715_s24   ;;  %s37_s26 = sadd.s32 1, %s11711_s23 }
  0x78   : > { %s34_s18 = ssub.s32 %s11715_s24, %s11962_s19  ;;  %p44_p6 = scmp.ne.s32.totalorder %s11711_s23, %s11707_s22 }
  0x79   : > { %p35_p13 = scmp.eq.s32.totalorder %s34_s18, 0  ;;  %p45_p4 = scmp.eq.s32.totalorder %s11715_s24, 0 }
  0x7a   : > { %p16260_p10 = scmp.eq.s32.totalorder %s11821_s25, 1  ;;  %p10888_p5 = scmp.lt.s32.totalorder %s11715_s24, 2 }
  0x7b   : > { %s11971_s17 = scalar_select %p35_p13, %s11711_s23, %s37_s26  }
  0x7c   : > { %p46_p8 = por %p45_p4, %p44_p6  ;;  %p11975_p3 = por %p16260_p10, %p44_p6 }
  0x7d   : > { %s404_s14 = sand.u32 1, %s11711_s23   ;;  %s10841_s15 = smul.u32 4608, %s11715_s24 }
  0x7e   : > { %s10840_s11 = smul.u32 288, %s404_s14  ;;  %p11982_p11 = pnand %p10888_p5, %p46_p8 }
  0x7f   : > { %s11989_s1 = scalar_lea.hbm %s16174_s0, %s10841_s15  ;;  %s11993_s28 = scalar_lea.sflag [#allocation4], %s404_s14 }
  0x80   : > { %s408_s30 = scalar_lea.vmem [#allocation3], %s10840_s11  ;;  %s11611_s18 = scalar_lea.hbm %s11989_s1, 4608 }
  0x81   : > { %s415_s12 = sshll.u32 %s408_s30, 4  ;;  %p11612_p7 = scmp.ne.s32.totalorder %s11989_s1, %s11611_s18  ;;  %s11991_s12 = int_to_ptr.vmem [resolvable:$true] %s415_s12 }
  0x82   : > { %p11613_p9 = pneg %p11982_p11  ;;  %s11616_s21 = scalar_lea.hbm %s16174_s0, 9216 }
  0x83   : > { %p11617_p1 = scmp.lt.u32.totalorder %s11989_s1, %s16174_s0  ;;  %p11618_p2 = scmp.lt.u32.totalorder %s11616_s21, %s11611_s18 }
  0x84   : > { %p11614_p12 = pnand %p11613_p9, %p11612_p7  ;;  %p11620_p6 = scmp.lt.u32.totalorder %s11611_s18, %s11989_s1 }
  0x85   : > { %p11619_p13 = por %p11618_p2, %p11617_p1 }
  0x86   : > { %p11615_p0 = pneg %p11614_p12 }
  0x87   : > { %p11621_p4 = por %p11620_p6, %p11619_p13 }
  0x89   : > { %p11622_p8 = pnand %p11621_p4, %p11615_p0 }
  0x8b   : > { %11625 = shalt.err (!%p11622_p8)
}
  0x8c   : > { %s11626_s14 = scalar_lea.vmem %s11991_s12, 4608  ;;  %s11727_s11 = smov [#allocation3]  }
  0x8d   : > { %p11627_p10 = scmp.ne.s32.totalorder %s11991_s12, %s11626_s14  ;;  %s11631_s30 = sshll.u32 %s11727_s11, 4  ;;  %s11632_s30 = int_to_ptr.vmem [resolvable:$false] %s11631_s30 }
  0x8e   : > { %s11633_s10 = scalar_lea.vmem %s11632_s30, 9216  ;;  %p11634_p12 = scmp.lt.s32.totalorder %s11991_s12, %s11632_s30 }
  0x8f   : > { %p11629_p5 = pnand %p11627_p10, %p11613_p9  ;;  %p11635_p1 = scmp.lt.s32.totalorder %s11633_s10, %s11626_s14 }
  0x91   : > { %p11630_p7 = pneg %p11629_p5  ;;  %p11636_p2 = por %p11635_p1, %p11634_p12 }
  0x93   : > { %p11637_p13 = pnand %p11636_p2, %p11630_p7 }
  0x95   : > { %11640 = shalt.err (!%p11637_p13)
}
  0x96   : > { %s16263_s18 = smov 4   ;;  %s16264_s26 = smov 64  }
  0x97   : > { %10879 = dma.hbm_to_vmem [thread:$0]  (!%p11982_p11), %s11989_s1, 4608, %s11991_s12, %s11993_s28, %s16264_s26, %s16264_s26, %s16263_s18  }
  0x98   : > { %p16265_p9 = scmp.ne.s32.totalorder %s16254_s29, 0 }
  0x9a   : > { %427 = sbr.rel (%p16265_p9) target bundleno = 2741 (0xab5), region = 68 }
  0xa1   : > { %s12027_s15 = sand.u32 1, %s11707_s22   ;;  %p16266_p0 = scmp.ne.s32.totalorder %s16251_s27, 0 }
  0xa2   : > { %s10842_s21 = smul.u32 288, %s12027_s15  ;;  %s430_s20 = scalar_lea.sflag [#allocation4], %s12027_s15 }
  0xa4   : > { %s12031_s14 = scalar_lea.vmem [#allocation3], %s10842_s21 }
  0xa5   : > { %11686 = dma.done.wait (%p16266_p0), %s430_s20, 4608  }
  0xa6   : > { %11688 = vsyncadd (%p16266_p0), %s430_s20, 4294962688  ;;  %p16267_p11 = scmp.eq.s32.totalorder %s11821_s25, 0 }
  0xa8   : > { %11690 = dma.done.wait (%p16267_p11), [#allocation7], 18432   ;;  %p16268_p6 = pmov %p16267_p11 }
  0xaa   : > { %11692 = vsyncadd (%p16268_p6), [#allocation7], 4294948864  ;;  %p16269_p4 = pmov %p16268_p6 }
  0xac   : > { %11694 = dma.done.wait (%p16269_p4), [#allocation10], 3072   ;;  %p16270_p8 = pmov %p16269_p4 }
  0xad   : > { %v16197_v0 = vmov 0   ;;  %v10942_v1 = vld [vmem:[#allocation6 + $0x4] ss:$12 sps:$4 sm:$0xff]   ;;  %v10944_v2 = vld [vmem:[#allocation6] ss:$12 sps:$4 sm:$0xff]   ;;  %v10967_v19 = vld [vmem:[%s12031_s14 + $0xd8] sm:$0xff]  }
  0xae   : > { %11696 = vsyncadd (%p16270_p8), [#allocation10], 4294964224  ;;  %971 = vmatprep.mubr.bf16.mxu0 %v16197_v0  ;;  %1202 = vmatprep.mubr.bf16.mxu1 %v16197_v0  ;;  %v10945_v3 = vld [vmem:[#allocation6 + $0x1c] ss:$12 sps:$4 sm:$0xff]   ;;  %v10947_v4 = vld [vmem:[#allocation6 + $0x18] ss:$12 sps:$4 sm:$0xff]  }
  0xaf   : > { %939 = vmatprep.subr.bf16.mxu0 %v10942_v1  ;;  %10824 = vmatprep.subr.bf16.mxu1 %v10942_v1  ;;  %v10948_v5 = vld [vmem:[#allocation6 + $0x34] ss:$12 sps:$4 sm:$0xff]   ;;  %v10950_v6 = vld [vmem:[#allocation6 + $0x30] ss:$12 sps:$4 sm:$0xff]   ;;  %v10951_v7 = vld [vmem:[#allocation6 + $0x4c] ss:$12 sps:$4 sm:$0xff]  }
  0xb0   : > { %940 = vmatpush1.bf16.msra.mxu0 %v10944_v2  ;;  %10832 = vmatpush1.bf16.msra.mxu1 %v10944_v2  ;;  %v10953_v8 = vld [vmem:[#allocation6 + $0x48] ss:$12 sps:$4 sm:$0xff]   ;;  %v10954_v9 = vld [vmem:[#allocation6 + $0x64] ss:$12 sps:$4 sm:$0xff]   ;;  %v10956_v10 = vld [vmem:[#allocation6 + $0x60] ss:$12 sps:$4 sm:$0xff]  }
  0xb1   : > { %941 = vmatprep.subr.bf16.mxu0 %v10945_v3  ;;  %10825 = vmatprep.subr.bf16.mxu1 %v10945_v3  ;;  %v10957_v11 = vld [vmem:[#allocation6 + $0x7c] ss:$12 sps:$4 sm:$0xff]   ;;  %v10959_v12 = vld [vmem:[#allocation6 + $0x78] ss:$12 sps:$4 sm:$0xff]   ;;  %v10960_v13 = vld [vmem:[#allocation6 + $0x94] ss:$12 sps:$4 sm:$0xff]  }
  0xb2   : > { %v10962_v14 = vld [vmem:[#allocation6 + $0x90] ss:$12 sps:$4 sm:$0xff]   ;;  %v10963_v15 = vld [vmem:[#allocation6 + $0xac] ss:$12 sps:$4 sm:$0xff]   ;;  %v10965_v16 = vld [vmem:[#allocation6 + $0xa8] ss:$12 sps:$4 sm:$0xff]  }
  0xb3   : > { %v10968_v17 = vld [vmem:[#allocation6 + $0x8] ss:$12 sps:$4 sm:$0xff]   ;;  %v10966_v18 = vld [vmem:[%s12031_s14] sm:$0xff]   ;;  %v10973_v24 = vld [vmem:[#allocation6 + $0x50] ss:$12 sps:$4 sm:$0xff]   ;;  %vm11730_vm2 = vmmov 0  }
  0xb4   : > { %942 = vmatpush1.bf16.msra.mxu0 %v10947_v4  ;;  %10833 = vmatpush1.bf16.msra.mxu1 %v10947_v4  ;;  %v10969_v20 = vld [vmem:[#allocation6 + $0x20] ss:$12 sps:$4 sm:$0xff]   ;;  %v10972_v21 = vld [vmem:[#allocation6 + $0x38] ss:$12 sps:$4 sm:$0xff]   ;;  %v10976_v25 = vld [vmem:[#allocation6 + $0x68] ss:$12 sps:$4 sm:$0xff]  }
  0xb5   : > { %943 = vmatprep.subr.bf16.mxu0 %v10948_v5  ;;  %10826 = vmatprep.subr.bf16.mxu1 %v10948_v5  ;;  %v10970_v22 = vld [vmem:[%s12031_s14 + $0x8] sm:$0xff]   ;;  %v12053_v23 = vld [vmem:[%s12031_s14 + $0xe0] sm:$0xff]   ;;  %v10974_v26 = vld [vmem:[%s12031_s14 + $0x10] sm:$0xff]   ;;  %s16413_s20 = sld [smem:[#allocation75_spill]]  ;;  %s16430_s29 = sld [smem:[#allocation76_spill]] }
  0xb6   : > { %v12060_v27 = vld [vmem:[%s12031_s14 + $0xe8] sm:$0xff]   ;;  %v10980_v29 = vld [vmem:[#allocation6 + $0x98] ss:$12 sps:$4 sm:$0xff]   ;;  %v12067_v31 = vld [vmem:[%s12031_s14 + $0xf0] sm:$0xff]   ;;  %s9226_s16 = sshll.u32 %s12027_s15, 8  ;;  %s9679_s12 = sshll.u32 %s11821_s25, 12 }
  0xb7   : > { %v10979_v28 = vld [vmem:[#allocation6 + $0x80] ss:$12 sps:$4 sm:$0xff]   ;;  %v10977_v30 = vld [vmem:[%s12031_s14 + $0x18] sm:$0xff]   ;;  %v11026_v33 = vld [vmem:[#allocation6 + $0xc8] ss:$12 sps:$4 sm:$0xff]   ;;  %s16007_s1 = scalar_lea.vmem [#allocation12], %s9226_s16 }
  0xb8   : > { %944 = vmatpush1.bf16.msra.mxu0 %v10950_v6  ;;  %10834 = vmatpush1.bf16.msra.mxu1 %v10950_v6  ;;  %v10983_v32 = vld [vmem:[#allocation6 + $0xb0] ss:$12 sps:$4 sm:$0xff]   ;;  %v10981_v34 = vld [vmem:[%s12031_s14 + $0x20] sm:$0xff]   ;;  %v10984_v38 = vld [vmem:[%s12031_s14 + $0x28] sm:$0xff]   ;;  %s9102_s28 = sshll.u32 %s16007_s1, 4  ;;  %s16485_s30 = sld [smem:[#allocation77_spill]]  ;;  %s16127_s28 = int_to_ptr.vmem [resolvable:$true] %s9102_s28 }
  0xb9   : > { %945 = vmatprep.subr.bf16.mxu0 %v10951_v7  ;;  %10827 = vmatprep.subr.bf16.mxu1 %v10951_v7  ;;  %v10987_v35 = vld [vmem:[#allocation6 + $0xc4] ss:$12 sps:$4 sm:$0xff]   ;;  %v12074_v36 = vld [vmem:[%s12031_s14 + $0xf8] sm:$0xff]   ;;  %v11031_v37 = vld [vmem:[#allocation6 + $0xe0] ss:$12 sps:$4 sm:$0xff]   ;;  %s9089_s18 = scalar_lea.sflag [#allocation5], %s12027_s15 }
  0xba   : > { %v10985_v39 = vld [vmem:[#allocation6 + $0xc0] ss:$12 sps:$4 sm:$0xff]   ;;  %v10992_v40 = vld [vmem:[#allocation6 + $0xdc] ss:$12 sps:$4 sm:$0xff]   ;;  %v10990_v41 = vld [vmem:[#allocation6 + $0xd8] ss:$12 sps:$4 sm:$0xff]  }
  0xbb   : > { %v10997_v42 = vld [vmem:[#allocation6 + $0xf4] ss:$12 sps:$4 sm:$0xff]   ;;  %v10995_v44 = vld [vmem:[#allocation6 + $0xf0] ss:$12 sps:$4 sm:$0xff]   ;;  %v11004_v45 = vld [vmem:[#allocation6 + $0x10c] ss:$12 sps:$4 sm:$0xff]  }
  0xbc   : > { %946 = vmatpush1.bf16.msra.mxu0 %v10953_v8  ;;  %10835 = vmatpush1.bf16.msra.mxu1 %v10953_v8  ;;  %v10988_v43 = vld [vmem:[%s12031_s14 + $0x30] sm:$0xff]   ;;  %v10989_v48 = vld [vmem:[%s12031_s14 + $0x38] sm:$0xff]   ;;  %v11009_v49 = vld [vmem:[#allocation6 + $0x120] ss:$12 sps:$4 sm:$0xff]   ;;  %s11641_s26 = scalar_lea.vmem %s16127_s28, 4096  ;;  %s11732_s21 = smov [#allocation12]  }
  0xbd   : > { %947 = vmatprep.subr.bf16.mxu0 %v10954_v9  ;;  %10828 = vmatprep.subr.bf16.mxu1 %v10954_v9  ;;  %v11002_v46 = vld [vmem:[#allocation6 + $0x108] ss:$12 sps:$4 sm:$0xff]   ;;  %v11011_v47 = vld [vmem:[#allocation6 + $0x124] ss:$12 sps:$4 sm:$0xff]   ;;  %v11030_v55 = vld [vmem:[#allocation6 + $0x16c] ss:$12 sps:$4 sm:$0xff]   ;;  %p11642_p10 = scmp.ne.s32.totalorder %s16127_s28, %s11641_s26 }
  0xbe   : > { %v11018_v50 = vld [vmem:[#allocation6 + $0x13c] ss:$12 sps:$4 sm:$0xff]   ;;  %v11016_v51 = vld [vmem:[#allocation6 + $0x138] ss:$12 sps:$4 sm:$0xff]   ;;  %v11025_v52 = vld [vmem:[#allocation6 + $0x154] ss:$12 sps:$4 sm:$0xff]   ;;  %s16125_s10 = scalar_lea.hbm %s16485_s30, %s9679_s12 }
  0xbf   : > { %v10993_v53 = vld [vmem:[%s12031_s14 + $0x40] sm:$0xff]   ;;  %v11023_v54 = vld [vmem:[#allocation6 + $0x150] ss:$12 sps:$4 sm:$0xff]   ;;  %v11028_v57 = vld [vmem:[#allocation6 + $0x168] ss:$12 sps:$4 sm:$0xff]   ;;  %p11643_p5 = pnand %p11642_p10, %p11975_p3 }
  0xc0   : > { %948 = vmatpush1.bf16.msra.mxu0 %v10956_v10  ;;  %10836 = vmatpush1.bf16.msra.mxu1 %v10956_v10  ;;  %v11039_v56 = vld [vmem:[#allocation6 + $0xf8] ss:$12 sps:$4 sm:$0xff]   ;;  %v11040_v58 = vld [vmem:[#allocation6 + $0x110] ss:$12 sps:$4 sm:$0xff]   ;;  %v10994_v60 = vld [vmem:[%s12031_s14 + $0x48] sm:$0xff]  }
  0xc1   : > { %949 = vmatprep.subr.bf16.mxu0 %v10957_v11  ;;  %10829 = vmatprep.subr.bf16.mxu1 %v10957_v11  ;;  %v11035_v59 = vld [vmem:[#allocation6 + $0x184] ss:$12 sps:$4 sm:$0xff]   ;;  %v11042_v62 = vld [vmem:[#allocation6 + $0x128] ss:$12 sps:$4 sm:$0xff]   ;;  %v11046_v63 = vld [vmem:[#allocation6 + $0x140] ss:$12 sps:$4 sm:$0xff]   ;;  %p11644_p7 = pneg %p11643_p5 }
  0xc2   : > { %v10998_v61 = vld [vmem:[%s12031_s14 + $0x50] sm:$0xff]   ;;  %v10999_v1 = vld [vmem:[%s12031_s14 + $0x58] sm:$0xff]   ;;  %v11000_v2 = vld [vmem:[%s12031_s14 + $0x60] sm:$0xff]  }
  0xc3   : > { %v11048_v3 = vld [vmem:[#allocation6 + $0x158] ss:$12 sps:$4 sm:$0xff]   ;;  %v11001_v4 = vld [vmem:[%s12031_s14 + $0x68] sm:$0xff]   ;;  %v11049_v5 = vld [vmem:[#allocation6 + $0x170] ss:$12 sps:$4 sm:$0xff]  }
  0xc4   : > { %950 = vmatpush1.bf16.msra.mxu0 %v10959_v12  ;;  %10837 = vmatpush1.bf16.msra.mxu1 %v10959_v12  ;;  %v11005_v6 = vld [vmem:[%s12031_s14 + $0x70] sm:$0xff]   ;;  %v11006_v7 = vld [vmem:[%s12031_s14 + $0x78] sm:$0xff]   ;;  %v11007_v8 = vld [vmem:[%s12031_s14 + $0x80] sm:$0xff]  }
  0xc5   : > { %951 = vmatprep.subr.bf16.mxu0 %v10960_v13  ;;  %10830 = vmatprep.subr.bf16.mxu1 %v10960_v13  ;;  %v11008_v9 = vld [vmem:[%s12031_s14 + $0x88] sm:$0xff]   ;;  %v11012_v10 = vld [vmem:[%s12031_s14 + $0x90] sm:$0xff]   ;;  %v11013_v11 = vld [vmem:[%s12031_s14 + $0x98] sm:$0xff]  }
  0xc6   : > { %v11014_v12 = vld [vmem:[%s12031_s14 + $0xa0] sm:$0xff]   ;;  %v11015_v13 = vld [vmem:[%s12031_s14 + $0xa8] sm:$0xff]  }
  0xc8   : > { %952 = vmatpush1.bf16.msra.mxu0 %v10962_v14  ;;  %10838 = vmatpush1.bf16.msra.mxu1 %v10962_v14  ;;  %v11019_v14 = vld [vmem:[%s12031_s14 + $0xb0] sm:$0xff]  }
  0xc9   : > { %953 = vmatprep.subr.bf16.mxu0 %v10963_v15  ;;  %10831 = vmatprep.subr.bf16.mxu1 %v10963_v15  ;;  %v11020_v15 = vld [vmem:[%s12031_s14 + $0xb8] sm:$0xff]  }
  0xcc   : > { %954 = vmatpush1.bf16.msra.mxu0 %v10965_v16  ;;  %10839 = vmatpush1.bf16.msra.mxu1 %v10965_v16  ;;  %v11021_v16 = vld [vmem:[%s12031_s14 + $0xc0] sm:$0xff]  }
  0xcd   : > { %10028 = vmatprep.subr.bf16.mxu1 %v10968_v17  ;;  %10108 = vmatprep.subr.bf16.mxu0 %v11026_v33 }
  0xcf   : > { %972 = vmatmul.mubr.bf16.vlgmr.msra.gmra.mrb[0].mxu0 %v10966_v18  ;;  %1203 = vmatmul.mubr.bf16.vlgmr.msra.gmra.mrb[0].mxu1 %v10967_v19  ;;  %v11498_v19 = vld [vmem:[%s12031_s14 + $0xd8] sm:$0xff]  }
  0xd0   : > { %10029 = vmatpush3.bf16.msra.mxu1 %v10968_v17  ;;  %981 = vmatprep.mubr.bf16.mxu0 %v16197_v0  ;;  %v11022_v17 = vld [vmem:[%s12031_s14 + $0xc8] sm:$0xff]  }
  0xd1   : > { %10030 = vmatprep.subr.bf16.mxu1 %v10969_v20  ;;  %1209 = vmatprep.mubr.bf16.mxu1 %v16197_v0 }
  0xd2   : > { %10109 = vmatpush3.bf16.msra.mxu0 %v11026_v33  ;;  %v12144_v33 = vld [vmem:[%s12031_s14 + $0x28] sm:$0xff]  }
  0xd3   : > { %10110 = vmatprep.subr.bf16.mxu0 %v11031_v37 }
  0xd4   : > { %10031 = vmatpush3.bf16.msra.mxu1 %v10969_v20  ;;  %v12126_v20 = vld [vmem:[%s12031_s14 + $0x10] sm:$0xff]  }
  0xd5   : > { %10032 = vmatprep.subr.bf16.mxu1 %v10972_v21 }
  0xd6   : > { %10111 = vmatpush3.bf16.msra.mxu0 %v11031_v37  ;;  %v12156_v37 = vld [vmem:[%s12031_s14 + $0x38] sm:$0xff]  }
  0xd7   : > { %982 = vmatmul.mubr.bf16.gmra.mrb[4].mxu0 %v10970_v22  ;;  %1210 = vmatmul.mubr.bf16.gmra.mrb[4].mxu1 %v12053_v23 }
  0xd8   : > { %10033 = vmatpush3.bf16.msra.mxu1 %v10972_v21  ;;  %988 = vmatprep.mubr.bf16.mxu0 %v16197_v0  ;;  %v11033_v21 = vld [vmem:[#allocation6 + $0x180] ss:$12 sps:$4 sm:$0xff]  }
  0xd9   : > { %1219 = vmatprep.mubr.bf16.mxu1 %v16197_v0  ;;  %10034 = vmatprep.subr.bf16.mxu1 %v10973_v24 }
  0xda   : > { %10112 = vmatprep.subr.bf16.mxu0 %v11039_v56 }
  0xdb   : > { %10113 = vmatpush3.bf16.msra.mxu0 %v11039_v56  ;;  %v11083_v56 = vld [vmem:[#allocation9 + $0x10] sm:$0xff]  }
  0xdc   : > { %10035 = vmatpush3.bf16.msra.mxu1 %v10973_v24  ;;  %10114 = vmatprep.subr.bf16.mxu0 %v11040_v58  ;;  %v11055_v24 = vld [vmem:[#allocation6 + $0x1b4] ss:$12 sps:$4 sm:$0xff]  }
  0xdd   : > { %10036 = vmatprep.subr.bf16.mxu1 %v10976_v25 }
  0xdf   : > { %989 = vmatmul.mubr.bf16.gmra.mrb[8].mxu0 %v10974_v26  ;;  %1220 = vmatmul.mubr.bf16.gmra.mrb[8].mxu1 %v12060_v27 }
  0xe0   : > { %10037 = vmatpush3.bf16.msra.mxu1 %v10976_v25  ;;  %998 = vmatprep.mubr.bf16.mxu0 %v16197_v0  ;;  %v12132_v25 = vld [vmem:[%s12031_s14 + $0x18] sm:$0xff]  }
  0xe1   : > { %1226 = vmatprep.mubr.bf16.mxu1 %v16197_v0  ;;  %10038 = vmatprep.subr.bf16.mxu1 %v10979_v28 }
  0xe2   : > { %10115 = vmatpush3.bf16.msra.mxu0 %v11040_v58 }
  0xe3   : > { %10116 = vmatprep.subr.bf16.mxu0 %v11042_v62 }
  0xe4   : > { %10039 = vmatpush3.bf16.msra.mxu1 %v10979_v28  ;;  %v11061_v28 = vld [vmem:[#allocation6 + $0x1c8] ss:$12 sps:$4 sm:$0xff]  }
  0xe5   : > { %10040 = vmatprep.subr.bf16.mxu1 %v10980_v29 }
  0xe6   : > { %10117 = vmatpush3.bf16.msra.mxu0 %v11042_v62 }
  0xe7   : > { %999 = vmatmul.mubr.bf16.gmra.mrb[12].mxu0 %v10977_v30  ;;  %1227 = vmatmul.mubr.bf16.gmra.mrb[12].mxu1 %v12067_v31 }
  0xe8   : > { %1005 = vmatprep.mubr.bf16.mxu0 %v16197_v0  ;;  %1236 = vmatprep.mubr.bf16.mxu1 %v16197_v0 }
  0xe9   : > { %10041 = vmatpush3.bf16.msra.mxu1 %v10980_v29  ;;  %10118 = vmatprep.subr.bf16.mxu0 %v11046_v63  ;;  %v11074_v29 = vld [vmem:[#allocation6 + $0x1e4] ss:$12 sps:$4 sm:$0xff]  }
  0xea   : > { %10042 = vmatprep.subr.bf16.mxu1 %v10983_v32  ;;  %10119 = vmatpush3.bf16.msra.mxu0 %v11046_v63 }
  0xeb   : > { %10120 = vmatprep.subr.bf16.mxu0 %v11048_v3 }
  0xed   : > { %10043 = vmatpush3.bf16.msra.mxu1 %v10983_v32  ;;  %v11079_v32 = vld [vmem:[#allocation9] sm:$0xff]  }
  0xee   : > { %2163 = vmatprep.subr.bf16.mxu1 %v10987_v35  ;;  %10121 = vmatpush3.bf16.msra.mxu0 %v11048_v3  ;;  %v11088_v35 = vld [vmem:[#allocation6 + $0x1f8] ss:$12 sps:$4 sm:$0xff]  }
  0xef   : > { %1006 = vmatmul.mubr.bf16.gmra.mrb[16].mxu0 %v10981_v34  ;;  %1237 = vmatmul.mubr.bf16.gmra.mrb[16].mxu1 %v12074_v36 }
  0xf0   : > { %1015 = vmatprep.mubr.bf16.mxu0 %v16197_v0  ;;  %10044 = vmatprep.mubr.bf16.mxu1 %v10966_v18  ;;  %v12112_v18 = vld [vmem:[%s12031_s14 + $0xd0] sm:$0xff]  }
  0xf1   : > { %10122 = vmatprep.subr.bf16.mxu0 %v11049_v5 }
  0xf2   : > { %10123 = vmatpush3.bf16.msra.mxu0 %v11049_v5 }
  0xf3   : > { %10188 = vmatprep.subr.bf16.mxu0 %v11079_v32 }
  0xf7   : > { %1016 = vmatmul.mubr.bf16.gmra.mrb[20].mxu0 %v10984_v38  ;;  %10045 = vmatmul.mubr.bf16.vlgmr.msra.gmra.mrb[20].mxu1 %v10970_v22  ;;  %v11045_v22 = vld [vmem:[#allocation6 + $0x19c] ss:$12 sps:$4 sm:$0xff]  }
  0xf8   : > { %2164 = vmatpush1.bf16.msra.mxu1 %v10985_v39  ;;  %1022 = vmatprep.mubr.bf16.mxu0 %v16197_v0 }
  0xf9   : > { %10048 = vmatprep.mubr.bf16.mxu1 %v10974_v26  ;;  %2165 = vmatprep.subr.bf16.mxu1 %v10992_v40  ;;  %v11053_v26 = vld [vmem:[#allocation6 + $0x1b0] ss:$12 sps:$4 sm:$0xff]  }
  0xfc   : > { %2166 = vmatpush1.bf16.msra.mxu1 %v10990_v41 }
  0xfd   : > { %2167 = vmatprep.subr.bf16.mxu1 %v10997_v42 }
  0xff   : > { %1023 = vmatmul.mubr.bf16.gmra.mrb[24].mxu0 %v10988_v43  ;;  %10049 = vmatmul.mubr.bf16.gmra.mrb[24].mxu1 %v10977_v30  ;;  %v12138_v30 = vld [vmem:[%s12031_s14 + $0x20] sm:$0xff]  }
 0x100   : > { %1032 = vmatprep.mubr.bf16.mxu0 %v16197_v0  ;;  %10052 = vmatprep.mubr.bf16.mxu1 %v10981_v34  ;;  %v12150_v34 = vld [vmem:[%s12031_s14 + $0x30] sm:$0xff]  }
 0x101   : > { %2168 = vmatpush1.bf16.msra.mxu1 %v10995_v44 }
 0x102   : > { %2169 = vmatprep.subr.bf16.mxu1 %v11004_v45 }
 0x105   : > { %2170 = vmatpush1.bf16.msra.mxu1 %v11002_v46 }
 0x106   : > { %2171 = vmatprep.subr.bf16.mxu1 %v11011_v47 }
 0x107   : > { %1033 = vmatmul.mubr.bf16.gmra.mrb[28].mxu0 %v10989_v48  ;;  %10053 = vmatmul.mubr.bf16.gmra.mrb[28].mxu1 %v10984_v38  ;;  %v1565_v38 = vlaneseq }
 0x108   : > { %1039 = vmatprep.mubr.bf16.mxu0 %v16197_v0  ;;  %10056 = vmatprep.mubr.bf16.mxu1 %v10988_v43  ;;  %v12167_v43 = vld [vmem:[%s12031_s14 + $0x40] sm:$0xff]  }
 0x109   : > { %2172 = vmatpush1.bf16.msra.mxu1 %v11009_v49  ;;  %v12162_v40 = vshrl.u32 %v1565_v38, 7 }
 0x10a   : > { %2173 = vmatprep.subr.bf16.mxu1 %v11018_v50 }
 0x10b   : > { %vm1567_vm0 = vcmp.lt.s32.totalorder %v12162_v40, 1  ;;  %vm1680_vm1 = vcmp.lt.s32.totalorder %v12162_v40, 7 }
 0x10d   : > { %2174 = vmatpush1.bf16.msra.mxu1 %v11016_v51  ;;  %v11080_v51 = vld [vmem:[#allocation9 + $0x8] sm:$0xff]  }
 0x10e   : > { %2175 = vmatprep.subr.bf16.mxu1 %v11025_v52 }
 0x10f   : > { %1040 = vmatmul.mubr.bf16.gmra.mrb[32].mxu0 %v10993_v53  ;;  %10057 = vmatmul.mubr.bf16.gmra.mrb[32].mxu1 %v10989_v48 }
 0x110   : > { %1049 = vmatprep.mubr.bf16.mxu0 %v16197_v0  ;;  %10060 = vmatprep.mubr.bf16.mxu1 %v10993_v53 }
 0x111   : > { %2176 = vmatpush1.bf16.msra.mxu1 %v11023_v54 }
 0x112   : > { %2177 = vmatprep.subr.bf16.mxu1 %v11030_v55 }
 0x115   : > { %2178 = vmatpush1.bf16.msra.mxu1 %v11028_v57 }
 0x116   : > { %3720 = vmatprep.subr.bf16.mxu1 %v11035_v59 }
 0x117   : > { %1050 = vmatmul.mubr.bf16.gmra.mrb[36].mxu0 %v10994_v60  ;;  %10061 = vmatmul.mubr.bf16.gmra.mrb[36].mxu1 %v10994_v60  ;;  %v12184_v60 = vld [vmem:[%s12031_s14 + $0x48] sm:$0xff]  }
 0x118   : > { %1056 = vmatprep.mubr.bf16.mxu0 %v16197_v0  ;;  %10064 = vmatprep.mubr.bf16.mxu1 %v10998_v61 }
 0x11f   : > { %1057 = vmatmul.mubr.bf16.gmra.mrb[40].mxu0 %v10998_v61  ;;  %10065 = vmatmul.mubr.bf16.gmra.mrb[40].mxu1 %v10999_v1 }
 0x120   : > { %1066 = vmatprep.mubr.bf16.mxu0 %v16197_v0  ;;  %10068 = vmatprep.mubr.bf16.mxu1 %v11000_v2 }
 0x127   : > { %1067 = vmatmul.mubr.bf16.gmra.mrb[44].mxu0 %v10999_v1  ;;  %10069 = vmatmul.mubr.bf16.gmra.mrb[44].mxu1 %v11001_v4 }
 0x128   : > { %1073 = vmatprep.mubr.bf16.mxu0 %v16197_v0  ;;  %10072 = vmatprep.mubr.bf16.mxu1 %v11005_v6 }
 0x12f   : > { %1074 = vmatmul.mubr.bf16.gmra.mrb[48].mxu0 %v11000_v2  ;;  %10073 = vmatmul.mubr.bf16.gmra.mrb[48].mxu1 %v11006_v7 }
 0x130   : > { %1083 = vmatprep.mubr.bf16.mxu0 %v16197_v0  ;;  %10076 = vmatprep.mubr.bf16.mxu1 %v11007_v8 }
 0x137   : > { %1084 = vmatmul.mubr.bf16.gmra.mrb[52].mxu0 %v11001_v4  ;;  %10077 = vmatmul.mubr.bf16.gmra.mrb[52].mxu1 %v11008_v9 }
 0x138   : > { %1090 = vmatprep.mubr.bf16.mxu0 %v16197_v0  ;;  %10080 = vmatprep.mubr.bf16.mxu1 %v11012_v10 }
 0x13f   : > { %1091 = vmatmul.mubr.bf16.gmra.mrb[56].mxu0 %v11005_v6  ;;  %10081 = vmatmul.mubr.bf16.gmra.mrb[56].mxu1 %v11013_v11  ;;  %v11084_v6 = vld [vmem:[#allocation9 + $0x18] sm:$0xff]  }
 0x140   : > { %1100 = vmatprep.mubr.bf16.mxu0 %v16197_v0  ;;  %10084 = vmatprep.mubr.bf16.mxu1 %v11014_v12 }
 0x147   : > { %1101 = vmatmul.mubr.bf16.gmra.mrb[60].mxu0 %v11006_v7  ;;  %10085 = vmatmul.mubr.bf16.gmra.mrb[60].mxu1 %v11015_v13 }
 0x148   : > { %1107 = vmatprep.mubr.bf16.mxu0 %v16197_v0  ;;  %10088 = vmatprep.mubr.bf16.mxu1 %v11019_v14 }
 0x14f   : > { %1108 = vmatmul.mubr.bf16.gmra.mrb[64].mxu0 %v11007_v8  ;;  %10089 = vmatmul.mubr.bf16.gmra.mrb[64].mxu1 %v11020_v15 }
 0x150   : > { %1117 = vmatprep.mubr.bf16.mxu0 %v16197_v0  ;;  %10092 = vmatprep.mubr.bf16.mxu1 %v11021_v16 }
 0x157   : > { %1118 = vmatmul.mubr.bf16.gmra.mrb[68].mxu0 %v11008_v9  ;;  %10093 = vmatmul.mubr.bf16.gmra.mrb[68].mxu1 %v11022_v17 }
 0x158   : > { %1124 = vmatprep.mubr.bf16.mxu0 %v16197_v0  ;;  %10096 = vmatprep.mubr.bf16.mxu1 %v12112_v18 }
 0x15f   : > { %1125 = vmatmul.mubr.bf16.gmra.mrb[72].mxu0 %v11012_v10  ;;  %10097 = vmatmul.mubr.bf16.gmra.mrb[72].mxu1 %v11498_v19 }
 0x160   : > { %1134 = vmatprep.mubr.bf16.mxu0 %v16197_v0  ;;  %10100 = vmatprep.mubr.bf16.mxu1 %v12053_v23  ;;  %v11043_v23 = vld [vmem:[#allocation6 + $0x198] ss:$12 sps:$4 sm:$0xff]  }
 0x167   : > { %1135 = vmatmul.mubr.bf16.gmra.mrb[76].mxu0 %v11013_v11  ;;  %10101 = vmatmul.mubr.bf16.gmra.mrb[76].mxu1 %v12060_v27  ;;  %v11063_v27 = vld [vmem:[#allocation6 + $0x1cc] ss:$12 sps:$4 sm:$0xff]  }
 0x168   : > { %1141 = vmatprep.mubr.bf16.mxu0 %v16197_v0  ;;  %10104 = vmatprep.mubr.bf16.mxu1 %v12067_v31  ;;  %v11072_v31 = vld [vmem:[#allocation6 + $0x1e0] ss:$12 sps:$4 sm:$0xff]  }
 0x16f   : > { %1142 = vmatmul.mubr.bf16.gmra.mrb[80].mxu0 %v11014_v12  ;;  %10105 = vmatmul.mubr.bf16.gmra.mrb[80].mxu1 %v12074_v36  ;;  %v11090_v36 = vld [vmem:[#allocation6 + $0x1fc] ss:$12 sps:$4 sm:$0xff]   ;;  %v11087_v12 = vld [vmem:[#allocation9 + $0x20] sm:$0xff]  }
 0x170   : > { %1151 = vmatprep.mubr.bf16.mxu0 %v16197_v0  ;;  %2195 = vmatprep.mubr.bf16.mxu1 %v16197_v0 }
 0x177   : > { %1152 = vmatmul.mubr.bf16.gmra.mrb[84].mxu0 %v11015_v13  ;;  %2196 = vmatmul.mubr.bf16.vlgmr.msra.gmra.mrb[84].mxu1 %v12126_v20 }
 0x178   : > { %3721 = vmatpush1.bf16.msra.mxu1 %v11033_v21  ;;  %1158 = vmatprep.mubr.bf16.mxu0 %v16197_v0 }
 0x179   : > { %2205 = vmatprep.mubr.bf16.mxu1 %v16197_v0  ;;  %3722 = vmatprep.subr.bf16.mxu1 %v11045_v22 }
 0x17c   : > { %3723 = vmatpush1.bf16.msra.mxu1 %v11043_v23 }
 0x17d   : > { %3724 = vmatprep.subr.bf16.mxu1 %v11055_v24 }
 0x17f   : > { %1159 = vmatmul.mubr.bf16.gmra.mrb[88].mxu0 %v11019_v14  ;;  %2206 = vmatmul.mubr.bf16.gmra.mrb[88].mxu1 %v12132_v25  ;;  %v12199_v14 = vld [vmem:[%s12031_s14 + $0x50] sm:$0xff]  }
 0x180   : > { %1168 = vmatprep.mubr.bf16.mxu0 %v16197_v0  ;;  %2212 = vmatprep.mubr.bf16.mxu1 %v16197_v0 }
 0x181   : > { %3725 = vmatpush1.bf16.msra.mxu1 %v11053_v26  ;;  %v11091_v26 = vld [vmem:[#allocation9 + $0x28] sm:$0xff]  }
 0x182   : > { %3726 = vmatprep.subr.bf16.mxu1 %v11063_v27 }
 0x185   : > { %3727 = vmatpush1.bf16.msra.mxu1 %v11061_v28 }
 0x186   : > { %3728 = vmatprep.subr.bf16.mxu1 %v11074_v29  ;;  %v11094_v29 = vld [vmem:[#allocation9 + $0x30] sm:$0xff]  }
 0x187   : > { %1169 = vmatmul.mubr.bf16.gmra.mrb[92].mxu0 %v11020_v15  ;;  %2213 = vmatmul.mubr.bf16.gmra.mrb[92].mxu1 %v12138_v30 }
 0x188   : > { %1175 = vmatprep.mubr.bf16.mxu0 %v16197_v0  ;;  %2222 = vmatprep.mubr.bf16.mxu1 %v16197_v0 }
 0x189   : > { %3729 = vmatpush1.bf16.msra.mxu1 %v11072_v31 }
 0x18a   : > { %3730 = vmatprep.subr.bf16.mxu1 %v11090_v36  ;;  %v11098_v36 = vld [vmem:[#allocation6 + $0x214] ss:$12 sps:$4 sm:$0xff]  }
 0x18d   : > { %3731 = vmatpush1.bf16.msra.mxu1 %v11088_v35  ;;  %v11096_v35 = vld [vmem:[#allocation6 + $0x210] ss:$12 sps:$4 sm:$0xff]  }
 0x18e   : > { %3732 = vmatprep.subr.bf16.mxu1 %v11098_v36 }
 0x18f   : > { %1176 = vmatmul.mubr.bf16.gmra.mrb[96].mxu0 %v11021_v16  ;;  %2223 = vmatmul.mubr.bf16.gmra.mrb[96].mxu1 %v12144_v33 }
 0x190   : > { %1185 = vmatprep.mubr.bf16.mxu0 %v16197_v0  ;;  %2229 = vmatprep.mubr.bf16.mxu1 %v16197_v0 }
 0x191   : > { %3733 = vmatpush1.bf16.msra.mxu1 %v11096_v35 }
 0x197   : > { %1186 = vmatmul.mubr.bf16.gmra.mrb[100].mxu0 %v11022_v17  ;;  %2230 = vmatmul.mubr.bf16.gmra.mrb[100].mxu1 %v12150_v34 }
 0x198   : > { %1192 = vmatprep.mubr.bf16.mxu0 %v16197_v0  ;;  %2239 = vmatprep.mubr.bf16.mxu1 %v16197_v0 }
 0x19f   : > { %1193 = vmatmul.mubr.bf16.gmra.mrb[104].mxu0 %v12112_v18  ;;  %2240 = vmatmul.mubr.bf16.gmra.mrb[104].mxu1 %v12156_v37 }
 0x1a0   : > { %2246 = vmatprep.mubr.bf16.mxu1 %v16197_v0  ;;  %10124 = vmatprep.mubr.bf16.mxu0 %v12126_v20 }
 0x1a2   : > { %v1204_v39 = vpop.f32.mrb[0].mxu1  ;;  %v12164_v41 = vpop.f32.mrb[0].mxu0 }
 0x1a3   : > { %v1205_v42 = vpop.f32.mrb[1].mxu1  ;;  %v12169_v44 = vpop.f32.mrb[1].mxu0  ;;  %v1517_v48 = vrot.slane %v12164_v41, 7 }
 0x1a4   : > { %v1206_v45 = vpop.f32.mrb[2].mxu1  ;;  %v977_v46 = vpop.f32.mrb[2].mxu0 }
 0x1a5   : > { %v1208_v47 = vpop.f32.mrb[3].mxu1  ;;  %v1518_v49 = vrot.slane %v977_v46, 7  ;;  %v979_v50 = vpop.f32.mrb[3].mxu0  ;;  %v1558_v57 = vrot.slane %v1206_v45, 7  ;;  %v12214_v45 = vld [vmem:[%s12031_s14 + $0x58] sm:$0xff]  }
 0x1a7   : > { %2247 = vmatmul.mubr.bf16.gmra.mrb[108].mxu1 %v12167_v43  ;;  %10125 = vmatmul.mubr.bf16.vlgmr.msra.gmra.mrb[108].mxu0 %v12132_v25  ;;  %v1598_v52 = vsel %vm1567_vm0, %v1517_v48, %v1518_v49 }
 0x1a8   : > { %2256 = vmatprep.mubr.bf16.mxu1 %v16197_v0  ;;  %10128 = vmatprep.mubr.bf16.mxu0 %v12138_v30  ;;  %v12181_v53 = vadd.f32 %v1598_v52, %v979_v50 }
 0x1a9   : > { %10189 = vmatpush3.bf16.msra.mxu0 %v11079_v32 }
 0x1aa   : > { %v1211_v54 = vpop.f32.mrb[4].mxu1  ;;  %v983_v55 = vpop.f32.mrb[4].mxu0  ;;  %10190 = vmatprep.subr.bf16.mxu0 %v11080_v51 }
 0x1ab   : > { %v1559_v58 = vrot.slane %v1211_v54, 7  ;;  %v1213_v59 = vpop.f32.mrb[5].mxu1  ;;  %v984_v61 = vpop.f32.mrb[5].mxu0 }
 0x1ac   : > { %v1215_v62 = vpop.f32.mrb[6].mxu1  ;;  %v985_v63 = vpop.f32.mrb[6].mxu0 }
 0x1ad   : > { %v1571_v1 = vsel %vm1567_vm0, %v1558_v57, %v1559_v58  ;;  %v1560_v2 = vrot.slane %v1215_v62, 7  ;;  %v1217_v3 = vpop.f32.mrb[7].mxu1  ;;  %v987_v4 = vpop.f32.mrb[7].mxu0  ;;  %10191 = vmatpush3.bf16.msra.mxu0 %v11080_v51  ;;  %v1519_v9 = vrot.slane %v985_v63, 7 }
 0x1ae   : > { %v12188_v5 = vadd.f32 %v1571_v1, %v1213_v59  ;;  %10192 = vmatprep.subr.bf16.mxu0 %v11083_v56  ;;  %v12229_v1 = vld [vmem:[%s12031_s14 + $0x60] sm:$0xff]  }
 0x1af   : > { %v1570_v7 = vsel %vm1567_vm0, %v1559_v58, %v1560_v2  ;;  %2257 = vmatmul.mubr.bf16.gmra.mrb[112].mxu1 %v12184_v60  ;;  %10129 = vmatmul.mubr.bf16.gmra.mrb[112].mxu0 %v12144_v33 }
 0x1b0   : > { %v12194_v8 = vadd.f32 %v1570_v7, %v1217_v3  ;;  %2263 = vmatprep.mubr.bf16.mxu1 %v16197_v0  ;;  %10132 = vmatprep.mubr.bf16.mxu0 %v12150_v34 }
 0x1b1   : > { %10193 = vmatpush3.bf16.msra.mxu0 %v11083_v56  ;;  %v11095_v56 = vld [vmem:[#allocation9 + $0x38] sm:$0xff]  }
 0x1b2   : > { %v1221_v10 = vpop.f32.mrb[8].mxu1  ;;  %v990_v11 = vpop.f32.mrb[8].mxu0  ;;  %10194 = vmatprep.subr.bf16.mxu0 %v11084_v6 }
 0x1b3   : > { %v1222_v13 = vpop.f32.mrb[9].mxu1  ;;  %v1520_v15 = vrot.slane %v990_v11, 7  ;;  %v992_v16 = vpop.f32.mrb[9].mxu0 }
 0x1b4   : > { %v1223_v17 = vpop.f32.mrb[10].mxu1  ;;  %v994_v18 = vpop.f32.mrb[10].mxu0 }
 0x1b5   : > { %v1225_v19 = vpop.f32.mrb[11].mxu1  ;;  %v1597_v21 = vsel %vm1567_vm0, %v1519_v9, %v1520_v15  ;;  %v1521_v22 = vrot.slane %v994_v18, 7  ;;  %v996_v23 = vpop.f32.mrb[11].mxu0  ;;  %10195 = vmatpush3.bf16.msra.mxu0 %v11084_v6  ;;  %v1561_v38 = vrot.slane %v1223_v17, 7 }
 0x1b6   : > { %v12203_v24 = vadd.f32 %v1597_v21, %v992_v16  ;;  %10196 = vmatprep.subr.bf16.mxu0 %v11087_v12 }
 0x1b7   : > { %2264 = vmatmul.mubr.bf16.gmra.mrb[116].mxu1 %v12199_v14  ;;  %10133 = vmatmul.mubr.bf16.gmra.mrb[116].mxu0 %v12156_v37  ;;  %v1596_v27 = vsel %vm1567_vm0, %v1520_v15, %v1521_v22  ;;  %v12249_v22 = vld [vmem:[%s12031_s14 + $0x68] sm:$0xff]  }
 0x1b8   : > { %2273 = vmatprep.mubr.bf16.mxu1 %v16197_v0  ;;  %10136 = vmatprep.mubr.bf16.mxu0 %v12167_v43  ;;  %v12211_v28 = vadd.f32 %v1596_v27, %v996_v23 }
 0x1b9   : > { %10197 = vmatpush3.bf16.msra.mxu0 %v11087_v12 }
 0x1ba   : > { %v1228_v31 = vpop.f32.mrb[12].mxu1  ;;  %v1000_v32 = vpop.f32.mrb[12].mxu0  ;;  %10198 = vmatprep.subr.bf16.mxu0 %v11091_v26 }
 0x1bb   : > { %v1562_v39 = vrot.slane %v1228_v31, 7  ;;  %v1230_v42 = vpop.f32.mrb[13].mxu1  ;;  %v1001_v46 = vpop.f32.mrb[13].mxu0 }
 0x1bc   : > { %v1232_v47 = vpop.f32.mrb[14].mxu1  ;;  %v1002_v49 = vpop.f32.mrb[14].mxu0 }
 0x1bd   : > { %v1569_v50 = vsel %vm1567_vm0, %v1561_v38, %v1562_v39  ;;  %v1563_v51 = vrot.slane %v1232_v47, 7  ;;  %v1234_v52 = vpop.f32.mrb[15].mxu1  ;;  %v1004_v54 = vpop.f32.mrb[15].mxu0  ;;  %10199 = vmatpush3.bf16.msra.mxu0 %v11091_v26  ;;  %v1522_v59 = vrot.slane %v1002_v49, 7  ;;  %v12252_v26 = vld [vmem:[%s12031_s14 + $0x70] sm:$0xff]  }
 0x1be   : > { %v12218_v55 = vadd.f32 %v1569_v50, %v1230_v42  ;;  %10200 = vmatprep.subr.bf16.mxu0 %v11094_v29 }
 0x1bf   : > { %v1568_v57 = vsel %vm1567_vm0, %v1562_v39, %v1563_v51  ;;  %2274 = vmatmul.mubr.bf16.gmra.mrb[120].mxu1 %v12214_v45  ;;  %10137 = vmatmul.mubr.bf16.gmra.mrb[120].mxu0 %v12184_v60  ;;  %v12269_v51 = vld [vmem:[%s12031_s14 + $0x78] sm:$0xff]  }
 0x1c0   : > { %v12224_v58 = vadd.f32 %v1568_v57, %v1234_v52  ;;  %2280 = vmatprep.mubr.bf16.mxu1 %v16197_v0  ;;  %10140 = vmatprep.mubr.bf16.mxu0 %v12199_v14  ;;  %v12272_v57 = vld [vmem:[%s12031_s14 + $0x80] sm:$0xff]  }
 0x1c1   : > { %10201 = vmatpush3.bf16.msra.mxu0 %v11094_v29 }
 0x1c2   : > { %v1238_v61 = vpop.f32.mrb[16].mxu1  ;;  %v1007_v62 = vpop.f32.mrb[16].mxu0  ;;  %10202 = vmatprep.subr.bf16.mxu0 %v11095_v56 }
 0x1c3   : > { %v1239_v63 = vpop.f32.mrb[17].mxu1  ;;  %v1523_v2 = vrot.slane %v1007_v62, 7  ;;  %v1009_v3 = vpop.f32.mrb[17].mxu0 }
 0x1c4   : > { %v1240_v4 = vpop.f32.mrb[18].mxu1  ;;  %v1011_v6 = vpop.f32.mrb[18].mxu0 }
 0x1c5   : > { %v1564_v7 = vrot.slane %v1240_v4, 7  ;;  %v1242_v9 = vpop.f32.mrb[19].mxu1  ;;  %v1595_v10 = vsel %vm1567_vm0, %v1522_v59, %v1523_v2  ;;  %v1524_v11 = vrot.slane %v1011_v6, 7  ;;  %v1013_v12 = vpop.f32.mrb[19].mxu0  ;;  %10203 = vmatpush3.bf16.msra.mxu0 %v11095_v56 }
 0x1c6   : > { %v12233_v13 = vadd.f32 %v1595_v10, %v1009_v3 }
 0x1c7   : > { %v1599_v15 = vsel %vm1567_vm0, %v1564_v7, %v1517_v48  ;;  %2281 = vmatmul.mubr.bf16.gmra.mrb[124].mxu1 %v12229_v1  ;;  %10141 = vmatmul.mubr.bf16.gmra.mrb[124].mxu0 %v12214_v45  ;;  %v1594_v16 = vsel %vm1567_vm0, %v1523_v2, %v1524_v11 }
 0x1c8   : > { %v1600_v17 = vadd.f32 %v1599_v15, %v12169_v44  ;;  %2290 = vmatprep.mubr.bf16.mxu1 %v16197_v0  ;;  %10144 = vmatprep.mubr.bf16.mxu0 %v12229_v1  ;;  %v12246_v18 = vadd.f32 %v1594_v16, %v1013_v12 }
 0x1ca   : > { %v10046_v19 = vpop.f32.mrb[20].mxu1  ;;  %v1017_v41 = vpop.f32.mrb[20].mxu0 }
 0x1cb   : > { %v1278_v21 = vpop.f32.mrb[21].mxu1  ;;  %v1018_v48 = vpop.f32.mrb[21].mxu0  ;;  %v1634_v31 = vrot.slane %v10046_v19, 1  ;;  %v11099_v19 = vld [vmem:[#allocation6 + $0x228] ss:$12 sps:$4 sm:$0xff]  }
 0x1cc   : > { %v10047_v23 = vpop.f32.mrb[22].mxu1  ;;  %v1019_v27 = vpop.f32.mrb[22].mxu0  ;;  %v1632_v32 = vrot.slane %v1278_v21, 1  ;;  %v11101_v41 = vld [vmem:[#allocation6 + $0x22c] ss:$12 sps:$4 sm:$0xff]  }
 0x1cd   : > { %v1281_v29 = vpop.f32.mrb[23].mxu1  ;;  %v1021_v44 = vpop.f32.mrb[23].mxu0  ;;  %v1525_v46 = vrot.slane %v1019_v27, 7  ;;  %v12293_v48 = vld [vmem:[%s12031_s14 + $0x88] sm:$0xff]   ;;  %3734 = vmatprep.subr.bf16.mxu1 %v11101_v41 }
 0x1ce   : > { %v1633_v35 = vrot.slane %v1281_v29, 1  ;;  %v12296_v29 = vld [vmem:[%s12031_s14 + $0x90] sm:$0xff]   ;;  %3735 = vmatpush1.bf16.msra.mxu1 %v11099_v19 }
 0x1cf   : > { %2291 = vmatmul.mubr.bf16.gmra.mrb[128].mxu1 %v12249_v22  ;;  %10145 = vmatmul.mubr.bf16.gmra.mrb[128].mxu0 %v12249_v22 }
 0x1d0   : > { %v1711_v36 = vsel %vm1680_vm1, %v1633_v35, %v1634_v31  ;;  %v1712_v38 = vsel %vm1680_vm1, %v1632_v32, %v1633_v35  ;;  %2297 = vmatprep.mubr.bf16.mxu1 %v16197_v0  ;;  %10148 = vmatprep.mubr.bf16.mxu0 %v12252_v26 }
 0x1d1   : > { %v12263_v39 = vadd.f32 %v1712_v38, %v1600_v17  ;;  %v12266_v42 = vadd.f32 %v1711_v36, %v12181_v53 }
 0x1d2   : > { %v10050_v47 = vpop.f32.mrb[24].mxu1  ;;  %v1024_v49 = vpop.f32.mrb[24].mxu0 }
 0x1d3   : > { %16271 = vst [vmem:[#allocation19_spill] sm:$0xff] %v12263_v39  ;;  %v1293_v50 = vpop.f32.mrb[25].mxu1  ;;  %v1526_v52 = vrot.slane %v1024_v49, 7  ;;  %v1026_v54 = vpop.f32.mrb[25].mxu0  ;;  %v1637_v53 = vrot.slane %v10050_v47, 1 }
 0x1d4   : > { %v10051_v56 = vpop.f32.mrb[26].mxu1  ;;  %v1028_v59 = vpop.f32.mrb[26].mxu0  ;;  %v1635_v3 = vrot.slane %v1293_v50, 1 }
 0x1d5   : > { %v1296_v61 = vpop.f32.mrb[27].mxu1  ;;  %v1593_v62 = vsel %vm1567_vm0, %v1525_v46, %v1526_v52  ;;  %v1527_v63 = vrot.slane %v1028_v59, 7  ;;  %v1030_v2 = vpop.f32.mrb[27].mxu0  ;;  %v12313_v56 = vld [vmem:[%s12031_s14 + $0x98] sm:$0xff]  }
 0x1d6   : > { %v1636_v4 = vrot.slane %v1296_v61, 1  ;;  %v1606_v6 = vadd.f32 %v1593_v62, %v1026_v54 }
 0x1d7   : > { %2298 = vmatmul.mubr.bf16.gmra.mrb[132].mxu1 %v12252_v26  ;;  %10149 = vmatmul.mubr.bf16.gmra.mrb[132].mxu0 %v12269_v51  ;;  %v1592_v7 = vsel %vm1567_vm0, %v1526_v52, %v1527_v63 }
 0x1d8   : > { %v1709_v9 = vsel %vm1680_vm1, %v1636_v4, %v1637_v53  ;;  %v1710_v10 = vsel %vm1680_vm1, %v1635_v3, %v1636_v4  ;;  %2307 = vmatprep.mubr.bf16.mxu1 %v16197_v0  ;;  %10152 = vmatprep.mubr.bf16.mxu0 %v12272_v57  ;;  %v1607_v11 = vadd.f32 %v1592_v7, %v1030_v2  ;;  %v12316_v2 = vld [vmem:[%s12031_s14 + $0xa0] sm:$0xff]  }
 0x1d9   : > { %v12287_v12 = vadd.f32 %v1710_v10, %v12203_v24  ;;  %v12290_v15 = vadd.f32 %v1709_v9, %v12211_v28 }
 0x1da   : > { %v10054_v16 = vpop.f32.mrb[28].mxu1  ;;  %v1034_v17 = vpop.f32.mrb[28].mxu0 }
 0x1db   : > { %16272 = vst [vmem:[#allocation20_spill] sm:$0xff] %v12287_v12  ;;  %16273 = vst [vmem:[#allocation21_spill] sm:$0xff] %v12290_v15  ;;  %v1308_v21 = vpop.f32.mrb[29].mxu1  ;;  %v1035_v23 = vpop.f32.mrb[29].mxu0  ;;  %v1640_v24 = vrot.slane %v10054_v16, 1 }
 0x1dc   : > { %v10055_v27 = vpop.f32.mrb[30].mxu1  ;;  %v1036_v44 = vpop.f32.mrb[30].mxu0  ;;  %v1638_v28 = vrot.slane %v1308_v21, 1  ;;  %v11106_v12 = vld [vmem:[#allocation6 + $0x1a0] ss:$12 sps:$4 sm:$0xff]  }
 0x1dd   : > { %v1311_v31 = vpop.f32.mrb[31].mxu1  ;;  %v1038_v32 = vpop.f32.mrb[31].mxu0  ;;  %v1528_v49 = vrot.slane %v1036_v44, 7 }
 0x1de   : > { %v1639_v35 = vrot.slane %v1311_v31, 1 }
 0x1df   : > { %2308 = vmatmul.mubr.bf16.gmra.mrb[136].mxu1 %v12269_v51  ;;  %10153 = vmatmul.mubr.bf16.gmra.mrb[136].mxu0 %v12293_v48 }
 0x1e0   : > { %v1707_v36 = vsel %vm1680_vm1, %v1639_v35, %v1640_v24  ;;  %v1708_v38 = vsel %vm1680_vm1, %v1638_v28, %v1639_v35  ;;  %2314 = vmatprep.mubr.bf16.mxu1 %v16197_v0  ;;  %10156 = vmatprep.mubr.bf16.mxu0 %v12296_v29  ;;  %v12335_v24 = vld [vmem:[%s12031_s14 + $0xa8] sm:$0xff]  }
 0x1e1   : > { %v12307_v46 = vadd.f32 %v1708_v38, %v12233_v13  ;;  %v12310_v47 = vadd.f32 %v1707_v36, %v12246_v18  ;;  %v12338_v36 = vld [vmem:[%s12031_s14 + $0xb0] sm:$0xff]  }
 0x1e2   : > { %v10058_v50 = vpop.f32.mrb[32].mxu1  ;;  %v1041_v52 = vpop.f32.mrb[32].mxu0 }
 0x1e3   : > { %16274 = vst [vmem:[#allocation22_spill] sm:$0xff] %v12307_v46  ;;  %16275 = vst [vmem:[#allocation23_spill] sm:$0xff] %v12310_v47  ;;  %v1323_v54 = vpop.f32.mrb[33].mxu1  ;;  %v1529_v59 = vrot.slane %v1041_v52, 7  ;;  %v1043_v61 = vpop.f32.mrb[33].mxu0  ;;  %v1643_v18 = vrot.slane %v10058_v50, 1 }
 0x1e4   : > { %v10059_v62 = vpop.f32.mrb[34].mxu1  ;;  %v1045_v63 = vpop.f32.mrb[34].mxu0  ;;  %v1641_v7 = vrot.slane %v1323_v54, 1 }
 0x1e5   : > { %v1326_v53 = vpop.f32.mrb[35].mxu1  ;;  %v1591_v13 = vsel %vm1567_vm0, %v1528_v49, %v1529_v59  ;;  %v1530_v3 = vrot.slane %v1045_v63, 7  ;;  %v1047_v4 = vpop.f32.mrb[35].mxu0 }
 0x1e6   : > { %v1642_v9 = vrot.slane %v1326_v53, 1  ;;  %v1608_v10 = vadd.f32 %v1591_v13, %v1043_v61 }
 0x1e7   : > { %2315 = vmatmul.mubr.bf16.gmra.mrb[140].mxu1 %v12272_v57  ;;  %10157 = vmatmul.mubr.bf16.gmra.mrb[140].mxu0 %v12313_v56  ;;  %v1590_v16 = vsel %vm1567_vm0, %v1529_v59, %v1530_v3 }
 0x1e8   : > { %v1705_v17 = vsel %vm1680_vm1, %v1642_v9, %v1643_v18  ;;  %v1706_v19 = vsel %vm1680_vm1, %v1641_v7, %v1642_v9  ;;  %v1609_v41 = vadd.f32 %v1590_v16, %v1047_v4  ;;  %2324 = vmatprep.mubr.bf16.mxu1 %v16197_v0  ;;  %10160 = vmatprep.mubr.bf16.mxu0 %v12316_v2  ;;  %v12353_v18 = vld [vmem:[%s12031_s14 + $0xb8] sm:$0xff]   ;;  %v12356_v16 = vld [vmem:[%s12031_s14 + $0xc0] sm:$0xff]  }
 0x1e9   : > { %v12330_v21 = vadd.f32 %v1706_v19, %v1606_v6  ;;  %v12332_v23 = vadd.f32 %v1705_v17, %v1607_v11 }
 0x1ea   : > { %v10062_v27 = vpop.f32.mrb[36].mxu1  ;;  %v1051_v44 = vpop.f32.mrb[36].mxu0 }
 0x1eb   : > { %16276 = vst [vmem:[#allocation24_spill] sm:$0xff] %v12330_v21  ;;  %16277 = vst [vmem:[#allocation25_spill] sm:$0xff] %v12332_v23  ;;  %v1338_v31 = vpop.f32.mrb[37].mxu1  ;;  %v1052_v32 = vpop.f32.mrb[37].mxu0  ;;  %v1646_v50 = vrot.slane %v10062_v27, 1 }
 0x1ec   : > { %v10063_v28 = vpop.f32.mrb[38].mxu1  ;;  %v1053_v35 = vpop.f32.mrb[38].mxu0  ;;  %v1644_v52 = vrot.slane %v1338_v31, 1 }
 0x1ed   : > { %v1341_v38 = vpop.f32.mrb[39].mxu1  ;;  %v1055_v49 = vpop.f32.mrb[39].mxu0  ;;  %v1531_v62 = vrot.slane %v1053_v35, 7 }
 0x1ee   : > { %v1645_v54 = vrot.slane %v1341_v38, 1 }
 0x1ef   : > { %2325 = vmatmul.mubr.bf16.gmra.mrb[144].mxu1 %v12293_v48  ;;  %10161 = vmatmul.mubr.bf16.gmra.mrb[144].mxu0 %v12335_v24 }
 0x1f0   : > { %v1703_v6 = vsel %vm1680_vm1, %v1645_v54, %v1646_v50  ;;  %v1704_v11 = vsel %vm1680_vm1, %v1644_v52, %v1645_v54  ;;  %2331 = vmatprep.mubr.bf16.mxu1 %v16197_v0  ;;  %10164 = vmatprep.mubr.bf16.mxu0 %v12338_v36 }
 0x1f1   : > { %v12348_v59 = vadd.f32 %v1704_v11, %v1608_v10  ;;  %v12350_v61 = vadd.f32 %v1703_v6, %v1609_v41 }
 0x1f2   : > { %v1058_v63 = vpop.f32.mrb[40].mxu0  ;;  %v10066_v53 = vpop.f32.mrb[40].mxu1 }
 0x1f3   : > { %16278 = vst [vmem:[#allocation26_spill] sm:$0xff] %v12348_v59  ;;  %16279 = vst [vmem:[#allocation27_spill] sm:$0xff] %v12350_v61  ;;  %v1532_v13 = vrot.slane %v1058_v63, 7  ;;  %v1060_v3 = vpop.f32.mrb[41].mxu0  ;;  %v1353_v4 = vpop.f32.mrb[41].mxu1  ;;  %v1649_v41 = vrot.slane %v10066_v53, 1 }
 0x1f4   : > { %v1062_v7 = vpop.f32.mrb[42].mxu0  ;;  %v10067_v9 = vpop.f32.mrb[42].mxu1  ;;  %v1647_v31 = vrot.slane %v1353_v4, 1  ;;  %v12375_v63 = vld [vmem:[%s12031_s14 + $0xc8] sm:$0xff]  }
 0x1f5   : > { %v1589_v17 = vsel %vm1567_vm0, %v1531_v62, %v1532_v13  ;;  %v1533_v19 = vrot.slane %v1062_v7, 7  ;;  %v1356_v10 = vpop.f32.mrb[43].mxu1  ;;  %v1064_v27 = vpop.f32.mrb[43].mxu0 }
 0x1f6   : > { %v1610_v44 = vadd.f32 %v1589_v17, %v1060_v3  ;;  %v1648_v32 = vrot.slane %v1356_v10, 1  ;;  %v12378_v3 = vld [vmem:[%s12031_s14 + $0xd0] sm:$0xff]  }
 0x1f7   : > { %v1588_v28 = vsel %vm1567_vm0, %v1532_v13, %v1533_v19  ;;  %2332 = vmatmul.mubr.bf16.gmra.mrb[148].mxu1 %v12296_v29  ;;  %10165 = vmatmul.mubr.bf16.gmra.mrb[148].mxu0 %v12353_v18 }
 0x1f8   : > { %v1702_v35 = vsel %vm1680_vm1, %v1647_v31, %v1648_v32  ;;  %v1611_v38 = vadd.f32 %v1588_v28, %v1064_v27  ;;  %v1701_v49 = vsel %vm1680_vm1, %v1648_v32, %v1649_v41  ;;  %2341 = vmatprep.mubr.bf16.mxu1 %v16197_v0  ;;  %10168 = vmatprep.mubr.bf16.mxu0 %v12356_v16 }
 0x1f9   : > { %v12370_v50 = vadd.f32 %v1702_v35, %v1610_v44 }
 0x1fa   : > { %v12372_v52 = vadd.f32 %v1701_v49, %v1611_v38  ;;  %v10070_v54 = vpop.f32.mrb[44].mxu1  ;;  %v1068_v6 = vpop.f32.mrb[44].mxu0  ;;  %v12389_v38 = vld [vmem:[%s12031_s14 + $0xd8] sm:$0xff]  }
 0x1fb   : > { %16280 = vst [vmem:[#allocation28_spill] sm:$0xff] %v12370_v50  ;;  %v1368_v11 = vpop.f32.mrb[45].mxu1  ;;  %v1069_v62 = vpop.f32.mrb[45].mxu0  ;;  %v1652_v9 = vrot.slane %v10070_v54, 1  ;;  %v12392_v6 = vld [vmem:[%s12031_s14 + $0xe0] sm:$0xff]  }
 0x1fc   : > { %16281 = vst [vmem:[#allocation29_spill] sm:$0xff] %v12372_v52  ;;  %v10071_v53 = vpop.f32.mrb[46].mxu1  ;;  %v1070_v13 = vpop.f32.mrb[46].mxu0  ;;  %v1650_v17 = vrot.slane %v1368_v11, 1  ;;  %v12435_v52 = vld [vmem:[%s12031_s14 + $0x100] sm:$0xff]  }
 0x1fd   : > { %v1371_v4 = vpop.f32.mrb[47].mxu1  ;;  %v1072_v7 = vpop.f32.mrb[47].mxu0  ;;  %v1534_v41 = vrot.slane %v1070_v13, 7 }
 0x1fe   : > { %v1651_v19 = vrot.slane %v1371_v4, 1 }
 0x1ff   : > { %2342 = vmatmul.mubr.bf16.gmra.mrb[152].mxu1 %v12313_v56  ;;  %10169 = vmatmul.mubr.bf16.gmra.mrb[152].mxu0 %v12375_v63 }
 0x200   : > { %v1700_v10 = vsel %vm1680_vm1, %v1650_v17, %v1651_v19  ;;  %2348 = vmatprep.mubr.bf16.mxu1 %v16197_v0  ;;  %10172 = vmatprep.mubr.bf16.mxu0 %v12378_v3  ;;  %v1699_v27 = vsel %vm1680_vm1, %v1651_v19, %v1652_v9  ;;  %v12396_v17 = vld [vmem:[#allocation6 + $0x188] ss:$12 sps:$4 sm:$0xff]  }
 0x201   : > { %10268 = vmatprep.subr.bf16.mxu0 %v12396_v17 }
 0x202   : > { %v1075_v44 = vpop.f32.mrb[48].mxu0  ;;  %v10074_v31 = vpop.f32.mrb[48].mxu1 }
 0x203   : > { %v1535_v32 = vrot.slane %v1075_v44, 7  ;;  %v1077_v28 = vpop.f32.mrb[49].mxu0  ;;  %v1383_v35 = vpop.f32.mrb[49].mxu1  ;;  %v1655_v19 = vrot.slane %v10074_v31, 1 }
 0x204   : > { %v1079_v49 = vpop.f32.mrb[50].mxu0  ;;  %v10075_v54 = vpop.f32.mrb[50].mxu1  ;;  %v1653_v9 = vrot.slane %v1383_v35, 1 }
 0x205   : > { %v1587_v11 = vsel %vm1567_vm0, %v1534_v41, %v1535_v32  ;;  %v1536_v62 = vrot.slane %v1079_v49, 7  ;;  %v1386_v53 = vpop.f32.mrb[51].mxu1  ;;  %v1081_v4 = vpop.f32.mrb[51].mxu0 }
 0x206   : > { %v1612_v7 = vadd.f32 %v1587_v11, %v1077_v28  ;;  %v1654_v13 = vrot.slane %v1386_v53, 1 }
 0x207   : > { %v1586_v44 = vsel %vm1567_vm0, %v1535_v32, %v1536_v62  ;;  %2349 = vmatmul.mubr.bf16.gmra.mrb[156].mxu1 %v12316_v2  ;;  %10173 = vmatmul.mubr.bf16.gmra.mrb[156].mxu0 %v12389_v38  ;;  %v12414_v62 = vld [vmem:[%s12031_s14 + $0xe8] sm:$0xff]  }
 0x208   : > { %v12402_v54 = vadd.f32 %v1700_v10, %v1612_v7  ;;  %v1613_v41 = vadd.f32 %v1586_v44, %v1081_v4  ;;  %2358 = vmatprep.mubr.bf16.mxu1 %v16197_v0  ;;  %10176 = vmatprep.mubr.bf16.mxu0 %v12392_v6  ;;  %v1698_v28 = vsel %vm1680_vm1, %v1653_v9, %v1654_v13  ;;  %v12417_v7 = vld [vmem:[%s12031_s14 + $0xf0] sm:$0xff]  }
 0x209   : > { %v1697_v31 = vsel %vm1680_vm1, %v1654_v13, %v1655_v19 }
 0x20a   : > { %16282 = vst [vmem:[#allocation30_spill] sm:$0xff] %v12402_v54  ;;  %v12411_v32 = vadd.f32 %v1699_v27, %v1613_v41  ;;  %v10078_v35 = vpop.f32.mrb[52].mxu1  ;;  %v1085_v49 = vpop.f32.mrb[52].mxu0  ;;  %v16284_v27 = vmov 0  }
 0x20b   : > { %v1398_v11 = vpop.f32.mrb[53].mxu1  ;;  %v1086_v10 = vpop.f32.mrb[53].mxu0  ;;  %v1658_v9 = vrot.slane %v10078_v35, 1 }
 0x20c   : > { %16283 = vst [vmem:[#allocation31_spill] sm:$0xff] %v12411_v32  ;;  %v10079_v53 = vpop.f32.mrb[54].mxu1  ;;  %v1087_v4 = vpop.f32.mrb[54].mxu0  ;;  %v1656_v39 = vrot.slane %v1398_v11, 1 }
 0x20d   : > { %v1401_v44 = vpop.f32.mrb[55].mxu1  ;;  %v1089_v0 = vpop.f32.mrb[55].mxu0  ;;  %v1537_v41 = vrot.slane %v1087_v4, 7 }
 0x20e   : > { %v1657_v13 = vrot.slane %v1401_v44, 1  ;;  %v12432_v44 = vld [vmem:[%s12031_s14 + $0xf8] sm:$0xff]  }
 0x20f   : > { %2359 = vmatmul.mubr.bf16.gmra.mrb[160].mxu1 %v12335_v24  ;;  %10177 = vmatmul.mubr.bf16.gmra.mrb[160].mxu0 %v12414_v62 }
 0x210   : > { %2365 = vmatprep.mubr.bf16.mxu1 %v16284_v27  ;;  %10180 = vmatprep.mubr.bf16.mxu0 %v12417_v7  ;;  %v12425_v19 = vsel %vm1680_vm1, %v1656_v39, %v1657_v13  ;;  %v12429_v0 = vsel %vm1680_vm1, %v1657_v13, %v1658_v9 }
 0x212   : > { %v1092_v35 = vpop.f32.mrb[56].mxu0  ;;  %v10082_v49 = vpop.f32.mrb[56].mxu1 }
 0x213   : > { %v1538_v11 = vrot.slane %v1092_v35, 7  ;;  %v1094_v10 = vpop.f32.mrb[57].mxu0  ;;  %v1413_v53 = vpop.f32.mrb[57].mxu1  ;;  %v1661_v23 = vrot.slane %v10082_v49, 1 }
 0x214   : > { %v1096_v32 = vpop.f32.mrb[58].mxu0  ;;  %v10083_v54 = vpop.f32.mrb[58].mxu1  ;;  %v1659_v13 = vrot.slane %v1413_v53, 1 }
 0x215   : > { %v1585_v39 = vsel %vm1567_vm0, %v1537_v41, %v1538_v11  ;;  %v1539_v50 = vrot.slane %v1096_v32, 7  ;;  %v1416_v61 = vpop.f32.mrb[59].mxu1  ;;  %v1098_v59 = vpop.f32.mrb[59].mxu0 }
 0x216   : > { %v1614_v9 = vadd.f32 %v1585_v39, %v1094_v10  ;;  %v1660_v4 = vrot.slane %v1416_v61, 1  ;;  %v12458_v10 = vld [vmem:[%s12031_s14 + $0x108] sm:$0xff]  }
 0x217   : > { %v1584_v35 = vsel %vm1567_vm0, %v1538_v11, %v1539_v50  ;;  %2366 = vmatmul.mubr.bf16.gmra.mrb[164].mxu1 %v12338_v36  ;;  %10181 = vmatmul.mubr.bf16.gmra.mrb[164].mxu0 %v12432_v44 }
 0x218   : > { %v12443_v54 = vadd.f32 %v1698_v28, %v1614_v9  ;;  %v1615_v21 = vadd.f32 %v1584_v35, %v1098_v59  ;;  %2375 = vmatprep.mubr.bf16.mxu1 %v16284_v27  ;;  %10184 = vmatprep.mubr.bf16.mxu0 %v12435_v52  ;;  %v12449_v32 = vsel %vm1680_vm1, %v1659_v13, %v1660_v4 }
 0x219   : > { %v12453_v61 = vsel %vm1680_vm1, %v1660_v4, %v1661_v23 }
 0x21a   : > { %16285 = vst [vmem:[#allocation32_spill] sm:$0xff] %v12443_v54  ;;  %v12455_v50 = vadd.f32 %v1697_v31, %v1615_v21  ;;  %v10086_v41 = vpop.f32.mrb[60].mxu1  ;;  %v1102_v49 = vpop.f32.mrb[60].mxu0 }
 0x21b   : > { %v1428_v11 = vpop.f32.mrb[61].mxu1  ;;  %v1103_v28 = vpop.f32.mrb[61].mxu0  ;;  %v1664_v35 = vrot.slane %v10086_v41, 1 }
 0x21c   : > { %16286 = vst [vmem:[#allocation33_spill] sm:$0xff] %v12455_v50  ;;  %v10087_v59 = vpop.f32.mrb[62].mxu1  ;;  %v1104_v53 = vpop.f32.mrb[62].mxu0  ;;  %v1662_v54 = vrot.slane %v1428_v11, 1 }
 0x21d   : > { %v1431_v39 = vpop.f32.mrb[63].mxu1  ;;  %v1106_v9 = vpop.f32.mrb[63].mxu0  ;;  %v1540_v31 = vrot.slane %v1104_v53, 7 }
 0x21e   : > { %v1663_v13 = vrot.slane %v1431_v39, 1 }
 0x21f   : > { %2376 = vmatmul.mubr.bf16.gmra.mrb[168].mxu1 %v12353_v18  ;;  %10185 = vmatmul.mubr.bf16.gmra.mrb[168].mxu0 %v12458_v10 }
 0x220   : > { %2382 = vmatprep.mubr.bf16.mxu1 %v16284_v27  ;;  %10204 = vmatprep.mubr.bf16.mxu0 %v12126_v20  ;;  %v12466_v21 = vsel %vm1680_vm1, %v1662_v54, %v1663_v13  ;;  %v12470_v23 = vsel %vm1680_vm1, %v1663_v13, %v1664_v35 }
 0x222   : > { %v1109_v4 = vpop.f32.mrb[64].mxu0  ;;  %v10090_v41 = vpop.f32.mrb[64].mxu1 }
 0x223   : > { %v1541_v49 = vrot.slane %v1109_v4, 7  ;;  %v1111_v11 = vpop.f32.mrb[65].mxu0  ;;  %v1443_v28 = vpop.f32.mrb[65].mxu1  ;;  %v1667_v35 = vrot.slane %v10090_v41, 1 }
 0x224   : > { %v1113_v59 = vpop.f32.mrb[66].mxu0  ;;  %v10091_v39 = vpop.f32.mrb[66].mxu1  ;;  %v1665_v46 = vrot.slane %v1443_v28, 1 }
 0x225   : > { %v1583_v9 = vsel %vm1567_vm0, %v1540_v31, %v1541_v49  ;;  %v1542_v20 = vrot.slane %v1113_v59, 7  ;;  %v1446_v50 = vpop.f32.mrb[67].mxu1  ;;  %v1115_v47 = vpop.f32.mrb[67].mxu0 }
 0x226   : > { %v1616_v54 = vadd.f32 %v1583_v9, %v1111_v11  ;;  %v1666_v15 = vrot.slane %v1446_v50, 1 }
 0x227   : > { %v1582_v53 = vsel %vm1567_vm0, %v1541_v49, %v1542_v20  ;;  %2383 = vmatmul.mubr.bf16.gmra.mrb[172].mxu1 %v12356_v16  ;;  %10205 = vmatmul.mubr.bf16.vlgmr.msra.gmra.mrb[172].mxu0 %v12132_v25  ;;  %v11109_v20 = vld [vmem:[#allocation6 + $0x1d0] ss:$12 sps:$4 sm:$0xff]  }
 0x228   : > { %v12479_v13 = vadd.f32 %v12425_v19, %v1616_v54  ;;  %v1617_v4 = vadd.f32 %v1582_v53, %v1115_v47  ;;  %2392 = vmatprep.mubr.bf16.mxu1 %v16284_v27  ;;  %10208 = vmatprep.mubr.bf16.mxu0 %v12138_v30  ;;  %v12485_v50 = vsel %vm1680_vm1, %v1665_v46, %v1666_v15  ;;  %v11108_v47 = vld [vmem:[#allocation6 + $0x1b8] ss:$12 sps:$4 sm:$0xff]   ;;  %v11111_v53 = vld [vmem:[#allocation6 + $0x1e8] ss:$12 sps:$4 sm:$0xff]  }
 0x229   : > { %v12489_v31 = vsel %vm1680_vm1, %v1666_v15, %v1667_v35  ;;  %10269 = vmatpush3.bf16.msra.mxu0 %v12396_v17 }
 0x22a   : > { %v12493_v25 = vadd.f32 %v12429_v0, %v1617_v4  ;;  %v10094_v19 = vpop.f32.mrb[68].mxu1  ;;  %v1119_v41 = vpop.f32.mrb[68].mxu0  ;;  %10270 = vmatprep.subr.bf16.mxu0 %v11106_v12 }
 0x22b   : > { %v1458_v49 = vpop.f32.mrb[69].mxu1  ;;  %v1120_v11 = vpop.f32.mrb[69].mxu0  ;;  %v1670_v39 = vrot.slane %v10094_v19, 1 }
 0x22c   : > { %v10095_v30 = vpop.f32.mrb[70].mxu1  ;;  %v1121_v28 = vpop.f32.mrb[70].mxu0  ;;  %v1668_v9 = vrot.slane %v1458_v49, 1 }
 0x22d   : > { %v1461_v59 = vpop.f32.mrb[71].mxu1  ;;  %v1123_v46 = vpop.f32.mrb[71].mxu0  ;;  %10271 = vmatpush3.bf16.msra.mxu0 %v11106_v12  ;;  %v1543_v0 = vrot.slane %v1121_v28, 7 }
 0x22e   : > { %v1669_v15 = vrot.slane %v1461_v59, 1  ;;  %10272 = vmatprep.subr.bf16.mxu0 %v11108_v47 }
 0x22f   : > { %2393 = vmatmul.mubr.bf16.gmra.mrb[176].mxu1 %v12375_v63  ;;  %10209 = vmatmul.mubr.bf16.gmra.mrb[176].mxu0 %v12144_v33 }
 0x230   : > { %2399 = vmatprep.mubr.bf16.mxu1 %v16284_v27  ;;  %10212 = vmatprep.mubr.bf16.mxu0 %v12150_v34  ;;  %v12501_v17 = vsel %vm1680_vm1, %v1668_v9, %v1669_v15  ;;  %v12505_v12 = vsel %vm1680_vm1, %v1669_v15, %v1670_v39 }
 0x231   : > { %10273 = vmatpush3.bf16.msra.mxu0 %v11108_v47  ;;  %v11112_v47 = vld [vmem:[#allocation6 + $0x200] ss:$12 sps:$4 sm:$0xff]  }
 0x232   : > { %v1126_v54 = vpop.f32.mrb[72].mxu0  ;;  %v10098_v35 = vpop.f32.mrb[72].mxu1  ;;  %10274 = vmatprep.subr.bf16.mxu0 %v11109_v20 }
 0x233   : > { %v1544_v4 = vrot.slane %v1126_v54, 7  ;;  %v1128_v33 = vpop.f32.mrb[73].mxu0  ;;  %v1473_v19 = vpop.f32.mrb[73].mxu1  ;;  %v1673_v9 = vrot.slane %v10098_v35, 1 }
 0x234   : > { %v1130_v41 = vpop.f32.mrb[74].mxu0  ;;  %v10099_v49 = vpop.f32.mrb[74].mxu1  ;;  %v1671_v39 = vrot.slane %v1473_v19, 1 }
 0x235   : > { %v1581_v34 = vsel %vm1567_vm0, %v1543_v0, %v1544_v4  ;;  %v1545_v11 = vrot.slane %v1130_v41, 7  ;;  %v1476_v30 = vpop.f32.mrb[75].mxu1  ;;  %v1132_v59 = vpop.f32.mrb[75].mxu0  ;;  %10275 = vmatpush3.bf16.msra.mxu0 %v11109_v20 }
 0x236   : > { %v1618_v46 = vadd.f32 %v1581_v34, %v1128_v33  ;;  %v1672_v28 = vrot.slane %v1476_v30, 1  ;;  %10276 = vmatprep.subr.bf16.mxu0 %v11111_v53  ;;  %v11114_v33 = vld [vmem:[#allocation6 + $0x218] ss:$12 sps:$4 sm:$0xff]  }
 0x237   : > { %v1580_v15 = vsel %vm1567_vm0, %v1544_v4, %v1545_v11  ;;  %2400 = vmatmul.mubr.bf16.gmra.mrb[180].mxu1 %v12378_v3  ;;  %10213 = vmatmul.mubr.bf16.gmra.mrb[180].mxu0 %v12156_v37 }
 0x238   : > { %v12514_v54 = vadd.f32 %v12449_v32, %v1618_v46  ;;  %v1619_v0 = vadd.f32 %v1580_v15, %v1132_v59  ;;  %2409 = vmatprep.mubr.bf16.mxu1 %v16284_v27  ;;  %10216 = vmatprep.mubr.bf16.mxu0 %v12167_v43  ;;  %v12520_v20 = vsel %vm1680_vm1, %v1671_v39, %v1672_v28  ;;  %v11115_v39 = vld [vmem:[#allocation6 + $0x230] ss:$12 sps:$4 sm:$0xff]  }
 0x239   : > { %v12524_v35 = vsel %vm1680_vm1, %v1672_v28, %v1673_v9  ;;  %10277 = vmatpush3.bf16.msra.mxu0 %v11111_v53 }
 0x23a   : > { %v12527_v4 = vadd.f32 %v12453_v61, %v1619_v0  ;;  %v10102_v37 = vpop.f32.mrb[76].mxu1  ;;  %v1136_v32 = vpop.f32.mrb[76].mxu0  ;;  %10278 = vmatprep.subr.bf16.mxu0 %v11112_v47 }
 0x23b   : > { %v1488_v19 = vpop.f32.mrb[77].mxu1  ;;  %v1137_v41 = vpop.f32.mrb[77].mxu0  ;;  %v1676_v30 = vrot.slane %v10102_v37, 1 }
 0x23c   : > { %v10103_v49 = vpop.f32.mrb[78].mxu1  ;;  %v1138_v43 = vpop.f32.mrb[78].mxu0  ;;  %v1674_v59 = vrot.slane %v1488_v19, 1 }
 0x23d   : > { %v1491_v34 = vpop.f32.mrb[79].mxu1  ;;  %v1140_v11 = vpop.f32.mrb[79].mxu0  ;;  %10279 = vmatpush3.bf16.msra.mxu0 %v11112_v47  ;;  %v1546_v9 = vrot.slane %v1138_v43, 7 }
 0x23e   : > { %v1675_v46 = vrot.slane %v1491_v34, 1  ;;  %10280 = vmatprep.subr.bf16.mxu0 %v11114_v33 }
 0x23f   : > { %2410 = vmatmul.mubr.bf16.gmra.mrb[184].mxu1 %v12389_v38  ;;  %10217 = vmatmul.mubr.bf16.gmra.mrb[184].mxu0 %v12184_v60 }
 0x240   : > { %v1683_v61 = vsel %vm1680_vm1, %v1675_v46, %v1676_v30  ;;  %v1684_v53 = vsel %vm1680_vm1, %v1674_v59, %v1675_v46  ;;  %2416 = vmatprep.mubr.bf16.mxu1 %v16284_v27  ;;  %10220 = vmatprep.mubr.bf16.mxu0 %v12199_v14 }
 0x241   : > { %v12538_v28 = vadd.f32 %v1684_v53, %v12188_v5  ;;  %v12541_v47 = vadd.f32 %v1683_v61, %v12194_v8  ;;  %10281 = vmatpush3.bf16.msra.mxu0 %v11114_v33 }
 0x242   : > { %v1143_v15 = vpop.f32.mrb[80].mxu0  ;;  %v10106_v60 = vpop.f32.mrb[80].mxu1  ;;  %10282 = vmatprep.subr.bf16.mxu0 %v11115_v39 }
 0x243   : > { %v1547_v0 = vrot.slane %v1143_v15, 7  ;;  %v1145_v37 = vpop.f32.mrb[81].mxu0  ;;  %v1503_v32 = vpop.f32.mrb[81].mxu1  ;;  %v1679_v11 = vrot.slane %v10106_v60, 1 }
 0x244   : > { %v1147_v19 = vpop.f32.mrb[82].mxu0  ;;  %v10107_v41 = vpop.f32.mrb[82].mxu1  ;;  %v1677_v30 = vrot.slane %v1503_v32, 1 }
 0x245   : > { %v1579_v49 = vsel %vm1567_vm0, %v1546_v9, %v1547_v0  ;;  %v1548_v14 = vrot.slane %v1147_v19, 7  ;;  %v1506_v34 = vpop.f32.mrb[83].mxu1  ;;  %v1149_v5 = vpop.f32.mrb[83].mxu0  ;;  %10283 = vmatpush3.bf16.msra.mxu0 %v11115_v39 }
 0x246   : > { %v1620_v8 = vadd.f32 %v1579_v49, %v1145_v37  ;;  %v1678_v43 = vrot.slane %v1506_v34, 1 }
 0x247   : > { %v1578_v33 = vsel %vm1567_vm0, %v1547_v0, %v1548_v14  ;;  %2417 = vmatmul.mubr.bf16.gmra.mrb[188].mxu1 %v12392_v6  ;;  %10221 = vmatmul.mubr.bf16.gmra.mrb[188].mxu0 %v12214_v45 }
 0x248   : > { %v12550_v59 = vadd.f32 %v12466_v21, %v1620_v8  ;;  %v1681_v46 = vsel %vm1680_vm1, %v1678_v43, %v1679_v11  ;;  %v1682_v39 = vsel %vm1680_vm1, %v1677_v30, %v1678_v43  ;;  %v1621_v61 = vadd.f32 %v1578_v33, %v1149_v5  ;;  %2426 = vmatprep.mubr.bf16.mxu1 %v16284_v27 }
 0x249   : > { %v12558_v53 = vadd.f32 %v1682_v39, %v12218_v55  ;;  %v12561_v9 = vadd.f32 %v1681_v46, %v12224_v58  ;;  %10224 = vmatprep.mubr.bf16.mxu0 %v12229_v1 }
 0x24a   : > { %v12565_v45 = vadd.f32 %v12470_v23, %v1621_v61  ;;  %v12567_v21 = vpop.f32.mrb[84].mxu1  ;;  %v1153_v15 = vpop.f32.mrb[84].mxu0 }
 0x24b   : > { %v12569_v60 = vpop.f32.mrb[85].mxu1  ;;  %v1154_v0 = vpop.f32.mrb[85].mxu0  ;;  %v16199_v19 = vrot.slane %v12567_v21, 7 }
 0x24c   : > { %v2201_v37 = vpop.f32.mrb[86].mxu1  ;;  %v1155_v32 = vpop.f32.mrb[86].mxu0 }
 0x24d   : > { %v2742_v55 = vrot.slane %v2201_v37, 7  ;;  %v2203_v41 = vpop.f32.mrb[87].mxu1  ;;  %v1157_v49 = vpop.f32.mrb[87].mxu0  ;;  %v1549_v23 = vrot.slane %v1155_v32, 7 }
 0x24f   : > { %v2819_v58 = vsel %vm1567_vm0, %v16199_v19, %v2742_v55  ;;  %2427 = vmatmul.mubr.bf16.gmra.mrb[192].mxu1 %v12414_v62  ;;  %10225 = vmatmul.mubr.bf16.gmra.mrb[192].mxu0 %v12249_v22 }
 0x250   : > { %v12578_v1 = vadd.f32 %v2819_v58, %v2203_v41  ;;  %2433 = vmatprep.mubr.bf16.mxu1 %v16284_v27  ;;  %10228 = vmatprep.mubr.bf16.mxu0 %v12252_v26 }
 0x252   : > { %v1160_v14 = vpop.f32.mrb[88].mxu0  ;;  %v2207_v34 = vpop.f32.mrb[88].mxu1 }
 0x253   : > { %v1550_v5 = vrot.slane %v1160_v14, 7  ;;  %v1162_v11 = vpop.f32.mrb[89].mxu0  ;;  %v2208_v8 = vpop.f32.mrb[89].mxu1 }
 0x254   : > { %v1164_v30 = vpop.f32.mrb[90].mxu0  ;;  %v2209_v43 = vpop.f32.mrb[90].mxu1 }
 0x255   : > { %v1577_v33 = vsel %vm1567_vm0, %v1549_v23, %v1550_v5  ;;  %v1551_v46 = vrot.slane %v1164_v30, 7  ;;  %v2211_v39 = vpop.f32.mrb[91].mxu1  ;;  %v1166_v22 = vpop.f32.mrb[91].mxu0  ;;  %v2743_v41 = vrot.slane %v2209_v43, 7 }
 0x256   : > { %v1622_v61 = vadd.f32 %v1577_v33, %v1162_v11 }
 0x257   : > { %v1576_v15 = vsel %vm1567_vm0, %v1550_v5, %v1551_v46  ;;  %2434 = vmatmul.mubr.bf16.gmra.mrb[196].mxu1 %v12417_v7  ;;  %10229 = vmatmul.mubr.bf16.gmra.mrb[196].mxu0 %v12269_v51 }
 0x258   : > { %v12589_v26 = vadd.f32 %v12485_v50, %v1622_v61  ;;  %v1623_v0 = vadd.f32 %v1576_v15, %v1166_v22  ;;  %2443 = vmatprep.mubr.bf16.mxu1 %v16284_v27  ;;  %10232 = vmatprep.mubr.bf16.mxu0 %v12272_v57 }
 0x25a   : > { %v12594_v37 = vadd.f32 %v12489_v31, %v1623_v0  ;;  %v2214_v32 = vpop.f32.mrb[92].mxu1  ;;  %v1170_v55 = vpop.f32.mrb[92].mxu0 }
 0x25b   : > { %v2744_v49 = vrot.slane %v2214_v32, 7  ;;  %v2216_v58 = vpop.f32.mrb[93].mxu1  ;;  %v1171_v23 = vpop.f32.mrb[93].mxu0 }
 0x25c   : > { %v2218_v14 = vpop.f32.mrb[94].mxu1  ;;  %v1172_v34 = vpop.f32.mrb[94].mxu0 }
 0x25d   : > { %v2818_v51 = vsel %vm1567_vm0, %v2743_v41, %v2744_v49  ;;  %v2745_v50 = vrot.slane %v2218_v14, 7  ;;  %v2220_v5 = vpop.f32.mrb[95].mxu1  ;;  %v1174_v11 = vpop.f32.mrb[95].mxu0  ;;  %v1552_v30 = vrot.slane %v1172_v34, 7 }
 0x25e   : > { %v12598_v8 = vadd.f32 %v2818_v51, %v2216_v58 }
 0x25f   : > { %v2817_v57 = vsel %vm1567_vm0, %v2744_v49, %v2745_v50  ;;  %2444 = vmatmul.mubr.bf16.gmra.mrb[200].mxu1 %v12432_v44  ;;  %10233 = vmatmul.mubr.bf16.gmra.mrb[200].mxu0 %v12293_v48 }
 0x260   : > { %v12604_v31 = vadd.f32 %v2817_v57, %v2220_v5  ;;  %2450 = vmatprep.mubr.bf16.mxu1 %v16284_v27  ;;  %10236 = vmatprep.mubr.bf16.mxu0 %v12296_v29 }
 0x262   : > { %v1177_v43 = vpop.f32.mrb[96].mxu0  ;;  %v2224_v33 = vpop.f32.mrb[96].mxu1 }
 0x263   : > { %v1553_v46 = vrot.slane %v1177_v43, 7  ;;  %v1179_v39 = vpop.f32.mrb[97].mxu0  ;;  %v2225_v22 = vpop.f32.mrb[97].mxu1 }
 0x264   : > { %v1181_v61 = vpop.f32.mrb[98].mxu0  ;;  %v2226_v15 = vpop.f32.mrb[98].mxu1 }
 0x265   : > { %v1575_v0 = vsel %vm1567_vm0, %v1552_v30, %v1553_v46  ;;  %v1554_v32 = vrot.slane %v1181_v61, 7  ;;  %v2228_v55 = vpop.f32.mrb[99].mxu1  ;;  %v1183_v48 = vpop.f32.mrb[99].mxu0  ;;  %v2746_v51 = vrot.slane %v2226_v15, 7 }
 0x266   : > { %v1624_v41 = vadd.f32 %v1575_v0, %v1179_v39  ;;  %v12635_v55 = vld [vmem:[%s12031_s14 + $0x20] sm:$0xff]  }
 0x267   : > { %v1574_v49 = vsel %vm1567_vm0, %v1553_v46, %v1554_v32  ;;  %2451 = vmatmul.mubr.bf16.gmra.mrb[204].mxu1 %v12435_v52  ;;  %10237 = vmatmul.mubr.bf16.gmra.mrb[204].mxu0 %v12313_v56 }
 0x268   : > { %v12615_v29 = vadd.f32 %v12501_v17, %v1624_v41  ;;  %v1625_v58 = vadd.f32 %v1574_v49, %v1183_v48  ;;  %2460 = vmatprep.mubr.bf16.mxu1 %v16284_v27  ;;  %10240 = vmatprep.mubr.bf16.mxu0 %v12316_v2 }
 0x26a   : > { %v12620_v23 = vadd.f32 %v12505_v12, %v1625_v58  ;;  %v2231_v14 = vpop.f32.mrb[100].mxu1  ;;  %v1187_v34 = vpop.f32.mrb[100].mxu0 }
 0x26b   : > { %v2747_v50 = vrot.slane %v2231_v14, 7  ;;  %v2233_v5 = vpop.f32.mrb[101].mxu1  ;;  %v1188_v11 = vpop.f32.mrb[101].mxu0 }
 0x26c   : > { %v2235_v57 = vpop.f32.mrb[102].mxu1  ;;  %v1189_v30 = vpop.f32.mrb[102].mxu0 }
 0x26d   : > { %v2816_v56 = vsel %vm1567_vm0, %v2746_v51, %v2747_v50  ;;  %v2748_v17 = vrot.slane %v2235_v57, 7  ;;  %v2237_v43 = vpop.f32.mrb[103].mxu1  ;;  %v1191_v33 = vpop.f32.mrb[103].mxu0  ;;  %v1555_v39 = vrot.slane %v1189_v30, 7 }
 0x26e   : > { %v12624_v46 = vadd.f32 %v2816_v56, %v2233_v5 }
 0x26f   : > { %v2815_v2 = vsel %vm1567_vm0, %v2747_v50, %v2748_v17  ;;  %2461 = vmatmul.mubr.bf16.gmra.mrb[208].mxu1 %v12458_v10  ;;  %10241 = vmatmul.mubr.bf16.gmra.mrb[208].mxu0 %v12335_v24 }
 0x270   : > { %v12630_v12 = vadd.f32 %v2815_v2, %v2237_v43  ;;  %10244 = vmatprep.mubr.bf16.mxu0 %v12338_v36  ;;  %3752 = vmatprep.mubr.bf16.mxu1 %v16284_v27 }
 0x272   : > { %v1194_v22 = vpop.f32.mrb[104].mxu0  ;;  %v2241_v61 = vpop.f32.mrb[104].mxu1 }
 0x273   : > { %v1556_v15 = vrot.slane %v1194_v22, 7  ;;  %v1196_v0 = vpop.f32.mrb[105].mxu0  ;;  %v2242_v32 = vpop.f32.mrb[105].mxu1 }
 0x274   : > { %v1198_v48 = vpop.f32.mrb[106].mxu0  ;;  %v2243_v41 = vpop.f32.mrb[106].mxu1 }
 0x275   : > { %v1573_v49 = vsel %vm1567_vm0, %v1555_v39, %v1556_v15  ;;  %v1557_v24 = vrot.slane %v1198_v48, 7  ;;  %v2245_v58 = vpop.f32.mrb[107].mxu1  ;;  %v1200_v14 = vpop.f32.mrb[107].mxu0  ;;  %v2749_v30 = vrot.slane %v2243_v41, 7 }
 0x276   : > { %v1626_v36 = vadd.f32 %v1573_v49, %v1196_v0 }
 0x277   : > { %v1572_v34 = vsel %vm1567_vm0, %v1556_v15, %v1557_v24  ;;  %10245 = vmatmul.mubr.bf16.gmra.mrb[212].mxu0 %v12353_v18  ;;  %3753 = vmatmul.mubr.bf16.vlgmr.msra.gmra.mrb[212].mxu1 %v12635_v55  ;;  %v12652_v18 = vld [vmem:[%s12031_s14 + $0x28] sm:$0xff]  }
 0x278   : > { %v12644_v51 = vadd.f32 %v12520_v20, %v1626_v36  ;;  %v1627_v50 = vadd.f32 %v1572_v34, %v1200_v14  ;;  %10248 = vmatprep.mubr.bf16.mxu0 %v12356_v16  ;;  %3762 = vmatprep.mubr.bf16.mxu1 %v16284_v27 }
 0x27a   : > { %v12649_v5 = vadd.f32 %v12524_v35, %v1627_v50  ;;  %v2248_v11 = vpop.f32.mrb[108].mxu1  ;;  %v10126_v57 = vpop.f32.mrb[108].mxu0  ;;  %v12677_v50 = vld [vmem:[%s12031_s14 + $0x30] sm:$0xff]  }
 0x27b   : > { %v2750_v56 = vrot.slane %v2248_v11, 7  ;;  %v2250_v17 = vpop.f32.mrb[109].mxu1  ;;  %v2502_v43 = vpop.f32.mrb[109].mxu0  ;;  %v2855_v33 = vrot.slane %v10126_v57, 1 }
 0x27c   : > { %v2853_v2 = vrot.slane %v2502_v43, 1  ;;  %v2252_v20 = vpop.f32.mrb[110].mxu1  ;;  %v10127_v39 = vpop.f32.mrb[110].mxu0 }
 0x27d   : > { %v2814_v16 = vsel %vm1567_vm0, %v2749_v30, %v2750_v56  ;;  %v2751_v22 = vrot.slane %v2252_v20, 7  ;;  %v2254_v61 = vpop.f32.mrb[111].mxu1  ;;  %v2505_v15 = vpop.f32.mrb[111].mxu0 }
 0x27e   : > { %v12656_v35 = vadd.f32 %v2814_v16, %v2250_v17  ;;  %v2854_v0 = vrot.slane %v2505_v15, 1  ;;  %v16287_v16 = vld [vmem:[#allocation20_spill] sm:$0xff] }
 0x27f   : > { %v2813_v32 = vsel %vm1567_vm0, %v2750_v56, %v2751_v22  ;;  %10249 = vmatmul.mubr.bf16.gmra.mrb[216].mxu0 %v12375_v63  ;;  %3763 = vmatmul.mubr.bf16.gmra.mrb[216].mxu1 %v12652_v18 }
 0x280   : > { %v12662_v48 = vadd.f32 %v2813_v32, %v2254_v61  ;;  %v2931_v41 = vsel %vm1680_vm1, %v2854_v0, %v2855_v33  ;;  %v12668_v49 = vsel %vm1680_vm1, %v2853_v2, %v2854_v0  ;;  %10252 = vmatprep.mubr.bf16.mxu0 %v12378_v3  ;;  %3769 = vmatprep.mubr.bf16.mxu1 %v16284_v27  ;;  %v16288_v61 = vld [vmem:[#allocation21_spill] sm:$0xff] }
 0x281   : > { %v2934_v24 = vadd.f32 %v2931_v41, %v12578_v1 }
 0x282   : > { %v2258_v58 = vpop.f32.mrb[112].mxu1  ;;  %v10130_v14 = vpop.f32.mrb[112].mxu0 }
 0x283   : > { %v12674_v63 = vadd.f32 %v2934_v24, %v12266_v42  ;;  %v2259_v36 = vpop.f32.mrb[113].mxu1  ;;  %v2517_v34 = vpop.f32.mrb[113].mxu0  ;;  %v2858_v11 = vrot.slane %v10130_v14, 1  ;;  %v12696_v24 = vld [vmem:[%s12031_s14 + $0x38] sm:$0xff]  }
 0x284   : > { %v2856_v57 = vrot.slane %v2517_v34, 1  ;;  %v2260_v30 = vpop.f32.mrb[114].mxu1  ;;  %v10131_v56 = vpop.f32.mrb[114].mxu0 }
 0x285   : > { %v2262_v17 = vpop.f32.mrb[115].mxu1  ;;  %v2520_v43 = vpop.f32.mrb[115].mxu0 }
 0x286   : > { %v2857_v3 = vrot.slane %v2520_v43, 1 }
 0x287   : > { %10253 = vmatmul.mubr.bf16.gmra.mrb[220].mxu0 %v12389_v38  ;;  %3770 = vmatmul.mubr.bf16.gmra.mrb[220].mxu1 %v12677_v50  ;;  %v2752_v38 = vrot.slane %v2260_v30, 7 }
 0x288   : > { %v2929_v42 = vsel %vm1680_vm1, %v2857_v3, %v2858_v11  ;;  %v2930_v1 = vsel %vm1680_vm1, %v2856_v57, %v2857_v3  ;;  %10256 = vmatprep.mubr.bf16.mxu0 %v12392_v6  ;;  %3779 = vmatprep.mubr.bf16.mxu1 %v16284_v27 }
 0x289   : > { %v2935_v33 = vadd.f32 %v2930_v1, %v12598_v8  ;;  %v2936_v2 = vadd.f32 %v2929_v42, %v12604_v31 }
 0x28a   : > { %v2265_v20 = vpop.f32.mrb[116].mxu1  ;;  %v10134_v39 = vpop.f32.mrb[116].mxu0 }
 0x28b   : > { %v12690_v22 = vadd.f32 %v2935_v33, %v16287_v16  ;;  %v12693_v15 = vadd.f32 %v2936_v2, %v16288_v61  ;;  %v2753_v0 = vrot.slane %v2265_v20, 7  ;;  %v2267_v32 = vpop.f32.mrb[117].mxu1  ;;  %v2532_v41 = vpop.f32.mrb[117].mxu0  ;;  %v2861_v6 = vrot.slane %v10134_v39, 1  ;;  %v16290_v39 = vld [vmem:[#allocation23_spill] sm:$0xff] }
 0x28c   : > { %v2859_v58 = vrot.slane %v2532_v41, 1  ;;  %v2269_v14 = vpop.f32.mrb[118].mxu1  ;;  %v10135_v8 = vpop.f32.mrb[118].mxu0 }
 0x28d   : > { %v2812_v31 = vsel %vm1567_vm0, %v2752_v38, %v2753_v0  ;;  %v2754_v36 = vrot.slane %v2269_v14, 7  ;;  %v2271_v34 = vpop.f32.mrb[119].mxu1  ;;  %v2535_v11 = vpop.f32.mrb[119].mxu0 }
 0x28e   : > { %v2829_v57 = vadd.f32 %v2812_v31, %v2267_v32  ;;  %v2860_v30 = vrot.slane %v2535_v11, 1 }
 0x28f   : > { %v2811_v56 = vsel %vm1567_vm0, %v2753_v0, %v2754_v36  ;;  %10257 = vmatmul.mubr.bf16.gmra.mrb[224].mxu0 %v12414_v62  ;;  %3780 = vmatmul.mubr.bf16.gmra.mrb[224].mxu1 %v12696_v24  ;;  %v16289_v62 = vld [vmem:[#allocation22_spill] sm:$0xff]  ;;  %v12719_v0 = vld [vmem:[%s12031_s14 + $0x40] sm:$0xff]  }
 0x290   : > { %v2830_v17 = vadd.f32 %v2811_v56, %v2271_v34  ;;  %v2927_v43 = vsel %vm1680_vm1, %v2860_v30, %v2861_v6  ;;  %v2928_v3 = vsel %vm1680_vm1, %v2859_v58, %v2860_v30  ;;  %10260 = vmatprep.mubr.bf16.mxu0 %v12417_v7  ;;  %3786 = vmatprep.mubr.bf16.mxu1 %v16284_v27  ;;  %v16291_v30 = vld [vmem:[#allocation24_spill] sm:$0xff] }
 0x291   : > { %v2937_v42 = vadd.f32 %v2928_v3, %v12624_v46  ;;  %v2938_v1 = vadd.f32 %v2927_v43, %v12630_v12  ;;  %v16292_v43 = vld [vmem:[#allocation25_spill] sm:$0xff] }
 0x292   : > { %v2275_v33 = vpop.f32.mrb[120].mxu1  ;;  %v10138_v2 = vpop.f32.mrb[120].mxu0 }
 0x293   : > { %v12713_v20 = vadd.f32 %v2937_v42, %v16289_v62  ;;  %v12716_v38 = vadd.f32 %v2938_v1, %v16290_v39  ;;  %v2276_v16 = vpop.f32.mrb[121].mxu1  ;;  %v2547_v61 = vpop.f32.mrb[121].mxu0  ;;  %v2864_v32 = vrot.slane %v10138_v2, 1  ;;  %v12738_v2 = vld [vmem:[%s12031_s14 + $0x48] sm:$0xff]  }
 0x294   : > { %v2862_v7 = vrot.slane %v2547_v61, 1  ;;  %v2277_v41 = vpop.f32.mrb[122].mxu1  ;;  %v10139_v6 = vpop.f32.mrb[122].mxu0 }
 0x295   : > { %v2279_v58 = vpop.f32.mrb[123].mxu1  ;;  %v2550_v46 = vpop.f32.mrb[123].mxu0 }
 0x296   : > { %v2863_v14 = vrot.slane %v2550_v46, 1 }
 0x297   : > { %10261 = vmatmul.mubr.bf16.gmra.mrb[228].mxu0 %v12432_v44  ;;  %3787 = vmatmul.mubr.bf16.gmra.mrb[228].mxu1 %v12719_v0  ;;  %v2755_v44 = vrot.slane %v2277_v41, 7 }
 0x298   : > { %v2925_v12 = vsel %vm1680_vm1, %v2863_v14, %v2864_v32  ;;  %v2926_v8 = vsel %vm1680_vm1, %v2862_v7, %v2863_v14  ;;  %10264 = vmatprep.mubr.bf16.mxu0 %v12435_v52  ;;  %3796 = vmatprep.mubr.bf16.mxu1 %v16284_v27 }
 0x299   : > { %v2939_v31 = vadd.f32 %v2926_v8, %v12656_v35  ;;  %v2940_v36 = vadd.f32 %v2925_v12, %v12662_v48 }
 0x29a   : > { %v2282_v34 = vpop.f32.mrb[124].mxu1  ;;  %v10142_v11 = vpop.f32.mrb[124].mxu0 }
 0x29b   : > { %v12732_v56 = vadd.f32 %v2939_v31, %v16291_v30  ;;  %v12735_v3 = vadd.f32 %v2940_v36, %v16292_v43  ;;  %v2756_v42 = vrot.slane %v2282_v34, 7  ;;  %v2284_v1 = vpop.f32.mrb[125].mxu1  ;;  %v2562_v33 = vpop.f32.mrb[125].mxu0  ;;  %v2867_v52 = vrot.slane %v10142_v11, 1  ;;  %v16293_v34 = vld [vmem:[#allocation26_spill] sm:$0xff] }
 0x29c   : > { %v2865_v62 = vrot.slane %v2562_v33, 1  ;;  %v2286_v39 = vpop.f32.mrb[126].mxu1  ;;  %v10143_v35 = vpop.f32.mrb[126].mxu0 }
 0x29d   : > { %v2810_v48 = vsel %vm1567_vm0, %v2755_v44, %v2756_v42  ;;  %v2757_v16 = vrot.slane %v2286_v39, 7  ;;  %v2288_v61 = vpop.f32.mrb[127].mxu1  ;;  %v2565_v32 = vpop.f32.mrb[127].mxu0 }
 0x29e   : > { %v2831_v7 = vadd.f32 %v2810_v48, %v2284_v1  ;;  %v2866_v41 = vrot.slane %v2565_v32, 1 }
 0x29f   : > { %v2809_v6 = vsel %vm1567_vm0, %v2756_v42, %v2757_v16  ;;  %10265 = vmatmul.mubr.bf16.gmra.mrb[232].mxu0 %v12458_v10  ;;  %3797 = vmatmul.mubr.bf16.gmra.mrb[232].mxu1 %v12738_v2  ;;  %v16294_v10 = vld [vmem:[#allocation27_spill] sm:$0xff]  ;;  %v12759_v42 = vld [vmem:[%s12031_s14 + $0x50] sm:$0xff]  }
 0x2a0   : > { %v2832_v58 = vadd.f32 %v2809_v6, %v2288_v61  ;;  %v2923_v46 = vsel %vm1680_vm1, %v2866_v41, %v2867_v52  ;;  %v2924_v14 = vsel %vm1680_vm1, %v2865_v62, %v2866_v41  ;;  %3803 = vmatprep.mubr.bf16.mxu1 %v16284_v27  ;;  %10284 = vmatprep.mubr.bf16.mxu0 %v12635_v55  ;;  %v16295_v6 = vld [vmem:[#allocation28_spill] sm:$0xff] }
 0x2a1   : > { %v2941_v12 = vadd.f32 %v2924_v14, %v2829_v57  ;;  %v2942_v8 = vadd.f32 %v2923_v46, %v2830_v17  ;;  %v16296_v14 = vld [vmem:[#allocation29_spill] sm:$0xff] }
 0x2a2   : > { %v2292_v31 = vpop.f32.mrb[128].mxu1  ;;  %v10146_v36 = vpop.f32.mrb[128].mxu0 }
 0x2a3   : > { %v12753_v11 = vadd.f32 %v2941_v12, %v16293_v34  ;;  %v12756_v44 = vadd.f32 %v2942_v8, %v16294_v10  ;;  %v2293_v30 = vpop.f32.mrb[129].mxu1  ;;  %v2577_v43 = vpop.f32.mrb[129].mxu0  ;;  %v2870_v1 = vrot.slane %v10146_v36, 1  ;;  %v11117_v36 = vld [vmem:[%s12031_s14 + $0x58] sm:$0xff]  }
 0x2a4   : > { %v2868_v33 = vrot.slane %v2577_v43, 1  ;;  %v2294_v52 = vpop.f32.mrb[130].mxu1  ;;  %v10147_v62 = vpop.f32.mrb[130].mxu0 }
 0x2a5   : > { %v2296_v39 = vpop.f32.mrb[131].mxu1  ;;  %v2580_v55 = vpop.f32.mrb[131].mxu0  ;;  %v2758_v41 = vrot.slane %v2294_v52, 7 }
 0x2a6   : > { %v2869_v57 = vrot.slane %v2580_v55, 1 }
 0x2a7   : > { %3804 = vmatmul.mubr.bf16.gmra.mrb[236].mxu1 %v12759_v42  ;;  %10285 = vmatmul.mubr.bf16.vlgmr.msra.gmra.mrb[236].mxu0 %v12652_v18 }
 0x2a8   : > { %v2921_v17 = vsel %vm1680_vm1, %v2869_v57, %v2870_v1  ;;  %v2922_v35 = vsel %vm1680_vm1, %v2868_v33, %v2869_v57  ;;  %3813 = vmatprep.mubr.bf16.mxu1 %v16284_v27  ;;  %10288 = vmatprep.mubr.bf16.mxu0 %v12677_v50 }
 0x2a9   : > { %v2943_v48 = vadd.f32 %v2922_v35, %v2831_v7  ;;  %v2944_v16 = vadd.f32 %v2921_v17, %v2832_v58 }
 0x2aa   : > { %v2299_v61 = vpop.f32.mrb[132].mxu1  ;;  %v10150_v32 = vpop.f32.mrb[132].mxu0 }
 0x2ab   : > { %v12770_v46 = vadd.f32 %v2943_v48, %v16295_v6  ;;  %v12773_v18 = vadd.f32 %v2944_v16, %v16296_v14  ;;  %v2759_v12 = vrot.slane %v2299_v61, 7  ;;  %v2301_v8 = vpop.f32.mrb[133].mxu1  ;;  %v2592_v31 = vpop.f32.mrb[133].mxu0  ;;  %v2873_v34 = vrot.slane %v10150_v32, 1  ;;  %v16297_v61 = vld [vmem:[#allocation30_spill] sm:$0xff]  ;;  %v16298_v14 = vld [vmem:[#allocation31_spill] sm:$0xff] }
 0x2ac   : > { %v2871_v10 = vrot.slane %v2592_v31, 1  ;;  %v2303_v30 = vpop.f32.mrb[134].mxu1  ;;  %v10151_v43 = vpop.f32.mrb[134].mxu0 }
 0x2ad   : > { %v2808_v50 = vsel %vm1567_vm0, %v2758_v41, %v2759_v12  ;;  %v2760_v7 = vrot.slane %v2303_v30, 7  ;;  %v2305_v58 = vpop.f32.mrb[135].mxu1  ;;  %v2595_v1 = vpop.f32.mrb[135].mxu0 }
 0x2ae   : > { %v2833_v33 = vadd.f32 %v2808_v50, %v2301_v8  ;;  %v2872_v52 = vrot.slane %v2595_v1, 1 }
 0x2af   : > { %v2807_v62 = vsel %vm1567_vm0, %v2759_v12, %v2760_v7  ;;  %3814 = vmatmul.mubr.bf16.gmra.mrb[240].mxu1 %v11117_v36  ;;  %10289 = vmatmul.mubr.bf16.gmra.mrb[240].mxu0 %v12696_v24  ;;  %v11118_v24 = vld [vmem:[%s12031_s14 + $0x60] sm:$0xff]  }
 0x2b0   : > { %v2834_v39 = vadd.f32 %v2807_v62, %v2305_v58  ;;  %v2919_v55 = vsel %vm1680_vm1, %v2872_v52, %v2873_v34  ;;  %v2920_v57 = vsel %vm1680_vm1, %v2871_v10, %v2872_v52  ;;  %3820 = vmatprep.mubr.bf16.mxu1 %v16284_v27  ;;  %10292 = vmatprep.mubr.bf16.mxu0 %v12719_v0 }
 0x2b1   : > { %v2945_v17 = vadd.f32 %v2920_v57, %v2833_v33 }
 0x2b2   : > { %v2946_v35 = vadd.f32 %v2919_v55, %v2834_v39  ;;  %v2309_v48 = vpop.f32.mrb[136].mxu1  ;;  %v10154_v16 = vpop.f32.mrb[136].mxu0  ;;  %v11119_v39 = vld [vmem:[%s12031_s14 + $0x68] sm:$0xff]  }
 0x2b3   : > { %v12788_v32 = vadd.f32 %v2945_v17, %v16297_v61  ;;  %v2310_v41 = vpop.f32.mrb[137].mxu1  ;;  %v2607_v6 = vpop.f32.mrb[137].mxu0  ;;  %v2876_v31 = vrot.slane %v10154_v16, 1 }
 0x2b4   : > { %v12792_v12 = vadd.f32 %v2946_v35, %v16298_v14  ;;  %v2311_v8 = vpop.f32.mrb[138].mxu1  ;;  %v2874_v34 = vrot.slane %v2607_v6, 1  ;;  %v10155_v10 = vpop.f32.mrb[138].mxu0 }
 0x2b5   : > { %v2313_v30 = vpop.f32.mrb[139].mxu1  ;;  %v2610_v0 = vpop.f32.mrb[139].mxu0  ;;  %v2761_v33 = vrot.slane %v2311_v8, 7 }
 0x2b6   : > { %v2875_v43 = vrot.slane %v2610_v0, 1  ;;  %v16299_v30 = vld [vmem:[#allocation32_spill] sm:$0xff] }
 0x2b7   : > { %3821 = vmatmul.mubr.bf16.gmra.mrb[244].mxu1 %v11118_v24  ;;  %10293 = vmatmul.mubr.bf16.gmra.mrb[244].mxu0 %v12738_v2 }
 0x2b8   : > { %v2918_v50 = vsel %vm1680_vm1, %v2874_v34, %v2875_v43  ;;  %v2917_v7 = vsel %vm1680_vm1, %v2875_v43, %v2876_v31  ;;  %3830 = vmatprep.mubr.bf16.mxu1 %v16284_v27  ;;  %10296 = vmatprep.mubr.bf16.mxu0 %v12759_v42 }
 0x2ba   : > { %v2316_v58 = vpop.f32.mrb[140].mxu1  ;;  %v10158_v1 = vpop.f32.mrb[140].mxu0 }
 0x2bb   : > { %v2762_v52 = vrot.slane %v2316_v58, 7  ;;  %v2318_v62 = vpop.f32.mrb[141].mxu1  ;;  %v2622_v55 = vpop.f32.mrb[141].mxu0  ;;  %v2879_v61 = vrot.slane %v10158_v1, 1 }
 0x2bc   : > { %v2320_v57 = vpop.f32.mrb[142].mxu1  ;;  %v2877_v17 = vrot.slane %v2622_v55, 1  ;;  %v10159_v2 = vpop.f32.mrb[142].mxu0 }
 0x2bd   : > { %v2806_v35 = vsel %vm1567_vm0, %v2761_v33, %v2762_v52  ;;  %v2763_v48 = vrot.slane %v2320_v57, 7  ;;  %v2322_v16 = vpop.f32.mrb[143].mxu1  ;;  %v2625_v41 = vpop.f32.mrb[143].mxu0 }
 0x2be   : > { %v2835_v6 = vadd.f32 %v2806_v35, %v2318_v62  ;;  %v2878_v42 = vrot.slane %v2625_v41, 1 }
 0x2bf   : > { %v2805_v14 = vsel %vm1567_vm0, %v2762_v52, %v2763_v48  ;;  %3831 = vmatmul.mubr.bf16.gmra.mrb[248].mxu1 %v11119_v39  ;;  %10297 = vmatmul.mubr.bf16.gmra.mrb[248].mxu0 %v11117_v36  ;;  %v11120_v52 = vld [vmem:[%s12031_s14 + $0x70] sm:$0xff]  }
 0x2c0   : > { %v2947_v8 = vadd.f32 %v2918_v50, %v2835_v6  ;;  %v2836_v31 = vadd.f32 %v2805_v14, %v2322_v16  ;;  %3837 = vmatprep.mubr.bf16.mxu1 %v16284_v27  ;;  %10300 = vmatprep.mubr.bf16.mxu0 %v11118_v24  ;;  %v2916_v34 = vsel %vm1680_vm1, %v2877_v17, %v2878_v42  ;;  %v16300_v50 = vld [vmem:[#allocation33_spill] sm:$0xff] }
 0x2c1   : > { %v2915_v10 = vsel %vm1680_vm1, %v2878_v42, %v2879_v61 }
 0x2c2   : > { %v12812_v0 = vadd.f32 %v2947_v8, %v16299_v30  ;;  %v2948_v43 = vadd.f32 %v2917_v7, %v2836_v31  ;;  %v2326_v58 = vpop.f32.mrb[144].mxu1  ;;  %v10162_v1 = vpop.f32.mrb[144].mxu0  ;;  %v11121_v8 = vld [vmem:[%s12031_s14 + $0x78] sm:$0xff]  }
 0x2c3   : > { %v2327_v33 = vpop.f32.mrb[145].mxu1  ;;  %v2637_v36 = vpop.f32.mrb[145].mxu0  ;;  %v2882_v24 = vrot.slane %v10162_v1, 1 }
 0x2c4   : > { %v12816_v62 = vadd.f32 %v2948_v43, %v16300_v50  ;;  %v2328_v55 = vpop.f32.mrb[146].mxu1  ;;  %v2880_v57 = vrot.slane %v2637_v36, 1  ;;  %v10163_v17 = vpop.f32.mrb[146].mxu0 }
 0x2c5   : > { %v2330_v2 = vpop.f32.mrb[147].mxu1  ;;  %v2640_v35 = vpop.f32.mrb[147].mxu0  ;;  %v2764_v6 = vrot.slane %v2328_v55, 7 }
 0x2c6   : > { %v2881_v48 = vrot.slane %v2640_v35, 1 }
 0x2c7   : > { %3838 = vmatmul.mubr.bf16.gmra.mrb[252].mxu1 %v11120_v52  ;;  %10301 = vmatmul.mubr.bf16.gmra.mrb[252].mxu0 %v11119_v39  ;;  %v11122_v39 = vld [vmem:[%s12031_s14 + $0x80] sm:$0xff]  }
 0x2c8   : > { %3847 = vmatprep.mubr.bf16.mxu1 %v16284_v27  ;;  %10304 = vmatprep.mubr.bf16.mxu0 %v11120_v52  ;;  %v12821_v7 = vsel %vm1680_vm1, %v2880_v57, %v2881_v48  ;;  %v12825_v16 = vsel %vm1680_vm1, %v2881_v48, %v2882_v24 }
 0x2ca   : > { %v2333_v61 = vpop.f32.mrb[148].mxu1  ;;  %v10166_v41 = vpop.f32.mrb[148].mxu0 }
 0x2cb   : > { %v2765_v42 = vrot.slane %v2333_v61, 7  ;;  %v2335_v14 = vpop.f32.mrb[149].mxu1  ;;  %v2652_v31 = vpop.f32.mrb[149].mxu0  ;;  %v2885_v36 = vrot.slane %v10166_v41, 1 }
 0x2cc   : > { %v2337_v30 = vpop.f32.mrb[150].mxu1  ;;  %v2883_v43 = vrot.slane %v2652_v31, 1  ;;  %v10167_v58 = vpop.f32.mrb[150].mxu0 }
 0x2cd   : > { %v2804_v1 = vsel %vm1567_vm0, %v2764_v6, %v2765_v42  ;;  %v2766_v33 = vrot.slane %v2337_v30, 7  ;;  %v2339_v52 = vpop.f32.mrb[151].mxu1  ;;  %v2655_v50 = vpop.f32.mrb[151].mxu0  ;;  %v11124_v58 = vld [vmem:[%s12031_s14 + $0x90] sm:$0xff]  }
 0x2ce   : > { %v2837_v24 = vadd.f32 %v2804_v1, %v2335_v14  ;;  %v2884_v57 = vrot.slane %v2655_v50, 1 }
 0x2cf   : > { %v2803_v55 = vsel %vm1567_vm0, %v2765_v42, %v2766_v33  ;;  %3848 = vmatmul.mubr.bf16.gmra.mrb[0].mxu1 %v11121_v8  ;;  %10305 = vmatmul.mubr.bf16.gmra.mrb[0].mxu0 %v11121_v8 }
 0x2d0   : > { %v2949_v17 = vadd.f32 %v2916_v34, %v2837_v24  ;;  %v2838_v2 = vadd.f32 %v2803_v55, %v2339_v52  ;;  %3854 = vmatprep.mubr.bf16.mxu1 %v16284_v27  ;;  %10308 = vmatprep.mubr.bf16.mxu0 %v11122_v39  ;;  %v12836_v35 = vsel %vm1680_vm1, %v2883_v43, %v2884_v57  ;;  %v11123_v34 = vld [vmem:[%s12031_s14 + $0x88] sm:$0xff]  }
 0x2d1   : > { %v12840_v48 = vsel %vm1680_vm1, %v2884_v57, %v2885_v36 }
 0x2d2   : > { %v12843_v61 = vadd.f32 %v2949_v17, %v12479_v13  ;;  %v2950_v41 = vadd.f32 %v2915_v10, %v2838_v2  ;;  %v2343_v6 = vpop.f32.mrb[152].mxu1  ;;  %v10170_v42 = vpop.f32.mrb[152].mxu0  ;;  %v12860_v2 = vld [vmem:[%s12031_s14 + $0x98] sm:$0xff]  }
 0x2d3   : > { %v2344_v14 = vpop.f32.mrb[153].mxu1  ;;  %v2667_v8 = vpop.f32.mrb[153].mxu0  ;;  %v2888_v43 = vrot.slane %v10170_v42, 1  ;;  %v12863_v6 = vld [vmem:[%s12031_s14 + $0xa0] sm:$0xff]  }
 0x2d4   : > { %v12847_v31 = vadd.f32 %v2950_v41, %v12493_v25  ;;  %v2345_v30 = vpop.f32.mrb[154].mxu1  ;;  %v2886_v1 = vrot.slane %v2667_v8, 1  ;;  %v10171_v33 = vpop.f32.mrb[154].mxu0 }
 0x2d5   : > { %v2347_v52 = vpop.f32.mrb[155].mxu1  ;;  %v2670_v36 = vpop.f32.mrb[155].mxu0  ;;  %v2767_v57 = vrot.slane %v2345_v30, 7 }
 0x2d6   : > { %v2887_v13 = vrot.slane %v2670_v36, 1 }
 0x2d7   : > { %3855 = vmatmul.mubr.bf16.gmra.mrb[4].mxu1 %v11122_v39  ;;  %10309 = vmatmul.mubr.bf16.gmra.mrb[4].mxu0 %v11123_v34 }
 0x2d8   : > { %3864 = vmatprep.mubr.bf16.mxu1 %v16284_v27  ;;  %10312 = vmatprep.mubr.bf16.mxu0 %v11124_v58  ;;  %v12853_v10 = vsel %vm1680_vm1, %v2886_v1, %v2887_v13  ;;  %v12857_v25 = vsel %vm1680_vm1, %v2887_v13, %v2888_v43 }
 0x2da   : > { %v2350_v50 = vpop.f32.mrb[156].mxu1  ;;  %v10174_v24 = vpop.f32.mrb[156].mxu0 }
 0x2db   : > { %v2768_v55 = vrot.slane %v2350_v50, 7  ;;  %v2352_v17 = vpop.f32.mrb[157].mxu1  ;;  %v2682_v39 = vpop.f32.mrb[157].mxu0  ;;  %v2891_v43 = vrot.slane %v10174_v24, 1 }
 0x2dc   : > { %v2354_v41 = vpop.f32.mrb[158].mxu1  ;;  %v2889_v42 = vrot.slane %v2682_v39, 1  ;;  %v10175_v14 = vpop.f32.mrb[158].mxu0 }
 0x2dd   : > { %v2802_v8 = vsel %vm1567_vm0, %v2767_v57, %v2768_v55  ;;  %v2769_v1 = vrot.slane %v2354_v41, 7  ;;  %v2356_v33 = vpop.f32.mrb[159].mxu1  ;;  %v2685_v52 = vpop.f32.mrb[159].mxu0  ;;  %v12886_v14 = vld [vmem:[%s12031_s14 + $0xa8] sm:$0xff]  }
 0x2de   : > { %v2839_v36 = vadd.f32 %v2802_v8, %v2352_v17  ;;  %v2890_v30 = vrot.slane %v2685_v52, 1 }
 0x2df   : > { %v2801_v13 = vsel %vm1567_vm0, %v2768_v55, %v2769_v1  ;;  %3865 = vmatmul.mubr.bf16.gmra.mrb[8].mxu1 %v11123_v34  ;;  %10313 = vmatmul.mubr.bf16.gmra.mrb[8].mxu0 %v12860_v2 }
 0x2e0   : > { %v2951_v50 = vadd.f32 %v12821_v7, %v2839_v36  ;;  %v2840_v39 = vadd.f32 %v2801_v13, %v2356_v33  ;;  %3871 = vmatprep.mubr.bf16.mxu1 %v16284_v27  ;;  %10316 = vmatprep.mubr.bf16.mxu0 %v12863_v6  ;;  %v12875_v24 = vsel %vm1680_vm1, %v2889_v42, %v2890_v30  ;;  %v12892_v33 = vld [vmem:[%s12031_s14 + $0xb0] sm:$0xff]  }
 0x2e1   : > { %v12879_v57 = vsel %vm1680_vm1, %v2890_v30, %v2891_v43 }
 0x2e2   : > { %v12882_v34 = vadd.f32 %v2951_v50, %v12514_v54  ;;  %v2952_v55 = vadd.f32 %v12825_v16, %v2840_v39  ;;  %v2360_v17 = vpop.f32.mrb[160].mxu1  ;;  %v10178_v7 = vpop.f32.mrb[160].mxu0 }
 0x2e3   : > { %v2361_v41 = vpop.f32.mrb[161].mxu1  ;;  %v2697_v8 = vpop.f32.mrb[161].mxu0  ;;  %v2894_v52 = vrot.slane %v10178_v7, 1 }
 0x2e4   : > { %16301 = vst [vmem:[#allocation20_spill] sm:$0xff] %v12882_v34  ;;  %v12889_v1 = vadd.f32 %v2952_v55, %v12527_v4  ;;  %v2362_v42 = vpop.f32.mrb[162].mxu1  ;;  %v2892_v43 = vrot.slane %v2697_v8, 1  ;;  %v10179_v36 = vpop.f32.mrb[162].mxu0 }
 0x2e5   : > { %v2364_v54 = vpop.f32.mrb[163].mxu1  ;;  %v2700_v30 = vpop.f32.mrb[163].mxu0  ;;  %v2770_v55 = vrot.slane %v2362_v42, 7  ;;  %v12909_v36 = vld [vmem:[%s12031_s14 + $0xc0] sm:$0xff]  }
 0x2e6   : > { %16302 = vst [vmem:[#allocation21_spill] sm:$0xff] %v12889_v1  ;;  %v2893_v16 = vrot.slane %v2700_v30, 1 }
 0x2e7   : > { %3872 = vmatmul.mubr.bf16.gmra.mrb[12].mxu1 %v11124_v58  ;;  %10317 = vmatmul.mubr.bf16.gmra.mrb[12].mxu0 %v12886_v14  ;;  %v12906_v58 = vld [vmem:[%s12031_s14 + $0xb8] sm:$0xff]  }
 0x2e8   : > { %3881 = vmatprep.mubr.bf16.mxu1 %v16284_v27  ;;  %10320 = vmatprep.mubr.bf16.mxu0 %v12892_v33  ;;  %v12899_v4 = vsel %vm1680_vm1, %v2892_v43, %v2893_v16  ;;  %v12903_v13 = vsel %vm1680_vm1, %v2893_v16, %v2894_v52 }
 0x2ea   : > { %v2367_v50 = vpop.f32.mrb[164].mxu1  ;;  %v10182_v39 = vpop.f32.mrb[164].mxu0 }
 0x2eb   : > { %v2771_v17 = vrot.slane %v2367_v50, 7  ;;  %v2369_v7 = vpop.f32.mrb[165].mxu1  ;;  %v2712_v41 = vpop.f32.mrb[165].mxu0  ;;  %v2897_v52 = vrot.slane %v10182_v39, 1 }
 0x2ec   : > { %v2371_v8 = vpop.f32.mrb[166].mxu1  ;;  %v2895_v54 = vrot.slane %v2712_v41, 1  ;;  %v10183_v30 = vpop.f32.mrb[166].mxu0 }
 0x2ed   : > { %v2800_v43 = vsel %vm1567_vm0, %v2770_v55, %v2771_v17  ;;  %v2772_v19 = vrot.slane %v2371_v8, 7  ;;  %v2373_v1 = vpop.f32.mrb[167].mxu1  ;;  %v2715_v16 = vpop.f32.mrb[167].mxu0 }
 0x2ee   : > { %v2841_v34 = vadd.f32 %v2800_v43, %v2369_v7  ;;  %v2896_v42 = vrot.slane %v2715_v16, 1  ;;  %v12939_v43 = vld [vmem:[%s12031_s14 + $0xd0] sm:$0xff]  }
 0x2ef   : > { %v2799_v50 = vsel %vm1567_vm0, %v2771_v17, %v2772_v19  ;;  %3882 = vmatmul.mubr.bf16.gmra.mrb[16].mxu1 %v12860_v2  ;;  %10321 = vmatmul.mubr.bf16.gmra.mrb[16].mxu0 %v12906_v58 }
 0x2f0   : > { %v2953_v41 = vadd.f32 %v12836_v35, %v2841_v34  ;;  %v2842_v30 = vadd.f32 %v2799_v50, %v2373_v1  ;;  %3888 = vmatprep.mubr.bf16.mxu1 %v16284_v27  ;;  %10324 = vmatprep.mubr.bf16.mxu0 %v12909_v36  ;;  %v12922_v39 = vsel %vm1680_vm1, %v2895_v54, %v2896_v42  ;;  %v12933_v1 = vld [vmem:[%s12031_s14 + $0xc8] sm:$0xff]  }
 0x2f1   : > { %v12926_v55 = vsel %vm1680_vm1, %v2896_v42, %v2897_v52 }
 0x2f2   : > { %v12929_v19 = vadd.f32 %v2953_v41, %v12550_v59  ;;  %v2954_v2 = vadd.f32 %v12840_v48, %v2842_v30  ;;  %v2377_v17 = vpop.f32.mrb[168].mxu1  ;;  %v10186_v35 = vpop.f32.mrb[168].mxu0 }
 0x2f3   : > { %v2378_v34 = vpop.f32.mrb[169].mxu1  ;;  %v2727_v7 = vpop.f32.mrb[169].mxu0  ;;  %v2900_v16 = vrot.slane %v10186_v35, 1 }
 0x2f4   : > { %v12936_v8 = vadd.f32 %v2954_v2, %v12565_v45  ;;  %v2379_v54 = vpop.f32.mrb[170].mxu1  ;;  %v2898_v52 = vrot.slane %v2727_v7, 1  ;;  %v10187_v42 = vpop.f32.mrb[170].mxu0 }
 0x2f5   : > { %v2381_v59 = vpop.f32.mrb[171].mxu1  ;;  %v2730_v50 = vpop.f32.mrb[171].mxu0  ;;  %v2773_v17 = vrot.slane %v2379_v54, 7 }
 0x2f6   : > { %16303 = vst [vmem:[#allocation22_spill] sm:$0xff] %v12936_v8  ;;  %v2899_v48 = vrot.slane %v2730_v50, 1  ;;  %v12959_v59 = vld [vmem:[%s12031_s14 + $0xe0] sm:$0xff]  }
 0x2f7   : > { %3889 = vmatmul.mubr.bf16.gmra.mrb[20].mxu1 %v12863_v6  ;;  %10325 = vmatmul.mubr.bf16.gmra.mrb[20].mxu0 %v12933_v1  ;;  %v12954_v6 = vld [vmem:[%s12031_s14 + $0xd8] sm:$0xff]  }
 0x2f8   : > { %3898 = vmatprep.mubr.bf16.mxu1 %v16284_v27  ;;  %10328 = vmatprep.mubr.bf16.mxu0 %v12939_v43  ;;  %v12947_v45 = vsel %vm1680_vm1, %v2898_v52, %v2899_v48  ;;  %v12951_v41 = vsel %vm1680_vm1, %v2899_v48, %v2900_v16 }
 0x2fa   : > { %v2384_v30 = vpop.f32.mrb[172].mxu1  ;;  %v10206_v2 = vpop.f32.mrb[172].mxu0 }
 0x2fb   : > { %v2774_v35 = vrot.slane %v2384_v30, 7  ;;  %v2386_v34 = vpop.f32.mrb[173].mxu1  ;;  %v12956_v7 = vpop.f32.mrb[173].mxu0 }
 0x2fc   : > { %16304 = vst [vmem:[#allocation23_spill] sm:$0xff] %v12956_v7  ;;  %v2388_v42 = vpop.f32.mrb[174].mxu1  ;;  %v10207_v50 = vpop.f32.mrb[174].mxu0 }
 0x2fd   : > { %v2798_v52 = vsel %vm1567_vm0, %v2773_v17, %v2774_v35  ;;  %v2775_v8 = vrot.slane %v2388_v42, 7  ;;  %v2390_v16 = vpop.f32.mrb[175].mxu1  ;;  %v12963_v48 = vpop.f32.mrb[175].mxu0 }
 0x2fe   : > { %16305 = vst [vmem:[#allocation24_spill] sm:$0xff] %v12963_v48  ;;  %v2843_v2 = vadd.f32 %v2798_v52, %v2386_v34 }
 0x2ff   : > { %v2797_v54 = vsel %vm1567_vm0, %v2774_v35, %v2775_v8  ;;  %3899 = vmatmul.mubr.bf16.gmra.mrb[24].mxu1 %v12886_v14  ;;  %10329 = vmatmul.mubr.bf16.gmra.mrb[24].mxu0 %v12954_v6  ;;  %v12977_v35 = vld [vmem:[%s12031_s14 + $0xe8] sm:$0xff]  }
 0x300   : > { %v2955_v30 = vadd.f32 %v12853_v10, %v2843_v2  ;;  %v2844_v50 = vadd.f32 %v2797_v54, %v2390_v16  ;;  %3905 = vmatprep.mubr.bf16.mxu1 %v16284_v27  ;;  %10332 = vmatprep.mubr.bf16.mxu0 %v12959_v59  ;;  %v12985_v2 = vld [vmem:[%s12031_s14 + $0xf0] sm:$0xff]  }
 0x302   : > { %v12973_v17 = vadd.f32 %v2955_v30, %v12589_v26  ;;  %v2956_v34 = vadd.f32 %v12857_v25, %v2844_v50  ;;  %v2394_v42 = vpop.f32.mrb[176].mxu1  ;;  %v10210_v52 = vpop.f32.mrb[176].mxu0 }
 0x303   : > { %v2395_v8 = vpop.f32.mrb[177].mxu1  ;;  %v12979_v14 = vpop.f32.mrb[177].mxu0  ;;  %v12996_v52 = vld [vmem:[%s12031_s14 + $0xf8] sm:$0xff]  }
 0x304   : > { %16306 = vst [vmem:[#allocation25_spill] sm:$0xff] %v12979_v14  ;;  %v12982_v48 = vadd.f32 %v2956_v34, %v12594_v37  ;;  %v2396_v10 = vpop.f32.mrb[178].mxu1  ;;  %v10211_v16 = vpop.f32.mrb[178].mxu0 }
 0x305   : > { %v2398_v26 = vpop.f32.mrb[179].mxu1  ;;  %v12987_v54 = vpop.f32.mrb[179].mxu0  ;;  %v2776_v30 = vrot.slane %v2396_v10, 7 }
 0x306   : > { %16307 = vst [vmem:[#allocation26_spill] sm:$0xff] %v12987_v54  ;;  %v12999_v26 = vld [vmem:[%s12031_s14 + $0x100] sm:$0xff]  }
 0x307   : > { %3906 = vmatmul.mubr.bf16.gmra.mrb[28].mxu1 %v12892_v33  ;;  %10333 = vmatmul.mubr.bf16.gmra.mrb[28].mxu0 %v12977_v35 }
 0x308   : > { %3915 = vmatprep.mubr.bf16.mxu1 %v16284_v27  ;;  %10336 = vmatprep.mubr.bf16.mxu0 %v12985_v2 }
 0x30a   : > { %v2401_v25 = vpop.f32.mrb[180].mxu1  ;;  %v10214_v37 = vpop.f32.mrb[180].mxu0 }
 0x30b   : > { %v2777_v50 = vrot.slane %v2401_v25, 7  ;;  %v2403_v34 = vpop.f32.mrb[181].mxu1  ;;  %v12993_v42 = vpop.f32.mrb[181].mxu0 }
 0x30c   : > { %16308 = vst [vmem:[#allocation27_spill] sm:$0xff] %v12993_v42  ;;  %v2405_v8 = vpop.f32.mrb[182].mxu1  ;;  %v10215_v16 = vpop.f32.mrb[182].mxu0 }
 0x30d   : > { %v2796_v33 = vsel %vm1567_vm0, %v2776_v30, %v2777_v50  ;;  %v2778_v54 = vrot.slane %v2405_v8, 7  ;;  %v2407_v14 = vpop.f32.mrb[183].mxu1  ;;  %v13003_v7 = vpop.f32.mrb[183].mxu0 }
 0x30e   : > { %16309 = vst [vmem:[#allocation28_spill] sm:$0xff] %v13003_v7  ;;  %v2845_v37 = vadd.f32 %v2796_v33, %v2403_v34 }
 0x30f   : > { %v2795_v10 = vsel %vm1567_vm0, %v2777_v50, %v2778_v54  ;;  %3916 = vmatmul.mubr.bf16.gmra.mrb[32].mxu1 %v12906_v58  ;;  %10337 = vmatmul.mubr.bf16.gmra.mrb[32].mxu0 %v12996_v52  ;;  %v13019_v58 = vld [vmem:[%s12031_s14 + $0x108] sm:$0xff]  }
 0x310   : > { %v2957_v25 = vadd.f32 %v12875_v24, %v2845_v37  ;;  %v2846_v16 = vadd.f32 %v2795_v10, %v2407_v14  ;;  %3922 = vmatprep.mubr.bf16.mxu1 %v16284_v27  ;;  %10340 = vmatprep.mubr.bf16.mxu0 %v12999_v26  ;;  %v13025_v37 = vld [vmem:[%s12031_s14 + $0x110] sm:$0xff]  }
 0x312   : > { %v13013_v30 = vadd.f32 %v2957_v25, %v12615_v29  ;;  %v2958_v34 = vadd.f32 %v12879_v57, %v2846_v16  ;;  %v2411_v8 = vpop.f32.mrb[184].mxu1  ;;  %v10218_v33 = vpop.f32.mrb[184].mxu0 }
 0x313   : > { %v2412_v54 = vpop.f32.mrb[185].mxu1  ;;  %v13016_v50 = vpop.f32.mrb[185].mxu0  ;;  %v13036_v33 = vld [vmem:[%s12031_s14 + $0x118] sm:$0xff]  }
 0x314   : > { %16310 = vst [vmem:[#allocation29_spill] sm:$0xff] %v13016_v50  ;;  %v13022_v7 = vadd.f32 %v2958_v34, %v12620_v23  ;;  %v2413_v24 = vpop.f32.mrb[186].mxu1  ;;  %v10219_v14 = vpop.f32.mrb[186].mxu0 }
 0x315   : > { %v2415_v10 = vpop.f32.mrb[187].mxu1  ;;  %v13027_v29 = vpop.f32.mrb[187].mxu0  ;;  %v2779_v23 = vrot.slane %v2413_v24, 7 }
 0x316   : > { %16311 = vst [vmem:[#allocation30_spill] sm:$0xff] %v13027_v29 }
 0x317   : > { %3923 = vmatmul.mubr.bf16.gmra.mrb[36].mxu1 %v12909_v36  ;;  %10341 = vmatmul.mubr.bf16.gmra.mrb[36].mxu0 %v13019_v58 }
 0x318   : > { %3932 = vmatprep.mubr.bf16.mxu1 %v16284_v27  ;;  %10344 = vmatprep.mubr.bf16.mxu0 %v13025_v37 }
 0x31a   : > { %v2418_v57 = vpop.f32.mrb[188].mxu1  ;;  %v10222_v25 = vpop.f32.mrb[188].mxu0 }
 0x31b   : > { %v2780_v16 = vrot.slane %v2418_v57, 7  ;;  %v2420_v34 = vpop.f32.mrb[189].mxu1  ;;  %v13033_v8 = vpop.f32.mrb[189].mxu0 }
 0x31c   : > { %16312 = vst [vmem:[#allocation31_spill] sm:$0xff] %v13033_v8  ;;  %v2422_v54 = vpop.f32.mrb[190].mxu1  ;;  %v10223_v14 = vpop.f32.mrb[190].mxu0 }
 0x31d   : > { %v2794_v36 = vsel %vm1567_vm0, %v2779_v23, %v2780_v16  ;;  %v2781_v10 = vrot.slane %v2422_v54, 7  ;;  %v2424_v29 = vpop.f32.mrb[191].mxu1  ;;  %v13040_v50 = vpop.f32.mrb[191].mxu0  ;;  %v16200_v14 = vmov 0.0|0.0  }
 0x31e   : > { %16313 = vst [vmem:[#allocation32_spill] sm:$0xff] %v13040_v50  ;;  %v2847_v42 = vadd.f32 %v2794_v36, %v2420_v34  ;;  %10752 = vmatprep.subr.bf16.mxu1 %v16200_v14  ;;  %10728 = vmatprep.subr.bf16.mxu0 %v16200_v14  ;;  %v491_v14 = vld [vmem:[#allocation11] sm:$0xff] }
 0x31f   : > { %v2793_v25 = vsel %vm1567_vm0, %v2780_v16, %v2781_v10  ;;  %3933 = vmatmul.mubr.bf16.gmra.mrb[40].mxu1 %v12933_v1  ;;  %10345 = vmatmul.mubr.bf16.gmra.mrb[40].mxu0 %v13036_v33 }
 0x320   : > { %v2959_v24 = vadd.f32 %v12899_v4, %v2847_v42  ;;  %v2848_v57 = vadd.f32 %v2793_v25, %v2424_v29  ;;  %3939 = vmatprep.mubr.bf16.mxu1 %v16284_v27 }
 0x322   : > { %v13051_v23 = vadd.f32 %v2959_v24, %v12644_v51  ;;  %v2960_v34 = vadd.f32 %v12903_v13, %v2848_v57  ;;  %v2428_v16 = vpop.f32.mrb[192].mxu1  ;;  %v10226_v54 = vpop.f32.mrb[192].mxu0  ;;  %v492_v51 = vld [vmem:[#allocation11 + $0x8] sm:$0xff] }
 0x323   : > { %v2429_v1 = vpop.f32.mrb[193].mxu1  ;;  %v13054_v36 = vpop.f32.mrb[193].mxu0  ;;  %v13063_v13 = vpack.c.bf16 %v492_v51, %v491_v14 }
 0x324   : > { %16314 = vst [vmem:[#allocation33_spill] sm:$0xff] %v13054_v36  ;;  %v13057_v4 = vadd.f32 %v2960_v34, %v12649_v5  ;;  %v2430_v42 = vpop.f32.mrb[194].mxu1  ;;  %v10227_v29 = vpop.f32.mrb[194].mxu0  ;;  %v16318_v1 = vmov 0.0|0.0  }
 0x325   : > { %v2432_v10 = vpop.f32.mrb[195].mxu1  ;;  %v13059_v25 = vpop.f32.mrb[195].mxu0  ;;  %16316 = vst [vmem:[#allocation35_spill] sm:$0xff] %v13063_v13  ;;  %10754 = vmatpush3.bf16.msra.mxu1 %v13063_v13  ;;  %10730 = vmatpush3.bf16.msra.mxu0 %v13063_v13  ;;  %v2782_v5 = vrot.slane %v2430_v42, 7 }
 0x326   : > { %16315 = vst [vmem:[#allocation34_spill] sm:$0xff] %v13059_v25  ;;  %10755 = vmatprep.subr.bf16.mxu1 %v16318_v1  ;;  %10731 = vmatprep.subr.bf16.mxu0 %v16318_v1 }
 0x327   : > { %3940 = vmatmul.mubr.bf16.gmra.mrb[44].mxu1 %v12939_v43 }
 0x328   : > { %3949 = vmatprep.mubr.bf16.mxu1 %v16284_v27 }
 0x32a   : > { %v2435_v24 = vpop.f32.mrb[196].mxu1  ;;  %v10230_v57 = vpop.f32.mrb[196].mxu0 }
 0x32b   : > { %v2783_v34 = vrot.slane %v2435_v24, 7  ;;  %v2437_v16 = vpop.f32.mrb[197].mxu1  ;;  %v13067_v54 = vpop.f32.mrb[197].mxu0 }
 0x32c   : > { %16317 = vst [vmem:[#allocation36_spill] sm:$0xff] %v13067_v54  ;;  %v2439_v43 = vpop.f32.mrb[198].mxu1  ;;  %v10231_v29 = vpop.f32.mrb[198].mxu0 }
 0x32d   : > { %v2792_v14 = vsel %vm1567_vm0, %v2782_v5, %v2783_v34  ;;  %v2784_v10 = vrot.slane %v2439_v43, 7  ;;  %v2441_v51 = vpop.f32.mrb[199].mxu1  ;;  %v13073_v57 = vpop.f32.mrb[199].mxu0 }
 0x32e   : > { %16319 = vst [vmem:[#allocation37_spill] sm:$0xff] %v13073_v57  ;;  %v2849_v25 = vadd.f32 %v2792_v14, %v2437_v16 }
 0x32f   : > { %v2791_v42 = vsel %vm1567_vm0, %v2783_v34, %v2784_v10  ;;  %3950 = vmatmul.mubr.bf16.gmra.mrb[48].mxu1 %v12954_v6 }
 0x330   : > { %v2961_v24 = vadd.f32 %v12922_v39, %v2849_v25  ;;  %v2850_v54 = vadd.f32 %v2791_v42, %v2441_v51  ;;  %3956 = vmatprep.mubr.bf16.mxu1 %v16284_v27 }
 0x332   : > { %v13081_v29 = vadd.f32 %v2961_v24, %v12538_v28  ;;  %v2962_v5 = vadd.f32 %v12926_v55, %v2850_v54  ;;  %v2445_v43 = vpop.f32.mrb[200].mxu1  ;;  %v10234_v36 = vpop.f32.mrb[200].mxu0 }
 0x333   : > { %v2446_v50 = vpop.f32.mrb[201].mxu1  ;;  %v13084_v57 = vpop.f32.mrb[201].mxu0 }
 0x334   : > { %16320 = vst [vmem:[#allocation38_spill] sm:$0xff] %v13084_v57  ;;  %v13087_v16 = vadd.f32 %v2962_v5, %v12541_v47  ;;  %v2447_v34 = vpop.f32.mrb[202].mxu1  ;;  %v10235_v6 = vpop.f32.mrb[202].mxu0 }
 0x335   : > { %v2449_v14 = vpop.f32.mrb[203].mxu1  ;;  %v13089_v39 = vpop.f32.mrb[203].mxu0  ;;  %v2785_v55 = vrot.slane %v2447_v34, 7 }
 0x336   : > { %16321 = vst [vmem:[#allocation39_spill] sm:$0xff] %v13089_v39 }
 0x337   : > { %3957 = vmatmul.mubr.bf16.gmra.mrb[52].mxu1 %v12959_v59 }
 0x338   : > { %3966 = vmatprep.mubr.bf16.mxu1 %v16284_v27 }
 0x33a   : > { %v2452_v28 = vpop.f32.mrb[204].mxu1  ;;  %v10238_v25 = vpop.f32.mrb[204].mxu0 }
 0x33b   : > { %v2786_v54 = vrot.slane %v2452_v28, 7  ;;  %v2454_v36 = vpop.f32.mrb[205].mxu1  ;;  %v13093_v50 = vpop.f32.mrb[205].mxu0 }
 0x33c   : > { %16322 = vst [vmem:[#allocation40_spill] sm:$0xff] %v13093_v50  ;;  %v2456_v10 = vpop.f32.mrb[206].mxu1  ;;  %v10239_v51 = vpop.f32.mrb[206].mxu0 }
 0x33d   : > { %v2790_v47 = vsel %vm1567_vm0, %v2785_v55, %v2786_v54  ;;  %v2787_v42 = vrot.slane %v2456_v10, 7  ;;  %v2458_v24 = vpop.f32.mrb[207].mxu1  ;;  %v13097_v5 = vpop.f32.mrb[207].mxu0 }
 0x33e   : > { %16323 = vst [vmem:[#allocation41_spill] sm:$0xff] %v13097_v5  ;;  %v2851_v43 = vadd.f32 %v2790_v47, %v2454_v36 }
 0x33f   : > { %v2789_v59 = vsel %vm1567_vm0, %v2786_v54, %v2787_v42  ;;  %3967 = vmatmul.mubr.bf16.gmra.mrb[56].mxu1 %v12977_v35 }
 0x340   : > { %v2963_v34 = vadd.f32 %v12947_v45, %v2851_v43  ;;  %v2852_v6 = vadd.f32 %v2789_v59, %v2458_v24  ;;  %3973 = vmatprep.mubr.bf16.mxu1 %v16284_v27  ;;  %v16326_v24 = vrot.slane %v12567_v21, 7  ;;  %v493_v43 = vld [vmem:[#allocation11 + $0x10] sm:$0xff] }
 0x342   : > { %v13105_v14 = vadd.f32 %v2963_v34, %v12558_v53  ;;  %v2964_v28 = vadd.f32 %v12951_v41, %v2852_v6  ;;  %v2462_v25 = vpop.f32.mrb[208].mxu1  ;;  %v10242_v55 = vpop.f32.mrb[208].mxu0 }
 0x343   : > { %v2463_v10 = vpop.f32.mrb[209].mxu1  ;;  %v13108_v51 = vpop.f32.mrb[209].mxu0 }
 0x344   : > { %16324 = vst [vmem:[#allocation42_spill] sm:$0xff] %v13108_v51  ;;  %v13111_v36 = vadd.f32 %v2964_v28, %v12561_v9  ;;  %v2464_v54 = vpop.f32.mrb[210].mxu1  ;;  %v10243_v35 = vpop.f32.mrb[210].mxu0  ;;  %v494_v9 = vld [vmem:[#allocation11 + $0x18] sm:$0xff] }
 0x345   : > { %v2788_v47 = vrot.slane %v2464_v54, 7  ;;  %v2466_v45 = vpop.f32.mrb[211].mxu1  ;;  %v13113_v42 = vpop.f32.mrb[211].mxu0  ;;  %v13122_v59 = vpack.c.bf16 %v494_v9, %v493_v43 }
 0x346   : > { %16325 = vst [vmem:[#allocation43_spill] sm:$0xff] %v13113_v42 }
 0x347   : > { %v2820_v53 = vsel %vm1567_vm0, %v2788_v47, %v16326_v24  ;;  %3974 = vmatmul.mubr.bf16.gmra.mrb[60].mxu1 %v12985_v2  ;;  %16327 = vst [vmem:[#allocation44_spill] sm:$0xff] %v13122_v59  ;;  %10733 = vmatpush3.bf16.msra.mxu0 %v13122_v59 }
 0x348   : > { %v2821_v41 = vadd.f32 %v2820_v53, %v12569_v60  ;;  %3983 = vmatprep.mubr.bf16.mxu1 %v16284_v27  ;;  %10757 = vmatpush3.bf16.msra.mxu1 %v13122_v59  ;;  %v16329_v60 = vld [vmem:[#allocation19_spill] sm:$0xff] }
 0x349   : > { %10758 = vmatprep.subr.bf16.mxu1 %v16318_v1  ;;  %10734 = vmatprep.subr.bf16.mxu0 %v16318_v1 }
 0x34a   : > { %v2933_v34 = vadd.f32 %v12668_v49, %v2821_v41  ;;  %v13125_v6 = vpop.f32.mrb[212].mxu1  ;;  %v10246_v28 = vpop.f32.mrb[212].mxu0 }
 0x34b   : > { %v13127_v25 = vpop.f32.mrb[213].mxu1  ;;  %v13129_v21 = vpop.f32.mrb[213].mxu0  ;;  %v16202_v49 = vrot.slane %v13125_v6, 7 }
 0x34c   : > { %16328 = vst [vmem:[#allocation45_spill] sm:$0xff] %v13129_v21  ;;  %v13134_v2 = vadd.f32 %v2933_v34, %v16329_v60  ;;  %v3758_v55 = vpop.f32.mrb[214].mxu1  ;;  %v10247_v10 = vpop.f32.mrb[214].mxu0 }
 0x34d   : > { %v4299_v54 = vrot.slane %v3758_v55, 7  ;;  %v3760_v35 = vpop.f32.mrb[215].mxu1  ;;  %v13139_v47 = vpop.f32.mrb[215].mxu0 }
 0x34e   : > { %16330 = vst [vmem:[#allocation19_spill] sm:$0xff] %v13139_v47 }
 0x34f   : > { %v4376_v45 = vsel %vm1567_vm0, %v16202_v49, %v4299_v54  ;;  %3984 = vmatmul.mubr.bf16.gmra.mrb[64].mxu1 %v12996_v52 }
 0x350   : > { %v13146_v24 = vadd.f32 %v4376_v45, %v3760_v35  ;;  %3990 = vmatprep.mubr.bf16.mxu1 %v16284_v27 }
 0x352   : > { %v3764_v53 = vpop.f32.mrb[216].mxu1  ;;  %v10250_v41 = vpop.f32.mrb[216].mxu0 }
 0x353   : > { %v3765_v43 = vpop.f32.mrb[217].mxu1  ;;  %v13149_v9 = vpop.f32.mrb[217].mxu0 }
 0x354   : > { %16331 = vst [vmem:[#allocation46_spill] sm:$0xff] %v13149_v9  ;;  %v3766_v34 = vpop.f32.mrb[218].mxu1  ;;  %v10251_v28 = vpop.f32.mrb[218].mxu0 }
 0x355   : > { %v3768_v60 = vpop.f32.mrb[219].mxu1  ;;  %v13151_v55 = vpop.f32.mrb[219].mxu0  ;;  %v4300_v54 = vrot.slane %v3766_v34, 7 }
 0x356   : > { %16332 = vst [vmem:[#allocation47_spill] sm:$0xff] %v13151_v55 }
 0x357   : > { %3991 = vmatmul.mubr.bf16.gmra.mrb[68].mxu1 %v12999_v26 }
 0x358   : > { %4000 = vmatprep.mubr.bf16.mxu1 %v16284_v27 }
 0x35a   : > { %v3771_v10 = vpop.f32.mrb[220].mxu1  ;;  %v10254_v52 = vpop.f32.mrb[220].mxu0 }
 0x35b   : > { %v4301_v35 = vrot.slane %v3771_v10, 7  ;;  %v3773_v45 = vpop.f32.mrb[221].mxu1  ;;  %v13155_v49 = vpop.f32.mrb[221].mxu0 }
 0x35c   : > { %16333 = vst [vmem:[#allocation48_spill] sm:$0xff] %v13155_v49  ;;  %v3775_v53 = vpop.f32.mrb[222].mxu1  ;;  %v10255_v41 = vpop.f32.mrb[222].mxu0 }
 0x35d   : > { %v4375_v43 = vsel %vm1567_vm0, %v4300_v54, %v4301_v35  ;;  %v4302_v28 = vrot.slane %v3775_v53, 7  ;;  %v3777_v60 = vpop.f32.mrb[223].mxu1  ;;  %v13159_v9 = vpop.f32.mrb[223].mxu0 }
 0x35e   : > { %16334 = vst [vmem:[#allocation49_spill] sm:$0xff] %v13159_v9  ;;  %v13161_v55 = vadd.f32 %v4375_v43, %v3773_v45 }
 0x35f   : > { %v4374_v26 = vsel %vm1567_vm0, %v4301_v35, %v4302_v28  ;;  %4001 = vmatmul.mubr.bf16.gmra.mrb[72].mxu1 %v13019_v58  ;;  %v495_v35 = vld [vmem:[#allocation11 + $0x20] sm:$0xff]  ;;  %v496_v58 = vld [vmem:[#allocation11 + $0x28] sm:$0xff] }
 0x360   : > { %v13166_v34 = vadd.f32 %v4374_v26, %v3777_v60  ;;  %4007 = vmatprep.mubr.bf16.mxu1 %v16284_v27  ;;  %v13175_v45 = vpack.c.bf16 %v496_v58, %v495_v35 }
 0x362   : > { %v3781_v10 = vpop.f32.mrb[224].mxu1  ;;  %v10258_v52 = vpop.f32.mrb[224].mxu0  ;;  %16337 = vst [vmem:[#allocation52_spill] sm:$0xff] %v13175_v45  ;;  %10760 = vmatpush3.bf16.msra.mxu1 %v13175_v45  ;;  %10736 = vmatpush3.bf16.msra.mxu0 %v13175_v45 }
 0x363   : > { %v3782_v41 = vpop.f32.mrb[225].mxu1  ;;  %v13169_v49 = vpop.f32.mrb[225].mxu0  ;;  %10761 = vmatprep.subr.bf16.mxu1 %v16318_v1  ;;  %10737 = vmatprep.subr.bf16.mxu0 %v16318_v1 }
 0x364   : > { %16335 = vst [vmem:[#allocation50_spill] sm:$0xff] %v13169_v49  ;;  %v3783_v54 = vpop.f32.mrb[226].mxu1  ;;  %v10259_v53 = vpop.f32.mrb[226].mxu0 }
 0x365   : > { %v3785_v47 = vpop.f32.mrb[227].mxu1  ;;  %v13171_v9 = vpop.f32.mrb[227].mxu0  ;;  %v4303_v60 = vrot.slane %v3783_v54, 7 }
 0x366   : > { %16336 = vst [vmem:[#allocation51_spill] sm:$0xff] %v13171_v9 }
 0x367   : > { %4008 = vmatmul.mubr.bf16.gmra.mrb[76].mxu1 %v13025_v37 }
 0x368   : > { %4017 = vmatprep.mubr.bf16.mxu1 %v16284_v27 }
 0x36a   : > { %v3788_v43 = vpop.f32.mrb[228].mxu1  ;;  %v10262_v28 = vpop.f32.mrb[228].mxu0 }
 0x36b   : > { %v4304_v26 = vrot.slane %v3788_v43, 7  ;;  %v3790_v10 = vpop.f32.mrb[229].mxu1  ;;  %v13177_v52 = vpop.f32.mrb[229].mxu0 }
 0x36c   : > { %16338 = vst [vmem:[#allocation53_spill] sm:$0xff] %v13177_v52  ;;  %v3792_v47 = vpop.f32.mrb[230].mxu1  ;;  %v10263_v41 = vpop.f32.mrb[230].mxu0 }
 0x36d   : > { %v4373_v37 = vsel %vm1567_vm0, %v4303_v60, %v4304_v26  ;;  %v4305_v53 = vrot.slane %v3792_v47, 7  ;;  %v3794_v35 = vpop.f32.mrb[231].mxu1  ;;  %v13185_v54 = vpop.f32.mrb[231].mxu0 }
 0x36e   : > { %16339 = vst [vmem:[#allocation54_spill] sm:$0xff] %v13185_v54  ;;  %v13187_v58 = vadd.f32 %v4373_v37, %v3790_v10 }
 0x36f   : > { %v4372_v43 = vsel %vm1567_vm0, %v4304_v26, %v4305_v53  ;;  %4018 = vmatmul.mubr.bf16.gmra.mrb[80].mxu1 %v13036_v33 }
 0x370   : > { %v13192_v28 = vadd.f32 %v4372_v43, %v3794_v35 }
 0x372   : > { %v3798_v41 = vpop.f32.mrb[232].mxu1  ;;  %v10266_v52 = vpop.f32.mrb[232].mxu0 }
 0x373   : > { %v3799_v9 = vpop.f32.mrb[233].mxu1  ;;  %v13194_v49 = vpop.f32.mrb[233].mxu0 }
 0x374   : > { %16340 = vst [vmem:[#allocation55_spill] sm:$0xff] %v13194_v49  ;;  %v3800_v21 = vpop.f32.mrb[234].mxu1  ;;  %v10267_v60 = vpop.f32.mrb[234].mxu0 }
 0x375   : > { %v3802_v47 = vpop.f32.mrb[235].mxu1  ;;  %v13196_v42 = vpop.f32.mrb[235].mxu0  ;;  %v4306_v37 = vrot.slane %v3800_v21, 7 }
 0x376   : > { %16341 = vst [vmem:[#allocation56_spill] sm:$0xff] %v13196_v42 }
 0x37a   : > { %v3805_v54 = vpop.f32.mrb[236].mxu1  ;;  %v10286_v10 = vpop.f32.mrb[236].mxu0 }
 0x37b   : > { %v4307_v51 = vrot.slane %v3805_v54, 7  ;;  %v3807_v5 = vpop.f32.mrb[237].mxu1  ;;  %v4059_v26 = vpop.f32.mrb[237].mxu0  ;;  %v4412_v53 = vrot.slane %v10286_v10, 1 }
 0x37c   : > { %v4410_v33 = vrot.slane %v4059_v26, 1  ;;  %v3809_v35 = vpop.f32.mrb[238].mxu1  ;;  %v10287_v43 = vpop.f32.mrb[238].mxu0 }
 0x37d   : > { %v4371_v9 = vsel %vm1567_vm0, %v4306_v37, %v4307_v51  ;;  %v4308_v52 = vrot.slane %v3809_v35, 7  ;;  %v3811_v41 = vpop.f32.mrb[239].mxu1  ;;  %v4062_v49 = vpop.f32.mrb[239].mxu0 }
 0x37e   : > { %v13200_v60 = vadd.f32 %v4371_v9, %v3807_v5  ;;  %v4411_v47 = vrot.slane %v4062_v49, 1 }
 0x37f   : > { %v4370_v42 = vsel %vm1567_vm0, %v4307_v51, %v4308_v52 }
 0x380   : > { %v13204_v21 = vadd.f32 %v4370_v42, %v3811_v41  ;;  %v4488_v54 = vsel %vm1680_vm1, %v4411_v47, %v4412_v53  ;;  %v13210_v10 = vsel %vm1680_vm1, %v4410_v33, %v4411_v47  ;;  %v497_v47 = vld [vmem:[#allocation11 + $0x30] sm:$0xff] }
 0x381   : > { %v4491_v37 = vadd.f32 %v4488_v54, %v13146_v24  ;;  %v498_v54 = vld [vmem:[#allocation11 + $0x38] sm:$0xff] }
 0x382   : > { %v3815_v26 = vpop.f32.mrb[240].mxu1  ;;  %v10290_v35 = vpop.f32.mrb[240].mxu0 }
 0x383   : > { %v13214_v5 = vadd.f32 %v4491_v37, %v12674_v63  ;;  %v3816_v49 = vpop.f32.mrb[241].mxu1  ;;  %v4074_v43 = vpop.f32.mrb[241].mxu0  ;;  %v4415_v9 = vrot.slane %v10290_v35, 1  ;;  %v13222_v26 = vpack.c.bf16 %v498_v54, %v497_v47 }
 0x384   : > { %v4413_v51 = vrot.slane %v4074_v43, 1  ;;  %v3817_v42 = vpop.f32.mrb[242].mxu1  ;;  %v10291_v52 = vpop.f32.mrb[242].mxu0 }
 0x385   : > { %v3819_v41 = vpop.f32.mrb[243].mxu1  ;;  %v4077_v50 = vpop.f32.mrb[243].mxu0  ;;  %16342 = vst [vmem:[#allocation57_spill] sm:$0xff] %v13222_v26  ;;  %v4309_v43 = vrot.slane %v3817_v42, 7  ;;  %10763 = vmatpush3.bf16.msra.mxu1 %v13222_v26  ;;  %10739 = vmatpush3.bf16.msra.mxu0 %v13222_v26 }
 0x386   : > { %v4414_v53 = vrot.slane %v4077_v50, 1  ;;  %10764 = vmatprep.subr.bf16.mxu1 %v16318_v1  ;;  %10740 = vmatprep.subr.bf16.mxu0 %v16318_v1 }
 0x388   : > { %v4486_v33 = vsel %vm1680_vm1, %v4414_v53, %v4415_v9  ;;  %v4487_v24 = vsel %vm1680_vm1, %v4413_v51, %v4414_v53 }
 0x389   : > { %v4492_v63 = vadd.f32 %v4487_v24, %v13161_v55  ;;  %v4493_v37 = vadd.f32 %v4486_v33, %v13166_v34 }
 0x38a   : > { %v3822_v35 = vpop.f32.mrb[244].mxu1  ;;  %v10294_v49 = vpop.f32.mrb[244].mxu0 }
 0x38b   : > { %v13225_v52 = vadd.f32 %v4492_v63, %v12690_v22  ;;  %v13228_v50 = vadd.f32 %v4493_v37, %v12693_v15  ;;  %v4310_v9 = vrot.slane %v3822_v35, 7  ;;  %v3824_v41 = vpop.f32.mrb[245].mxu1  ;;  %v4089_v51 = vpop.f32.mrb[245].mxu0  ;;  %v4418_v55 = vrot.slane %v10294_v49, 1 }
 0x38c   : > { %v4416_v34 = vrot.slane %v4089_v51, 1  ;;  %v3826_v53 = vpop.f32.mrb[246].mxu1  ;;  %v10295_v33 = vpop.f32.mrb[246].mxu0 }
 0x38d   : > { %v4369_v22 = vsel %vm1567_vm0, %v4309_v43, %v4310_v9  ;;  %v4311_v15 = vrot.slane %v3826_v53, 7  ;;  %v3828_v42 = vpop.f32.mrb[247].mxu1  ;;  %v4092_v24 = vpop.f32.mrb[247].mxu0 }
 0x38e   : > { %v4386_v47 = vadd.f32 %v4369_v22, %v3824_v41  ;;  %v4417_v54 = vrot.slane %v4092_v24, 1 }
 0x38f   : > { %v4368_v63 = vsel %vm1567_vm0, %v4310_v9, %v4311_v15 }
 0x390   : > { %v4387_v37 = vadd.f32 %v4368_v63, %v3828_v42  ;;  %v4484_v35 = vsel %vm1680_vm1, %v4417_v54, %v4418_v55  ;;  %v4485_v49 = vsel %vm1680_vm1, %v4416_v34, %v4417_v54 }
 0x391   : > { %v4494_v51 = vadd.f32 %v4485_v49, %v13187_v58  ;;  %v4495_v33 = vadd.f32 %v4484_v35, %v13192_v28 }
 0x392   : > { %v3832_v43 = vpop.f32.mrb[248].mxu1  ;;  %v10298_v53 = vpop.f32.mrb[248].mxu0 }
 0x393   : > { %v13245_v39 = vadd.f32 %v4494_v51, %v12713_v20  ;;  %v13248_v41 = vadd.f32 %v4495_v33, %v12716_v38  ;;  %v3833_v9 = vpop.f32.mrb[249].mxu1  ;;  %v4104_v22 = vpop.f32.mrb[249].mxu0  ;;  %v4421_v15 = vrot.slane %v10298_v53, 1 }
 0x394   : > { %v4419_v42 = vrot.slane %v4104_v22, 1  ;;  %v3834_v55 = vpop.f32.mrb[250].mxu1  ;;  %v10299_v24 = vpop.f32.mrb[250].mxu0 }
 0x395   : > { %v3836_v63 = vpop.f32.mrb[251].mxu1  ;;  %v4107_v34 = vpop.f32.mrb[251].mxu0  ;;  %v4312_v51 = vrot.slane %v3834_v55, 7 }
 0x396   : > { %v4420_v54 = vrot.slane %v4107_v34, 1 }
 0x398   : > { %v4482_v58 = vsel %vm1680_vm1, %v4420_v54, %v4421_v15  ;;  %v4483_v28 = vsel %vm1680_vm1, %v4419_v42, %v4420_v54 }
 0x399   : > { %v4496_v20 = vadd.f32 %v4483_v28, %v13200_v60  ;;  %v4497_v38 = vadd.f32 %v4482_v58, %v13204_v21 }
 0x39a   : > { %v3839_v35 = vpop.f32.mrb[252].mxu1  ;;  %v10302_v49 = vpop.f32.mrb[252].mxu0 }
 0x39b   : > { %v13257_v33 = vadd.f32 %v4496_v20, %v12732_v56  ;;  %v13260_v43 = vadd.f32 %v4497_v38, %v12735_v3  ;;  %v4313_v53 = vrot.slane %v3839_v35, 7  ;;  %v3841_v9 = vpop.f32.mrb[253].mxu1  ;;  %v4119_v22 = vpop.f32.mrb[253].mxu0  ;;  %v4424_v15 = vrot.slane %v10302_v49, 1 }
 0x39c   : > { %v4422_v24 = vrot.slane %v4119_v22, 1  ;;  %v3843_v63 = vpop.f32.mrb[254].mxu1  ;;  %v10303_v42 = vpop.f32.mrb[254].mxu0 }
 0x39d   : > { %v4367_v60 = vsel %vm1567_vm0, %v4312_v51, %v4313_v53  ;;  %v4314_v21 = vrot.slane %v3843_v63, 7  ;;  %v3845_v34 = vpop.f32.mrb[255].mxu1  ;;  %v4122_v54 = vpop.f32.mrb[255].mxu0 }
 0x39e   : > { %v4388_v55 = vadd.f32 %v4367_v60, %v3841_v9  ;;  %v4423_v58 = vrot.slane %v4122_v54, 1 }
 0x39f   : > { %v4366_v56 = vsel %vm1567_vm0, %v4313_v53, %v4314_v21 }
 0x3a0   : > { %v4389_v3 = vadd.f32 %v4366_v56, %v3845_v34  ;;  %v4480_v28 = vsel %vm1680_vm1, %v4423_v58, %v4424_v15  ;;  %v4481_v20 = vsel %vm1680_vm1, %v4422_v24, %v4423_v58  ;;  %v500_v24 = vld [vmem:[#allocation11 + $0x48] sm:$0xff] }
 0x3a1   : > { %v4498_v38 = vadd.f32 %v4481_v20, %v4386_v47  ;;  %v4499_v35 = vadd.f32 %v4480_v28, %v4387_v37 }
 0x3a2   : > { %v3849_v49 = vpop.f32.mrb[0].mxu1  ;;  %v10306_v22 = vpop.f32.mrb[0].mxu0 }
 0x3a3   : > { %v13271_v51 = vadd.f32 %v4498_v38, %v12753_v11  ;;  %v13274_v9 = vadd.f32 %v4499_v35, %v12756_v44  ;;  %v3850_v63 = vpop.f32.mrb[1].mxu1  ;;  %v4134_v42 = vpop.f32.mrb[1].mxu0  ;;  %v4427_v53 = vrot.slane %v10306_v22, 1  ;;  %v499_v11 = vld [vmem:[#allocation11 + $0x40] sm:$0xff] }
 0x3a4   : > { %v4425_v60 = vrot.slane %v4134_v42, 1  ;;  %v3851_v21 = vpop.f32.mrb[2].mxu1  ;;  %v10307_v34 = vpop.f32.mrb[2].mxu0  ;;  %v13280_v28 = vpack.c.bf16 %v500_v24, %v499_v11 }
 0x3a5   : > { %v3853_v15 = vpop.f32.mrb[3].mxu1  ;;  %v4137_v54 = vpop.f32.mrb[3].mxu0  ;;  %v4315_v35 = vrot.slane %v3851_v21, 7 }
 0x3a6   : > { %v4426_v56 = vrot.slane %v4137_v54, 1  ;;  %16343 = vst [vmem:[#allocation58_spill] sm:$0xff] %v13280_v28  ;;  %10766 = vmatpush3.bf16.msra.mxu1 %v13280_v28  ;;  %10742 = vmatpush3.bf16.msra.mxu0 %v13280_v28 }
 0x3a7   : > { %10767 = vmatprep.subr.bf16.mxu1 %v16318_v1  ;;  %10743 = vmatprep.subr.bf16.mxu0 %v16318_v1 }
 0x3a8   : > { %v4478_v47 = vsel %vm1680_vm1, %v4426_v56, %v4427_v53  ;;  %v4479_v37 = vsel %vm1680_vm1, %v4425_v60, %v4426_v56 }
 0x3a9   : > { %v4500_v58 = vadd.f32 %v4479_v37, %v4388_v55  ;;  %v4501_v44 = vadd.f32 %v4478_v47, %v4389_v3 }
 0x3aa   : > { %v3856_v20 = vpop.f32.mrb[4].mxu1  ;;  %v10310_v38 = vpop.f32.mrb[4].mxu0 }
 0x3ab   : > { %v13283_v49 = vadd.f32 %v4500_v58, %v12770_v46  ;;  %v13286_v22 = vadd.f32 %v4501_v44, %v12773_v18  ;;  %v4316_v63 = vrot.slane %v3856_v20, 7  ;;  %v3858_v42 = vpop.f32.mrb[5].mxu1  ;;  %v4149_v53 = vpop.f32.mrb[5].mxu0  ;;  %v4430_v55 = vrot.slane %v10310_v38, 1 }
 0x3ac   : > { %v4428_v3 = vrot.slane %v4149_v53, 1  ;;  %v3860_v60 = vpop.f32.mrb[6].mxu1  ;;  %v10311_v34 = vpop.f32.mrb[6].mxu0 }
 0x3ad   : > { %v4365_v46 = vsel %vm1567_vm0, %v4315_v35, %v4316_v63  ;;  %v4317_v18 = vrot.slane %v3860_v60, 7  ;;  %v3862_v21 = vpop.f32.mrb[7].mxu1  ;;  %v4152_v15 = vpop.f32.mrb[7].mxu0 }
 0x3ae   : > { %v4390_v54 = vadd.f32 %v4365_v46, %v3858_v42  ;;  %v4429_v56 = vrot.slane %v4152_v15, 1 }
 0x3af   : > { %v4364_v47 = vsel %vm1567_vm0, %v4316_v63, %v4317_v18 }
 0x3b0   : > { %v4391_v37 = vadd.f32 %v4364_v47, %v3862_v21  ;;  %v4476_v11 = vsel %vm1680_vm1, %v4429_v56, %v4430_v55  ;;  %v4477_v24 = vsel %vm1680_vm1, %v4428_v3, %v4429_v56 }
 0x3b1   : > { %v4502_v58 = vadd.f32 %v4477_v24, %v4390_v54 }
 0x3b2   : > { %v4503_v44 = vadd.f32 %v4476_v11, %v4391_v37  ;;  %v3866_v20 = vpop.f32.mrb[8].mxu1  ;;  %v10314_v38 = vpop.f32.mrb[8].mxu0 }
 0x3b3   : > { %v13301_v35 = vadd.f32 %v4502_v58, %v12788_v32  ;;  %v3867_v53 = vpop.f32.mrb[9].mxu1  ;;  %v4164_v42 = vpop.f32.mrb[9].mxu0  ;;  %v4433_v34 = vrot.slane %v10314_v38, 1 }
 0x3b4   : > { %v13304_v60 = vadd.f32 %v4503_v44, %v12792_v12  ;;  %v3868_v63 = vpop.f32.mrb[10].mxu1  ;;  %v4431_v46 = vrot.slane %v4164_v42, 1  ;;  %v10315_v18 = vpop.f32.mrb[10].mxu0 }
 0x3b5   : > { %v3870_v55 = vpop.f32.mrb[11].mxu1  ;;  %v4167_v21 = vpop.f32.mrb[11].mxu0  ;;  %v4318_v47 = vrot.slane %v3868_v63, 7 }
 0x3b6   : > { %v4432_v15 = vrot.slane %v4167_v21, 1 }
 0x3b8   : > { %v4475_v3 = vsel %vm1680_vm1, %v4431_v46, %v4432_v15  ;;  %v4474_v54 = vsel %vm1680_vm1, %v4432_v15, %v4433_v34 }
 0x3ba   : > { %v3873_v32 = vpop.f32.mrb[12].mxu1  ;;  %v10318_v56 = vpop.f32.mrb[12].mxu0 }
 0x3bb   : > { %v4319_v37 = vrot.slane %v3873_v32, 7  ;;  %v3875_v11 = vpop.f32.mrb[13].mxu1  ;;  %v4179_v12 = vpop.f32.mrb[13].mxu0  ;;  %v4436_v58 = vrot.slane %v10318_v56, 1 }
 0x3bc   : > { %v3877_v24 = vpop.f32.mrb[14].mxu1  ;;  %v4434_v44 = vrot.slane %v4179_v12, 1  ;;  %v10319_v20 = vpop.f32.mrb[14].mxu0 }
 0x3bd   : > { %v4363_v38 = vsel %vm1567_vm0, %v4318_v47, %v4319_v37  ;;  %v4320_v53 = vrot.slane %v3877_v24, 7  ;;  %v3879_v42 = vpop.f32.mrb[15].mxu1  ;;  %v4182_v18 = vpop.f32.mrb[15].mxu0 }
 0x3be   : > { %v4392_v46 = vadd.f32 %v4363_v38, %v3875_v11  ;;  %v4435_v55 = vrot.slane %v4182_v18, 1 }
 0x3bf   : > { %v4362_v34 = vsel %vm1567_vm0, %v4319_v37, %v4320_v53 }
 0x3c0   : > { %v4504_v21 = vadd.f32 %v4475_v3, %v4392_v46  ;;  %v4393_v63 = vadd.f32 %v4362_v34, %v3879_v42  ;;  %v4473_v15 = vsel %vm1680_vm1, %v4434_v44, %v4435_v55  ;;  %v4472_v32 = vsel %vm1680_vm1, %v4435_v55, %v4436_v58  ;;  %v502_v55 = vld [vmem:[#allocation11 + $0x58] sm:$0xff] }
 0x3c2   : > { %v13319_v56 = vadd.f32 %v4504_v21, %v12812_v0  ;;  %v4505_v47 = vadd.f32 %v4474_v54, %v4393_v63  ;;  %v3883_v12 = vpop.f32.mrb[16].mxu1  ;;  %v10322_v24 = vpop.f32.mrb[16].mxu0  ;;  %v501_v54 = vld [vmem:[#allocation11 + $0x50] sm:$0xff] }
 0x3c3   : > { %v3884_v20 = vpop.f32.mrb[17].mxu1  ;;  %v4194_v11 = vpop.f32.mrb[17].mxu0  ;;  %v4439_v3 = vrot.slane %v10322_v24, 1  ;;  %v13332_v34 = vpack.c.bf16 %v502_v55, %v501_v54 }
 0x3c4   : > { %v13322_v38 = vadd.f32 %v4505_v47, %v12816_v62  ;;  %v3885_v37 = vpop.f32.mrb[18].mxu1  ;;  %v4437_v53 = vrot.slane %v4194_v11, 1  ;;  %v10323_v42 = vpop.f32.mrb[18].mxu0 }
 0x3c5   : > { %v3887_v18 = vpop.f32.mrb[19].mxu1  ;;  %v4197_v44 = vpop.f32.mrb[19].mxu0  ;;  %16344 = vst [vmem:[#allocation59_spill] sm:$0xff] %v13332_v34  ;;  %v4321_v63 = vrot.slane %v3885_v37, 7  ;;  %10769 = vmatpush3.bf16.msra.mxu1 %v13332_v34  ;;  %10745 = vmatpush3.bf16.msra.mxu0 %v13332_v34 }
 0x3c6   : > { %v4438_v46 = vrot.slane %v4197_v44, 1  ;;  %10770 = vmatprep.subr.bf16.mxu1 %v16318_v1  ;;  %10746 = vmatprep.subr.bf16.mxu0 %v16318_v1 }
 0x3c8   : > { %v13326_v58 = vsel %vm1680_vm1, %v4437_v53, %v4438_v46  ;;  %v13330_v0 = vsel %vm1680_vm1, %v4438_v46, %v4439_v3 }
 0x3ca   : > { %v3890_v62 = vpop.f32.mrb[20].mxu1  ;;  %v10326_v21 = vpop.f32.mrb[20].mxu0 }
 0x3cb   : > { %v4322_v47 = vrot.slane %v3890_v62, 7  ;;  %v3892_v12 = vpop.f32.mrb[21].mxu1  ;;  %v4209_v24 = vpop.f32.mrb[21].mxu0  ;;  %v4442_v11 = vrot.slane %v10326_v21, 1 }
 0x3cc   : > { %v3894_v20 = vpop.f32.mrb[22].mxu1  ;;  %v4440_v53 = vrot.slane %v4209_v24, 1  ;;  %v10327_v42 = vpop.f32.mrb[22].mxu0 }
 0x3cd   : > { %v4361_v3 = vsel %vm1567_vm0, %v4321_v63, %v4322_v47  ;;  %v4323_v18 = vrot.slane %v3894_v20, 7  ;;  %v3896_v37 = vpop.f32.mrb[23].mxu1  ;;  %v4212_v44 = vpop.f32.mrb[23].mxu0 }
 0x3ce   : > { %v4394_v46 = vadd.f32 %v4361_v3, %v3892_v12  ;;  %v4441_v54 = vrot.slane %v4212_v44, 1 }
 0x3cf   : > { %v4360_v55 = vsel %vm1567_vm0, %v4322_v47, %v4323_v18 }
 0x3d0   : > { %v4506_v62 = vadd.f32 %v4473_v15, %v4394_v46  ;;  %v4395_v57 = vadd.f32 %v4360_v55, %v3896_v37  ;;  %v13344_v21 = vsel %vm1680_vm1, %v4440_v53, %v4441_v54  ;;  %v13348_v24 = vsel %vm1680_vm1, %v4441_v54, %v4442_v11 }
 0x3d2   : > { %v13351_v63 = vadd.f32 %v4506_v62, %v12843_v61  ;;  %v4507_v20 = vadd.f32 %v4472_v32, %v4395_v57  ;;  %v3900_v42 = vpop.f32.mrb[24].mxu1  ;;  %v10330_v12 = vpop.f32.mrb[24].mxu0 }
 0x3d3   : > { %v3901_v3 = vpop.f32.mrb[25].mxu1  ;;  %v4224_v44 = vpop.f32.mrb[25].mxu0  ;;  %v4445_v18 = vrot.slane %v10330_v12, 1 }
 0x3d4   : > { %v13354_v47 = vadd.f32 %v4507_v20, %v12847_v31  ;;  %v3902_v15 = vpop.f32.mrb[26].mxu1  ;;  %v4443_v37 = vrot.slane %v4224_v44, 1  ;;  %v10331_v53 = vpop.f32.mrb[26].mxu0 }
 0x3d5   : > { %v3904_v46 = vpop.f32.mrb[27].mxu1  ;;  %v4227_v55 = vpop.f32.mrb[27].mxu0  ;;  %v4324_v54 = vrot.slane %v3902_v15, 7 }
 0x3d6   : > { %v4444_v8 = vrot.slane %v4227_v55, 1 }
 0x3d8   : > { %v13358_v11 = vsel %vm1680_vm1, %v4443_v37, %v4444_v8  ;;  %v13362_v61 = vsel %vm1680_vm1, %v4444_v8, %v4445_v18 }
 0x3da   : > { %v3907_v57 = vpop.f32.mrb[28].mxu1  ;;  %v10334_v32 = vpop.f32.mrb[28].mxu0 }
 0x3db   : > { %v4325_v31 = vrot.slane %v3907_v57, 7  ;;  %v3909_v62 = vpop.f32.mrb[29].mxu1  ;;  %v4239_v20 = vpop.f32.mrb[29].mxu0  ;;  %v4448_v12 = vrot.slane %v10334_v32, 1 }
 0x3dc   : > { %v3911_v42 = vpop.f32.mrb[30].mxu1  ;;  %v4446_v3 = vrot.slane %v4239_v20, 1  ;;  %v10335_v44 = vpop.f32.mrb[30].mxu0 }
 0x3dd   : > { %v4359_v53 = vsel %vm1567_vm0, %v4324_v54, %v4325_v31  ;;  %v4326_v46 = vrot.slane %v3911_v42, 7  ;;  %v3913_v37 = vpop.f32.mrb[31].mxu1  ;;  %v4242_v55 = vpop.f32.mrb[31].mxu0  ;;  %v16345_v54 = vld [vmem:[#allocation20_spill] sm:$0xff] }
 0x3de   : > { %v4396_v34 = vadd.f32 %v4359_v53, %v3909_v62  ;;  %v4447_v28 = vrot.slane %v4242_v55, 1 }
 0x3df   : > { %v4358_v8 = vsel %vm1567_vm0, %v4325_v31, %v4326_v46  ;;  %v16346_v46 = vld [vmem:[#allocation21_spill] sm:$0xff] }
 0x3e0   : > { %v4508_v15 = vadd.f32 %v13326_v58, %v4396_v34  ;;  %v4397_v18 = vadd.f32 %v4358_v8, %v3913_v37  ;;  %v13371_v57 = vsel %vm1680_vm1, %v4446_v3, %v4447_v28  ;;  %v13375_v32 = vsel %vm1680_vm1, %v4447_v28, %v4448_v12 }
 0x3e2   : > { %v13378_v20 = vadd.f32 %v4508_v15, %v16345_v54  ;;  %v4509_v62 = vadd.f32 %v13330_v0, %v4397_v18  ;;  %v3917_v42 = vpop.f32.mrb[32].mxu1  ;;  %v10338_v44 = vpop.f32.mrb[32].mxu0 }
 0x3e3   : > { %v3918_v53 = vpop.f32.mrb[33].mxu1  ;;  %v4254_v31 = vpop.f32.mrb[33].mxu0  ;;  %v4451_v37 = vrot.slane %v10338_v44, 1 }
 0x3e4   : > { %v13382_v58 = vadd.f32 %v4509_v62, %v16346_v46  ;;  %v3919_v34 = vpop.f32.mrb[34].mxu1  ;;  %v4449_v3 = vrot.slane %v4254_v31, 1  ;;  %v10339_v55 = vpop.f32.mrb[34].mxu0 }
 0x3e5   : > { %v3921_v8 = vpop.f32.mrb[35].mxu1  ;;  %v4257_v26 = vpop.f32.mrb[35].mxu0  ;;  %v4327_v54 = vrot.slane %v3919_v34, 7 }
 0x3e6   : > { %v4450_v28 = vrot.slane %v4257_v26, 1 }
 0x3e8   : > { %v13386_v12 = vsel %vm1680_vm1, %v4449_v3, %v4450_v28  ;;  %v13390_v0 = vsel %vm1680_vm1, %v4450_v28, %v4451_v37 }
 0x3ea   : > { %v3924_v15 = vpop.f32.mrb[36].mxu1  ;;  %v10342_v18 = vpop.f32.mrb[36].mxu0 }
 0x3eb   : > { %v4328_v62 = vrot.slane %v3924_v15, 7  ;;  %v3926_v42 = vpop.f32.mrb[37].mxu1  ;;  %v4269_v53 = vpop.f32.mrb[37].mxu0  ;;  %v4454_v31 = vrot.slane %v10342_v18, 1 }
 0x3ec   : > { %v3928_v44 = vpop.f32.mrb[38].mxu1  ;;  %v4452_v46 = vrot.slane %v4269_v53, 1  ;;  %v10343_v55 = vpop.f32.mrb[38].mxu0 }
 0x3ed   : > { %v4357_v26 = vsel %vm1567_vm0, %v4327_v54, %v4328_v62  ;;  %v4329_v8 = vrot.slane %v3928_v44, 7  ;;  %v3930_v3 = vpop.f32.mrb[39].mxu1  ;;  %v4272_v45 = vpop.f32.mrb[39].mxu0 }
 0x3ee   : > { %v4398_v59 = vadd.f32 %v4357_v26, %v3926_v42  ;;  %v4453_v13 = vrot.slane %v4272_v45, 1 }
 0x3ef   : > { %v4356_v37 = vsel %vm1567_vm0, %v4328_v62, %v4329_v8 }
 0x3f0   : > { %v4510_v34 = vadd.f32 %v13344_v21, %v4398_v59  ;;  %v4399_v28 = vadd.f32 %v4356_v37, %v3930_v3  ;;  %v13399_v15 = vsel %vm1680_vm1, %v4452_v46, %v4453_v13  ;;  %v13403_v18 = vsel %vm1680_vm1, %v4453_v13, %v4454_v31  ;;  %v16347_v59 = vld [vmem:[#allocation22_spill] sm:$0xff]  ;;  %v503_v3 = vld [vmem:[#allocation11 + $0x60] sm:$0xff]  ;;  %v504_v37 = vld [vmem:[#allocation11 + $0x68] sm:$0xff] }
 0x3f1   : > { %v505_v13 = vld [vmem:[#allocation11 + $0x70] sm:$0xff] }
 0x3f2   : > { %v13406_v54 = vadd.f32 %v4510_v34, %v12929_v19  ;;  %v4511_v42 = vadd.f32 %v13348_v24, %v4399_v28  ;;  %v3934_v45 = vpop.f32.mrb[40].mxu1  ;;  %v10346_v53 = vpop.f32.mrb[40].mxu0  ;;  %v13412_v19 = vpack.c.bf16 %v504_v37, %v503_v3  ;;  %v506_v34 = vld [vmem:[#allocation11 + $0x78] sm:$0xff]  ;;  %v16216_v28 = vmov 0.0  }
 0x3f3   : > { %v3935_v44 = vpop.f32.mrb[41].mxu1  ;;  %v4457_v62 = vrot.slane %v10346_v53, 1  ;;  %v4284_v55 = vpop.f32.mrb[41].mxu0  ;;  %10380 = vmatprep.mubr.msk.f32.mxu0 %vm11730_vm2, %v16216_v28  ;;  %10415 = vmatprep.mubr.msk.f32.mxu1 %vm11730_vm2, %v16216_v28 }
 0x3f4   : > { %v13410_v21 = vadd.f32 %v4511_v42, %v16347_v59  ;;  %v3936_v26 = vpop.f32.mrb[42].mxu1  ;;  %v4455_v46 = vrot.slane %v4284_v55, 1  ;;  %v10347_v8 = vpop.f32.mrb[42].mxu0  ;;  %16348 = vst [vmem:[#allocation20_spill] sm:$0xff] %v13412_v19  ;;  %10772 = vmatpush3.bf16.msra.mxu1 %v13412_v19  ;;  %10748 = vmatpush3.bf16.msra.mxu0 %v13412_v19  ;;  %v13420_v42 = vpack.c.bf16 %v506_v34, %v505_v13 }
 0x3f5   : > { %v3938_v31 = vpop.f32.mrb[43].mxu1  ;;  %v4287_v27 = vpop.f32.mrb[43].mxu0  ;;  %10773 = vmatprep.subr.bf16.mxu1 %v16318_v1  ;;  %10749 = vmatprep.subr.bf16.mxu0 %v16318_v1  ;;  %v4330_v44 = vrot.slane %v3936_v26, 7 }
 0x3f6   : > { %v4456_v24 = vrot.slane %v4287_v27, 1  ;;  %16349 = vst [vmem:[#allocation21_spill] sm:$0xff] %v13420_v42 }
 0x3f8   : > { %v13424_v45 = vsel %vm1680_vm1, %v4455_v46, %v4456_v24  ;;  %v13428_v27 = vsel %vm1680_vm1, %v4456_v24, %v4457_v62  ;;  %10775 = vmatpush3.bf16.msra.mxu1 %v13420_v42  ;;  %10751 = vmatpush3.bf16.msra.mxu0 %v13420_v42 }
 0x3fa   : > { %v3941_v53 = vpop.f32.mrb[44].mxu1 }
 0x3fb   : > { %v4331_v55 = vrot.slane %v3941_v53, 7  ;;  %v3943_v59 = vpop.f32.mrb[45].mxu1 }
 0x3fc   : > { %v3945_v8 = vpop.f32.mrb[46].mxu1 }
 0x3fd   : > { %v4355_v46 = vsel %vm1567_vm0, %v4330_v44, %v4331_v55  ;;  %v4332_v3 = vrot.slane %v3945_v8, 7  ;;  %v3947_v37 = vpop.f32.mrb[47].mxu1 }
 0x3fe   : > { %v4400_v62 = vadd.f32 %v4355_v46, %v3943_v59 }
 0x3ff   : > { %v4354_v13 = vsel %vm1567_vm0, %v4331_v55, %v4332_v3 }
 0x400   : > { %v4512_v31 = vadd.f32 %v13358_v11, %v4400_v62  ;;  %v4401_v34 = vadd.f32 %v4354_v13, %v3947_v37 }
 0x402   : > { %v13440_v26 = vadd.f32 %v4512_v31, %v12973_v17  ;;  %v4513_v24 = vadd.f32 %v13362_v61, %v4401_v34  ;;  %v3951_v53 = vpop.f32.mrb[48].mxu1 }
 0x403   : > { %v3952_v28 = vpop.f32.mrb[49].mxu1 }
 0x404   : > { %v13444_v42 = vadd.f32 %v4513_v24, %v12982_v48  ;;  %v3953_v44 = vpop.f32.mrb[50].mxu1 }
 0x405   : > { %v3955_v8 = vpop.f32.mrb[51].mxu1  ;;  %v4333_v59 = vrot.slane %v3953_v44, 7 }
 0x40a   : > { %v3958_v19 = vpop.f32.mrb[52].mxu1 }
 0x40b   : > { %v4334_v46 = vrot.slane %v3958_v19, 7  ;;  %v3960_v1 = vpop.f32.mrb[53].mxu1 }
 0x40c   : > { %v3962_v55 = vpop.f32.mrb[54].mxu1 }
 0x40d   : > { %v4353_v11 = vsel %vm1567_vm0, %v4333_v59, %v4334_v46  ;;  %v4335_v3 = vrot.slane %v3962_v55, 7  ;;  %v3964_v17 = vpop.f32.mrb[55].mxu1 }
 0x40e   : > { %v4402_v37 = vadd.f32 %v4353_v11, %v3960_v1 }
 0x40f   : > { %v4352_v61 = vsel %vm1567_vm0, %v4334_v46, %v4335_v3 }
 0x410   : > { %v4514_v28 = vadd.f32 %v13371_v57, %v4402_v37  ;;  %v4403_v48 = vadd.f32 %v4352_v61, %v3964_v17 }
 0x412   : > { %v13452_v62 = vadd.f32 %v4514_v28, %v13013_v30  ;;  %v4515_v13 = vadd.f32 %v13375_v32, %v4403_v48  ;;  %v3968_v19 = vpop.f32.mrb[56].mxu1 }
 0x413   : > { %v3969_v31 = vpop.f32.mrb[57].mxu1 }
 0x414   : > { %v13456_v34 = vadd.f32 %v4515_v13, %v13022_v7  ;;  %v3970_v24 = vpop.f32.mrb[58].mxu1 }
 0x415   : > { %v3972_v53 = vpop.f32.mrb[59].mxu1  ;;  %v4336_v1 = vrot.slane %v3970_v24, 7 }
 0x41a   : > { %v3975_v44 = vpop.f32.mrb[60].mxu1 }
 0x41b   : > { %v4337_v8 = vrot.slane %v3975_v44, 7  ;;  %v3977_v59 = vpop.f32.mrb[61].mxu1 }
 0x41c   : > { %v3979_v46 = vpop.f32.mrb[62].mxu1 }
 0x41d   : > { %v4351_v57 = vsel %vm1567_vm0, %v4336_v1, %v4337_v8  ;;  %v4338_v55 = vrot.slane %v3979_v46, 7  ;;  %v3981_v30 = vpop.f32.mrb[63].mxu1 }
 0x41e   : > { %v4404_v11 = vadd.f32 %v4351_v57, %v3977_v59 }
 0x41f   : > { %v4350_v32 = vsel %vm1567_vm0, %v4337_v8, %v4338_v55 }
 0x420   : > { %v4516_v3 = vadd.f32 %v13386_v12, %v4404_v11  ;;  %v4405_v7 = vadd.f32 %v4350_v32, %v3981_v30 }
 0x422   : > { %v13464_v17 = vadd.f32 %v4516_v3, %v13051_v23  ;;  %v4517_v37 = vadd.f32 %v13390_v0, %v4405_v7  ;;  %v3985_v61 = vpop.f32.mrb[64].mxu1 }
 0x423   : > { %v3986_v28 = vpop.f32.mrb[65].mxu1 }
 0x424   : > { %v13468_v48 = vadd.f32 %v4517_v37, %v13057_v4  ;;  %v3987_v13 = vpop.f32.mrb[66].mxu1 }
 0x425   : > { %v3989_v19 = vpop.f32.mrb[67].mxu1  ;;  %v4339_v24 = vrot.slane %v3987_v13, 7 }
 0x42a   : > { %v3992_v31 = vpop.f32.mrb[68].mxu1 }
 0x42b   : > { %v4340_v53 = vrot.slane %v3992_v31, 7  ;;  %v3994_v44 = vpop.f32.mrb[69].mxu1 }
 0x42c   : > { %v3996_v1 = vpop.f32.mrb[70].mxu1 }
 0x42d   : > { %v4349_v12 = vsel %vm1567_vm0, %v4339_v24, %v4340_v53  ;;  %v4341_v8 = vrot.slane %v3996_v1, 7  ;;  %v3998_v23 = vpop.f32.mrb[71].mxu1 }
 0x42e   : > { %v4406_v59 = vadd.f32 %v4349_v12, %v3994_v44 }
 0x42f   : > { %v4348_v0 = vsel %vm1567_vm0, %v4340_v53, %v4341_v8 }
 0x430   : > { %v4518_v46 = vadd.f32 %v13399_v15, %v4406_v59  ;;  %v4407_v4 = vadd.f32 %v4348_v0, %v3998_v23 }
 0x432   : > { %v13476_v57 = vadd.f32 %v4518_v46, %v13081_v29  ;;  %v4519_v55 = vadd.f32 %v13403_v18, %v4407_v4  ;;  %v4002_v30 = vpop.f32.mrb[72].mxu1  ;;  %v16350_v4 = vrot.slane %v13125_v6, 7 }
 0x433   : > { %v4003_v11 = vpop.f32.mrb[73].mxu1 }
 0x434   : > { %v13480_v32 = vadd.f32 %v4519_v55, %v13087_v16  ;;  %v4004_v3 = vpop.f32.mrb[74].mxu1 }
 0x435   : > { %v4006_v7 = vpop.f32.mrb[75].mxu1  ;;  %v4342_v61 = vrot.slane %v4004_v3, 7 }
 0x43a   : > { %v4009_v37 = vpop.f32.mrb[76].mxu1 }
 0x43b   : > { %v4343_v28 = vrot.slane %v4009_v37, 7  ;;  %v4011_v13 = vpop.f32.mrb[77].mxu1 }
 0x43c   : > { %v4013_v19 = vpop.f32.mrb[78].mxu1 }
 0x43d   : > { %v4347_v15 = vsel %vm1567_vm0, %v4342_v61, %v4343_v28  ;;  %v4344_v31 = vrot.slane %v4013_v19, 7  ;;  %v4015_v29 = vpop.f32.mrb[79].mxu1 }
 0x43e   : > { %v4408_v24 = vadd.f32 %v4347_v15, %v4011_v13 }
 0x43f   : > { %v4346_v18 = vsel %vm1567_vm0, %v4343_v28, %v4344_v31 }
 0x440   : > { %v4520_v53 = vadd.f32 %v13424_v45, %v4408_v24  ;;  %v4409_v16 = vadd.f32 %v4346_v18, %v4015_v29 }
 0x442   : > { %v13488_v44 = vadd.f32 %v4520_v53, %v13105_v14  ;;  %v4521_v1 = vadd.f32 %v13428_v27, %v4409_v16  ;;  %v4019_v12 = vpop.f32.mrb[80].mxu1  ;;  %v13502_v14 = vld [vmem:[%s16179_s5] ss:$0 sm:$0xff] }
 0x443   : > { %v4020_v8 = vpop.f32.mrb[81].mxu1  ;;  %v13512_v6 = vadd.f32 %v13502_v14, %v13225_v52  ;;  %v13521_v3 = vadd.f32 %v13502_v14, %v13228_v50  ;;  %v13531_v52 = vadd.f32 %v13502_v14, %v13245_v39  ;;  %v13538_v61 = vadd.f32 %v13502_v14, %v13248_v41 }
 0x444   : > { %v13492_v23 = vadd.f32 %v4521_v1, %v13111_v36  ;;  %v4021_v59 = vpop.f32.mrb[82].mxu1  ;;  %v13507_v36 = vadd.f32 %v13502_v14, %v13214_v5  ;;  %v13545_v39 = vadd.f32 %v13502_v14, %v13257_v33  ;;  %v13552_v41 = vadd.f32 %v13502_v14, %v13260_v43 }
 0x445   : > { %v4345_v0 = vrot.slane %v4021_v59, 7  ;;  %v4023_v46 = vpop.f32.mrb[83].mxu1  ;;  %v4634_v5 = vmul.f32 %v13512_v6, %v13512_v6  ;;  %v4635_v50 = vmul.f32 %v13521_v3, %v13521_v3  ;;  %v4636_v19 = vmul.f32 %v13531_v52, %v13531_v52 }
 0x446   : > { %v4637_v29 = vmul.f32 %v13538_v61, %v13538_v61  ;;  %v4638_v53 = vmul.f32 %v13545_v39, %v13545_v39  ;;  %v13559_v33 = vadd.f32 %v13502_v14, %v13271_v51  ;;  %v4639_v12 = vmul.f32 %v13552_v41, %v13552_v41 }
 0x447   : > { %v4377_v55 = vsel %vm1567_vm0, %v4345_v0, %v16350_v4  ;;  %v13566_v43 = vadd.f32 %v13502_v14, %v13274_v9  ;;  %v13573_v51 = vadd.f32 %v13502_v14, %v13283_v49  ;;  %v13580_v9 = vadd.f32 %v13502_v14, %v13286_v22 }
 0x448   : > { %v4378_v45 = vadd.f32 %v4377_v55, %v13127_v25  ;;  %v4633_v25 = vmul.f32 %v13507_v36, %v13507_v36  ;;  %v4640_v0 = vmul.f32 %v13559_v33, %v13559_v33  ;;  %v13587_v49 = vadd.f32 %v13502_v14, %v13301_v35 }
 0x449   : > { %v4641_v55 = vmul.f32 %v13566_v43, %v13566_v43  ;;  %v13594_v22 = vadd.f32 %v13502_v14, %v13304_v60  ;;  %v13601_v35 = vadd.f32 %v13502_v14, %v13319_v56  ;;  %v13608_v60 = vadd.f32 %v13502_v14, %v13322_v38 }
 0x44a   : > { %v4490_v27 = vadd.f32 %v13210_v10, %v4378_v45  ;;  %v13615_v56 = vadd.f32 %v13502_v14, %v13351_v63  ;;  %v13622_v38 = vadd.f32 %v13502_v14, %v13354_v47  ;;  %v13629_v63 = vadd.f32 %v13502_v14, %v13378_v20 }
 0x44b   : > { %v13636_v47 = vadd.f32 %v13502_v14, %v13382_v58  ;;  %v13643_v20 = vadd.f32 %v13502_v14, %v13406_v54  ;;  %v13650_v58 = vadd.f32 %v13502_v14, %v13410_v21  ;;  %v13657_v54 = vadd.f32 %v13502_v14, %v13440_v26 }
 0x44c   : > { %v4522_v30 = vadd.f32 %v4490_v27, %v13134_v2  ;;  %v13664_v21 = vadd.f32 %v13502_v14, %v13444_v42  ;;  %v13671_v26 = vadd.f32 %v13502_v14, %v13452_v62  ;;  %v13678_v42 = vadd.f32 %v13502_v14, %v13456_v34 }
 0x44d   : > { %v13685_v62 = vadd.f32 %v13502_v14, %v13464_v17  ;;  %v13692_v34 = vadd.f32 %v13502_v14, %v13468_v48  ;;  %v13699_v17 = vadd.f32 %v13502_v14, %v13476_v57  ;;  %v13706_v48 = vadd.f32 %v13502_v14, %v13480_v32 }
 0x44e   : > { %v13515_v11 = vadd.f32 %v13502_v14, %v4522_v30  ;;  %v4642_v30 = vmul.f32 %v13573_v51, %v13573_v51  ;;  %v13713_v57 = vadd.f32 %v13502_v14, %v13488_v44  ;;  %v13720_v32 = vadd.f32 %v13502_v14, %v13492_v23 }
 0x450   : > { %v4595_v10 = vadd.f32 %v13507_v36, %v13515_v11  ;;  %v4632_v2 = vmul.f32 %v13515_v11, %v13515_v11 }
 0x452   : > { %v4596_v7 = vadd.f32 %v4595_v10, %v13512_v6  ;;  %v4664_v37 = vadd.f32 %v4633_v25, %v4632_v2  ;;  %v4643_v2 = vmul.f32 %v13580_v9, %v13580_v9 }
 0x454   : > { %v4597_v28 = vadd.f32 %v4596_v7, %v13521_v3  ;;  %v4665_v13 = vadd.f32 %v4664_v37, %v4634_v5  ;;  %v4644_v37 = vmul.f32 %v13587_v49, %v13587_v49 }
 0x456   : > { %v4598_v15 = vadd.f32 %v4597_v28, %v13531_v52  ;;  %v4666_v31 = vadd.f32 %v4665_v13, %v4635_v50  ;;  %v4645_v13 = vmul.f32 %v13594_v22, %v13594_v22 }
 0x458   : > { %v4599_v24 = vadd.f32 %v4598_v15, %v13538_v61  ;;  %v4667_v18 = vadd.f32 %v4666_v31, %v4636_v19  ;;  %v4646_v31 = vmul.f32 %v13601_v35, %v13601_v35 }
 0x45a   : > { %v4600_v16 = vadd.f32 %v4599_v24, %v13545_v39  ;;  %v4668_v1 = vadd.f32 %v4667_v18, %v4637_v29  ;;  %v4647_v18 = vmul.f32 %v13608_v60, %v13608_v60 }
 0x45c   : > { %v4601_v8 = vadd.f32 %v4600_v16, %v13552_v41  ;;  %v4669_v59 = vadd.f32 %v4668_v1, %v4638_v53  ;;  %v4648_v1 = vmul.f32 %v13615_v56, %v13615_v56 }
 0x45e   : > { %v4602_v46 = vadd.f32 %v4601_v8, %v13559_v33  ;;  %v4670_v4 = vadd.f32 %v4669_v59, %v4639_v12  ;;  %v4649_v59 = vmul.f32 %v13622_v38, %v13622_v38 }
 0x460   : > { %v4603_v45 = vadd.f32 %v4602_v46, %v13566_v43  ;;  %v4671_v27 = vadd.f32 %v4670_v4, %v4640_v0  ;;  %v4650_v4 = vmul.f32 %v13629_v63, %v13629_v63 }
 0x462   : > { %v4604_v25 = vadd.f32 %v4603_v45, %v13573_v51  ;;  %v4672_v10 = vadd.f32 %v4671_v27, %v4641_v55  ;;  %v4651_v27 = vmul.f32 %v13636_v47, %v13636_v47 }
 0x464   : > { %v4605_v5 = vadd.f32 %v4604_v25, %v13580_v9  ;;  %v4673_v7 = vadd.f32 %v4672_v10, %v4642_v30  ;;  %v4652_v10 = vmul.f32 %v13643_v20, %v13643_v20 }
 0x466   : > { %v4606_v50 = vadd.f32 %v4605_v5, %v13587_v49  ;;  %v4674_v28 = vadd.f32 %v4673_v7, %v4643_v2  ;;  %v4653_v7 = vmul.f32 %v13650_v58, %v13650_v58 }
 0x468   : > { %v4607_v19 = vadd.f32 %v4606_v50, %v13594_v22  ;;  %v4675_v15 = vadd.f32 %v4674_v28, %v4644_v37  ;;  %v4654_v28 = vmul.f32 %v13657_v54, %v13657_v54 }
 0x46a   : > { %v4608_v29 = vadd.f32 %v4607_v19, %v13601_v35  ;;  %v4676_v24 = vadd.f32 %v4675_v15, %v4645_v13  ;;  %v4655_v15 = vmul.f32 %v13664_v21, %v13664_v21 }
 0x46c   : > { %v4609_v53 = vadd.f32 %v4608_v29, %v13608_v60  ;;  %v4677_v16 = vadd.f32 %v4676_v24, %v4646_v31  ;;  %v4656_v24 = vmul.f32 %v13671_v26, %v13671_v26 }
 0x46e   : > { %v4610_v12 = vadd.f32 %v4609_v53, %v13615_v56  ;;  %v4678_v8 = vadd.f32 %v4677_v16, %v4647_v18  ;;  %v4657_v16 = vmul.f32 %v13678_v42, %v13678_v42 }
 0x470   : > { %v4611_v0 = vadd.f32 %v4610_v12, %v13622_v38  ;;  %v4679_v46 = vadd.f32 %v4678_v8, %v4648_v1  ;;  %v4658_v8 = vmul.f32 %v13685_v62, %v13685_v62 }
 0x472   : > { %v4612_v55 = vadd.f32 %v4611_v0, %v13629_v63  ;;  %v4680_v45 = vadd.f32 %v4679_v46, %v4649_v59  ;;  %v4659_v46 = vmul.f32 %v13692_v34, %v13692_v34 }
 0x474   : > { %v4681_v30 = vadd.f32 %v4680_v45, %v4650_v4  ;;  %v4613_v25 = vadd.f32 %v4612_v55, %v13636_v47  ;;  %v4660_v45 = vmul.f32 %v13699_v17, %v13699_v17 }
 0x476   : > { %v4614_v2 = vadd.f32 %v4613_v25, %v13643_v20  ;;  %v4682_v5 = vadd.f32 %v4681_v30, %v4651_v27  ;;  %v4661_v25 = vmul.f32 %v13706_v48, %v13706_v48 }
 0x478   : > { %v4615_v37 = vadd.f32 %v4614_v2, %v13650_v58  ;;  %v4683_v50 = vadd.f32 %v4682_v5, %v4652_v10  ;;  %v4662_v5 = vmul.f32 %v13713_v57, %v13713_v57 }
 0x47a   : > { %v4616_v13 = vadd.f32 %v4615_v37, %v13657_v54  ;;  %v4684_v19 = vadd.f32 %v4683_v50, %v4653_v7  ;;  %v4663_v37 = vmul.f32 %v13720_v32, %v13720_v32 }
 0x47c   : > { %v4617_v31 = vadd.f32 %v4616_v13, %v13664_v21  ;;  %v4685_v29 = vadd.f32 %v4684_v19, %v4654_v28 }
 0x47e   : > { %v4618_v18 = vadd.f32 %v4617_v31, %v13671_v26  ;;  %v4686_v53 = vadd.f32 %v4685_v29, %v4655_v15 }
 0x480   : > { %v4619_v1 = vadd.f32 %v4618_v18, %v13678_v42  ;;  %v4687_v12 = vadd.f32 %v4686_v53, %v4656_v24 }
 0x482   : > { %v4620_v59 = vadd.f32 %v4619_v1, %v13685_v62  ;;  %v4688_v0 = vadd.f32 %v4687_v12, %v4657_v16 }
 0x484   : > { %v4621_v4 = vadd.f32 %v4620_v59, %v13692_v34  ;;  %v4689_v55 = vadd.f32 %v4688_v0, %v4658_v8  ;;  %v16351_v8 = vmov 0   ;;  %v11144_v59 = vld [vmem:[#allocation8 + $0x4] ss:$12 sps:$4 sm:$0xff]   ;;  %v11142_v0 = vld [vmem:[#allocation8] ss:$12 sps:$4 sm:$0xff]  }
 0x485   : > { %5464 = vmatprep.subr.bf16.mxu0 %v11144_v59 }
 0x486   : > { %v4622_v27 = vadd.f32 %v4621_v4, %v13699_v17  ;;  %v4690_v30 = vadd.f32 %v4689_v55, %v4659_v46  ;;  %v11145_v46 = vld [vmem:[#allocation8 + $0x8] ss:$12 sps:$4 sm:$0xff]   ;;  %v11146_v55 = vld [vmem:[#allocation8 + $0x18] ss:$12 sps:$4 sm:$0xff]  }
 0x487   : > { %10418 = vmatprep.subr.bf16.mxu1 %v11145_v46  ;;  %v11148_v4 = vld [vmem:[#allocation8 + $0x1c] ss:$12 sps:$4 sm:$0xff]  }
 0x488   : > { %v4623_v10 = vadd.f32 %v4622_v27, %v13706_v48  ;;  %v4691_v2 = vadd.f32 %v4690_v30, %v4660_v45  ;;  %v11149_v45 = vld [vmem:[#allocation8 + $0x20] ss:$12 sps:$4 sm:$0xff]   ;;  %v11150_v30 = vld [vmem:[#allocation8 + $0x30] ss:$12 sps:$4 sm:$0xff]  }
 0x489   : > { %v11152_v27 = vld [vmem:[#allocation8 + $0x34] ss:$12 sps:$4 sm:$0xff]  }
 0x48a   : > { %v4624_v7 = vadd.f32 %v4623_v10, %v13713_v57  ;;  %v4692_v44 = vadd.f32 %v4691_v2, %v4661_v25  ;;  %v11153_v25 = vld [vmem:[#allocation8 + $0x38] ss:$12 sps:$4 sm:$0xff]   ;;  %v11154_v2 = vld [vmem:[#allocation8 + $0x48] ss:$12 sps:$4 sm:$0xff]  }
 0x48b   : > { %v11156_v10 = vld [vmem:[#allocation8 + $0x4c] ss:$12 sps:$4 sm:$0xff]  }
 0x48c   : > { %v4625_v50 = vadd.f32 %v4624_v7, %v13720_v32  ;;  %v4693_v28 = vadd.f32 %v4692_v44, %v4662_v5  ;;  %v11157_v5 = vld [vmem:[#allocation8 + $0x50] ss:$12 sps:$4 sm:$0xff]   ;;  %v11158_v44 = vld [vmem:[#allocation8 + $0x60] ss:$12 sps:$4 sm:$0xff]  }
 0x48d   : > { %v11160_v7 = vld [vmem:[#allocation8 + $0x64] ss:$12 sps:$4 sm:$0xff]  }
 0x48e   : > { %v4626_v13 = vrot.slane %v4625_v50, 4  ;;  %v4694_v19 = vadd.f32 %v4693_v28, %v4663_v37  ;;  %v11161_v37 = vld [vmem:[#allocation8 + $0x68] ss:$12 sps:$4 sm:$0xff]   ;;  %v11162_v28 = vld [vmem:[#allocation8 + $0x78] ss:$12 sps:$4 sm:$0xff]  }
 0x490   : > { %v4627_v15 = vadd.f32 %v4626_v13, %v4625_v50  ;;  %v4695_v23 = vrot.slane %v4694_v19, 4  ;;  %v11164_v50 = vld [vmem:[#allocation8 + $0x7c] ss:$12 sps:$4 sm:$0xff]   ;;  %v11165_v13 = vld [vmem:[#allocation8 + $0x80] ss:$12 sps:$4 sm:$0xff]  }
 0x492   : > { %v4628_v14 = vrot.slane %v4627_v15, 2  ;;  %v4696_v31 = vadd.f32 %v4695_v23, %v4694_v19  ;;  %v11168_v19 = vld [vmem:[#allocation8 + $0x94] ss:$12 sps:$4 sm:$0xff]   ;;  %v11169_v23 = vld [vmem:[#allocation8 + $0x98] ss:$12 sps:$4 sm:$0xff]  }
 0x494   : > { %v4629_v29 = vadd.f32 %v4628_v14, %v4627_v15  ;;  %v4697_v24 = vrot.slane %v4696_v31, 2  ;;  %v11166_v15 = vld [vmem:[#allocation8 + $0x90] ss:$12 sps:$4 sm:$0xff]   ;;  %v11172_v14 = vld [vmem:[#allocation8 + $0xac] ss:$12 sps:$4 sm:$0xff]  }
 0x496   : > { %v4630_v18 = vrot.slane %v4629_v29, 1  ;;  %v4698_v53 = vadd.f32 %v4697_v24, %v4696_v31  ;;  %v11170_v31 = vld [vmem:[#allocation8 + $0xa8] ss:$12 sps:$4 sm:$0xff]  }
 0x497   : > { %v11174_v24 = vld [vmem:[#allocation8 + $0xc8] ss:$12 sps:$4 sm:$0xff]  }
 0x498   : > { %v4631_v16 = vadd.f32 %v4630_v18, %v4629_v29  ;;  %v4699_v1 = vrot.slane %v4698_v53, 1  ;;  %v11173_v29 = vld [vmem:[#allocation8 + $0xb0] ss:$12 sps:$4 sm:$0xff]   ;;  %v11175_v18 = vld [vmem:[#allocation8 + $0xe0] ss:$12 sps:$4 sm:$0xff]  }
 0x49a   : > { %10381 = vmatmul.mubr.f32.vlgmr.msra.gmra.mrb[44].mxu0 %v4631_v16  ;;  %v4700_v12 = vadd.f32 %v4699_v1, %v4698_v53  ;;  %v11176_v53 = vld [vmem:[#allocation8 + $0xf8] ss:$12 sps:$4 sm:$0xff]  }
 0x49b   : > { %5496 = vmatprep.mubr.bf16.mxu0 %v16351_v8  ;;  %5465 = vmatpush1.bf16.msra.mxu0 %v11142_v0 }
 0x49c   : > { %10416 = vmatmul.mubr.f32.vlgmr.msra.gmra.mrb[84].mxu1 %v4700_v12  ;;  %5466 = vmatprep.subr.bf16.mxu0 %v11148_v4 }
 0x49d   : > { %10434 = vmatprep.mubr.bf16.mxu1 %v16351_v8  ;;  %10419 = vmatpush3.bf16.msra.mxu1 %v11145_v46 }
 0x49e   : > { %10420 = vmatprep.subr.bf16.mxu1 %v11149_v45 }
 0x49f   : > { %5467 = vmatpush1.bf16.msra.mxu0 %v11146_v55  ;;  %v13737_v55 = vsub.s32 0, %v12162_v40 }
 0x4a0   : > { %5468 = vmatprep.subr.bf16.mxu0 %v11152_v27 }
 0x4a1   : > { %10421 = vmatpush3.bf16.msra.mxu1 %v11149_v45  ;;  %16352 = vst [vmem:[#allocation22_spill] sm:$0xff] %v13737_v55 }
 0x4a2   : > { %10422 = vmatprep.subr.bf16.mxu1 %v11153_v25 }
 0x4a3   : > { %5469 = vmatpush1.bf16.msra.mxu0 %v11150_v30 }
 0x4a4   : > { %5470 = vmatprep.subr.bf16.mxu0 %v11156_v10 }
 0x4a5   : > { %10423 = vmatpush3.bf16.msra.mxu1 %v11153_v25 }
 0x4a6   : > { %10424 = vmatprep.subr.bf16.mxu1 %v11157_v5 }
 0x4a7   : > { %5471 = vmatpush1.bf16.msra.mxu0 %v11154_v2 }
 0x4a8   : > { %5472 = vmatprep.subr.bf16.mxu0 %v11160_v7 }
 0x4a9   : > { %10425 = vmatpush3.bf16.msra.mxu1 %v11157_v5 }
 0x4aa   : > { %10426 = vmatprep.subr.bf16.mxu1 %v11161_v37 }
 0x4ab   : > { %5473 = vmatpush1.bf16.msra.mxu0 %v11158_v44 }
 0x4ac   : > { %5474 = vmatprep.subr.bf16.mxu0 %v11164_v50 }
 0x4ad   : > { %10427 = vmatpush3.bf16.msra.mxu1 %v11161_v37 }
 0x4ae   : > { %10428 = vmatprep.subr.bf16.mxu1 %v11165_v13 }
 0x4af   : > { %5475 = vmatpush1.bf16.msra.mxu0 %v11162_v28 }
 0x4b0   : > { %5476 = vmatprep.subr.bf16.mxu0 %v11168_v19 }
 0x4b1   : > { %10429 = vmatpush3.bf16.msra.mxu1 %v11165_v13 }
 0x4b2   : > { %10430 = vmatprep.subr.bf16.mxu1 %v11169_v23 }
 0x4b3   : > { %5477 = vmatpush1.bf16.msra.mxu0 %v11166_v15 }
 0x4b4   : > { %5478 = vmatprep.subr.bf16.mxu0 %v11172_v14  ;;  %v11177_v14 = vld [vmem:[#allocation8 + $0x110] ss:$12 sps:$4 sm:$0xff]  }
 0x4b5   : > { %10431 = vmatpush3.bf16.msra.mxu1 %v11169_v23 }
 0x4b6   : > { %10432 = vmatprep.subr.bf16.mxu1 %v11173_v29 }
 0x4b7   : > { %5479 = vmatpush1.bf16.msra.mxu0 %v11170_v31 }
 0x4b8   : > { %10498 = vmatprep.subr.bf16.mxu0 %v11174_v24 }
 0x4b9   : > { %10433 = vmatpush3.bf16.msra.mxu1 %v11173_v29 }
 0x4ba   : > { %5497 = vmatmul.mubr.bf16.vlgmr.msra.gmra.mrb[48].mxu0 %v16351_v8 }
 0x4bb   : > { %5506 = vmatprep.mubr.bf16.mxu0 %v16351_v8  ;;  %10499 = vmatpush3.bf16.msra.mxu0 %v11174_v24 }
 0x4bc   : > { %10435 = vmatmul.mubr.bf16.vlgmr.msra.gmra.mrb[88].mxu1 %v16351_v8  ;;  %10500 = vmatprep.subr.bf16.mxu0 %v11175_v18 }
 0x4bf   : > { %10501 = vmatpush3.bf16.msra.mxu0 %v11175_v18 }
 0x4c0   : > { %10502 = vmatprep.subr.bf16.mxu0 %v11176_v53 }
 0x4c2   : > { %5507 = vmatmul.mubr.bf16.gmra.mrb[52].mxu0 %v16351_v8 }
 0x4c3   : > { %5513 = vmatprep.mubr.bf16.mxu0 %v16351_v8  ;;  %10503 = vmatpush3.bf16.msra.mxu0 %v11176_v53 }
 0x4c4   : > { %10504 = vmatprep.subr.bf16.mxu0 %v11177_v14 }
 0x4c7   : > { %10505 = vmatpush3.bf16.msra.mxu0 %v11177_v14 }
 0x56d   : > { %v4767_v16 = vpop.f32.mrb[44].mxu0 }
 0x56e   : > { %v10382_v1 = vpop.f32.mrb[45].mxu0  ;;  %v4841_v0 = vmul.f32 %v4767_v16, %v4767_v16  ;;  %v13740_v27 = vrot.slane %v4767_v16, %v13737_v55 }
 0x56f   : > { %v4837_v12 = vpop.f32.mrb[84].mxu1 }
 0x570   : > { %v10417_v59 = vpop.f32.mrb[85].mxu1  ;;  %v4842_v46 = vsub.f32 %v4837_v12, %v4841_v0  ;;  %v4848_v30 = vsub.f32 %v13515_v11, %v13740_v27  ;;  %v4849_v25 = vsub.f32 %v13507_v36, %v13740_v27  ;;  %v4850_v10 = vsub.f32 %v13512_v6, %v13740_v27 }
 0x571   : > { %v4851_v2 = vsub.f32 %v13521_v3, %v13740_v27  ;;  %v4852_v5 = vsub.f32 %v13531_v52, %v13740_v27  ;;  %v4853_v7 = vsub.f32 %v13538_v61, %v13740_v27  ;;  %v4854_v44 = vsub.f32 %v13545_v39, %v13740_v27 }
 0x572   : > { %v4843_v4 = vmax.f32 %v4842_v46, 0.0  ;;  %v4855_v11 = vsub.f32 %v13552_v41, %v13740_v27  ;;  %v4856_v36 = vsub.f32 %v13559_v33, %v13740_v27  ;;  %v4857_v6 = vsub.f32 %v13566_v43, %v13740_v27 }
 0x573   : > { %v4858_v3 = vsub.f32 %v13573_v51, %v13740_v27  ;;  %v4859_v52 = vsub.f32 %v13580_v9, %v13740_v27  ;;  %v4860_v61 = vsub.f32 %v13587_v49, %v13740_v27  ;;  %v4861_v39 = vsub.f32 %v13594_v22, %v13740_v27 }
 0x574   : > { %v4880_v45 = vadd.f32 1e-05, %v4843_v4  ;;  %v4862_v41 = vsub.f32 %v13601_v35, %v13740_v27  ;;  %v4863_v33 = vsub.f32 %v13608_v60, %v13740_v27  ;;  %v4864_v43 = vsub.f32 %v13615_v56, %v13740_v27 }
 0x575   : > { %v4865_v51 = vsub.f32 %v13622_v38, %v13740_v27  ;;  %v4866_v9 = vsub.f32 %v13629_v63, %v13740_v27  ;;  %v4867_v49 = vsub.f32 %v13636_v47, %v13740_v27  ;;  %v4868_v22 = vsub.f32 %v13643_v20, %v13740_v27 }
 0x576   : > { %11238 = vrsqrt.f32 %v4880_v45  ;;  %v4869_v35 = vsub.f32 %v13650_v58, %v13740_v27  ;;  %v4870_v60 = vsub.f32 %v13657_v54, %v13740_v27  ;;  %v4871_v56 = vsub.f32 %v13664_v21, %v13740_v27 }
 0x577   : > { %v4872_v38 = vsub.f32 %v13671_v26, %v13740_v27  ;;  %v4873_v63 = vsub.f32 %v13678_v42, %v13740_v27  ;;  %v4874_v20 = vsub.f32 %v13685_v62, %v13740_v27  ;;  %v4875_v58 = vsub.f32 %v13692_v34, %v13740_v27 }
 0x578   : > { %v4876_v54 = vsub.f32 %v13699_v17, %v13740_v27  ;;  %v4877_v21 = vsub.f32 %v13706_v48, %v13740_v27 }
 0x580   : > { %v11239_v37 = vpop.eup %11238 }
 0x581   : > { %v13795_v47 = vrot.slane %v11239_v37, %v13737_v55 }
 0x583   : > { %v4886_v26 = vmul.f32 %v13795_v47, %v4848_v30  ;;  %v4887_v50 = vmul.f32 %v13795_v47, %v4849_v25  ;;  %v4888_v42 = vmul.f32 %v13795_v47, %v4850_v10  ;;  %v4889_v28 = vmul.f32 %v13795_v47, %v4851_v2  ;;  %v13858_v2 = vld [vmem:[%s16180_s6] ss:$0 sm:$0xff] }
 0x584   : > { %v13810_v13 = vmul.f32 %v13795_v47, %v4852_v5  ;;  %v13813_v62 = vmul.f32 %v13795_v47, %v4853_v7  ;;  %v13816_v34 = vmul.f32 %v13795_v47, %v4854_v44  ;;  %v13819_v17 = vmul.f32 %v13795_v47, %v4855_v11 }
 0x585   : > { %v13822_v48 = vmul.f32 %v13795_v47, %v4856_v36  ;;  %v13825_v19 = vmul.f32 %v13795_v47, %v4857_v6  ;;  %v13828_v15 = vmul.f32 %v13795_v47, %v4858_v3  ;;  %v13831_v23 = vmul.f32 %v13795_v47, %v4859_v52 }
 0x586   : > { %v13834_v31 = vmul.f32 %v13795_v47, %v4860_v61  ;;  %v13837_v29 = vmul.f32 %v13795_v47, %v4861_v39  ;;  %v13840_v24 = vmul.f32 %v13795_v47, %v4862_v41  ;;  %v4901_v18 = vmul.f32 %v13795_v47, %v4863_v33  ;;  %v13871_v61 = vld [vmem:[%s16181_s7] ss:$0 sm:$0xff] }
 0x587   : > { %v4902_v53 = vmul.f32 %v13795_v47, %v4864_v43  ;;  %v4903_v16 = vmul.f32 %v13795_v47, %v4865_v51  ;;  %v4904_v1 = vmul.f32 %v13795_v47, %v4866_v9  ;;  %v4905_v12 = vmul.f32 %v13795_v47, %v4867_v49 }
 0x588   : > { %v4906_v59 = vmul.f32 %v13795_v47, %v4868_v22  ;;  %v4907_v0 = vmul.f32 %v13795_v47, %v4869_v35  ;;  %v4908_v46 = vmul.f32 %v13795_v47, %v4870_v60  ;;  %v4909_v4 = vmul.f32 %v13795_v47, %v4871_v56 }
 0x589   : > { %v4910_v45 = vmul.f32 %v13795_v47, %v4872_v38  ;;  %v4911_v30 = vmul.f32 %v13795_v47, %v4873_v63  ;;  %v4912_v25 = vmul.f32 %v13795_v47, %v4874_v20  ;;  %v4913_v10 = vmul.f32 %v13795_v47, %v4875_v58 }
 0x58a   : > { %v4914_v5 = vmul.f32 %v13795_v47, %v4876_v54  ;;  %v4915_v7 = vmul.f32 %v13795_v47, %v4877_v21  ;;  %v4924_v44 = vmul.f32 %v13858_v2, %v4886_v26  ;;  %v4925_v11 = vmul.f32 %v13858_v2, %v4887_v50 }
 0x58b   : > { %v4926_v36 = vmul.f32 %v13858_v2, %v4888_v42  ;;  %v4939_v6 = vmul.f32 %v13858_v2, %v4901_v18  ;;  %v4940_v3 = vmul.f32 %v13858_v2, %v4902_v53  ;;  %v4941_v52 = vmul.f32 %v13858_v2, %v4903_v16 }
 0x58c   : > { %v4942_v39 = vmul.f32 %v13858_v2, %v4904_v1  ;;  %v4943_v41 = vmul.f32 %v13858_v2, %v4905_v12  ;;  %v4944_v33 = vmul.f32 %v13858_v2, %v4906_v59  ;;  %v4945_v43 = vmul.f32 %v13858_v2, %v4907_v0 }
 0x58d   : > { %v13878_v51 = vmul.f32 %v13858_v2, %v4908_v46  ;;  %v4947_v9 = vmul.f32 %v13858_v2, %v4909_v4  ;;  %v13882_v37 = vmul.f32 %v13858_v2, %v4910_v45  ;;  %v4949_v49 = vmul.f32 %v13858_v2, %v4911_v30  ;;  %v11178_v46 = vld [vmem:[#allocation8 + $0xc0] ss:$12 sps:$4 sm:$0xff]   ;;  %v11180_v45 = vld [vmem:[#allocation8 + $0xc4] ss:$12 sps:$4 sm:$0xff]  }
 0x58e   : > { %v13886_v22 = vmul.f32 %v13858_v2, %v4912_v25  ;;  %v4951_v35 = vmul.f32 %v13858_v2, %v4913_v10  ;;  %v13890_v60 = vmul.f32 %v13858_v2, %v4914_v5  ;;  %v4953_v56 = vmul.f32 %v13858_v2, %v4915_v7  ;;  %6459 = vmatprep.subr.bf16.mxu1 %v11180_v45  ;;  %v11181_v10 = vld [vmem:[#allocation8 + $0xd8] ss:$12 sps:$4 sm:$0xff]   ;;  %v11186_v7 = vld [vmem:[#allocation8 + $0xf4] ss:$12 sps:$4 sm:$0xff]  }
 0x58f   : > { %v13894_v38 = vadd.f32 %v13871_v61, %v4924_v44  ;;  %v13897_v63 = vadd.f32 %v13871_v61, %v4925_v11  ;;  %v13900_v20 = vadd.f32 %v13871_v61, %v4939_v6  ;;  %v13903_v58 = vadd.f32 %v13871_v61, %v4941_v52  ;;  %6460 = vmatpush1.bf16.msra.mxu1 %v11178_v46  ;;  %v11192_v46 = vld [vmem:[#allocation8 + $0x124] ss:$12 sps:$4 sm:$0xff]  }
 0x590   : > { %v13906_v54 = vadd.f32 %v13871_v61, %v4943_v41  ;;  %v13909_v21 = vadd.f32 %v13871_v61, %v4945_v43  ;;  %v13912_v26 = vadd.f32 %v13871_v61, %v4947_v9  ;;  %v13915_v50 = vadd.f32 %v13871_v61, %v4949_v49  ;;  %v11189_v43 = vld [vmem:[#allocation8 + $0x10c] ss:$12 sps:$4 sm:$0xff]  }
 0x591   : > { %v13918_v42 = vadd.f32 %v13871_v61, %v4951_v35  ;;  %v13921_v14 = vadd.f32 %v13871_v61, %v4953_v56  ;;  %v9534_v18 = vmul.f32 -1.442695, %v13894_v38  ;;  %v9535_v53 = vmul.f32 -1.442695, %v13897_v63 }
 0x592   : > { %v4927_v16 = vmul.f32 %v13858_v2, %v4889_v28  ;;  %v9549_v1 = vmul.f32 -1.442695, %v13900_v20  ;;  %v9551_v12 = vmul.f32 -1.442695, %v13903_v58  ;;  %v4928_v59 = vmul.f32 %v13858_v2, %v13810_v13  ;;  %v11183_v28 = vld [vmem:[#allocation8 + $0xdc] ss:$12 sps:$4 sm:$0xff]  }
 0x593   : > { %11240 = vpow2.f32 %v9534_v18  ;;  %v9553_v0 = vmul.f32 -1.442695, %v13906_v54  ;;  %v9555_v4 = vmul.f32 -1.442695, %v13909_v21  ;;  %v13933_v30 = vadd.f32 %v13871_v61, %v4926_v36  ;;  %6461 = vmatprep.subr.bf16.mxu1 %v11183_v28  ;;  %v11184_v36 = vld [vmem:[#allocation8 + $0xf0] ss:$12 sps:$4 sm:$0xff]  }
 0x594   : > { %11242 = vpow2.f32 %v9535_v53  ;;  %v13936_v25 = vadd.f32 %v13871_v61, %v4927_v16  ;;  %v13939_v13 = vadd.f32 %v13871_v61, %v4928_v59  ;;  %6462 = vmatpush1.bf16.msra.mxu1 %v11181_v10  ;;  %v4879_v6 = vsub.f32 %v13720_v32, %v13740_v27 }
 0x595   : > { %11244 = vpow2.f32 %v9549_v1  ;;  %v9536_v5 = vmul.f32 -1.442695, %v13933_v30  ;;  %v4929_v52 = vmul.f32 %v13858_v2, %v13813_v62  ;;  %v13949_v41 = vadd.f32 %v13871_v61, %v4940_v3  ;;  %6463 = vmatprep.subr.bf16.mxu1 %v11186_v7  ;;  %v11190_v7 = vld [vmem:[#allocation8 + $0x120] ss:$12 sps:$4 sm:$0xff]  }
 0x596   : > { %11246 = vpow2.f32 %v9551_v12  ;;  %v9537_v44 = vmul.f32 -1.442695, %v13936_v25  ;;  %v9538_v11 = vmul.f32 -1.442695, %v13939_v13  ;;  %v4878_v9 = vsub.f32 %v13713_v57, %v13740_v27 }
 0x597   : > { %11248 = vpow2.f32 %v9553_v0  ;;  %v4930_v35 = vmul.f32 %v13858_v2, %v13816_v34  ;;  %v13956_v56 = vadd.f32 %v13871_v61, %v4942_v39  ;;  %v13959_v32 = vadd.f32 %v13871_v61, %v4944_v33  ;;  %v11187_v33 = vld [vmem:[#allocation8 + $0x108] ss:$12 sps:$4 sm:$0xff]  }
 0x598   : > { %11250 = vpow2.f32 %v9555_v4  ;;  %v9557_v3 = vmul.f32 -1.442695, %v13912_v26  ;;  %v13964_v53 = vadd.f32 %v13871_v61, %v13878_v51  ;;  %v4931_v27 = vmul.f32 %v13858_v2, %v13819_v17  ;;  %6464 = vmatpush1.bf16.msra.mxu1 %v11184_v36 }
 0x599   : > { %11252 = vpow2.f32 %v9536_v5  ;;  %v9559_v34 = vmul.f32 -1.442695, %v13915_v50  ;;  %v4932_v1 = vmul.f32 %v13858_v2, %v13822_v48  ;;  %v9561_v12 = vmul.f32 -1.442695, %v13918_v42  ;;  %6465 = vmatprep.subr.bf16.mxu1 %v11189_v43 }
 0x59a   : > { %11254 = vpow2.f32 %v9537_v44  ;;  %v13974_v51 = vadd.f32 %v13871_v61, %v13882_v37  ;;  %v9563_v17 = vmul.f32 -1.442695, %v13921_v14  ;;  %v13979_v0 = vadd.f32 %v13871_v61, %v13886_v22  ;;  %v11195_v44 = vld [vmem:[#allocation8 + $0x13c] ss:$12 sps:$4 sm:$0xff]  }
 0x59b   : > { %11256 = vpow2.f32 %v9538_v11  ;;  %v13983_v48 = vadd.f32 %v13871_v61, %v13890_v60  ;;  %v4933_v45 = vmul.f32 %v13858_v2, %v13825_v19  ;;  %v4916_v28 = vmul.f32 %v13795_v47, %v4878_v9  ;;  %v11196_v11 = vld [vmem:[#allocation8 + $0x128] ss:$12 sps:$4 sm:$0xff]  }
 0x59c   : > { %v4934_v10 = vmul.f32 %v13858_v2, %v13828_v15  ;;  %v13991_v22 = vadd.f32 %v13871_v61, %v4929_v52  ;;  %6466 = vmatpush1.bf16.msra.mxu1 %v11187_v33  ;;  %v4917_v19 = vmul.f32 %v13795_v47, %v4879_v6  ;;  %v4935_v43 = vmul.f32 %v13858_v2, %v13831_v23 }
 0x59d   : > { %v11241_v49 = vpop.eup %11240  ;;  %6467 = vmatprep.subr.bf16.mxu1 %v11192_v46  ;;  %v4954_v36 = vmul.f32 %v13858_v2, %v4916_v28  ;;  %v4936_v15 = vmul.f32 %v13858_v2, %v13834_v31  ;;  %v14000_v9 = vadd.f32 %v13871_v61, %v4930_v35  ;;  %10506 = vmatprep.subr.bf16.mxu0 %v11196_v11 }
 0x59e   : > { %v11243_v62 = vpop.eup %11242  ;;  %v5090_v18 = vadd.f32 1.0, %v11241_v49  ;;  %v4955_v49 = vmul.f32 %v13858_v2, %v4917_v19  ;;  %v4937_v6 = vmul.f32 %v13858_v2, %v13837_v29  ;;  %v9539_v23 = vmul.f32 -1.442695, %v13991_v22  ;;  %10507 = vmatpush3.bf16.msra.mxu0 %v11196_v11 }
 0x59f   : > { %v11245_v57 = vpop.eup %11244  ;;  %v5091_v39 = vadd.f32 1.0, %v11243_v62  ;;  %v14004_v62 = vadd.f32 %v13871_v61, %v4954_v36  ;;  %v14010_v31 = vadd.f32 %v13871_v61, %v4931_v27  ;;  %v14021_v33 = vadd.f32 %v13871_v61, %v4933_v45  ;;  %v11197_v45 = vld [vmem:[#allocation8 + $0x150] ss:$12 sps:$4 sm:$0xff]   ;;  %v11202_v36 = vld [vmem:[#allocation8 + $0x16c] ss:$12 sps:$4 sm:$0xff]  }
 0x5a0   : > { %v11247_v16 = vpop.eup %11246  ;;  %11258 = vrcp.f32 %v5090_v18  ;;  %v5105_v37 = vadd.f32 1.0, %v11245_v57  ;;  %6468 = vmatpush1.bf16.msra.mxu1 %v11190_v7  ;;  %v14013_v57 = vadd.f32 %v13871_v61, %v4932_v1  ;;  %v9540_v1 = vmul.f32 -1.442695, %v14000_v9 }
 0x5a1   : > { %v11249_v59 = vpop.eup %11248  ;;  %11260 = vrcp.f32 %v5091_v39  ;;  %v5107_v5 = vadd.f32 1.0, %v11247_v16  ;;  %6469 = vmatprep.subr.bf16.mxu1 %v11195_v44  ;;  %v4938_v39 = vmul.f32 %v13858_v2, %v13840_v24  ;;  %v11199_v16 = vld [vmem:[#allocation8 + $0x154] ss:$12 sps:$4 sm:$0xff]   ;;  %v9541_v24 = vmul.f32 -1.442695, %v14010_v31 }
 0x5a2   : > { %v11251_v4 = vpop.eup %11250  ;;  %11262 = vpow2.f32 %v9557_v3  ;;  %v5109_v60 = vadd.f32 1.0, %v11249_v59  ;;  %v11193_v3 = vld [vmem:[#allocation8 + $0x138] ss:$12 sps:$4 sm:$0xff]   ;;  %v14030_v2 = vadd.f32 %v13871_v61, %v4935_v43  ;;  %v9543_v7 = vmul.f32 -1.442695, %v14021_v33 }
 0x5a3   : > { %11264 = vpow2.f32 %v9559_v34  ;;  %v5111_v52 = vadd.f32 1.0, %v11251_v4  ;;  %v11253_v47 = vpop.eup %11252  ;;  %v14016_v34 = vadd.f32 %v13871_v61, %v4955_v49  ;;  %v14051_v19 = vadd.f32 %v13871_v61, %v4938_v39 }
 0x5a4   : > { %11266 = vpow2.f32 %v9561_v12  ;;  %v11255_v35 = vpop.eup %11254  ;;  %v5092_v18 = vadd.f32 1.0, %v11253_v47  ;;  %6470 = vmatpush1.bf16.msra.mxu1 %v11193_v3  ;;  %v9552_v39 = vmul.f32 -1.442695, %v13956_v56 }
 0x5a5   : > { %11268 = vpow2.f32 %v9563_v17  ;;  %v11257_v29 = vpop.eup %11256  ;;  %v5093_v27 = vadd.f32 1.0, %v11255_v35  ;;  %v14025_v17 = vadd.f32 %v13871_v61, %v4934_v10  ;;  %v14037_v10 = vadd.f32 %v13871_v61, %v4936_v15  ;;  %6471 = vmatprep.subr.bf16.mxu1 %v11199_v16 }
 0x5a6   : > { %11270 = vrcp.f32 %v5105_v37  ;;  %v5094_v59 = vadd.f32 1.0, %v11257_v29  ;;  %v9545_v15 = vmul.f32 -1.442695, %v14030_v2  ;;  %v9548_v3 = vmul.f32 -1.442695, %v14051_v19 }
 0x5a7   : > { %11272 = vrcp.f32 %v5107_v5  ;;  %v9542_v5 = vmul.f32 -1.442695, %v14013_v57  ;;  %v9546_v47 = vmul.f32 -1.442695, %v14037_v10 }
 0x5a8   : > { %11274 = vrcp.f32 %v5109_v60  ;;  %v14043_v60 = vadd.f32 %v13871_v61, %v4937_v6  ;;  %6472 = vmatpush1.bf16.msra.mxu1 %v11197_v45 }
 0x5a9   : > { %11276 = vrcp.f32 %v5111_v52  ;;  %v11200_v52 = vld [vmem:[#allocation8 + $0x168] ss:$12 sps:$4 sm:$0xff]   ;;  %6473 = vmatprep.subr.bf16.mxu1 %v11202_v36 }
 0x5aa   : > { %v11259_v12 = vpop.eup %11258  ;;  %11278 = vrcp.f32 %v5092_v18  ;;  %v9547_v61 = vmul.f32 -1.442695, %v14043_v60  ;;  %v9550_v18 = vmul.f32 -1.442695, %v13949_v41 }
 0x5ab   : > { %v11261_v46 = vpop.eup %11260  ;;  %v5186_v4 = vmul.f32 %v11259_v12, %v13894_v38  ;;  %11280 = vrcp.f32 %v5093_v27 }
 0x5ac   : > { %v14032_v37 = vpop.eup %11262  ;;  %v5187_v28 = vmul.f32 %v11261_v46, %v13897_v63  ;;  %11282 = vpow2.f32 %v9539_v23  ;;  %v9544_v63 = vmul.f32 -1.442695, %v14025_v17  ;;  %6474 = vmatpush1.bf16.msra.mxu1 %v11200_v52 }
 0x5ad   : > { %v14039_v38 = vpop.eup %11264  ;;  %11284 = vrcp.f32 %v5094_v59 }
 0x5ae   : > { %v14045_v44 = vpop.eup %11266  ;;  %v14047_v11 = vpack.c.bf16 %v5187_v28, %v5186_v4  ;;  %11286 = vpow2.f32 %v9540_v1  ;;  %v9554_v1 = vmul.f32 -1.442695, %v13959_v32 }
 0x5af   : > { %v14053_v43 = vpop.eup %11268  ;;  %11288 = vpow2.f32 %v9541_v24 }
 0x5b0   : > { %v14056_v49 = vpop.eup %11270  ;;  %5514 = vmatmul.mubr.bf16.gmra.mrb[56].mxu0 %v14047_v11  ;;  %10438 = vmatprep.mubr.bf16.mxu1 %v14047_v11  ;;  %11290 = vpow2.f32 %v9542_v5 }
 0x5b1   : > { %v14061_v6 = vpop.eup %11272  ;;  %10439 = vmatmul.mubr.bf16.gmra.mrb[92].mxu1 %v16351_v8  ;;  %5523 = vmatprep.mubr.bf16.mxu0 %v16351_v8  ;;  %11292 = vpow2.f32 %v9543_v7 }
 0x5b2   : > { %v14066_v23 = vpop.eup %11274  ;;  %11294 = vpow2.f32 %v9544_v63 }
 0x5b3   : > { %v14069_v35 = vpop.eup %11276  ;;  %11296 = vpow2.f32 %v9545_v15 }
 0x5b4   : > { %v11279_v29 = vpop.eup %11278  ;;  %11298 = vpow2.f32 %v9546_v47 }
 0x5b5   : > { %v11281_v27 = vpop.eup %11280  ;;  %v5188_v16 = vmul.f32 %v11279_v29, %v13933_v30  ;;  %11300 = vpow2.f32 %v9547_v61 }
 0x5b6   : > { %v11283_v12 = vpop.eup %11282  ;;  %v5189_v59 = vmul.f32 %v11281_v27, %v13936_v25  ;;  %11302 = vpow2.f32 %v9548_v3 }
 0x5b7   : > { %v11285_v46 = vpop.eup %11284  ;;  %v5095_v4 = vadd.f32 1.0, %v11283_v12  ;;  %11304 = vpow2.f32 %v9550_v18 }
 0x5b8   : > { %v11287_v24 = vpop.eup %11286  ;;  %v14076_v45 = vpack.c.bf16 %v5189_v59, %v5188_v16  ;;  %5524 = vmatmul.mubr.bf16.gmra.mrb[60].mxu0 %v16351_v8  ;;  %11306 = vpow2.f32 %v9552_v39 }
 0x5b9   : > { %v11289_v28 = vpop.eup %11288  ;;  %11308 = vrcp.f32 %v5095_v4  ;;  %5530 = vmatprep.mubr.bf16.mxu0 %v16351_v8  ;;  %v5096_v30 = vadd.f32 1.0, %v11287_v24  ;;  %v9556_v24 = vmul.f32 -1.442695, %v13964_v53 }
 0x5ba   : > { %v11291_v5 = vpop.eup %11290  ;;  %10442 = vmatprep.mubr.bf16.mxu1 %v14076_v45  ;;  %v5097_v25 = vadd.f32 1.0, %v11289_v28  ;;  %11310 = vpow2.f32 %v9554_v1  ;;  %v5190_v1 = vmul.f32 %v11285_v46, %v13939_v13  ;;  %v11203_v28 = vld [vmem:[#allocation8 + $0x140] ss:$12 sps:$4 sm:$0xff]   ;;  %v9560_v13 = vmul.f32 -1.442695, %v13979_v0 }
 0x5bb   : > { %v11293_v7 = vpop.eup %11292  ;;  %10443 = vmatmul.mubr.bf16.gmra.mrb[96].mxu1 %v16351_v8  ;;  %11312 = vrcp.f32 %v5096_v30  ;;  %v5098_v63 = vadd.f32 1.0, %v11291_v5  ;;  %10508 = vmatprep.subr.bf16.mxu0 %v11203_v28 }
 0x5bc   : > { %v11295_v36 = vpop.eup %11294  ;;  %11314 = vrcp.f32 %v5097_v25  ;;  %v5099_v15 = vadd.f32 1.0, %v11293_v7  ;;  %10509 = vmatpush3.bf16.msra.mxu0 %v11203_v28 }
 0x5bd   : > { %v11297_v52 = vpop.eup %11296  ;;  %11316 = vrcp.f32 %v5098_v63  ;;  %v5100_v47 = vadd.f32 1.0, %v11295_v36  ;;  %v9558_v63 = vmul.f32 -1.442695, %v13974_v51 }
 0x5be   : > { %v11299_v61 = vpop.eup %11298  ;;  %11318 = vrcp.f32 %v5099_v15  ;;  %v5101_v3 = vadd.f32 1.0, %v11297_v52 }
 0x5bf   : > { %v11301_v18 = vpop.eup %11300  ;;  %11320 = vrcp.f32 %v5100_v47  ;;  %v5102_v29 = vadd.f32 1.0, %v11299_v61  ;;  %v9562_v61 = vmul.f32 -1.442695, %v13983_v48 }
 0x5c0   : > { %v11303_v39 = vpop.eup %11302  ;;  %5531 = vmatmul.mubr.bf16.gmra.mrb[64].mxu0 %v14076_v45  ;;  %11322 = vrcp.f32 %v5101_v3  ;;  %v5103_v27 = vadd.f32 1.0, %v11301_v18  ;;  %v9564_v18 = vmul.f32 -1.442695, %v14004_v62 }
 0x5c1   : > { %v11305_v16 = vpop.eup %11304  ;;  %5540 = vmatprep.mubr.bf16.mxu0 %v16351_v8  ;;  %11324 = vrcp.f32 %v5102_v29  ;;  %v5104_v12 = vadd.f32 1.0, %v11303_v39 }
 0x5c2   : > { %v11307_v59 = vpop.eup %11306  ;;  %11326 = vrcp.f32 %v5103_v27  ;;  %v5106_v4 = vadd.f32 1.0, %v11305_v16  ;;  %v9565_v27 = vmul.f32 -1.442695, %v14016_v34 }
 0x5c3   : > { %v11309_v30 = vpop.eup %11308  ;;  %11328 = vrcp.f32 %v5104_v12  ;;  %v5108_v5 = vadd.f32 1.0, %v11307_v59 }
 0x5c4   : > { %v11311_v25 = vpop.eup %11310  ;;  %v5191_v7 = vmul.f32 %v11309_v30, %v13991_v22  ;;  %11330 = vrcp.f32 %v5106_v4 }
 0x5c5   : > { %v11313_v36 = vpop.eup %11312  ;;  %11332 = vrcp.f32 %v5108_v5  ;;  %v5110_v15 = vadd.f32 1.0, %v11311_v25  ;;  %v5201_v5 = vmul.f32 %v14056_v49, %v13900_v20  ;;  %v5117_v25 = vadd.f32 1.0, %v14045_v44 }
 0x5c6   : > { %v11315_v46 = vpop.eup %11314  ;;  %v14089_v52 = vpack.c.bf16 %v5191_v7, %v5190_v1  ;;  %v5192_v47 = vmul.f32 %v11313_v36, %v14000_v9  ;;  %11334 = vpow2.f32 %v9556_v24  ;;  %v5119_v36 = vadd.f32 1.0, %v14053_v43 }
 0x5c7   : > { %v11317_v3 = vpop.eup %11316  ;;  %v5193_v22 = vmul.f32 %v11315_v46, %v14010_v31  ;;  %11336 = vrcp.f32 %v5110_v15 }
 0x5c8   : > { %v11319_v29 = vpop.eup %11318  ;;  %10446 = vmatprep.mubr.bf16.mxu1 %v14089_v52  ;;  %5541 = vmatmul.mubr.bf16.gmra.mrb[68].mxu0 %v16351_v8  ;;  %v5194_v39 = vmul.f32 %v11317_v3, %v14013_v57  ;;  %11338 = vpow2.f32 %v9558_v63  ;;  %v5113_v57 = vadd.f32 1.0, %v14032_v37 }
 0x5c9   : > { %v11321_v9 = vpop.eup %11320  ;;  %10447 = vmatmul.mubr.bf16.gmra.mrb[100].mxu1 %v16351_v8  ;;  %v14100_v16 = vpack.c.bf16 %v5193_v22, %v5192_v47  ;;  %v5195_v31 = vmul.f32 %v11319_v29, %v14021_v33  ;;  %5547 = vmatprep.mubr.bf16.mxu0 %v16351_v8  ;;  %11340 = vpow2.f32 %v9560_v13  ;;  %v5115_v33 = vadd.f32 1.0, %v14039_v38 }
 0x5ca   : > { %v11323_v12 = vpop.eup %11322  ;;  %v5196_v59 = vmul.f32 %v11321_v9, %v14025_v17  ;;  %11342 = vpow2.f32 %v9562_v61 }
 0x5cb   : > { %v11325_v1 = vpop.eup %11324  ;;  %10450 = vmatprep.mubr.bf16.mxu1 %v14100_v16  ;;  %v14107_v4 = vpack.c.bf16 %v5195_v31, %v5194_v39  ;;  %v5197_v24 = vmul.f32 %v11323_v12, %v14030_v2  ;;  %11344 = vpow2.f32 %v9564_v18  ;;  %v5203_v2 = vmul.f32 %v14061_v6, %v13903_v58 }
 0x5cc   : > { %v11327_v28 = vpop.eup %11326  ;;  %v5198_v30 = vmul.f32 %v11325_v1, %v14037_v10  ;;  %11346 = vpow2.f32 %v9565_v27  ;;  %v5205_v10 = vmul.f32 %v14066_v23, %v13906_v54 }
 0x5cd   : > { %v11329_v17 = vpop.eup %11328  ;;  %v14115_v37 = vpack.c.bf16 %v5197_v24, %v5196_v59  ;;  %v5199_v7 = vmul.f32 %v11327_v28, %v14043_v60  ;;  %11348 = vrcp.f32 %v5113_v57 }
 0x5ce   : > { %v11331_v63 = vpop.eup %11330  ;;  %v5200_v38 = vmul.f32 %v11329_v17, %v14051_v19  ;;  %11350 = vrcp.f32 %v5115_v33  ;;  %v5207_v19 = vmul.f32 %v14069_v35, %v13909_v21 }
 0x5cf   : > { %v11333_v20 = vpop.eup %11332  ;;  %v14124_v49 = vpack.c.bf16 %v5199_v7, %v5198_v30  ;;  %v5202_v44 = vmul.f32 %v11331_v63, %v13949_v41  ;;  %11352 = vrcp.f32 %v5117_v25  ;;  %v11204_v25 = vld [vmem:[#allocation8 + $0x158] ss:$12 sps:$4 sm:$0xff]  }
 0x5d0   : > { %v11335_v15 = vpop.eup %11334  ;;  %5548 = vmatmul.mubr.bf16.gmra.mrb[72].mxu0 %v14089_v52  ;;  %v14128_v60 = vpack.c.bf16 %v5201_v5, %v5200_v38  ;;  %v5204_v58 = vmul.f32 %v11333_v20, %v13956_v56  ;;  %11354 = vrcp.f32 %v5119_v36  ;;  %10510 = vmatprep.subr.bf16.mxu0 %v11204_v25  ;;  %v10436_v36 = vpop.f32.mrb[88].mxu1 }
 0x5d1   : > { %v11337_v43 = vpop.eup %11336  ;;  %10451 = vmatmul.mubr.bf16.gmra.mrb[104].mxu1 %v16351_v8  ;;  %5557 = vmatprep.mubr.bf16.mxu0 %v16351_v8  ;;  %v14135_v54 = vpack.c.bf16 %v5203_v2, %v5202_v44  ;;  %v5112_v41 = vadd.f32 1.0, %v11335_v15  ;;  %v6156_v20 = vrot.slane %v10436_v36, 1 }
 0x5d2   : > { %v11339_v6 = vpop.eup %11338  ;;  %10454 = vmatprep.mubr.bf16.mxu1 %v14107_v4  ;;  %v14138_v23 = vpack.c.bf16 %v5205_v10, %v5204_v58  ;;  %v5206_v56 = vmul.f32 %v11337_v43, %v13959_v32  ;;  %10511 = vmatpush3.bf16.msra.mxu0 %v11204_v25  ;;  %v5803_v10 = vpop.f32.mrb[89].mxu1 }
 0x5d3   : > { %v11341_v13 = vpop.eup %11340  ;;  %11356 = vrcp.f32 %v5112_v41  ;;  %v5114_v21 = vadd.f32 1.0, %v11339_v6  ;;  %v6154_v15 = vrot.slane %v5803_v10, 1  ;;  %v10437_v58 = vpop.f32.mrb[90].mxu1 }
 0x5d4   : > { %v11343_v35 = vpop.eup %11342  ;;  %v14141_v46 = vpack.c.bf16 %v5207_v19, %v5206_v56  ;;  %v5116_v47 = vadd.f32 1.0, %v11341_v13  ;;  %v5806_v43 = vpop.f32.mrb[91].mxu1 }
 0x5d5   : > { %v11345_v61 = vpop.eup %11344  ;;  %11358 = vrcp.f32 %v5114_v21  ;;  %v5118_v3 = vadd.f32 1.0, %v11343_v35  ;;  %v6155_v41 = vrot.slane %v5806_v43, 1 }
 0x5d6   : > { %v11347_v22 = vpop.eup %11346  ;;  %11360 = vrcp.f32 %v5116_v47  ;;  %v5120_v18 = vadd.f32 1.0, %v11345_v61 }
 0x5d7   : > { %11362 = vrcp.f32 %v5118_v3  ;;  %v5121_v29 = vadd.f32 1.0, %v11347_v22  ;;  %v11349_v39 = vpop.eup %11348  ;;  %v14194_v13 = vsel %vm1680_vm1, %v6154_v15, %v6155_v41  ;;  %v6232_v21 = vsel %vm1680_vm1, %v6155_v41, %v6156_v20 }
 0x5d8   : > { %5558 = vmatmul.mubr.bf16.gmra.mrb[76].mxu0 %v16351_v8  ;;  %11364 = vrcp.f32 %v5120_v18  ;;  %v11351_v32 = vpop.eup %11350  ;;  %v5209_v31 = vmul.f32 %v11349_v39, %v13912_v26  ;;  %v11205_v18 = vld [vmem:[#allocation8 + $0x170] ss:$12 sps:$4 sm:$0xff]   ;;  %v11218_v39 = vld [vmem:[#allocation8 + $0x188] ss:$12 sps:$4 sm:$0xff]  }
 0x5d9   : > { %10455 = vmatmul.mubr.bf16.gmra.mrb[108].mxu1 %v16351_v8  ;;  %5564 = vmatprep.mubr.bf16.mxu0 %v16351_v8  ;;  %11366 = vrcp.f32 %v5121_v29  ;;  %v11353_v27 = vpop.eup %11352  ;;  %v5211_v1 = vmul.f32 %v11351_v32, %v13915_v50  ;;  %v11208_v29 = vld [vmem:[#allocation8 + $0x184] ss:$12 sps:$4 sm:$0xff]   ;;  %v11225_v32 = vld [vmem:[#allocation8 + $0x1a0] ss:$12 sps:$4 sm:$0xff]  }
 0x5da   : > { %10458 = vmatprep.mubr.bf16.mxu1 %v14115_v37  ;;  %v11355_v9 = vpop.eup %11354  ;;  %v5213_v24 = vmul.f32 %v11353_v27, %v13918_v42  ;;  %10512 = vmatprep.subr.bf16.mxu0 %v11205_v18 }
 0x5db   : > { %v5215_v5 = vmul.f32 %v11355_v9, %v13921_v14  ;;  %10513 = vmatpush3.bf16.msra.mxu0 %v11205_v18  ;;  %10578 = vmatprep.subr.bf16.mxu1 %v11218_v39 }
 0x5dc   : > { %7487 = vmatprep.subr.bf16.mxu0 %v11208_v29 }
 0x5dd   : > { %v11357_v12 = vpop.eup %11356 }
 0x5de   : > { %v5208_v59 = vmul.f32 %v11357_v12, %v13964_v53 }
 0x5df   : > { %v11359_v57 = vpop.eup %11358 }
 0x5e0   : > { %v11361_v28 = vpop.eup %11360  ;;  %5565 = vmatmul.mubr.bf16.gmra.mrb[80].mxu0 %v14100_v16  ;;  %v14152_v33 = vpack.c.bf16 %v5209_v31, %v5208_v59  ;;  %v5210_v30 = vmul.f32 %v11359_v57, %v13974_v51 }
 0x5e1   : > { %v11363_v17 = vpop.eup %11362  ;;  %10459 = vmatmul.mubr.bf16.gmra.mrb[112].mxu1 %v16351_v8  ;;  %5574 = vmatprep.mubr.bf16.mxu0 %v16351_v8  ;;  %v5212_v26 = vmul.f32 %v11361_v28, %v13979_v0 }
 0x5e2   : > { %v11365_v50 = vpop.eup %11364  ;;  %10462 = vmatprep.mubr.bf16.mxu1 %v14124_v49  ;;  %v14160_v42 = vpack.c.bf16 %v5211_v1, %v5210_v30  ;;  %v5214_v53 = vmul.f32 %v11363_v17, %v13983_v48  ;;  %v14179_v48 = vpop.f32.mrb[48].mxu0 }
 0x5e3   : > { %v11367_v7 = vpop.eup %11366  ;;  %v14163_v2 = vpack.c.bf16 %v5213_v24, %v5212_v26  ;;  %v5216_v14 = vmul.f32 %v11365_v50, %v14004_v62  ;;  %v16223_v62 = vrot.slane %v14179_v48, 7 }
 0x5e4   : > { %v14166_v51 = vpack.c.bf16 %v5215_v5, %v5214_v53  ;;  %v5217_v63 = vmul.f32 %v11367_v7, %v14016_v34  ;;  %v14182_v34 = vpop.f32.mrb[49].mxu0 }
 0x5e5   : > { %v5502_v38 = vpop.f32.mrb[50].mxu0 }
 0x5e6   : > { %v14169_v0 = vpack.c.bf16 %v5217_v63, %v5216_v14  ;;  %v6043_v44 = vrot.slane %v5502_v38, 7  ;;  %v5504_v19 = vpop.f32.mrb[51].mxu0 }
 0x5e7   : > { %v5508_v47 = vpop.f32.mrb[52].mxu0 }
 0x5e8   : > { %5575 = vmatmul.mubr.bf16.gmra.mrb[84].mxu0 %v16351_v8  ;;  %v6120_v6 = vsel %vm1567_vm0, %v16223_v62, %v6043_v44  ;;  %v5509_v61 = vpop.f32.mrb[53].mxu0 }
 0x5e9   : > { %10463 = vmatmul.mubr.bf16.gmra.mrb[116].mxu1 %v16351_v8  ;;  %5581 = vmatprep.mubr.bf16.mxu0 %v16351_v8  ;;  %v6123_v56 = vadd.f32 %v6120_v6, %v5504_v19  ;;  %v14203_v3 = vpop.f32.mrb[54].mxu0 }
 0x5ea   : > { %10466 = vmatprep.mubr.bf16.mxu1 %v14128_v60  ;;  %v5512_v22 = vpop.f32.mrb[55].mxu0  ;;  %v6044_v9 = vrot.slane %v14203_v3, 7 }
 0x5eb   : > { %v14198_v35 = vadd.f32 %v6232_v21, %v6123_v56 }
 0x5f0   : > { %5582 = vmatmul.mubr.bf16.gmra.mrb[88].mxu0 %v14107_v4 }
 0x5f1   : > { %10467 = vmatmul.mubr.bf16.gmra.mrb[120].mxu1 %v16351_v8  ;;  %5591 = vmatprep.mubr.bf16.mxu0 %v16351_v8 }
 0x5f2   : > { %10470 = vmatprep.mubr.bf16.mxu1 %v14135_v54 }
 0x5f8   : > { %5592 = vmatmul.mubr.bf16.gmra.mrb[92].mxu0 %v16351_v8 }
 0x5f9   : > { %10471 = vmatmul.mubr.bf16.gmra.mrb[124].mxu1 %v16351_v8  ;;  %5598 = vmatprep.mubr.bf16.mxu0 %v16351_v8 }
 0x5fa   : > { %10474 = vmatprep.mubr.bf16.mxu1 %v14138_v23 }
 0x600   : > { %5599 = vmatmul.mubr.bf16.gmra.mrb[96].mxu0 %v14115_v37 }
 0x601   : > { %10475 = vmatmul.mubr.bf16.gmra.mrb[128].mxu1 %v16351_v8  ;;  %5608 = vmatprep.mubr.bf16.mxu0 %v16351_v8 }
 0x602   : > { %10478 = vmatprep.mubr.bf16.mxu1 %v14141_v46 }
 0x608   : > { %5609 = vmatmul.mubr.bf16.gmra.mrb[100].mxu0 %v16351_v8 }
 0x609   : > { %10479 = vmatmul.mubr.bf16.gmra.mrb[132].mxu1 %v16351_v8  ;;  %5615 = vmatprep.mubr.bf16.mxu0 %v16351_v8 }
 0x60a   : > { %10482 = vmatprep.mubr.bf16.mxu1 %v14152_v33 }
 0x610   : > { %5616 = vmatmul.mubr.bf16.gmra.mrb[104].mxu0 %v14124_v49 }
 0x611   : > { %10483 = vmatmul.mubr.bf16.gmra.mrb[136].mxu1 %v16351_v8  ;;  %5625 = vmatprep.mubr.bf16.mxu0 %v16351_v8 }
 0x612   : > { %10486 = vmatprep.mubr.bf16.mxu1 %v14160_v42 }
 0x618   : > { %5626 = vmatmul.mubr.bf16.gmra.mrb[108].mxu0 %v16351_v8 }
 0x619   : > { %10487 = vmatmul.mubr.bf16.gmra.mrb[140].mxu1 %v16351_v8  ;;  %5632 = vmatprep.mubr.bf16.mxu0 %v16351_v8 }
 0x61a   : > { %10490 = vmatprep.mubr.bf16.mxu1 %v14163_v2 }
 0x620   : > { %5633 = vmatmul.mubr.bf16.gmra.mrb[112].mxu0 %v14128_v60 }
 0x621   : > { %10491 = vmatmul.mubr.bf16.gmra.mrb[144].mxu1 %v16351_v8  ;;  %5642 = vmatprep.mubr.bf16.mxu0 %v16351_v8 }
 0x622   : > { %10494 = vmatprep.mubr.bf16.mxu1 %v14166_v51 }
 0x628   : > { %5643 = vmatmul.mubr.bf16.gmra.mrb[116].mxu0 %v16351_v8 }
 0x629   : > { %10495 = vmatmul.mubr.bf16.gmra.mrb[148].mxu1 %v16351_v8  ;;  %5649 = vmatprep.mubr.bf16.mxu0 %v16351_v8 }
 0x62a   : > { %6491 = vmatprep.mubr.bf16.mxu1 %v16351_v8 }
 0x630   : > { %5650 = vmatmul.mubr.bf16.gmra.mrb[120].mxu0 %v14135_v54 }
 0x631   : > { %6492 = vmatmul.mubr.bf16.vlgmr.msra.gmra.mrb[152].mxu1 %v14047_v11  ;;  %5659 = vmatprep.mubr.bf16.mxu0 %v16351_v8 }
 0x632   : > { %6501 = vmatprep.mubr.bf16.mxu1 %v16351_v8  ;;  %10579 = vmatpush3.bf16.msra.mxu1 %v11218_v39 }
 0x633   : > { %10580 = vmatprep.subr.bf16.mxu1 %v11225_v32 }
 0x636   : > { %10581 = vmatpush3.bf16.msra.mxu1 %v11225_v32 }
 0x638   : > { %5660 = vmatmul.mubr.bf16.gmra.mrb[124].mxu0 %v16351_v8 }
 0x639   : > { %6502 = vmatmul.mubr.bf16.gmra.mrb[156].mxu1 %v16351_v8  ;;  %5666 = vmatprep.mubr.bf16.mxu0 %v16351_v8 }
 0x63a   : > { %6508 = vmatprep.mubr.bf16.mxu1 %v16351_v8 }
 0x640   : > { %5667 = vmatmul.mubr.bf16.gmra.mrb[128].mxu0 %v14138_v23 }
 0x641   : > { %6509 = vmatmul.mubr.bf16.gmra.mrb[160].mxu1 %v14076_v45  ;;  %5676 = vmatprep.mubr.bf16.mxu0 %v16351_v8 }
 0x642   : > { %6518 = vmatprep.mubr.bf16.mxu1 %v16351_v8 }
 0x648   : > { %5677 = vmatmul.mubr.bf16.gmra.mrb[132].mxu0 %v16351_v8 }
 0x649   : > { %6519 = vmatmul.mubr.bf16.gmra.mrb[164].mxu1 %v16351_v8  ;;  %5683 = vmatprep.mubr.bf16.mxu0 %v16351_v8 }
 0x64a   : > { %6525 = vmatprep.mubr.bf16.mxu1 %v16351_v8 }
 0x650   : > { %5684 = vmatmul.mubr.bf16.gmra.mrb[136].mxu0 %v14141_v46 }
 0x651   : > { %6526 = vmatmul.mubr.bf16.gmra.mrb[168].mxu1 %v14089_v52  ;;  %5693 = vmatprep.mubr.bf16.mxu0 %v16351_v8 }
 0x652   : > { %6535 = vmatprep.mubr.bf16.mxu1 %v16351_v8 }
 0x658   : > { %5694 = vmatmul.mubr.bf16.gmra.mrb[140].mxu0 %v16351_v8 }
 0x659   : > { %6536 = vmatmul.mubr.bf16.gmra.mrb[172].mxu1 %v16351_v8  ;;  %5700 = vmatprep.mubr.bf16.mxu0 %v16351_v8 }
 0x65a   : > { %6542 = vmatprep.mubr.bf16.mxu1 %v16351_v8 }
 0x660   : > { %5701 = vmatmul.mubr.bf16.gmra.mrb[144].mxu0 %v14152_v33 }
 0x661   : > { %6543 = vmatmul.mubr.bf16.gmra.mrb[176].mxu1 %v14100_v16  ;;  %5710 = vmatprep.mubr.bf16.mxu0 %v16351_v8 }
 0x662   : > { %6552 = vmatprep.mubr.bf16.mxu1 %v16351_v8 }
 0x668   : > { %5711 = vmatmul.mubr.bf16.gmra.mrb[148].mxu0 %v16351_v8 }
 0x669   : > { %6553 = vmatmul.mubr.bf16.gmra.mrb[180].mxu1 %v16351_v8  ;;  %5717 = vmatprep.mubr.bf16.mxu0 %v16351_v8 }
 0x66a   : > { %6559 = vmatprep.mubr.bf16.mxu1 %v16351_v8 }
 0x670   : > { %5718 = vmatmul.mubr.bf16.gmra.mrb[152].mxu0 %v14160_v42 }
 0x671   : > { %6560 = vmatmul.mubr.bf16.gmra.mrb[184].mxu1 %v14107_v4  ;;  %5727 = vmatprep.mubr.bf16.mxu0 %v16351_v8 }
 0x672   : > { %6569 = vmatprep.mubr.bf16.mxu1 %v16351_v8 }
 0x678   : > { %5728 = vmatmul.mubr.bf16.gmra.mrb[156].mxu0 %v16351_v8 }
 0x679   : > { %6570 = vmatmul.mubr.bf16.gmra.mrb[188].mxu1 %v16351_v8  ;;  %5734 = vmatprep.mubr.bf16.mxu0 %v16351_v8 }
 0x67a   : > { %6576 = vmatprep.mubr.bf16.mxu1 %v16351_v8 }
 0x680   : > { %5735 = vmatmul.mubr.bf16.gmra.mrb[160].mxu0 %v14163_v2 }
 0x681   : > { %6577 = vmatmul.mubr.bf16.gmra.mrb[192].mxu1 %v14115_v37  ;;  %5744 = vmatprep.mubr.bf16.mxu0 %v16351_v8 }
 0x682   : > { %6586 = vmatprep.mubr.bf16.mxu1 %v16351_v8 }
 0x683   : > { %v5515_v27 = vpop.f32.mrb[56].mxu0 }
 0x684   : > { %v6045_v31 = vrot.slane %v5515_v27, 7  ;;  %v5517_v12 = vpop.f32.mrb[57].mxu0  ;;  %v10440_v59 = vpop.f32.mrb[92].mxu1 }
 0x685   : > { %v5519_v1 = vpop.f32.mrb[58].mxu0  ;;  %v5818_v57 = vpop.f32.mrb[93].mxu1  ;;  %v6159_v28 = vrot.slane %v10440_v59, 1 }
 0x686   : > { %v6119_v24 = vsel %vm1567_vm0, %v6044_v9, %v6045_v31  ;;  %v6046_v30 = vrot.slane %v5519_v1, 7  ;;  %v6157_v5 = vrot.slane %v5818_v57, 1  ;;  %v5521_v17 = vpop.f32.mrb[59].mxu0  ;;  %v10441_v26 = vpop.f32.mrb[94].mxu1 }
 0x687   : > { %v6124_v50 = vadd.f32 %v6119_v24, %v5517_v12  ;;  %v5821_v53 = vpop.f32.mrb[95].mxu1  ;;  %v11232_v24 = vld [vmem:[#allocation8 + $0x1b8] ss:$12 sps:$4 sm:$0xff]  }
 0x688   : > { %v6118_v25 = vsel %vm1567_vm0, %v6045_v31, %v6046_v30  ;;  %v6158_v7 = vrot.slane %v5821_v53, 1  ;;  %5745 = vmatmul.mubr.bf16.gmra.mrb[164].mxu0 %v16351_v8  ;;  %10582 = vmatprep.subr.bf16.mxu1 %v11232_v24 }
 0x689   : > { %6587 = vmatmul.mubr.bf16.gmra.mrb[196].mxu1 %v16351_v8  ;;  %v6125_v14 = vadd.f32 %v6118_v25, %v5521_v17  ;;  %5751 = vmatprep.mubr.bf16.mxu0 %v16351_v8 }
 0x68a   : > { %v6230_v63 = vsel %vm1680_vm1, %v6158_v7, %v6159_v28  ;;  %v6231_v36 = vsel %vm1680_vm1, %v6157_v5, %v6158_v7  ;;  %6593 = vmatprep.mubr.bf16.mxu1 %v16351_v8  ;;  %v11233_v5 = vld [vmem:[#allocation8 + $0x1d0] ss:$12 sps:$4 sm:$0xff]   ;;  %10583 = vmatpush3.bf16.msra.mxu1 %v11232_v24  ;;  %v11206_v7 = vld [vmem:[#allocation8 + $0x180] ss:$12 sps:$4 sm:$0xff]  }
 0x68b   : > { %v14283_v38 = vadd.f32 %v6231_v36, %v6124_v50  ;;  %v14285_v10 = vadd.f32 %v6230_v63, %v6125_v14  ;;  %v5525_v20 = vpop.f32.mrb[60].mxu0  ;;  %10584 = vmatprep.subr.bf16.mxu1 %v11233_v5 }
 0x68c   : > { %v5526_v44 = vpop.f32.mrb[61].mxu0  ;;  %v11211_v20 = vld [vmem:[#allocation8 + $0x19c] ss:$12 sps:$4 sm:$0xff]  }
 0x68d   : > { %v5527_v15 = vpop.f32.mrb[62].mxu0 }
 0x68e   : > { %v5529_v58 = vpop.f32.mrb[63].mxu0  ;;  %v10444_v19 = vpop.f32.mrb[96].mxu1  ;;  %v6047_v3 = vrot.slane %v5527_v15, 7  ;;  %v11234_v15 = vld [vmem:[#allocation8 + $0x1e8] ss:$12 sps:$4 sm:$0xff]   ;;  %10585 = vmatpush3.bf16.msra.mxu1 %v11233_v5 }
 0x68f   : > { %v5833_v43 = vpop.f32.mrb[97].mxu1  ;;  %v6162_v41 = vrot.slane %v10444_v19, 1  ;;  %10586 = vmatprep.subr.bf16.mxu1 %v11234_v15  ;;  %v11235_v5 = vld [vmem:[#allocation8 + $0x200] ss:$12 sps:$4 sm:$0xff]  }
 0x690   : > { %5752 = vmatmul.mubr.bf16.gmra.mrb[168].mxu0 %v14166_v51  ;;  %v6160_v6 = vrot.slane %v5833_v43, 1  ;;  %v10445_v56 = vpop.f32.mrb[98].mxu1  ;;  %v11209_v43 = vld [vmem:[#allocation8 + $0x198] ss:$12 sps:$4 sm:$0xff]  }
 0x691   : > { %6594 = vmatmul.mubr.bf16.gmra.mrb[200].mxu1 %v14124_v49  ;;  %v5836_v21 = vpop.f32.mrb[99].mxu1  ;;  %5761 = vmatprep.mubr.bf16.mxu0 %v16351_v8 }
 0x692   : > { %6603 = vmatprep.mubr.bf16.mxu1 %v16351_v8  ;;  %v6161_v47 = vrot.slane %v5836_v21, 1  ;;  %10587 = vmatpush3.bf16.msra.mxu1 %v11234_v15 }
 0x693   : > { %v5532_v61 = vpop.f32.mrb[64].mxu0  ;;  %10588 = vmatprep.subr.bf16.mxu1 %v11235_v5 }
 0x694   : > { %v6048_v22 = vrot.slane %v5532_v61, 7  ;;  %v5534_v18 = vpop.f32.mrb[65].mxu0  ;;  %v6228_v29 = vsel %vm1680_vm1, %v6161_v47, %v6162_v41  ;;  %v6229_v39 = vsel %vm1680_vm1, %v6160_v6, %v6161_v47  ;;  %v11214_v6 = vld [vmem:[#allocation8 + $0x1b4] ss:$12 sps:$4 sm:$0xff]  }
 0x695   : > { %v5536_v32 = vpop.f32.mrb[66].mxu0 }
 0x696   : > { %v6117_v27 = vsel %vm1567_vm0, %v6047_v3, %v6048_v22  ;;  %v6049_v9 = vrot.slane %v5536_v32, 7  ;;  %v5538_v31 = vpop.f32.mrb[67].mxu0  ;;  %10589 = vmatpush3.bf16.msra.mxu1 %v11235_v5 }
 0x697   : > { %v6126_v12 = vadd.f32 %v6117_v27, %v5534_v18  ;;  %v11212_v18 = vld [vmem:[#allocation8 + $0x1b0] ss:$12 sps:$4 sm:$0xff]  }
 0x698   : > { %v6116_v59 = vsel %vm1567_vm0, %v6048_v22, %v6049_v9  ;;  %5762 = vmatmul.mubr.bf16.gmra.mrb[172].mxu0 %v16351_v8 }
 0x699   : > { %6604 = vmatmul.mubr.bf16.gmra.mrb[204].mxu1 %v16351_v8  ;;  %v14301_v1 = vadd.f32 %v6229_v39, %v6126_v12  ;;  %v6127_v57 = vadd.f32 %v6116_v59, %v5538_v31  ;;  %10514 = vmatprep.mubr.bf16.mxu0 %v14047_v11 }
 0x69a   : > { %6610 = vmatprep.mubr.bf16.mxu1 %v16351_v8 }
 0x69b   : > { %v14305_v28 = vadd.f32 %v6228_v29, %v6127_v57  ;;  %v5542_v30 = vpop.f32.mrb[68].mxu0  ;;  %v11217_v57 = vld [vmem:[#allocation8 + $0x1cc] ss:$12 sps:$4 sm:$0xff]  }
 0x69c   : > { %v5543_v17 = vpop.f32.mrb[69].mxu0  ;;  %v10448_v26 = vpop.f32.mrb[100].mxu1 }
 0x69d   : > { %v5544_v50 = vpop.f32.mrb[70].mxu0  ;;  %v5848_v53 = vpop.f32.mrb[101].mxu1  ;;  %v6165_v14 = vrot.slane %v10448_v26, 1 }
 0x69e   : > { %v5546_v25 = vpop.f32.mrb[71].mxu0  ;;  %v6163_v63 = vrot.slane %v5848_v53, 1  ;;  %v10449_v36 = vpop.f32.mrb[102].mxu1  ;;  %v6050_v56 = vrot.slane %v5544_v50, 7 }
 0x69f   : > { %v5851_v11 = vpop.f32.mrb[103].mxu1  ;;  %v11215_v25 = vld [vmem:[#allocation8 + $0x1c8] ss:$12 sps:$4 sm:$0xff]   ;;  %v11221_v36 = vld [vmem:[#allocation8 + $0x1e4] ss:$12 sps:$4 sm:$0xff]  }
 0x6a0   : > { %10515 = vmatmul.mubr.bf16.vlgmr.msra.gmra.mrb[176].mxu0 %v16351_v8  ;;  %v6164_v44 = vrot.slane %v5851_v11, 1 }
 0x6a1   : > { %6611 = vmatmul.mubr.bf16.gmra.mrb[208].mxu1 %v14128_v60  ;;  %10518 = vmatprep.mubr.bf16.mxu0 %v14076_v45 }
 0x6a2   : > { %6620 = vmatprep.mubr.bf16.mxu1 %v16351_v8  ;;  %7488 = vmatpush1.bf16.msra.mxu0 %v11206_v7  ;;  %v6226_v58 = vsel %vm1680_vm1, %v6164_v44, %v6165_v14  ;;  %v6227_v19 = vsel %vm1680_vm1, %v6163_v63, %v6164_v44  ;;  %v11236_v7 = vld [vmem:[#allocation8 + $0x218] ss:$12 sps:$4 sm:$0xff]  }
 0x6a3   : > { %v5549_v41 = vpop.f32.mrb[72].mxu0  ;;  %7489 = vmatprep.subr.bf16.mxu0 %v11211_v20  ;;  %10590 = vmatprep.subr.bf16.mxu1 %v11236_v7 }
 0x6a4   : > { %v6051_v21 = vrot.slane %v5549_v41, 7  ;;  %v5551_v47 = vpop.f32.mrb[73].mxu0  ;;  %v10452_v61 = vpop.f32.mrb[104].mxu1  ;;  %10591 = vmatpush3.bf16.msra.mxu1 %v11236_v7 }
 0x6a5   : > { %v5553_v3 = vpop.f32.mrb[74].mxu0  ;;  %v5863_v22 = vpop.f32.mrb[105].mxu1  ;;  %v6168_v27 = vrot.slane %v10452_v61, 1 }
 0x6a6   : > { %v6115_v29 = vsel %vm1567_vm0, %v6050_v56, %v6051_v21  ;;  %v6052_v39 = vrot.slane %v5553_v3, 7  ;;  %v5555_v32 = vpop.f32.mrb[75].mxu0  ;;  %7490 = vmatpush1.bf16.msra.mxu0 %v11209_v43  ;;  %v6166_v9 = vrot.slane %v5863_v22, 1  ;;  %v10453_v31 = vpop.f32.mrb[106].mxu1  ;;  %v11219_v56 = vld [vmem:[#allocation8 + $0x1e0] ss:$12 sps:$4 sm:$0xff]  }
 0x6a7   : > { %v6128_v12 = vadd.f32 %v6115_v29, %v5551_v47  ;;  %v5866_v59 = vpop.f32.mrb[107].mxu1  ;;  %7491 = vmatprep.subr.bf16.mxu0 %v11214_v6  ;;  %v11237_v47 = vld [vmem:[#allocation8 + $0x230] ss:$12 sps:$4 sm:$0xff]  }
 0x6a8   : > { %v6114_v24 = vsel %vm1567_vm0, %v6051_v21, %v6052_v39  ;;  %10519 = vmatmul.mubr.bf16.gmra.mrb[180].mxu0 %v16351_v8  ;;  %v6167_v30 = vrot.slane %v5866_v59, 1  ;;  %v11228_v39 = vld [vmem:[#allocation8 + $0x214] ss:$12 sps:$4 sm:$0xff]   ;;  %10592 = vmatprep.subr.bf16.mxu1 %v11237_v47 }
 0x6a9   : > { %6621 = vmatmul.mubr.bf16.gmra.mrb[212].mxu1 %v16351_v8  ;;  %v14321_v17 = vadd.f32 %v6227_v19, %v6128_v12  ;;  %v6129_v26 = vadd.f32 %v6114_v24, %v5555_v32  ;;  %10522 = vmatprep.mubr.bf16.mxu0 %v14089_v52  ;;  %v16353_v24 = vmov 0.0|0.0  }
 0x6aa   : > { %6627 = vmatprep.mubr.bf16.mxu1 %v16351_v8  ;;  %v14327_v50 = vsel %vm1680_vm1, %v6167_v30, %v6168_v27  ;;  %v14331_v53 = vsel %vm1680_vm1, %v6166_v9, %v6167_v30  ;;  %7492 = vmatpush1.bf16.msra.mxu0 %v11212_v18  ;;  %v11222_v18 = vld [vmem:[#allocation8 + $0x1f8] ss:$12 sps:$4 sm:$0xff]  }
 0x6ab   : > { %v14333_v14 = vadd.f32 %v6226_v58, %v6129_v26  ;;  %v5559_v63 = vpop.f32.mrb[76].mxu0  ;;  %7493 = vmatprep.subr.bf16.mxu0 %v11217_v57  ;;  %v11224_v58 = vld [vmem:[#allocation8 + $0x1fc] ss:$12 sps:$4 sm:$0xff]   ;;  %10593 = vmatpush3.bf16.msra.mxu1 %v11237_v47 }
 0x6ac   : > { %v5560_v11 = vpop.f32.mrb[77].mxu0  ;;  %v10456_v20 = vpop.f32.mrb[108].mxu1  ;;  %v11226_v57 = vld [vmem:[#allocation8 + $0x210] ss:$12 sps:$4 sm:$0xff]   ;;  %10776 = vmatprep.subr.bf16.mxu1 %v16353_v24 }
 0x6ad   : > { %v5561_v44 = vpop.f32.mrb[78].mxu0  ;;  %v5878_v15 = vpop.f32.mrb[109].mxu1  ;;  %v6171_v43 = vrot.slane %v10456_v20, 1  ;;  %v11231_v20 = vld [vmem:[#allocation8 + $0x22c] ss:$12 sps:$4 sm:$0xff]  }
 0x6ae   : > { %v5563_v19 = vpop.f32.mrb[79].mxu0  ;;  %v6169_v41 = vrot.slane %v5878_v15, 1  ;;  %v10457_v6 = vpop.f32.mrb[110].mxu1  ;;  %7494 = vmatpush1.bf16.msra.mxu0 %v11215_v25  ;;  %v6053_v32 = vrot.slane %v5561_v44, 7 }
 0x6af   : > { %v5881_v21 = vpop.f32.mrb[111].mxu1  ;;  %7495 = vmatprep.subr.bf16.mxu0 %v11221_v36 }
 0x6b0   : > { %10523 = vmatmul.mubr.bf16.gmra.mrb[184].mxu0 %v16351_v8  ;;  %v6170_v61 = vrot.slane %v5881_v21, 1 }
 0x6b1   : > { %6628 = vmatmul.mubr.bf16.gmra.mrb[216].mxu1 %v14135_v54  ;;  %10526 = vmatprep.mubr.bf16.mxu0 %v14100_v16 }
 0x6b2   : > { %6637 = vmatprep.mubr.bf16.mxu1 %v16351_v8  ;;  %v14341_v3 = vsel %vm1680_vm1, %v6170_v61, %v6171_v43  ;;  %v14345_v22 = vsel %vm1680_vm1, %v6169_v41, %v6170_v61  ;;  %7496 = vmatpush1.bf16.msra.mxu0 %v11219_v56  ;;  %v11229_v56 = vld [vmem:[#allocation8 + $0x228] ss:$12 sps:$4 sm:$0xff]  }
 0x6b3   : > { %v5566_v29 = vpop.f32.mrb[80].mxu0  ;;  %7497 = vmatprep.subr.bf16.mxu0 %v11224_v58 }
 0x6b4   : > { %v6054_v27 = vrot.slane %v5566_v29, 7  ;;  %v5568_v9 = vpop.f32.mrb[81].mxu0  ;;  %v10460_v31 = vpop.f32.mrb[112].mxu1 }
 0x6b5   : > { %v5570_v12 = vpop.f32.mrb[82].mxu0  ;;  %v5893_v59 = vpop.f32.mrb[113].mxu1  ;;  %v6174_v25 = vrot.slane %v10460_v31, 1 }
 0x6b6   : > { %v6113_v30 = vsel %vm1567_vm0, %v6053_v32, %v6054_v27  ;;  %v6055_v5 = vrot.slane %v5570_v12, 7  ;;  %v5572_v26 = vpop.f32.mrb[83].mxu0  ;;  %v6172_v7 = vrot.slane %v5893_v59, 1  ;;  %v10461_v63 = vpop.f32.mrb[114].mxu1  ;;  %7498 = vmatpush1.bf16.msra.mxu0 %v11222_v18 }
 0x6b7   : > { %v6130_v36 = vadd.f32 %v6113_v30, %v5568_v9  ;;  %v5896_v11 = vpop.f32.mrb[115].mxu1  ;;  %7499 = vmatprep.subr.bf16.mxu0 %v11228_v39 }
 0x6b8   : > { %v6112_v44 = vsel %vm1567_vm0, %v6054_v27, %v6055_v5  ;;  %10527 = vmatmul.mubr.bf16.gmra.mrb[188].mxu0 %v16351_v8  ;;  %v6173_v15 = vrot.slane %v5896_v11, 1 }
 0x6b9   : > { %6638 = vmatmul.mubr.bf16.gmra.mrb[220].mxu1 %v16351_v8  ;;  %v14355_v19 = vadd.f32 %v14331_v53, %v6130_v36  ;;  %v6131_v43 = vadd.f32 %v6112_v44, %v5572_v26  ;;  %10530 = vmatprep.mubr.bf16.mxu0 %v14107_v4 }
 0x6ba   : > { %6644 = vmatprep.mubr.bf16.mxu1 %v16351_v8  ;;  %v14361_v41 = vsel %vm1680_vm1, %v6173_v15, %v6174_v25  ;;  %v14365_v6 = vsel %vm1680_vm1, %v6172_v7, %v6173_v15  ;;  %7500 = vmatpush1.bf16.msra.mxu0 %v11226_v57 }
 0x6bb   : > { %v14368_v21 = vadd.f32 %v14327_v50, %v6131_v43  ;;  %v5576_v53 = vpop.f32.mrb[84].mxu0  ;;  %7501 = vmatprep.subr.bf16.mxu0 %v11231_v20 }
 0x6bc   : > { %v5577_v58 = vpop.f32.mrb[85].mxu0  ;;  %v10464_v47 = vpop.f32.mrb[116].mxu1 }
 0x6bd   : > { %v5578_v61 = vpop.f32.mrb[86].mxu0  ;;  %v5908_v18 = vpop.f32.mrb[117].mxu1  ;;  %v6177_v39 = vrot.slane %v10464_v47, 1 }
 0x6be   : > { %v5580_v29 = vpop.f32.mrb[87].mxu0  ;;  %v6175_v32 = vrot.slane %v5908_v18, 1  ;;  %v10465_v27 = vpop.f32.mrb[118].mxu1  ;;  %7502 = vmatpush1.bf16.msra.mxu0 %v11229_v56  ;;  %v6056_v57 = vrot.slane %v5578_v61, 7 }
 0x6bf   : > { %v5911_v9 = vpop.f32.mrb[119].mxu1 }
 0x6c0   : > { %10531 = vmatmul.mubr.bf16.gmra.mrb[192].mxu0 %v16351_v8  ;;  %v6176_v31 = vrot.slane %v5911_v9, 1 }
 0x6c1   : > { %6645 = vmatmul.mubr.bf16.gmra.mrb[224].mxu1 %v14138_v23  ;;  %10534 = vmatprep.mubr.bf16.mxu0 %v14115_v37 }
 0x6c2   : > { %6654 = vmatprep.mubr.bf16.mxu1 %v16351_v8  ;;  %v14376_v50 = vsel %vm1680_vm1, %v6176_v31, %v6177_v39  ;;  %v14380_v12 = vsel %vm1680_vm1, %v6175_v32, %v6176_v31 }
 0x6c3   : > { %v5583_v59 = vpop.f32.mrb[88].mxu0 }
 0x6c4   : > { %v6057_v30 = vrot.slane %v5583_v59, 7  ;;  %v5585_v5 = vpop.f32.mrb[89].mxu0  ;;  %v10468_v26 = vpop.f32.mrb[120].mxu1 }
 0x6c5   : > { %v5587_v25 = vpop.f32.mrb[90].mxu0  ;;  %v5923_v7 = vpop.f32.mrb[121].mxu1  ;;  %v6180_v20 = vrot.slane %v10468_v26, 1 }
 0x6c6   : > { %v6111_v63 = vsel %vm1567_vm0, %v6056_v57, %v6057_v30  ;;  %v6058_v36 = vrot.slane %v5587_v25, 7  ;;  %v5589_v11 = vpop.f32.mrb[91].mxu0  ;;  %v6178_v44 = vrot.slane %v5923_v7, 1  ;;  %v10469_v15 = vpop.f32.mrb[122].mxu1 }
 0x6c7   : > { %v6132_v43 = vadd.f32 %v6111_v63, %v5585_v5  ;;  %v5926_v56 = vpop.f32.mrb[123].mxu1 }
 0x6c8   : > { %v6110_v53 = vsel %vm1567_vm0, %v6057_v30, %v6058_v36  ;;  %10535 = vmatmul.mubr.bf16.gmra.mrb[196].mxu0 %v16351_v8  ;;  %v6179_v58 = vrot.slane %v5926_v56, 1 }
 0x6c9   : > { %6655 = vmatmul.mubr.bf16.gmra.mrb[228].mxu1 %v16351_v8  ;;  %v14389_v47 = vadd.f32 %v14345_v22, %v6132_v43  ;;  %v6133_v61 = vadd.f32 %v6110_v53, %v5589_v11  ;;  %10538 = vmatprep.mubr.bf16.mxu0 %v14124_v49 }
 0x6ca   : > { %6661 = vmatprep.mubr.bf16.mxu1 %v16351_v8  ;;  %v14395_v18 = vsel %vm1680_vm1, %v6178_v44, %v6179_v58  ;;  %v14399_v29 = vsel %vm1680_vm1, %v6179_v58, %v6180_v20 }
 0x6cb   : > { %v14402_v39 = vadd.f32 %v14341_v3, %v6133_v61  ;;  %v5593_v32 = vpop.f32.mrb[92].mxu0 }
 0x6cc   : > { %v5594_v27 = vpop.f32.mrb[93].mxu0  ;;  %v10472_v22 = vpop.f32.mrb[124].mxu1 }
 0x6cd   : > { %v5595_v9 = vpop.f32.mrb[94].mxu0  ;;  %v5938_v31 = vpop.f32.mrb[125].mxu1  ;;  %v6183_v57 = vrot.slane %v10472_v22, 1 }
 0x6ce   : > { %v5597_v59 = vpop.f32.mrb[95].mxu0  ;;  %v6181_v30 = vrot.slane %v5938_v31, 1  ;;  %v10473_v5 = vpop.f32.mrb[126].mxu1  ;;  %v6059_v36 = vrot.slane %v5595_v9, 7 }
 0x6cf   : > { %v5941_v26 = vpop.f32.mrb[127].mxu1 }
 0x6d0   : > { %10539 = vmatmul.mubr.bf16.gmra.mrb[200].mxu0 %v16351_v8  ;;  %v6182_v25 = vrot.slane %v5941_v26, 1 }
 0x6d1   : > { %6662 = vmatmul.mubr.bf16.gmra.mrb[232].mxu1 %v14141_v46  ;;  %10542 = vmatprep.mubr.bf16.mxu0 %v14128_v60 }
 0x6d2   : > { %6671 = vmatprep.mubr.bf16.mxu1 %v16351_v8  ;;  %v14410_v3 = vsel %vm1680_vm1, %v6181_v30, %v6182_v25  ;;  %v14414_v7 = vsel %vm1680_vm1, %v6182_v25, %v6183_v57 }
 0x6d3   : > { %v5600_v63 = vpop.f32.mrb[96].mxu0 }
 0x6d4   : > { %v6060_v11 = vrot.slane %v5600_v63, 7  ;;  %v5602_v20 = vpop.f32.mrb[97].mxu0  ;;  %v10476_v44 = vpop.f32.mrb[128].mxu1 }
 0x6d5   : > { %v5604_v15 = vpop.f32.mrb[98].mxu0  ;;  %v5953_v43 = vpop.f32.mrb[129].mxu1  ;;  %v6186_v61 = vrot.slane %v10476_v44, 1 }
 0x6d6   : > { %v6109_v56 = vsel %vm1567_vm0, %v6059_v36, %v6060_v11  ;;  %v6061_v53 = vrot.slane %v5604_v15, 7  ;;  %v5606_v58 = vpop.f32.mrb[99].mxu0  ;;  %v6184_v32 = vrot.slane %v5953_v43, 1  ;;  %v10477_v27 = vpop.f32.mrb[130].mxu1 }
 0x6d7   : > { %v6134_v22 = vadd.f32 %v6109_v56, %v5602_v20  ;;  %v5956_v31 = vpop.f32.mrb[131].mxu1 }
 0x6d8   : > { %v6108_v59 = vsel %vm1567_vm0, %v6060_v11, %v6061_v53  ;;  %10543 = vmatmul.mubr.bf16.gmra.mrb[204].mxu0 %v16351_v8  ;;  %v6185_v9 = vrot.slane %v5956_v31, 1 }
 0x6d9   : > { %6672 = vmatmul.mubr.bf16.gmra.mrb[236].mxu1 %v16351_v8  ;;  %v14423_v57 = vadd.f32 %v14365_v6, %v6134_v22  ;;  %v6135_v30 = vadd.f32 %v6108_v59, %v5606_v58  ;;  %10546 = vmatprep.mubr.bf16.mxu0 %v14135_v54 }
 0x6da   : > { %6678 = vmatprep.mubr.bf16.mxu1 %v16351_v8  ;;  %v14429_v5 = vsel %vm1680_vm1, %v6184_v32, %v6185_v9  ;;  %v14433_v26 = vsel %vm1680_vm1, %v6185_v9, %v6186_v61 }
 0x6db   : > { %16354 = vst [vmem:[#allocation60_spill] sm:$0xff] %v14423_v57  ;;  %v14436_v25 = vadd.f32 %v14361_v41, %v6135_v30  ;;  %v5610_v63 = vpop.f32.mrb[100].mxu0 }
 0x6dc   : > { %v5611_v36 = vpop.f32.mrb[101].mxu0  ;;  %v10480_v6 = vpop.f32.mrb[132].mxu1 }
 0x6dd   : > { %16355 = vst [vmem:[#allocation61_spill] sm:$0xff] %v14436_v25  ;;  %v5612_v11 = vpop.f32.mrb[102].mxu0  ;;  %v5968_v20 = vpop.f32.mrb[133].mxu1  ;;  %v6189_v15 = vrot.slane %v10480_v6, 1 }
 0x6de   : > { %v5614_v44 = vpop.f32.mrb[103].mxu0  ;;  %v6187_v43 = vrot.slane %v5968_v20, 1  ;;  %v10481_v56 = vpop.f32.mrb[134].mxu1  ;;  %v6062_v27 = vrot.slane %v5612_v11, 7 }
 0x6df   : > { %v5971_v53 = vpop.f32.mrb[135].mxu1 }
 0x6e0   : > { %10547 = vmatmul.mubr.bf16.gmra.mrb[208].mxu0 %v16351_v8  ;;  %v6188_v58 = vrot.slane %v5971_v53, 1 }
 0x6e1   : > { %6679 = vmatmul.mubr.bf16.gmra.mrb[240].mxu1 %v14152_v33  ;;  %10550 = vmatprep.mubr.bf16.mxu0 %v14138_v23 }
 0x6e2   : > { %6688 = vmatprep.mubr.bf16.mxu1 %v16351_v8  ;;  %v14444_v41 = vsel %vm1680_vm1, %v6187_v43, %v6188_v58  ;;  %v14448_v61 = vsel %vm1680_vm1, %v6188_v58, %v6189_v15 }
 0x6e3   : > { %v5617_v32 = vpop.f32.mrb[104].mxu0 }
 0x6e4   : > { %v6063_v22 = vrot.slane %v5617_v32, 7  ;;  %v5619_v31 = vpop.f32.mrb[105].mxu0  ;;  %v10484_v59 = vpop.f32.mrb[136].mxu1 }
 0x6e5   : > { %v5621_v9 = vpop.f32.mrb[106].mxu0  ;;  %v5983_v30 = vpop.f32.mrb[137].mxu1  ;;  %v6192_v20 = vrot.slane %v10484_v59, 1 }
 0x6e6   : > { %v6107_v63 = vsel %vm1567_vm0, %v6062_v27, %v6063_v22  ;;  %v6064_v36 = vrot.slane %v5621_v9, 7  ;;  %v5623_v6 = vpop.f32.mrb[107].mxu0  ;;  %v6190_v44 = vrot.slane %v5983_v30, 1  ;;  %v10485_v43 = vpop.f32.mrb[138].mxu1 }
 0x6e7   : > { %v6136_v56 = vadd.f32 %v6107_v63, %v5619_v31  ;;  %v5986_v53 = vpop.f32.mrb[139].mxu1 }
 0x6e8   : > { %v6106_v15 = vsel %vm1567_vm0, %v6063_v22, %v6064_v36  ;;  %10551 = vmatmul.mubr.bf16.gmra.mrb[212].mxu0 %v16351_v8  ;;  %v6191_v11 = vrot.slane %v5986_v53, 1 }
 0x6e9   : > { %6689 = vmatmul.mubr.bf16.gmra.mrb[244].mxu1 %v16351_v8  ;;  %v14457_v58 = vadd.f32 %v14380_v12, %v6136_v56  ;;  %v6137_v32 = vadd.f32 %v6106_v15, %v5623_v6  ;;  %10554 = vmatprep.mubr.bf16.mxu0 %v14141_v46 }
 0x6ea   : > { %6695 = vmatprep.mubr.bf16.mxu1 %v16351_v8  ;;  %v14463_v27 = vsel %vm1680_vm1, %v6190_v44, %v6191_v11  ;;  %v14467_v22 = vsel %vm1680_vm1, %v6191_v11, %v6192_v20 }
 0x6eb   : > { %16356 = vst [vmem:[#allocation62_spill] sm:$0xff] %v14457_v58  ;;  %v14470_v31 = vadd.f32 %v14376_v50, %v6137_v32  ;;  %v5627_v59 = vpop.f32.mrb[108].mxu0 }
 0x6ec   : > { %v5628_v9 = vpop.f32.mrb[109].mxu0  ;;  %v10488_v12 = vpop.f32.mrb[140].mxu1 }
 0x6ed   : > { %16357 = vst [vmem:[#allocation63_spill] sm:$0xff] %v14470_v31  ;;  %v5629_v30 = vpop.f32.mrb[110].mxu0  ;;  %v5998_v63 = vpop.f32.mrb[141].mxu1  ;;  %v6195_v6 = vrot.slane %v10488_v12, 1 }
 0x6ee   : > { %v5631_v36 = vpop.f32.mrb[111].mxu0  ;;  %v6193_v43 = vrot.slane %v5998_v63, 1  ;;  %v10489_v56 = vpop.f32.mrb[142].mxu1  ;;  %v6065_v11 = vrot.slane %v5629_v30, 7 }
 0x6ef   : > { %v6001_v53 = vpop.f32.mrb[143].mxu1 }
 0x6f0   : > { %10555 = vmatmul.mubr.bf16.gmra.mrb[216].mxu0 %v16351_v8  ;;  %v6194_v44 = vrot.slane %v6001_v53, 1 }
 0x6f1   : > { %6696 = vmatmul.mubr.bf16.gmra.mrb[248].mxu1 %v14160_v42  ;;  %10558 = vmatprep.mubr.bf16.mxu0 %v14152_v33 }
 0x6f2   : > { %6705 = vmatprep.mubr.bf16.mxu1 %v16351_v8  ;;  %v14478_v50 = vsel %vm1680_vm1, %v6193_v43, %v6194_v44  ;;  %v14482_v20 = vsel %vm1680_vm1, %v6194_v44, %v6195_v6 }
 0x6f3   : > { %v5634_v15 = vpop.f32.mrb[112].mxu0 }
 0x6f4   : > { %v6066_v32 = vrot.slane %v5634_v15, 7  ;;  %v5636_v59 = vpop.f32.mrb[113].mxu0  ;;  %v10492_v9 = vpop.f32.mrb[144].mxu1 }
 0x6f5   : > { %v5638_v12 = vpop.f32.mrb[114].mxu0  ;;  %v6013_v63 = vpop.f32.mrb[145].mxu1  ;;  %v6198_v56 = vrot.slane %v10492_v9, 1 }
 0x6f6   : > { %v6105_v36 = vsel %vm1567_vm0, %v6065_v11, %v6066_v32  ;;  %v6067_v53 = vrot.slane %v5638_v12, 7  ;;  %v6196_v62 = vrot.slane %v6013_v63, 1  ;;  %v5640_v55 = vpop.f32.mrb[115].mxu0  ;;  %v10493_v43 = vpop.f32.mrb[146].mxu1 }
 0x6f7   : > { %v6138_v31 = vadd.f32 %v6105_v36, %v5636_v59  ;;  %v6016_v58 = vpop.f32.mrb[147].mxu1 }
 0x6f8   : > { %v6104_v6 = vsel %vm1567_vm0, %v6066_v32, %v6067_v53  ;;  %v6197_v44 = vrot.slane %v6016_v58, 1  ;;  %10559 = vmatmul.mubr.bf16.gmra.mrb[220].mxu0 %v16351_v8 }
 0x6f9   : > { %6706 = vmatmul.mubr.bf16.gmra.mrb[252].mxu1 %v16351_v8  ;;  %v14491_v30 = vadd.f32 %v14395_v18, %v6138_v31  ;;  %v6139_v15 = vadd.f32 %v6104_v6, %v5640_v55  ;;  %10562 = vmatprep.mubr.bf16.mxu0 %v14160_v42 }
 0x6fa   : > { %6712 = vmatprep.mubr.bf16.mxu1 %v16351_v8  ;;  %v14497_v11 = vsel %vm1680_vm1, %v6196_v62, %v6197_v44  ;;  %v14501_v32 = vsel %vm1680_vm1, %v6197_v44, %v6198_v56 }
 0x6fb   : > { %16358 = vst [vmem:[#allocation64_spill] sm:$0xff] %v14491_v30  ;;  %v14504_v58 = vadd.f32 %v14399_v29, %v6139_v15  ;;  %v5644_v59 = vpop.f32.mrb[116].mxu0 }
 0x6fc   : > { %v10496_v9 = vpop.f32.mrb[148].mxu1  ;;  %v5645_v18 = vpop.f32.mrb[117].mxu0 }
 0x6fd   : > { %16359 = vst [vmem:[#allocation65_spill] sm:$0xff] %v14504_v58  ;;  %v6028_v31 = vpop.f32.mrb[149].mxu1  ;;  %v5646_v55 = vpop.f32.mrb[118].mxu0  ;;  %v6201_v12 = vrot.slane %v10496_v9, 1 }
 0x6fe   : > { %v6199_v63 = vrot.slane %v6028_v31, 1  ;;  %v10497_v36 = vpop.f32.mrb[150].mxu1  ;;  %v5648_v53 = vpop.f32.mrb[119].mxu0  ;;  %v6068_v15 = vrot.slane %v5646_v55, 7 }
 0x6ff   : > { %v6031_v43 = vpop.f32.mrb[151].mxu1 }
 0x700   : > { %v6200_v6 = vrot.slane %v6031_v43, 1  ;;  %10563 = vmatmul.mubr.bf16.gmra.mrb[224].mxu0 %v16351_v8 }
 0x701   : > { %6713 = vmatmul.mubr.bf16.gmra.mrb[0].mxu1 %v14163_v2  ;;  %10566 = vmatprep.mubr.bf16.mxu0 %v14163_v2 }
 0x702   : > { %6722 = vmatprep.mubr.bf16.mxu1 %v16351_v8  ;;  %v14512_v62 = vsel %vm1680_vm1, %v6199_v63, %v6200_v6  ;;  %v14516_v29 = vsel %vm1680_vm1, %v6200_v6, %v6201_v12 }
 0x703   : > { %v5651_v56 = vpop.f32.mrb[120].mxu0 }
 0x704   : > { %v14518_v44 = vpop.f32.mrb[152].mxu1  ;;  %v6069_v59 = vrot.slane %v5651_v56, 7  ;;  %v5653_v9 = vpop.f32.mrb[121].mxu0 }
 0x705   : > { %16360 = vst [vmem:[#allocation66_spill] sm:$0xff] %v14518_v44  ;;  %v14520_v18 = vpop.f32.mrb[153].mxu1  ;;  %v5655_v31 = vpop.f32.mrb[122].mxu0  ;;  %v16226_v58 = vrot.slane %v14518_v44, 7 }
 0x706   : > { %16361 = vst [vmem:[#allocation67_spill] sm:$0xff] %v14520_v18  ;;  %v6497_v36 = vpop.f32.mrb[154].mxu1  ;;  %v6103_v53 = vsel %vm1567_vm0, %v6068_v15, %v6069_v59  ;;  %v6070_v43 = vrot.slane %v5655_v31, 7  ;;  %v5657_v63 = vpop.f32.mrb[123].mxu0 }
 0x707   : > { %v7038_v30 = vrot.slane %v6497_v36, 7  ;;  %v6499_v12 = vpop.f32.mrb[155].mxu1  ;;  %v6140_v6 = vadd.f32 %v6103_v53, %v5653_v9 }
 0x708   : > { %v6102_v25 = vsel %vm1567_vm0, %v6069_v59, %v6070_v43  ;;  %10567 = vmatmul.mubr.bf16.gmra.mrb[228].mxu0 %v16351_v8 }
 0x709   : > { %v7115_v55 = vsel %vm1567_vm0, %v16226_v58, %v7038_v30  ;;  %6723 = vmatmul.mubr.bf16.gmra.mrb[4].mxu1 %v16351_v8  ;;  %v14534_v56 = vadd.f32 %v14410_v3, %v6140_v6  ;;  %v6141_v15 = vadd.f32 %v6102_v25, %v5657_v63  ;;  %10570 = vmatprep.mubr.bf16.mxu0 %v14166_v51 }
 0x70a   : > { %v14537_v31 = vadd.f32 %v7115_v55, %v6499_v12  ;;  %6729 = vmatprep.mubr.bf16.mxu1 %v16351_v8 }
 0x70b   : > { %16362 = vst [vmem:[#allocation68_spill] sm:$0xff] %v14534_v56  ;;  %v14541_v59 = vadd.f32 %v14414_v7, %v6141_v15  ;;  %v5661_v9 = vpop.f32.mrb[124].mxu0 }
 0x70c   : > { %v6503_v36 = vpop.f32.mrb[156].mxu1  ;;  %v5662_v53 = vpop.f32.mrb[125].mxu0 }
 0x70d   : > { %16363 = vst [vmem:[#allocation69_spill] sm:$0xff] %v14541_v59  ;;  %v6504_v43 = vpop.f32.mrb[157].mxu1  ;;  %v5663_v30 = vpop.f32.mrb[126].mxu0 }
 0x70e   : > { %v6505_v58 = vpop.f32.mrb[158].mxu1  ;;  %v5665_v18 = vpop.f32.mrb[127].mxu0  ;;  %v6071_v63 = vrot.slane %v5663_v30, 7 }
 0x70f   : > { %v6507_v44 = vpop.f32.mrb[159].mxu1  ;;  %v7039_v3 = vrot.slane %v6505_v58, 7 }
 0x710   : > { %10571 = vmatmul.mubr.bf16.gmra.mrb[232].mxu0 %v16351_v8 }
 0x711   : > { %6730 = vmatmul.mubr.bf16.gmra.mrb[8].mxu1 %v14166_v51  ;;  %10574 = vmatprep.mubr.bf16.mxu0 %v14169_v0 }
 0x712   : > { %6739 = vmatprep.mubr.bf16.mxu1 %v16351_v8 }
 0x713   : > { %v5668_v25 = vpop.f32.mrb[128].mxu0 }
 0x714   : > { %v6510_v7 = vpop.f32.mrb[160].mxu1  ;;  %v6072_v12 = vrot.slane %v5668_v25, 7  ;;  %v5670_v6 = vpop.f32.mrb[129].mxu0 }
 0x715   : > { %v7040_v55 = vrot.slane %v6510_v7, 7  ;;  %v6512_v15 = vpop.f32.mrb[161].mxu1  ;;  %v5672_v9 = vpop.f32.mrb[130].mxu0 }
 0x716   : > { %v6514_v36 = vpop.f32.mrb[162].mxu1  ;;  %v6101_v44 = vsel %vm1567_vm0, %v6071_v63, %v6072_v12  ;;  %v6073_v18 = vrot.slane %v5672_v9, 7  ;;  %v5674_v53 = vpop.f32.mrb[131].mxu0 }
 0x717   : > { %v7114_v43 = vsel %vm1567_vm0, %v7039_v3, %v7040_v55  ;;  %v7041_v59 = vrot.slane %v6514_v36, 7  ;;  %v6516_v56 = vpop.f32.mrb[163].mxu1  ;;  %v6142_v58 = vadd.f32 %v6101_v44, %v5670_v6 }
 0x718   : > { %v14551_v57 = vadd.f32 %v7114_v43, %v6512_v15  ;;  %v6100_v30 = vsel %vm1567_vm0, %v6072_v12, %v6073_v18  ;;  %10575 = vmatmul.mubr.bf16.gmra.mrb[236].mxu0 %v16351_v8 }
 0x719   : > { %v7113_v25 = vsel %vm1567_vm0, %v7040_v55, %v7041_v59  ;;  %6740 = vmatmul.mubr.bf16.gmra.mrb[12].mxu1 %v16351_v8  ;;  %v14560_v7 = vadd.f32 %v14429_v5, %v6142_v58  ;;  %v6143_v63 = vadd.f32 %v6100_v30, %v5674_v53  ;;  %7519 = vmatprep.mubr.bf16.mxu0 %v16351_v8 }
 0x71a   : > { %v14563_v3 = vadd.f32 %v7113_v25, %v6516_v56  ;;  %6746 = vmatprep.mubr.bf16.mxu1 %v16351_v8 }
 0x71b   : > { %16364 = vst [vmem:[#allocation70_spill] sm:$0xff] %v14560_v7  ;;  %v14567_v6 = vadd.f32 %v14433_v26, %v6143_v63  ;;  %v5678_v12 = vpop.f32.mrb[132].mxu0 }
 0x71c   : > { %v6520_v15 = vpop.f32.mrb[164].mxu1  ;;  %v5679_v9 = vpop.f32.mrb[133].mxu0 }
 0x71d   : > { %16365 = vst [vmem:[#allocation71_spill] sm:$0xff] %v14567_v6  ;;  %v6521_v36 = vpop.f32.mrb[165].mxu1  ;;  %v5680_v59 = vpop.f32.mrb[134].mxu0 }
 0x71e   : > { %v6522_v55 = vpop.f32.mrb[166].mxu1  ;;  %v5682_v44 = vpop.f32.mrb[135].mxu0  ;;  %v6074_v53 = vrot.slane %v5680_v59, 7 }
 0x71f   : > { %v6524_v18 = vpop.f32.mrb[167].mxu1  ;;  %v7042_v5 = vrot.slane %v6522_v55, 7 }
 0x720   : > { %7520 = vmatmul.mubr.bf16.vlgmr.msra.gmra.mrb[240].mxu0 %v14076_v45 }
 0x721   : > { %6747 = vmatmul.mubr.bf16.gmra.mrb[16].mxu1 %v14169_v0  ;;  %7529 = vmatprep.mubr.bf16.mxu0 %v16351_v8 }
 0x722   : > { %6756 = vmatprep.mubr.bf16.mxu1 %v16351_v8 }
 0x723   : > { %v5685_v56 = vpop.f32.mrb[136].mxu0 }
 0x724   : > { %v6527_v26 = vpop.f32.mrb[168].mxu1  ;;  %v6075_v43 = vrot.slane %v5685_v56, 7  ;;  %v5687_v58 = vpop.f32.mrb[137].mxu0 }
 0x725   : > { %v7043_v30 = vrot.slane %v6527_v26, 7  ;;  %v6529_v25 = vpop.f32.mrb[169].mxu1  ;;  %v5689_v63 = vpop.f32.mrb[138].mxu0 }
 0x726   : > { %v6531_v12 = vpop.f32.mrb[170].mxu1  ;;  %v6099_v15 = vsel %vm1567_vm0, %v6074_v53, %v6075_v43  ;;  %v6076_v9 = vrot.slane %v5689_v63, 7  ;;  %v5691_v36 = vpop.f32.mrb[139].mxu0 }
 0x727   : > { %v7112_v44 = vsel %vm1567_vm0, %v7042_v5, %v7043_v30  ;;  %v7044_v18 = vrot.slane %v6531_v12, 7  ;;  %v6533_v6 = vpop.f32.mrb[171].mxu1  ;;  %v6144_v55 = vadd.f32 %v6099_v15, %v5687_v58 }
 0x728   : > { %v14577_v7 = vadd.f32 %v7112_v44, %v6529_v25  ;;  %v6098_v59 = vsel %vm1567_vm0, %v6075_v43, %v6076_v9  ;;  %7530 = vmatmul.mubr.bf16.gmra.mrb[244].mxu0 %v16351_v8 }
 0x729   : > { %v7111_v56 = vsel %vm1567_vm0, %v7043_v30, %v7044_v18  ;;  %6757 = vmatmul.mubr.bf16.gmra.mrb[20].mxu1 %v16351_v8  ;;  %v14586_v26 = vadd.f32 %v14444_v41, %v6144_v55  ;;  %v6145_v53 = vadd.f32 %v6098_v59, %v5691_v36  ;;  %7536 = vmatprep.mubr.bf16.mxu0 %v16351_v8 }
 0x72a   : > { %v14589_v5 = vadd.f32 %v7111_v56, %v6533_v6  ;;  %10594 = vmatprep.mubr.bf16.mxu1 %v14076_v45  ;;  %v16366_v45 = vld [vmem:[#allocation35_spill] sm:$0xff] }
 0x72b   : > { %v14593_v58 = vadd.f32 %v14448_v61, %v6145_v53  ;;  %v5695_v43 = vpop.f32.mrb[140].mxu0 }
 0x72c   : > { %v6537_v25 = vpop.f32.mrb[172].mxu1  ;;  %v5696_v63 = vpop.f32.mrb[141].mxu0 }
 0x72d   : > { %v6538_v12 = vpop.f32.mrb[173].mxu1  ;;  %v5697_v30 = vpop.f32.mrb[142].mxu0 }
 0x72e   : > { %v6539_v15 = vpop.f32.mrb[174].mxu1  ;;  %v5699_v9 = vpop.f32.mrb[143].mxu0  ;;  %v6077_v36 = vrot.slane %v5697_v30, 7 }
 0x72f   : > { %v6541_v44 = vpop.f32.mrb[175].mxu1  ;;  %v7045_v41 = vrot.slane %v6539_v15, 7 }
 0x730   : > { %7537 = vmatmul.mubr.bf16.gmra.mrb[248].mxu0 %v14089_v52 }
 0x731   : > { %10595 = vmatmul.mubr.bf16.vlgmr.msra.gmra.mrb[24].mxu1 %v16351_v8  ;;  %7546 = vmatprep.mubr.bf16.mxu0 %v16351_v8 }
 0x732   : > { %10598 = vmatprep.mubr.bf16.mxu1 %v14089_v52  ;;  %10778 = vmatpush3.bf16.msra.mxu1 %v16366_v45  ;;  %v16367_v52 = vld [vmem:[#allocation44_spill] sm:$0xff] }
 0x733   : > { %v5702_v61 = vpop.f32.mrb[144].mxu0  ;;  %10779 = vmatprep.subr.bf16.mxu1 %v16353_v24 }
 0x734   : > { %v6544_v6 = vpop.f32.mrb[176].mxu1  ;;  %v6078_v18 = vrot.slane %v5702_v61, 7  ;;  %v5704_v55 = vpop.f32.mrb[145].mxu0 }
 0x735   : > { %v7046_v59 = vrot.slane %v6544_v6, 7  ;;  %v6546_v56 = vpop.f32.mrb[177].mxu1  ;;  %v5706_v53 = vpop.f32.mrb[146].mxu0 }
 0x736   : > { %v6548_v43 = vpop.f32.mrb[178].mxu1  ;;  %v6097_v25 = vsel %vm1567_vm0, %v6077_v36, %v6078_v18  ;;  %v6079_v63 = vrot.slane %v5706_v53, 7  ;;  %v5708_v12 = vpop.f32.mrb[147].mxu0  ;;  %10781 = vmatpush3.bf16.msra.mxu1 %v16367_v52 }
 0x737   : > { %v7110_v15 = vsel %vm1567_vm0, %v7045_v41, %v7046_v59  ;;  %v7047_v9 = vrot.slane %v6548_v43, 7  ;;  %v6550_v44 = vpop.f32.mrb[179].mxu1  ;;  %v6146_v45 = vadd.f32 %v6097_v25, %v5704_v55  ;;  %10782 = vmatprep.subr.bf16.mxu1 %v16353_v24 }
 0x738   : > { %v14607_v30 = vadd.f32 %v7110_v15, %v6546_v56  ;;  %v6096_v61 = vsel %vm1567_vm0, %v6078_v18, %v6079_v63  ;;  %7547 = vmatmul.mubr.bf16.gmra.mrb[252].mxu0 %v16351_v8  ;;  %v16368_v56 = vld [vmem:[#allocation52_spill] sm:$0xff] }
 0x739   : > { %v7109_v6 = vsel %vm1567_vm0, %v7046_v59, %v7047_v9  ;;  %10599 = vmatmul.mubr.bf16.gmra.mrb[28].mxu1 %v16351_v8  ;;  %v14616_v36 = vadd.f32 %v14463_v27, %v6146_v45  ;;  %v6147_v41 = vadd.f32 %v6096_v61, %v5708_v12  ;;  %7553 = vmatprep.mubr.bf16.mxu0 %v16351_v8  ;;  %v16370_v12 = vld [vmem:[#allocation57_spill] sm:$0xff] }
 0x73a   : > { %v14619_v55 = vadd.f32 %v7109_v6, %v6550_v44  ;;  %10602 = vmatprep.mubr.bf16.mxu1 %v14100_v16  ;;  %10784 = vmatpush3.bf16.msra.mxu1 %v16368_v56  ;;  %v16372_v56 = vld [vmem:[#allocation59_spill] sm:$0xff] }
 0x73b   : > { %v14624_v18 = vadd.f32 %v14467_v22, %v6147_v41  ;;  %v5712_v53 = vpop.f32.mrb[148].mxu0  ;;  %10785 = vmatprep.subr.bf16.mxu1 %v16353_v24  ;;  %v16371_v22 = vld [vmem:[#allocation58_spill] sm:$0xff] }
 0x73c   : > { %v6554_v59 = vpop.f32.mrb[180].mxu1  ;;  %v5713_v43 = vpop.f32.mrb[149].mxu0 }
 0x73d   : > { %16369 = vst [vmem:[#allocation72_spill] sm:$0xff] %v14624_v18  ;;  %v6555_v25 = vpop.f32.mrb[181].mxu1  ;;  %v5714_v27 = vpop.f32.mrb[150].mxu0 }
 0x73e   : > { %v6556_v45 = vpop.f32.mrb[182].mxu1  ;;  %v5716_v63 = vpop.f32.mrb[151].mxu0  ;;  %10787 = vmatpush3.bf16.msra.mxu1 %v16370_v12  ;;  %v6080_v6 = vrot.slane %v5714_v27, 7 }
 0x73f   : > { %v6558_v15 = vpop.f32.mrb[183].mxu1  ;;  %10788 = vmatprep.subr.bf16.mxu1 %v16353_v24  ;;  %v7048_v9 = vrot.slane %v6556_v45, 7 }
 0x740   : > { %7554 = vmatmul.mubr.bf16.gmra.mrb[0].mxu0 %v14100_v16 }
 0x741   : > { %10603 = vmatmul.mubr.bf16.gmra.mrb[32].mxu1 %v16351_v8  ;;  %7563 = vmatprep.mubr.bf16.mxu0 %v16351_v8 }
 0x742   : > { %10606 = vmatprep.mubr.bf16.mxu1 %v14107_v4  ;;  %10790 = vmatpush3.bf16.msra.mxu1 %v16371_v22 }
 0x743   : > { %v5719_v44 = vpop.f32.mrb[152].mxu0  ;;  %10791 = vmatprep.subr.bf16.mxu1 %v16353_v24 }
 0x744   : > { %v6561_v61 = vpop.f32.mrb[184].mxu1  ;;  %v6081_v41 = vrot.slane %v5719_v44, 7  ;;  %v5721_v53 = vpop.f32.mrb[153].mxu0 }
 0x745   : > { %v7049_v59 = vrot.slane %v6561_v61, 7  ;;  %v6563_v43 = vpop.f32.mrb[185].mxu1  ;;  %v5723_v25 = vpop.f32.mrb[154].mxu0 }
 0x746   : > { %v6565_v16 = vpop.f32.mrb[186].mxu1  ;;  %v6095_v63 = vsel %vm1567_vm0, %v6080_v6, %v6081_v41  ;;  %v6082_v15 = vrot.slane %v5723_v25, 7  ;;  %v5725_v12 = vpop.f32.mrb[155].mxu0  ;;  %10793 = vmatpush3.bf16.msra.mxu1 %v16372_v56 }
 0x747   : > { %v7108_v45 = vsel %vm1567_vm0, %v7048_v9, %v7049_v59  ;;  %v7050_v22 = vrot.slane %v6565_v16, 7  ;;  %v6567_v52 = vpop.f32.mrb[187].mxu1  ;;  %v6148_v18 = vadd.f32 %v6095_v63, %v5721_v53  ;;  %10794 = vmatprep.subr.bf16.mxu1 %v16353_v24  ;;  %v16374_v63 = vld [vmem:[#allocation21_spill] sm:$0xff] }
 0x748   : > { %v14641_v27 = vadd.f32 %v7108_v45, %v6563_v43  ;;  %v6094_v44 = vsel %vm1567_vm0, %v6081_v41, %v6082_v15  ;;  %7564 = vmatmul.mubr.bf16.gmra.mrb[4].mxu0 %v16351_v8  ;;  %v16373_v43 = vld [vmem:[#allocation20_spill] sm:$0xff] }
 0x749   : > { %v7107_v61 = vsel %vm1567_vm0, %v7049_v59, %v7050_v22  ;;  %10607 = vmatmul.mubr.bf16.gmra.mrb[36].mxu1 %v16351_v8  ;;  %v14650_v6 = vadd.f32 %v14478_v50, %v6148_v18  ;;  %v6149_v9 = vadd.f32 %v6094_v44, %v5725_v12  ;;  %7570 = vmatprep.mubr.bf16.mxu0 %v16351_v8 }
 0x74a   : > { %v14653_v53 = vadd.f32 %v7107_v61, %v6567_v52  ;;  %10610 = vmatprep.mubr.bf16.mxu1 %v14115_v37  ;;  %10796 = vmatpush3.bf16.msra.mxu1 %v16373_v43 }
 0x74b   : > { %v14658_v41 = vadd.f32 %v14482_v20, %v6149_v9  ;;  %v5729_v25 = vpop.f32.mrb[156].mxu0  ;;  %10797 = vmatprep.subr.bf16.mxu1 %v16353_v24 }
 0x74c   : > { %v6571_v22 = vpop.f32.mrb[188].mxu1  ;;  %v5730_v59 = vpop.f32.mrb[157].mxu0 }
 0x74d   : > { %v6572_v16 = vpop.f32.mrb[189].mxu1  ;;  %v5731_v50 = vpop.f32.mrb[158].mxu0 }
 0x74e   : > { %v6573_v18 = vpop.f32.mrb[190].mxu1  ;;  %v5733_v12 = vpop.f32.mrb[159].mxu0  ;;  %10799 = vmatpush3.bf16.msra.mxu1 %v16374_v63  ;;  %v6083_v44 = vrot.slane %v5731_v50, 7 }
 0x74f   : > { %v6575_v52 = vpop.f32.mrb[191].mxu1  ;;  %10800 = vmatprep.subr.bf16.mxu1 %v16353_v24  ;;  %v7051_v20 = vrot.slane %v6573_v18, 7 }
 0x750   : > { %7571 = vmatmul.mubr.bf16.gmra.mrb[8].mxu0 %v14107_v4 }
 0x751   : > { %10611 = vmatmul.mubr.bf16.gmra.mrb[40].mxu1 %v16351_v8  ;;  %7580 = vmatprep.mubr.bf16.mxu0 %v16351_v8 }
 0x752   : > { %10614 = vmatprep.mubr.bf16.mxu1 %v14124_v49 }
 0x753   : > { %v5736_v15 = vpop.f32.mrb[160].mxu0 }
 0x754   : > { %v6578_v45 = vpop.f32.mrb[192].mxu1  ;;  %v6084_v61 = vrot.slane %v5736_v15, 7  ;;  %v5738_v9 = vpop.f32.mrb[161].mxu0 }
 0x755   : > { %v7052_v25 = vrot.slane %v6578_v45, 7  ;;  %v6580_v22 = vpop.f32.mrb[193].mxu1  ;;  %v5740_v59 = vpop.f32.mrb[162].mxu0 }
 0x756   : > { %v6582_v16 = vpop.f32.mrb[194].mxu1  ;;  %v6093_v12 = vsel %vm1567_vm0, %v6083_v44, %v6084_v61  ;;  %v6085_v4 = vrot.slane %v5740_v59, 7  ;;  %v5742_v52 = vpop.f32.mrb[163].mxu0 }
 0x757   : > { %v7106_v63 = vsel %vm1567_vm0, %v7051_v20, %v7052_v25  ;;  %v7053_v43 = vrot.slane %v6582_v16, 7  ;;  %v6584_v56 = vpop.f32.mrb[195].mxu1  ;;  %v6150_v18 = vadd.f32 %v6093_v12, %v5738_v9 }
 0x758   : > { %v14671_v24 = vadd.f32 %v7106_v63, %v6580_v22  ;;  %v6092_v50 = vsel %vm1567_vm0, %v6084_v61, %v6085_v4  ;;  %7581 = vmatmul.mubr.bf16.gmra.mrb[12].mxu0 %v16351_v8 }
 0x759   : > { %v7105_v15 = vsel %vm1567_vm0, %v7052_v25, %v7053_v43  ;;  %10615 = vmatmul.mubr.bf16.gmra.mrb[44].mxu1 %v16351_v8  ;;  %v14680_v45 = vadd.f32 %v14497_v11, %v6150_v18  ;;  %v6151_v44 = vadd.f32 %v6092_v50, %v5742_v52  ;;  %7587 = vmatprep.mubr.bf16.mxu0 %v16351_v8 }
 0x75a   : > { %v14683_v20 = vadd.f32 %v7105_v15, %v6584_v56  ;;  %10618 = vmatprep.mubr.bf16.mxu1 %v14128_v60 }
 0x75b   : > { %v14687_v63 = vadd.f32 %v14501_v32, %v6151_v44  ;;  %v5746_v61 = vpop.f32.mrb[164].mxu0 }
 0x75c   : > { %v6588_v9 = vpop.f32.mrb[196].mxu1  ;;  %v5747_v22 = vpop.f32.mrb[165].mxu0 }
 0x75d   : > { %16375 = vst [vmem:[#allocation73_spill] sm:$0xff] %v14687_v63  ;;  %v6589_v59 = vpop.f32.mrb[197].mxu1  ;;  %v5748_v43 = vpop.f32.mrb[166].mxu0 }
 0x75e   : > { %v6590_v25 = vpop.f32.mrb[198].mxu1  ;;  %v5750_v16 = vpop.f32.mrb[167].mxu0  ;;  %v6086_v4 = vrot.slane %v5748_v43, 7 }
 0x75f   : > { %v6592_v12 = vpop.f32.mrb[199].mxu1  ;;  %v7054_v11 = vrot.slane %v6590_v25, 7 }
 0x760   : > { %7588 = vmatmul.mubr.bf16.gmra.mrb[16].mxu0 %v14115_v37 }
 0x761   : > { %10619 = vmatmul.mubr.bf16.gmra.mrb[48].mxu1 %v16351_v8  ;;  %7597 = vmatprep.mubr.bf16.mxu0 %v16351_v8 }
 0x762   : > { %10622 = vmatprep.mubr.bf16.mxu1 %v14135_v54 }
 0x763   : > { %v5753_v56 = vpop.f32.mrb[168].mxu0 }
 0x764   : > { %v6595_v32 = vpop.f32.mrb[200].mxu1  ;;  %v6087_v52 = vrot.slane %v5753_v56, 7  ;;  %v5755_v18 = vpop.f32.mrb[169].mxu0 }
 0x765   : > { %v7055_v50 = vrot.slane %v6595_v32, 7  ;;  %v6597_v15 = vpop.f32.mrb[201].mxu1  ;;  %v5757_v44 = vpop.f32.mrb[170].mxu0 }
 0x766   : > { %v6599_v61 = vpop.f32.mrb[202].mxu1  ;;  %v6091_v9 = vsel %vm1567_vm0, %v6086_v4, %v6087_v52  ;;  %v6088_v37 = vrot.slane %v5757_v44, 7  ;;  %v5759_v22 = vpop.f32.mrb[171].mxu0 }
 0x767   : > { %v7104_v59 = vsel %vm1567_vm0, %v7054_v11, %v7055_v50  ;;  %v7056_v16 = vrot.slane %v6599_v61, 7  ;;  %v6601_v12 = vpop.f32.mrb[203].mxu1  ;;  %v6152_v25 = vadd.f32 %v6091_v9, %v5755_v18 }
 0x768   : > { %v14697_v63 = vadd.f32 %v7104_v59, %v6597_v15  ;;  %v6090_v43 = vsel %vm1567_vm0, %v6087_v52, %v6088_v37  ;;  %7598 = vmatmul.mubr.bf16.gmra.mrb[20].mxu0 %v16351_v8 }
 0x769   : > { %v7103_v56 = vsel %vm1567_vm0, %v7055_v50, %v7056_v16  ;;  %10623 = vmatmul.mubr.bf16.gmra.mrb[52].mxu1 %v16351_v8  ;;  %v14706_v32 = vadd.f32 %v14512_v62, %v6152_v25  ;;  %v6153_v4 = vadd.f32 %v6090_v43, %v5759_v22  ;;  %7604 = vmatprep.mubr.bf16.mxu0 %v16351_v8  ;;  %v16376_v22 = vrot.slane %v14179_v48, 7 }
 0x76a   : > { %v14709_v11 = vadd.f32 %v7103_v56, %v6601_v12  ;;  %10626 = vmatprep.mubr.bf16.mxu1 %v14138_v23 }
 0x76b   : > { %v14713_v18 = vadd.f32 %v14516_v29, %v6153_v4  ;;  %v5763_v52 = vpop.f32.mrb[172].mxu0 }
 0x76c   : > { %v6605_v15 = vpop.f32.mrb[204].mxu1  ;;  %v5764_v44 = vpop.f32.mrb[173].mxu0 }
 0x76d   : > { %v6606_v61 = vpop.f32.mrb[205].mxu1  ;;  %v5765_v50 = vpop.f32.mrb[174].mxu0 }
 0x76e   : > { %v6607_v9 = vpop.f32.mrb[206].mxu1  ;;  %v6089_v37 = vrot.slane %v5765_v50, 7  ;;  %v5767_v59 = vpop.f32.mrb[175].mxu0 }
 0x76f   : > { %v6609_v62 = vpop.f32.mrb[207].mxu1  ;;  %v7057_v12 = vrot.slane %v6607_v9, 7 }
 0x770   : > { %v6121_v16 = vsel %vm1567_vm0, %v6089_v37, %v16376_v22  ;;  %7605 = vmatmul.mubr.bf16.gmra.mrb[24].mxu0 %v14124_v49 }
 0x771   : > { %10627 = vmatmul.mubr.bf16.gmra.mrb[56].mxu1 %v16351_v8  ;;  %v6122_v29 = vadd.f32 %v6121_v16, %v14182_v34  ;;  %7614 = vmatprep.mubr.bf16.mxu0 %v16351_v8 }
 0x772   : > { %10630 = vmatprep.mubr.bf16.mxu1 %v14141_v46 }
 0x773   : > { %v14725_v25 = vadd.f32 %v14194_v13, %v6122_v29  ;;  %v10516_v43 = vpop.f32.mrb[176].mxu0 }
 0x774   : > { %v6612_v56 = vpop.f32.mrb[208].mxu1  ;;  %v6798_v48 = vpop.f32.mrb[177].mxu0  ;;  %v7151_v49 = vrot.slane %v10516_v43, 1 }
 0x775   : > { %v7058_v4 = vrot.slane %v6612_v56, 7  ;;  %v6614_v52 = vpop.f32.mrb[209].mxu1  ;;  %v10517_v15 = vpop.f32.mrb[178].mxu0  ;;  %v7149_v59 = vrot.slane %v6798_v48, 1 }
 0x776   : > { %v6616_v44 = vpop.f32.mrb[210].mxu1  ;;  %v6801_v61 = vpop.f32.mrb[179].mxu0 }
 0x777   : > { %v7102_v34 = vsel %vm1567_vm0, %v7057_v12, %v7058_v4  ;;  %v7059_v50 = vrot.slane %v6616_v44, 7  ;;  %v6618_v37 = vpop.f32.mrb[211].mxu1  ;;  %v7150_v62 = vrot.slane %v6801_v61, 1 }
 0x778   : > { %v14729_v9 = vadd.f32 %v7102_v34, %v6614_v52  ;;  %7615 = vmatmul.mubr.bf16.gmra.mrb[28].mxu0 %v16351_v8 }
 0x779   : > { %v7101_v13 = vsel %vm1567_vm0, %v7058_v4, %v7059_v50  ;;  %10631 = vmatmul.mubr.bf16.gmra.mrb[60].mxu1 %v16351_v8  ;;  %v7227_v22 = vsel %vm1680_vm1, %v7150_v62, %v7151_v49  ;;  %v14739_v16 = vsel %vm1680_vm1, %v7149_v59, %v7150_v62  ;;  %7621 = vmatprep.mubr.bf16.mxu0 %v16351_v8 }
 0x77a   : > { %v14742_v29 = vadd.f32 %v7101_v13, %v6618_v37  ;;  %10634 = vmatprep.mubr.bf16.mxu1 %v14152_v33  ;;  %v7230_v12 = vadd.f32 %v7227_v22, %v14537_v31 }
 0x77b   : > { %v10520_v43 = vpop.f32.mrb[180].mxu0 }
 0x77c   : > { %v14747_v56 = vadd.f32 %v7230_v12, %v14198_v35  ;;  %v6622_v48 = vpop.f32.mrb[212].mxu1  ;;  %v6813_v4 = vpop.f32.mrb[181].mxu0  ;;  %v7154_v34 = vrot.slane %v10520_v43, 1 }
 0x77d   : > { %v6623_v52 = vpop.f32.mrb[213].mxu1  ;;  %v10521_v15 = vpop.f32.mrb[182].mxu0  ;;  %v7152_v50 = vrot.slane %v6813_v4, 1 }
 0x77e   : > { %v6624_v44 = vpop.f32.mrb[214].mxu1  ;;  %v6816_v49 = vpop.f32.mrb[183].mxu0 }
 0x77f   : > { %v6626_v61 = vpop.f32.mrb[215].mxu1  ;;  %v7153_v59 = vrot.slane %v6816_v49, 1  ;;  %v7060_v13 = vrot.slane %v6624_v44, 7 }
 0x780   : > { %7622 = vmatmul.mubr.bf16.gmra.mrb[32].mxu0 %v14128_v60 }
 0x781   : > { %10635 = vmatmul.mubr.bf16.gmra.mrb[64].mxu1 %v16351_v8  ;;  %v7225_v31 = vsel %vm1680_vm1, %v7153_v59, %v7154_v34  ;;  %v7226_v35 = vsel %vm1680_vm1, %v7152_v50, %v7153_v59  ;;  %7631 = vmatprep.mubr.bf16.mxu0 %v16351_v8 }
 0x782   : > { %10638 = vmatprep.mubr.bf16.mxu1 %v14160_v42  ;;  %v7231_v37 = vadd.f32 %v7226_v35, %v14551_v57  ;;  %v7232_v62 = vadd.f32 %v7225_v31, %v14563_v3 }
 0x783   : > { %v10524_v22 = vpop.f32.mrb[184].mxu0 }
 0x784   : > { %v6629_v12 = vpop.f32.mrb[216].mxu1  ;;  %v14760_v60 = vadd.f32 %v7231_v37, %v14283_v38  ;;  %v14763_v43 = vadd.f32 %v7232_v62, %v14285_v10  ;;  %v6828_v48 = vpop.f32.mrb[185].mxu0  ;;  %v7157_v61 = vrot.slane %v10524_v22, 1 }
 0x785   : > { %v7061_v4 = vrot.slane %v6629_v12, 7  ;;  %v6631_v52 = vpop.f32.mrb[217].mxu1  ;;  %v10525_v15 = vpop.f32.mrb[186].mxu0  ;;  %v7155_v50 = vrot.slane %v6828_v48, 1 }
 0x786   : > { %v6633_v49 = vpop.f32.mrb[218].mxu1  ;;  %v6831_v34 = vpop.f32.mrb[187].mxu0 }
 0x787   : > { %v7100_v57 = vsel %vm1567_vm0, %v7060_v13, %v7061_v4  ;;  %v7062_v3 = vrot.slane %v6633_v49, 7  ;;  %v6635_v44 = vpop.f32.mrb[219].mxu1  ;;  %v7156_v59 = vrot.slane %v6831_v34, 1 }
 0x788   : > { %v14767_v31 = vadd.f32 %v7100_v57, %v6631_v52  ;;  %7632 = vmatmul.mubr.bf16.gmra.mrb[36].mxu0 %v16351_v8 }
 0x789   : > { %v7099_v38 = vsel %vm1567_vm0, %v7061_v4, %v7062_v3  ;;  %10639 = vmatmul.mubr.bf16.gmra.mrb[68].mxu1 %v16351_v8  ;;  %v7223_v10 = vsel %vm1680_vm1, %v7156_v59, %v7157_v61  ;;  %v7224_v35 = vsel %vm1680_vm1, %v7155_v50, %v7156_v59  ;;  %7638 = vmatprep.mubr.bf16.mxu0 %v16351_v8 }
 0x78a   : > { %v14778_v37 = vadd.f32 %v7099_v38, %v6635_v44  ;;  %10642 = vmatprep.mubr.bf16.mxu1 %v14163_v2  ;;  %v7233_v62 = vadd.f32 %v7224_v35, %v14577_v7  ;;  %v7234_v13 = vadd.f32 %v7223_v10, %v14589_v5 }
 0x78b   : > { %v10528_v22 = vpop.f32.mrb[188].mxu0 }
 0x78c   : > { %v14784_v12 = vadd.f32 %v7233_v62, %v14301_v1  ;;  %v6639_v48 = vpop.f32.mrb[220].mxu1  ;;  %v6843_v4 = vpop.f32.mrb[189].mxu0  ;;  %v14787_v52 = vadd.f32 %v7234_v13, %v14305_v28  ;;  %v7160_v3 = vrot.slane %v10528_v22, 1 }
 0x78d   : > { %v6640_v15 = vpop.f32.mrb[221].mxu1  ;;  %v10529_v49 = vpop.f32.mrb[190].mxu0  ;;  %v7158_v44 = vrot.slane %v6843_v4, 1 }
 0x78e   : > { %v6641_v61 = vpop.f32.mrb[222].mxu1  ;;  %v6846_v34 = vpop.f32.mrb[191].mxu0 }
 0x78f   : > { %v6643_v57 = vpop.f32.mrb[223].mxu1  ;;  %v7159_v50 = vrot.slane %v6846_v34, 1  ;;  %v7063_v59 = vrot.slane %v6641_v61, 7 }
 0x790   : > { %7639 = vmatmul.mubr.bf16.gmra.mrb[40].mxu0 %v14135_v54 }
 0x791   : > { %10643 = vmatmul.mubr.bf16.gmra.mrb[72].mxu1 %v16351_v8  ;;  %v7221_v1 = vsel %vm1680_vm1, %v7159_v50, %v7160_v3  ;;  %v7222_v7 = vsel %vm1680_vm1, %v7158_v44, %v7159_v50  ;;  %7648 = vmatprep.mubr.bf16.mxu0 %v16351_v8 }
 0x792   : > { %10646 = vmatprep.mubr.bf16.mxu1 %v14166_v51  ;;  %v7235_v28 = vadd.f32 %v7222_v7, %v14607_v30  ;;  %v7236_v5 = vadd.f32 %v7221_v1, %v14619_v55 }
 0x793   : > { %v10532_v38 = vpop.f32.mrb[192].mxu0 }
 0x794   : > { %v6646_v10 = vpop.f32.mrb[224].mxu1  ;;  %v14800_v54 = vadd.f32 %v7235_v28, %v14321_v17  ;;  %v6858_v35 = vpop.f32.mrb[193].mxu0  ;;  %v14803_v62 = vadd.f32 %v7236_v5, %v14333_v14  ;;  %v7163_v15 = vrot.slane %v10532_v38, 1 }
 0x795   : > { %v7064_v13 = vrot.slane %v6646_v10, 7  ;;  %v6648_v22 = vpop.f32.mrb[225].mxu1  ;;  %v10533_v48 = vpop.f32.mrb[194].mxu0  ;;  %v7161_v34 = vrot.slane %v6858_v35, 1 }
 0x796   : > { %v6650_v4 = vpop.f32.mrb[226].mxu1  ;;  %v6861_v49 = vpop.f32.mrb[195].mxu0 }
 0x797   : > { %v7098_v30 = vsel %vm1567_vm0, %v7063_v59, %v7064_v13  ;;  %v7065_v55 = vrot.slane %v6650_v4, 7  ;;  %v6652_v61 = vpop.f32.mrb[227].mxu1  ;;  %v7162_v57 = vrot.slane %v6861_v49, 1 }
 0x798   : > { %v14807_v3 = vadd.f32 %v7098_v30, %v6648_v22  ;;  %7649 = vmatmul.mubr.bf16.gmra.mrb[44].mxu0 %v16351_v8 }
 0x799   : > { %v7097_v17 = vsel %vm1567_vm0, %v7064_v13, %v7065_v55  ;;  %10647 = vmatmul.mubr.bf16.gmra.mrb[76].mxu1 %v16351_v8  ;;  %v7219_v14 = vsel %vm1680_vm1, %v7162_v57, %v7163_v15  ;;  %v7220_v44 = vsel %vm1680_vm1, %v7161_v34, %v7162_v57  ;;  %7655 = vmatprep.mubr.bf16.mxu0 %v16351_v8 }
 0x79a   : > { %v14818_v50 = vadd.f32 %v7097_v17, %v6652_v61  ;;  %10650 = vmatprep.mubr.bf16.mxu1 %v14169_v0  ;;  %v7237_v1 = vadd.f32 %v7220_v44, %v14641_v27  ;;  %v7238_v7 = vadd.f32 %v7219_v14, %v14653_v53 }
 0x79b   : > { %v10536_v28 = vpop.f32.mrb[196].mxu0 }
 0x79c   : > { %v14824_v5 = vadd.f32 %v7237_v1, %v14355_v19  ;;  %v6656_v59 = vpop.f32.mrb[228].mxu1  ;;  %v6873_v38 = vpop.f32.mrb[197].mxu0  ;;  %v14827_v10 = vadd.f32 %v7238_v7, %v14368_v21  ;;  %v7166_v15 = vrot.slane %v10536_v28, 1 }
 0x79d   : > { %v6657_v35 = vpop.f32.mrb[229].mxu1  ;;  %v10537_v13 = vpop.f32.mrb[198].mxu0  ;;  %v7164_v49 = vrot.slane %v6873_v38, 1 }
 0x79e   : > { %v6658_v22 = vpop.f32.mrb[230].mxu1  ;;  %v6876_v48 = vpop.f32.mrb[199].mxu0 }
 0x79f   : > { %v6660_v4 = vpop.f32.mrb[231].mxu1  ;;  %v7165_v30 = vrot.slane %v6876_v48, 1  ;;  %v7066_v55 = vrot.slane %v6658_v22, 7 }
 0x7a0   : > { %7656 = vmatmul.mubr.bf16.gmra.mrb[48].mxu0 %v14138_v23 }
 0x7a1   : > { %v7217_v27 = vsel %vm1680_vm1, %v7165_v30, %v7166_v15  ;;  %v7218_v19 = vsel %vm1680_vm1, %v7164_v49, %v7165_v30  ;;  %7665 = vmatprep.mubr.bf16.mxu0 %v16351_v8  ;;  %10651 = vmatmul.mubr.bf16.gmra.mrb[80].mxu1 %v16351_v8  ;;  %v16377_v30 = vmov 0.0  }
 0x7a2   : > { %v7239_v21 = vadd.f32 %v7218_v19, %v14671_v24  ;;  %v7240_v53 = vadd.f32 %v7217_v27, %v14683_v20  ;;  %10654 = vmatprep.mubr.bf16.mxu1 %v16351_v8  ;;  %v16378_v19 = vld [vmem:[#allocation60_spill] sm:$0xff] }
 0x7a3   : > { %v10540_v61 = vpop.f32.mrb[200].mxu0 }
 0x7a4   : > { %v6663_v34 = vpop.f32.mrb[232].mxu1  ;;  %v14840_v23 = vadd.f32 %v7239_v21, %v14389_v47  ;;  %v6888_v57 = vpop.f32.mrb[201].mxu0  ;;  %v14843_v17 = vadd.f32 %v7240_v53, %v14402_v39  ;;  %v7169_v28 = vrot.slane %v10540_v61, 1  ;;  %v16379_v61 = vld [vmem:[#allocation61_spill] sm:$0xff] }
 0x7a5   : > { %v7067_v14 = vrot.slane %v6663_v34, 7  ;;  %v6665_v44 = vpop.f32.mrb[233].mxu1  ;;  %v10541_v1 = vpop.f32.mrb[202].mxu0  ;;  %v7167_v35 = vrot.slane %v6888_v57, 1 }
 0x7a6   : > { %v6667_v7 = vpop.f32.mrb[234].mxu1  ;;  %v6891_v24 = vpop.f32.mrb[203].mxu0 }
 0x7a7   : > { %v7096_v20 = vsel %vm1567_vm0, %v7066_v55, %v7067_v14  ;;  %v7068_v59 = vrot.slane %v6667_v7, 7  ;;  %v6669_v38 = vpop.f32.mrb[235].mxu1  ;;  %v7168_v13 = vrot.slane %v6891_v24, 1 }
 0x7a8   : > { %v14847_v22 = vadd.f32 %v7096_v20, %v6665_v44  ;;  %7666 = vmatmul.mubr.bf16.gmra.mrb[52].mxu0 %v16351_v8 }
 0x7a9   : > { %v7095_v47 = vsel %vm1567_vm0, %v7067_v14, %v7068_v59  ;;  %v7215_v39 = vsel %vm1680_vm1, %v7168_v13, %v7169_v28  ;;  %v7216_v48 = vsel %vm1680_vm1, %v7167_v35, %v7168_v13  ;;  %7672 = vmatprep.mubr.bf16.mxu0 %v16351_v8  ;;  %10655 = vmatmul.mubr.bf16.gmra.mrb[84].mxu1 %v16351_v8 }
 0x7aa   : > { %v14858_v4 = vadd.f32 %v7095_v47, %v6669_v38  ;;  %v7241_v15 = vadd.f32 %v7216_v48, %v14697_v63  ;;  %v7242_v49 = vadd.f32 %v7215_v39, %v14709_v11  ;;  %10690 = vmatprep.mubr.msk.f32.mxu1 %vm11730_vm2, %v16377_v30  ;;  %v16380_v39 = vld [vmem:[#allocation62_spill] sm:$0xff] }
 0x7ab   : > { %v10544_v27 = vpop.f32.mrb[204].mxu0 }
 0x7ac   : > { %v14865_v21 = vadd.f32 %v7241_v15, %v16378_v19  ;;  %v6673_v53 = vpop.f32.mrb[236].mxu1  ;;  %v6903_v55 = vpop.f32.mrb[205].mxu0  ;;  %v14868_v34 = vadd.f32 %v7242_v49, %v16379_v61  ;;  %v7172_v63 = vrot.slane %v10544_v27, 1 }
 0x7ad   : > { %v6674_v57 = vpop.f32.mrb[237].mxu1  ;;  %v10545_v14 = vpop.f32.mrb[206].mxu0  ;;  %v7170_v28 = vrot.slane %v6903_v55, 1 }
 0x7ae   : > { %v6675_v44 = vpop.f32.mrb[238].mxu1  ;;  %v6906_v1 = vpop.f32.mrb[207].mxu0 }
 0x7af   : > { %v6677_v7 = vpop.f32.mrb[239].mxu1  ;;  %v7171_v11 = vrot.slane %v6906_v1, 1  ;;  %v7069_v35 = vrot.slane %v6675_v44, 7 }
 0x7b0   : > { %7673 = vmatmul.mubr.bf16.gmra.mrb[56].mxu0 %v14141_v46  ;;  %v16381_v46 = vld [vmem:[#allocation63_spill] sm:$0xff] }
 0x7b1   : > { %v7213_v24 = vsel %vm1680_vm1, %v7171_v11, %v7172_v63  ;;  %v7214_v20 = vsel %vm1680_vm1, %v7170_v28, %v7171_v11  ;;  %7682 = vmatprep.mubr.bf16.mxu0 %v16351_v8 }
 0x7b2   : > { %v7243_v59 = vadd.f32 %v7214_v20, %v14729_v9  ;;  %v7244_v38 = vadd.f32 %v7213_v24, %v14742_v29 }
 0x7b3   : > { %v10548_v13 = vpop.f32.mrb[208].mxu0 }
 0x7b4   : > { %v6680_v47 = vpop.f32.mrb[240].mxu1  ;;  %v14879_v48 = vadd.f32 %v7243_v59, %v16380_v39  ;;  %v6918_v15 = vpop.f32.mrb[209].mxu0  ;;  %v14882_v49 = vadd.f32 %v7244_v38, %v16381_v46  ;;  %v7175_v61 = vrot.slane %v10548_v13, 1 }
 0x7b5   : > { %v7070_v27 = vrot.slane %v6680_v47, 7  ;;  %v6682_v19 = vpop.f32.mrb[241].mxu1  ;;  %v10549_v53 = vpop.f32.mrb[210].mxu0  ;;  %v7173_v44 = vrot.slane %v6918_v15, 1  ;;  %v16383_v15 = vld [vmem:[#allocation65_spill] sm:$0xff] }
 0x7b6   : > { %v6684_v55 = vpop.f32.mrb[242].mxu1  ;;  %v6921_v57 = vpop.f32.mrb[211].mxu0 }
 0x7b7   : > { %v7094_v9 = vsel %vm1567_vm0, %v7069_v35, %v7070_v27  ;;  %v7071_v29 = vrot.slane %v6684_v55, 7  ;;  %v6686_v14 = vpop.f32.mrb[243].mxu1  ;;  %v7174_v1 = vrot.slane %v6921_v57, 1  ;;  %v16382_v35 = vld [vmem:[#allocation64_spill] sm:$0xff] }
 0x7b8   : > { %v14886_v7 = vadd.f32 %v7094_v9, %v6682_v19  ;;  %7683 = vmatmul.mubr.bf16.gmra.mrb[60].mxu0 %v16351_v8 }
 0x7b9   : > { %v7093_v63 = vsel %vm1567_vm0, %v7070_v27, %v7071_v29  ;;  %v7211_v28 = vsel %vm1680_vm1, %v7174_v1, %v7175_v61  ;;  %v7212_v11 = vsel %vm1680_vm1, %v7173_v44, %v7174_v1  ;;  %7689 = vmatprep.mubr.bf16.mxu0 %v16351_v8 }
 0x7ba   : > { %v14896_v24 = vadd.f32 %v7093_v63, %v6686_v14  ;;  %v7245_v20 = vadd.f32 %v7212_v11, %v14767_v31  ;;  %v7246_v59 = vadd.f32 %v7211_v28, %v14778_v37  ;;  %v16384_v11 = vld [vmem:[#allocation68_spill] sm:$0xff] }
 0x7bb   : > { %v10552_v38 = vpop.f32.mrb[212].mxu0 }
 0x7bc   : > { %v14901_v13 = vadd.f32 %v7245_v20, %v16382_v35  ;;  %v6690_v47 = vpop.f32.mrb[244].mxu1  ;;  %v6933_v39 = vpop.f32.mrb[213].mxu0  ;;  %v14904_v46 = vadd.f32 %v7246_v59, %v16383_v15  ;;  %v7178_v57 = vrot.slane %v10552_v38, 1 }
 0x7bd   : > { %v6691_v27 = vpop.f32.mrb[245].mxu1  ;;  %v10553_v19 = vpop.f32.mrb[214].mxu0  ;;  %v7176_v9 = vrot.slane %v6933_v39, 1 }
 0x7be   : > { %v6692_v53 = vpop.f32.mrb[246].mxu1  ;;  %v6936_v55 = vpop.f32.mrb[215].mxu0 }
 0x7bf   : > { %v6694_v61 = vpop.f32.mrb[247].mxu1  ;;  %v7177_v29 = vrot.slane %v6936_v55, 1  ;;  %v7072_v1 = vrot.slane %v6692_v53, 7 }
 0x7c0   : > { %7690 = vmatmul.mubr.bf16.gmra.mrb[64].mxu0 %v14152_v33  ;;  %v16385_v33 = vld [vmem:[#allocation69_spill] sm:$0xff] }
 0x7c1   : > { %v7209_v31 = vsel %vm1680_vm1, %v7177_v29, %v7178_v57  ;;  %v7210_v37 = vsel %vm1680_vm1, %v7176_v9, %v7177_v29  ;;  %7699 = vmatprep.mubr.bf16.mxu0 %v16351_v8 }
 0x7c2   : > { %v7247_v14 = vadd.f32 %v7210_v37, %v14807_v3  ;;  %v7248_v44 = vadd.f32 %v7209_v31, %v14818_v50 }
 0x7c3   : > { %v10556_v63 = vpop.f32.mrb[216].mxu0 }
 0x7c4   : > { %v6697_v28 = vpop.f32.mrb[248].mxu1  ;;  %v14915_v20 = vadd.f32 %v7247_v14, %v16384_v11  ;;  %v6948_v59 = vpop.f32.mrb[217].mxu0  ;;  %v14918_v38 = vadd.f32 %v7248_v44, %v16385_v33  ;;  %v7181_v27 = vrot.slane %v10556_v63, 1  ;;  %v16386_v63 = vld [vmem:[#allocation70_spill] sm:$0xff]  ;;  %v16387_v33 = vld [vmem:[#allocation71_spill] sm:$0xff] }
 0x7c5   : > { %v7073_v35 = vrot.slane %v6697_v28, 7  ;;  %v6699_v47 = vpop.f32.mrb[249].mxu1  ;;  %v10557_v39 = vpop.f32.mrb[218].mxu0  ;;  %v7179_v55 = vrot.slane %v6948_v59, 1 }
 0x7c6   : > { %v6701_v15 = vpop.f32.mrb[250].mxu1  ;;  %v6951_v19 = vpop.f32.mrb[219].mxu0 }
 0x7c7   : > { %v7092_v3 = vsel %vm1567_vm0, %v7072_v1, %v7073_v35  ;;  %v7074_v50 = vrot.slane %v6701_v15, 7  ;;  %v6703_v53 = vpop.f32.mrb[251].mxu1  ;;  %v7180_v61 = vrot.slane %v6951_v19, 1 }
 0x7c8   : > { %v7141_v57 = vadd.f32 %v7092_v3, %v6699_v47  ;;  %7700 = vmatmul.mubr.bf16.gmra.mrb[68].mxu0 %v16351_v8 }
 0x7c9   : > { %v7091_v9 = vsel %vm1567_vm0, %v7073_v35, %v7074_v50  ;;  %v7207_v29 = vsel %vm1680_vm1, %v7180_v61, %v7181_v27  ;;  %v7208_v31 = vsel %vm1680_vm1, %v7179_v55, %v7180_v61  ;;  %7706 = vmatprep.mubr.bf16.mxu0 %v16351_v8 }
 0x7ca   : > { %v7142_v37 = vadd.f32 %v7091_v9, %v6703_v53  ;;  %v7249_v14 = vadd.f32 %v7208_v31, %v14847_v22  ;;  %v7250_v44 = vadd.f32 %v7207_v29, %v14858_v4 }
 0x7cb   : > { %v10560_v1 = vpop.f32.mrb[220].mxu0 }
 0x7cc   : > { %v14933_v28 = vadd.f32 %v7249_v14, %v16386_v63  ;;  %v6707_v11 = vpop.f32.mrb[252].mxu1  ;;  %v6963_v59 = vpop.f32.mrb[221].mxu0  ;;  %v14936_v35 = vadd.f32 %v7250_v44, %v16387_v33  ;;  %v7184_v3 = vrot.slane %v10560_v1, 1 }
 0x7cd   : > { %v6708_v47 = vpop.f32.mrb[253].mxu1  ;;  %v10561_v39 = vpop.f32.mrb[222].mxu0  ;;  %v7182_v50 = vrot.slane %v6963_v59, 1 }
 0x7ce   : > { %v6709_v15 = vpop.f32.mrb[254].mxu1  ;;  %v6966_v27 = vpop.f32.mrb[223].mxu0 }
 0x7cf   : > { %v6711_v19 = vpop.f32.mrb[255].mxu1  ;;  %v7183_v53 = vrot.slane %v6966_v27, 1  ;;  %v7075_v9 = vrot.slane %v6709_v15, 7 }
 0x7d0   : > { %7707 = vmatmul.mubr.bf16.gmra.mrb[72].mxu0 %v14160_v42 }
 0x7d1   : > { %v7205_v22 = vsel %vm1680_vm1, %v7183_v53, %v7184_v3  ;;  %v7206_v4 = vsel %vm1680_vm1, %v7182_v50, %v7183_v53  ;;  %7716 = vmatprep.mubr.bf16.mxu0 %v16351_v8 }
 0x7d2   : > { %v7251_v55 = vadd.f32 %v7206_v4, %v14886_v7  ;;  %v7252_v61 = vadd.f32 %v7205_v22, %v14896_v24 }
 0x7d3   : > { %v10564_v29 = vpop.f32.mrb[224].mxu0 }
 0x7d4   : > { %v6714_v31 = vpop.f32.mrb[0].mxu1  ;;  %v14947_v14 = vadd.f32 %v7251_v55, %v14586_v26  ;;  %v6978_v44 = vpop.f32.mrb[225].mxu0  ;;  %v14950_v42 = vadd.f32 %v7252_v61, %v14593_v58  ;;  %v7187_v33 = vrot.slane %v10564_v29, 1  ;;  %v16388_v29 = vld [vmem:[#allocation72_spill] sm:$0xff] }
 0x7d5   : > { %v7076_v1 = vrot.slane %v6714_v31, 7  ;;  %v6716_v63 = vpop.f32.mrb[1].mxu1  ;;  %v10565_v11 = vpop.f32.mrb[226].mxu0  ;;  %v7185_v15 = vrot.slane %v6978_v44, 1 }
 0x7d6   : > { %v6718_v59 = vpop.f32.mrb[2].mxu1  ;;  %v6981_v47 = vpop.f32.mrb[227].mxu0 }
 0x7d7   : > { %v7090_v7 = vsel %vm1567_vm0, %v7075_v9, %v7076_v1  ;;  %v7077_v24 = vrot.slane %v6718_v59, 7  ;;  %v6720_v39 = vpop.f32.mrb[3].mxu1  ;;  %v7186_v27 = vrot.slane %v6981_v47, 1 }
 0x7d8   : > { %v7143_v19 = vadd.f32 %v7090_v7, %v6716_v63  ;;  %7717 = vmatmul.mubr.bf16.gmra.mrb[76].mxu0 %v16351_v8 }
 0x7d9   : > { %v7089_v26 = vsel %vm1567_vm0, %v7076_v1, %v7077_v24  ;;  %v7203_v58 = vsel %vm1680_vm1, %v7186_v27, %v7187_v33  ;;  %v7204_v3 = vsel %vm1680_vm1, %v7185_v15, %v7186_v27  ;;  %7723 = vmatprep.mubr.bf16.mxu0 %v16351_v8 }
 0x7da   : > { %v7144_v50 = vadd.f32 %v7089_v26, %v6720_v39  ;;  %v7253_v53 = vadd.f32 %v7204_v3, %v7141_v57  ;;  %v7254_v22 = vadd.f32 %v7203_v58, %v7142_v37 }
 0x7db   : > { %v10568_v4 = vpop.f32.mrb[228].mxu0 }
 0x7dc   : > { %v14963_v55 = vadd.f32 %v7253_v53, %v14616_v36  ;;  %v6724_v61 = vpop.f32.mrb[4].mxu1  ;;  %v6993_v9 = vpop.f32.mrb[229].mxu0  ;;  %v14966_v31 = vadd.f32 %v7254_v22, %v16388_v29  ;;  %v7190_v33 = vrot.slane %v10568_v4, 1 }
 0x7dd   : > { %v6725_v44 = vpop.f32.mrb[5].mxu1  ;;  %v10569_v1 = vpop.f32.mrb[230].mxu0  ;;  %v7188_v47 = vrot.slane %v6993_v9, 1 }
 0x7de   : > { %v6726_v63 = vpop.f32.mrb[6].mxu1  ;;  %v6996_v11 = vpop.f32.mrb[231].mxu0 }
 0x7df   : > { %v6728_v59 = vpop.f32.mrb[7].mxu1  ;;  %v7189_v7 = vrot.slane %v6996_v11, 1  ;;  %v7078_v39 = vrot.slane %v6726_v63, 7 }
 0x7e0   : > { %7724 = vmatmul.mubr.bf16.gmra.mrb[80].mxu0 %v14163_v2 }
 0x7e1   : > { %v7201_v57 = vsel %vm1680_vm1, %v7189_v7, %v7190_v33  ;;  %v7202_v36 = vsel %vm1680_vm1, %v7188_v47, %v7189_v7  ;;  %7733 = vmatprep.mubr.bf16.mxu0 %v16351_v8 }
 0x7e2   : > { %v7255_v37 = vadd.f32 %v7202_v36, %v7143_v19  ;;  %v7256_v24 = vadd.f32 %v7201_v57, %v7144_v50 }
 0x7e3   : > { %v10572_v15 = vpop.f32.mrb[232].mxu0 }
 0x7e4   : > { %v6731_v27 = vpop.f32.mrb[8].mxu1  ;;  %v14975_v26 = vadd.f32 %v7255_v37, %v14650_v6  ;;  %v7008_v58 = vpop.f32.mrb[233].mxu0  ;;  %v14978_v3 = vadd.f32 %v7256_v24, %v14658_v41  ;;  %v7193_v61 = vrot.slane %v10572_v15, 1 }
 0x7e5   : > { %v7079_v2 = vrot.slane %v6731_v27, 7  ;;  %v6733_v53 = vpop.f32.mrb[9].mxu1  ;;  %v10573_v22 = vpop.f32.mrb[234].mxu0  ;;  %v7191_v44 = vrot.slane %v7008_v58, 1  ;;  %v16389_v58 = vld [vmem:[#allocation73_spill] sm:$0xff] }
 0x7e6   : > { %v6735_v4 = vpop.f32.mrb[10].mxu1  ;;  %v7011_v9 = vpop.f32.mrb[235].mxu0 }
 0x7e7   : > { %v7088_v19 = vsel %vm1567_vm0, %v7078_v39, %v7079_v2  ;;  %v7080_v50 = vrot.slane %v6735_v4, 7  ;;  %v6737_v29 = vpop.f32.mrb[11].mxu1  ;;  %v7192_v1 = vrot.slane %v7011_v9, 1 }
 0x7e8   : > { %v7145_v63 = vadd.f32 %v7088_v19, %v6733_v53  ;;  %7734 = vmatmul.mubr.bf16.gmra.mrb[84].mxu0 %v16351_v8 }
 0x7e9   : > { %v7087_v6 = vsel %vm1567_vm0, %v7079_v2, %v7080_v50  ;;  %v7199_v41 = vsel %vm1680_vm1, %v7192_v1, %v7193_v61  ;;  %v7200_v11 = vsel %vm1680_vm1, %v7191_v44, %v7192_v1  ;;  %7740 = vmatprep.mubr.bf16.mxu0 %v16351_v8 }
 0x7ea   : > { %v7146_v59 = vadd.f32 %v7087_v6, %v6737_v29  ;;  %v7257_v33 = vadd.f32 %v7200_v11, %v7145_v63 }
 0x7eb   : > { %v10576_v47 = vpop.f32.mrb[236].mxu0 }
 0x7ec   : > { %v7258_v7 = vadd.f32 %v7199_v41, %v7146_v59  ;;  %v14991_v57 = vadd.f32 %v7257_v33, %v14680_v45  ;;  %v6741_v36 = vpop.f32.mrb[12].mxu1  ;;  %v7023_v37 = vpop.f32.mrb[237].mxu0  ;;  %v7196_v22 = vrot.slane %v10576_v47, 1 }
 0x7ed   : > { %v6742_v24 = vpop.f32.mrb[13].mxu1  ;;  %v10577_v39 = vpop.f32.mrb[238].mxu0  ;;  %v7194_v4 = vrot.slane %v7023_v37, 1 }
 0x7ee   : > { %v6743_v15 = vpop.f32.mrb[14].mxu1  ;;  %v7026_v27 = vpop.f32.mrb[239].mxu0  ;;  %v14994_v2 = vadd.f32 %v7258_v7, %v16389_v58 }
 0x7ef   : > { %v6745_v53 = vpop.f32.mrb[15].mxu1  ;;  %v7195_v61 = vrot.slane %v7026_v27, 1  ;;  %v7081_v19 = vrot.slane %v6743_v15, 7 }
 0x7f0   : > { %7741 = vmatmul.mubr.bf16.gmra.mrb[88].mxu0 %v14166_v51 }
 0x7f1   : > { %v7198_v9 = vsel %vm1680_vm1, %v7194_v4, %v7195_v61  ;;  %v7197_v45 = vsel %vm1680_vm1, %v7195_v61, %v7196_v22  ;;  %7750 = vmatprep.mubr.bf16.mxu0 %v16351_v8 }
 0x7f3   : > { %v15002_v50 = vpop.f32.mrb[240].mxu0 }
 0x7f4   : > { %v6748_v29 = vpop.f32.mrb[16].mxu1  ;;  %v15004_v44 = vpop.f32.mrb[241].mxu0  ;;  %v16229_v51 = vrot.slane %v15002_v50, 7 }
 0x7f5   : > { %v7082_v1 = vrot.slane %v6748_v29, 7  ;;  %v6750_v63 = vpop.f32.mrb[17].mxu1  ;;  %v7525_v6 = vpop.f32.mrb[242].mxu0 }
 0x7f6   : > { %v6752_v41 = vpop.f32.mrb[18].mxu1  ;;  %v8066_v11 = vrot.slane %v7525_v6, 7  ;;  %v7527_v59 = vpop.f32.mrb[243].mxu0 }
 0x7f7   : > { %v7086_v33 = vsel %vm1567_vm0, %v7081_v19, %v7082_v1  ;;  %v7083_v47 = vrot.slane %v6752_v41, 7  ;;  %v6754_v7 = vpop.f32.mrb[19].mxu1 }
 0x7f8   : > { %v7147_v36 = vadd.f32 %v7086_v33, %v6750_v63  ;;  %v8143_v37 = vsel %vm1567_vm0, %v16229_v51, %v8066_v11  ;;  %7751 = vmatmul.mubr.bf16.gmra.mrb[92].mxu0 %v16351_v8 }
 0x7f9   : > { %v7085_v24 = vsel %vm1567_vm0, %v7082_v1, %v7083_v47  ;;  %v8146_v39 = vadd.f32 %v8143_v37, %v7527_v59  ;;  %7757 = vmatprep.mubr.bf16.mxu0 %v16351_v8 }
 0x7fa   : > { %v7259_v15 = vadd.f32 %v7198_v9, %v7147_v36  ;;  %v7148_v27 = vadd.f32 %v7085_v24, %v6754_v7  ;;  %v16390_v9 = vld [vmem:[#allocation66_spill] sm:$0xff] }
 0x7fb   : > { %v7531_v58 = vpop.f32.mrb[244].mxu0  ;;  %v16391_v59 = vrot.slane %v16390_v9, 7 }
 0x7fc   : > { %v15018_v53 = vadd.f32 %v7259_v15, %v14706_v32  ;;  %v7260_v22 = vadd.f32 %v7197_v45, %v7148_v27  ;;  %v6758_v4 = vpop.f32.mrb[20].mxu1  ;;  %v7532_v61 = vpop.f32.mrb[245].mxu0  ;;  %v16392_v45 = vld [vmem:[#allocation67_spill] sm:$0xff] }
 0x7fd   : > { %v6759_v19 = vpop.f32.mrb[21].mxu1  ;;  %v7533_v29 = vpop.f32.mrb[246].mxu0 }
 0x7fe   : > { %v15021_v63 = vadd.f32 %v7260_v22, %v14713_v18  ;;  %v6760_v6 = vpop.f32.mrb[22].mxu1  ;;  %v7535_v41 = vpop.f32.mrb[247].mxu0  ;;  %v8067_v36 = vrot.slane %v7533_v29, 7 }
 0x7ff   : > { %v7084_v1 = vrot.slane %v6760_v6, 7  ;;  %v6762_v11 = vpop.f32.mrb[23].mxu1 }
 0x800   : > { %7758 = vmatmul.mubr.bf16.gmra.mrb[96].mxu0 %v14169_v0 }
 0x801   : > { %v7116_v32 = vsel %vm1567_vm0, %v7084_v1, %v16391_v59  ;;  %7767 = vmatprep.mubr.bf16.mxu0 %v16351_v8 }
 0x802   : > { %v7117_v33 = vadd.f32 %v7116_v32, %v16392_v45 }
 0x803   : > { %v7538_v47 = vpop.f32.mrb[248].mxu0 }
 0x804   : > { %v7229_v7 = vadd.f32 %v14739_v16, %v7117_v33  ;;  %v10596_v18 = vpop.f32.mrb[24].mxu1  ;;  %v8068_v37 = vrot.slane %v7538_v47, 7  ;;  %v7540_v24 = vpop.f32.mrb[249].mxu0 }
 0x805   : > { %v8179_v15 = vrot.slane %v10596_v18, 1  ;;  %v7826_v27 = vpop.f32.mrb[25].mxu1  ;;  %v7542_v58 = vpop.f32.mrb[250].mxu0 }
 0x806   : > { %v15032_v0 = vadd.f32 %v7229_v7, %v14725_v25  ;;  %v8177_v22 = vrot.slane %v7826_v27, 1  ;;  %v10597_v4 = vpop.f32.mrb[26].mxu1  ;;  %v8142_v61 = vsel %vm1567_vm0, %v8067_v36, %v8068_v37  ;;  %v8069_v19 = vrot.slane %v7542_v58, 7  ;;  %v7544_v6 = vpop.f32.mrb[251].mxu0 }
 0x807   : > { %v7829_v41 = vpop.f32.mrb[27].mxu1  ;;  %v8147_v1 = vadd.f32 %v8142_v61, %v7540_v24 }
 0x808   : > { %v8178_v16 = vrot.slane %v7829_v41, 1  ;;  %v8141_v29 = vsel %vm1567_vm0, %v8068_v37, %v8069_v19  ;;  %7768 = vmatmul.mubr.bf16.gmra.mrb[100].mxu0 %v16351_v8 }
 0x809   : > { %v8148_v11 = vadd.f32 %v8141_v29, %v7544_v6  ;;  %7774 = vmatprep.mubr.bf16.mxu0 %v16351_v8 }
 0x80a   : > { %v8255_v25 = vsel %vm1680_vm1, %v8178_v16, %v8179_v15  ;;  %v15044_v9 = vsel %vm1680_vm1, %v8177_v22, %v8178_v16 }
 0x80b   : > { %v8258_v59 = vadd.f32 %v8255_v25, %v8146_v39  ;;  %v7548_v32 = vpop.f32.mrb[252].mxu0 }
 0x80c   : > { %v10600_v45 = vpop.f32.mrb[28].mxu1  ;;  %v7549_v33 = vpop.f32.mrb[253].mxu0 }
 0x80d   : > { %v15047_v47 = vadd.f32 %v8258_v59, %v14747_v56  ;;  %v7841_v7 = vpop.f32.mrb[29].mxu1  ;;  %v7550_v18 = vpop.f32.mrb[254].mxu0  ;;  %v8182_v36 = vrot.slane %v10600_v45, 1 }
 0x80e   : > { %v8180_v37 = vrot.slane %v7841_v7, 1  ;;  %v10601_v24 = vpop.f32.mrb[30].mxu1  ;;  %v7552_v27 = vpop.f32.mrb[255].mxu0  ;;  %v8070_v19 = vrot.slane %v7550_v18, 7 }
 0x80f   : > { %v7844_v58 = vpop.f32.mrb[31].mxu1 }
 0x810   : > { %v8181_v4 = vrot.slane %v7844_v58, 1  ;;  %7775 = vmatmul.mubr.bf16.gmra.mrb[104].mxu0 %v16351_v8 }
 0x811   : > { %7784 = vmatprep.mubr.bf16.mxu0 %v16351_v8 }
 0x812   : > { %v8253_v39 = vsel %vm1680_vm1, %v8181_v4, %v8182_v36  ;;  %v8254_v15 = vsel %vm1680_vm1, %v8180_v37, %v8181_v4 }
 0x813   : > { %v8259_v56 = vadd.f32 %v8254_v15, %v8147_v1  ;;  %v8260_v22 = vadd.f32 %v8253_v39, %v8148_v11  ;;  %v7555_v61 = vpop.f32.mrb[0].mxu0 }
 0x814   : > { %v10604_v6 = vpop.f32.mrb[32].mxu1  ;;  %v8071_v41 = vrot.slane %v7555_v61, 7  ;;  %v7557_v16 = vpop.f32.mrb[1].mxu0 }
 0x815   : > { %v15056_v29 = vadd.f32 %v8259_v56, %v14760_v60  ;;  %v15059_v25 = vadd.f32 %v8260_v22, %v14763_v43  ;;  %v7856_v59 = vpop.f32.mrb[33].mxu1  ;;  %v7559_v32 = vpop.f32.mrb[2].mxu0  ;;  %v8185_v45 = vrot.slane %v10604_v6, 1 }
 0x816   : > { %v8183_v33 = vrot.slane %v7856_v59, 1  ;;  %v8140_v7 = vsel %vm1567_vm0, %v8070_v19, %v8071_v41  ;;  %v10605_v1 = vpop.f32.mrb[34].mxu1  ;;  %v8072_v11 = vrot.slane %v7559_v32, 7  ;;  %v7561_v36 = vpop.f32.mrb[3].mxu0 }
 0x817   : > { %v8149_v18 = vadd.f32 %v8140_v7, %v7557_v16  ;;  %v7859_v37 = vpop.f32.mrb[35].mxu1 }
 0x818   : > { %v8184_v24 = vrot.slane %v7859_v37, 1  ;;  %v8139_v60 = vsel %vm1567_vm0, %v8071_v41, %v8072_v11  ;;  %7785 = vmatmul.mubr.bf16.gmra.mrb[108].mxu0 %v16351_v8 }
 0x819   : > { %v8150_v43 = vadd.f32 %v8139_v60, %v7561_v36 }
 0x81a   : > { %v8252_v27 = vsel %vm1680_vm1, %v8183_v33, %v8184_v24  ;;  %v8251_v58 = vsel %vm1680_vm1, %v8184_v24, %v8185_v45 }
 0x81b   : > { %v8261_v4 = vadd.f32 %v8252_v27, %v8149_v18  ;;  %v8262_v39 = vadd.f32 %v8251_v58, %v8150_v43  ;;  %v7565_v15 = vpop.f32.mrb[4].mxu0 }
 0x81c   : > { %v7566_v56 = vpop.f32.mrb[5].mxu0  ;;  %v10608_v22 = vpop.f32.mrb[36].mxu1 }
 0x81d   : > { %v15071_v61 = vadd.f32 %v8261_v4, %v14784_v12  ;;  %v15074_v19 = vadd.f32 %v8262_v39, %v14787_v52  ;;  %v7567_v6 = vpop.f32.mrb[6].mxu0  ;;  %v7871_v8 = vpop.f32.mrb[37].mxu1  ;;  %v8188_v16 = vrot.slane %v10608_v22, 1 }
 0x81e   : > { %v7569_v41 = vpop.f32.mrb[7].mxu0  ;;  %v8186_v59 = vrot.slane %v7871_v8, 1  ;;  %v10609_v32 = vpop.f32.mrb[38].mxu1  ;;  %v8073_v12 = vrot.slane %v7567_v6, 7 }
 0x81f   : > { %v7874_v33 = vpop.f32.mrb[39].mxu1 }
 0x820   : > { %v8187_v7 = vrot.slane %v7874_v33, 1 }
 0x822   : > { %v8250_v45 = vsel %vm1680_vm1, %v8186_v59, %v8187_v7  ;;  %v8249_v1 = vsel %vm1680_vm1, %v8187_v7, %v8188_v16 }
 0x823   : > { %v7572_v11 = vpop.f32.mrb[8].mxu0 }
 0x824   : > { %v8074_v36 = vrot.slane %v7572_v11, 7  ;;  %v7574_v18 = vpop.f32.mrb[9].mxu0  ;;  %v10612_v52 = vpop.f32.mrb[40].mxu1 }
 0x825   : > { %v7576_v37 = vpop.f32.mrb[10].mxu0  ;;  %v7886_v24 = vpop.f32.mrb[41].mxu1  ;;  %v8191_v58 = vrot.slane %v10612_v52, 1 }
 0x826   : > { %v8138_v60 = vsel %vm1567_vm0, %v8073_v12, %v8074_v36  ;;  %v8075_v43 = vrot.slane %v7576_v37, 7  ;;  %v7578_v27 = vpop.f32.mrb[11].mxu0  ;;  %v8189_v4 = vrot.slane %v7886_v24, 1  ;;  %v10613_v39 = vpop.f32.mrb[42].mxu1 }
 0x827   : > { %v8151_v15 = vadd.f32 %v8138_v60, %v7574_v18  ;;  %v7889_v56 = vpop.f32.mrb[43].mxu1 }
 0x828   : > { %v8137_v22 = vsel %vm1567_vm0, %v8074_v36, %v8075_v43  ;;  %v8190_v8 = vrot.slane %v7889_v56, 1 }
 0x829   : > { %v8263_v6 = vadd.f32 %v8250_v45, %v8151_v15  ;;  %v8152_v41 = vadd.f32 %v8137_v22, %v7578_v27 }
 0x82a   : > { %v8248_v16 = vsel %vm1680_vm1, %v8189_v4, %v8190_v8  ;;  %v8247_v59 = vsel %vm1680_vm1, %v8190_v8, %v8191_v58 }
 0x82b   : > { %v15089_v32 = vadd.f32 %v8263_v6, %v14800_v54  ;;  %v8264_v33 = vadd.f32 %v8249_v1, %v8152_v41  ;;  %v7582_v7 = vpop.f32.mrb[12].mxu0 }
 0x82c   : > { %v7583_v11 = vpop.f32.mrb[13].mxu0  ;;  %v10616_v12 = vpop.f32.mrb[44].mxu1 }
 0x82d   : > { %v15092_v18 = vadd.f32 %v8264_v33, %v14803_v62  ;;  %v7584_v36 = vpop.f32.mrb[14].mxu0  ;;  %v7901_v52 = vpop.f32.mrb[45].mxu1  ;;  %v8194_v37 = vrot.slane %v10616_v12, 1 }
 0x82e   : > { %v7586_v45 = vpop.f32.mrb[15].mxu0  ;;  %v8192_v24 = vrot.slane %v7901_v52, 1  ;;  %v10617_v60 = vpop.f32.mrb[46].mxu1  ;;  %v8076_v4 = vrot.slane %v7584_v36, 7 }
 0x82f   : > { %v7904_v43 = vpop.f32.mrb[47].mxu1 }
 0x830   : > { %v8193_v27 = vrot.slane %v7904_v43, 1 }
 0x832   : > { %v8246_v58 = vsel %vm1680_vm1, %v8192_v24, %v8193_v27  ;;  %v8245_v54 = vsel %vm1680_vm1, %v8193_v27, %v8194_v37 }
 0x833   : > { %v7589_v1 = vpop.f32.mrb[16].mxu0 }
 0x834   : > { %v8077_v39 = vrot.slane %v7589_v1, 7  ;;  %v7591_v15 = vpop.f32.mrb[17].mxu0  ;;  %v10620_v62 = vpop.f32.mrb[48].mxu1 }
 0x835   : > { %v7593_v56 = vpop.f32.mrb[18].mxu0  ;;  %v7916_v22 = vpop.f32.mrb[49].mxu1  ;;  %v8197_v33 = vrot.slane %v10620_v62, 1 }
 0x836   : > { %v8136_v8 = vsel %vm1567_vm0, %v8076_v4, %v8077_v39  ;;  %v8078_v6 = vrot.slane %v7593_v56, 7  ;;  %v7595_v41 = vpop.f32.mrb[19].mxu0  ;;  %v8195_v7 = vrot.slane %v7916_v22, 1  ;;  %v10621_v11 = vpop.f32.mrb[50].mxu1 }
 0x837   : > { %v8153_v12 = vadd.f32 %v8136_v8, %v7591_v15  ;;  %v7919_v52 = vpop.f32.mrb[51].mxu1 }
 0x838   : > { %v8135_v45 = vsel %vm1567_vm0, %v8077_v39, %v8078_v6  ;;  %v8196_v37 = vrot.slane %v7919_v52, 1 }
 0x839   : > { %v8265_v36 = vadd.f32 %v8248_v16, %v8153_v12  ;;  %v8154_v24 = vadd.f32 %v8135_v45, %v7595_v41 }
 0x83a   : > { %v15104_v60 = vsel %vm1680_vm1, %v8195_v7, %v8196_v37  ;;  %v15108_v43 = vsel %vm1680_vm1, %v8196_v37, %v8197_v33 }
 0x83b   : > { %v15111_v27 = vadd.f32 %v8265_v36, %v14824_v5  ;;  %v8266_v1 = vadd.f32 %v8247_v59, %v8154_v24  ;;  %v7599_v4 = vpop.f32.mrb[20].mxu0 }
 0x83c   : > { %v7600_v15 = vpop.f32.mrb[21].mxu0  ;;  %v10624_v62 = vpop.f32.mrb[52].mxu1 }
 0x83d   : > { %v15114_v39 = vadd.f32 %v8266_v1, %v14827_v10  ;;  %v7601_v16 = vpop.f32.mrb[22].mxu0  ;;  %v7931_v56 = vpop.f32.mrb[53].mxu1  ;;  %v8200_v8 = vrot.slane %v10624_v62, 1 }
 0x83e   : > { %v7603_v22 = vpop.f32.mrb[23].mxu0  ;;  %v8198_v6 = vrot.slane %v7931_v56, 1  ;;  %v10625_v41 = vpop.f32.mrb[54].mxu1  ;;  %v8079_v12 = vrot.slane %v7601_v16, 7 }
 0x83f   : > { %v7934_v7 = vpop.f32.mrb[55].mxu1 }
 0x840   : > { %v8199_v11 = vrot.slane %v7934_v7, 1 }
 0x842   : > { %v15118_v33 = vsel %vm1680_vm1, %v8198_v6, %v8199_v11  ;;  %v15122_v5 = vsel %vm1680_vm1, %v8199_v11, %v8200_v8 }
 0x843   : > { %v7606_v59 = vpop.f32.mrb[24].mxu0 }
 0x844   : > { %v8080_v10 = vrot.slane %v7606_v59, 7  ;;  %v7608_v52 = vpop.f32.mrb[25].mxu0  ;;  %v10628_v45 = vpop.f32.mrb[56].mxu1 }
 0x845   : > { %v7610_v37 = vpop.f32.mrb[26].mxu0  ;;  %v7946_v36 = vpop.f32.mrb[57].mxu1  ;;  %v8203_v15 = vrot.slane %v10628_v45, 1 }
 0x846   : > { %v8134_v24 = vsel %vm1567_vm0, %v8079_v12, %v8080_v10  ;;  %v8081_v1 = vrot.slane %v7610_v37, 7  ;;  %v7612_v4 = vpop.f32.mrb[27].mxu0  ;;  %v8201_v62 = vrot.slane %v7946_v36, 1  ;;  %v10629_v56 = vpop.f32.mrb[58].mxu1 }
 0x847   : > { %v8155_v22 = vadd.f32 %v8134_v24, %v7608_v52  ;;  %v7949_v6 = vpop.f32.mrb[59].mxu1 }
 0x848   : > { %v8133_v8 = vsel %vm1567_vm0, %v8080_v10, %v8081_v1  ;;  %v8202_v41 = vrot.slane %v7949_v6, 1 }
 0x849   : > { %v8267_v16 = vadd.f32 %v8246_v58, %v8155_v22  ;;  %v8156_v7 = vadd.f32 %v8133_v8, %v7612_v4 }
 0x84a   : > { %v15130_v11 = vsel %vm1680_vm1, %v8201_v62, %v8202_v41  ;;  %v15134_v59 = vsel %vm1680_vm1, %v8202_v41, %v8203_v15 }
 0x84b   : > { %v15137_v12 = vadd.f32 %v8267_v16, %v14840_v23  ;;  %v8268_v45 = vadd.f32 %v8245_v54, %v8156_v7  ;;  %v7616_v52 = vpop.f32.mrb[28].mxu0 }
 0x84c   : > { %v7617_v37 = vpop.f32.mrb[29].mxu0  ;;  %v10632_v36 = vpop.f32.mrb[60].mxu1 }
 0x84d   : > { %v15140_v10 = vadd.f32 %v8268_v45, %v14843_v17  ;;  %v7618_v58 = vpop.f32.mrb[30].mxu0  ;;  %v7961_v24 = vpop.f32.mrb[61].mxu1  ;;  %v8206_v4 = vrot.slane %v10632_v36, 1 }
 0x84e   : > { %v7620_v1 = vpop.f32.mrb[31].mxu0  ;;  %v8204_v62 = vrot.slane %v7961_v24, 1  ;;  %v10633_v56 = vpop.f32.mrb[62].mxu1  ;;  %v8082_v8 = vrot.slane %v7618_v58, 7 }
 0x84f   : > { %v7964_v22 = vpop.f32.mrb[63].mxu1 }
 0x850   : > { %v8205_v6 = vrot.slane %v7964_v22, 1 }
 0x852   : > { %v15144_v15 = vsel %vm1680_vm1, %v8204_v62, %v8205_v6  ;;  %v15148_v23 = vsel %vm1680_vm1, %v8205_v6, %v8206_v4 }
 0x853   : > { %v7623_v54 = vpop.f32.mrb[32].mxu0 }
 0x854   : > { %v8083_v17 = vrot.slane %v7623_v54, 7  ;;  %v7625_v41 = vpop.f32.mrb[33].mxu0  ;;  %v10636_v16 = vpop.f32.mrb[64].mxu1 }
 0x855   : > { %v7627_v7 = vpop.f32.mrb[34].mxu0  ;;  %v7976_v45 = vpop.f32.mrb[65].mxu1  ;;  %v8209_v24 = vrot.slane %v10636_v16, 1 }
 0x856   : > { %v8132_v52 = vsel %vm1567_vm0, %v8082_v8, %v8083_v17  ;;  %v8084_v37 = vrot.slane %v7627_v7, 7  ;;  %v7629_v36 = vpop.f32.mrb[35].mxu0  ;;  %v8207_v1 = vrot.slane %v7976_v45, 1  ;;  %v10637_v62 = vpop.f32.mrb[66].mxu1 }
 0x857   : > { %v8157_v56 = vadd.f32 %v8132_v52, %v7625_v41  ;;  %v7979_v22 = vpop.f32.mrb[67].mxu1 }
 0x858   : > { %v8131_v4 = vsel %vm1567_vm0, %v8083_v17, %v8084_v37  ;;  %v8208_v6 = vrot.slane %v7979_v22, 1 }
 0x859   : > { %v8269_v58 = vadd.f32 %v15104_v60, %v8157_v56  ;;  %v8158_v54 = vadd.f32 %v8131_v4, %v7629_v36 }
 0x85a   : > { %v15157_v51 = vsel %vm1680_vm1, %v8207_v1, %v8208_v6  ;;  %v15161_v8 = vsel %vm1680_vm1, %v8208_v6, %v8209_v24 }
 0x85b   : > { %v15164_v16 = vadd.f32 %v8269_v58, %v14865_v21  ;;  %v8270_v41 = vadd.f32 %v15108_v43, %v8158_v54  ;;  %v7633_v7 = vpop.f32.mrb[36].mxu0 }
 0x85c   : > { %v7634_v45 = vpop.f32.mrb[37].mxu0  ;;  %v10640_v17 = vpop.f32.mrb[68].mxu1 }
 0x85d   : > { %v15168_v52 = vadd.f32 %v8270_v41, %v14868_v34  ;;  %v7635_v60 = vpop.f32.mrb[38].mxu0  ;;  %v7991_v37 = vpop.f32.mrb[69].mxu1  ;;  %v8212_v1 = vrot.slane %v10640_v17, 1 }
 0x85e   : > { %v7637_v36 = vpop.f32.mrb[39].mxu0  ;;  %v8210_v62 = vrot.slane %v7991_v37, 1  ;;  %v10641_v56 = vpop.f32.mrb[70].mxu1  ;;  %v8085_v6 = vrot.slane %v7635_v60, 7 }
 0x85f   : > { %16393 = vst [vmem:[#allocation60_spill] sm:$0xff] %v15168_v52  ;;  %v7994_v22 = vpop.f32.mrb[71].mxu1 }
 0x860   : > { %v8211_v24 = vrot.slane %v7994_v22, 1 }
 0x862   : > { %v15172_v21 = vsel %vm1680_vm1, %v8210_v62, %v8211_v24  ;;  %v15176_v43 = vsel %vm1680_vm1, %v8211_v24, %v8212_v1 }
 0x863   : > { %v7640_v4 = vpop.f32.mrb[40].mxu0 }
 0x864   : > { %v8086_v34 = vrot.slane %v7640_v4, 7  ;;  %v7642_v58 = vpop.f32.mrb[41].mxu0  ;;  %v10644_v54 = vpop.f32.mrb[72].mxu1 }
 0x865   : > { %v7644_v41 = vpop.f32.mrb[42].mxu0  ;;  %v8006_v7 = vpop.f32.mrb[73].mxu1  ;;  %v8215_v36 = vrot.slane %v10644_v54, 1 }
 0x866   : > { %v8130_v45 = vsel %vm1567_vm0, %v8085_v6, %v8086_v34  ;;  %v8087_v17 = vrot.slane %v7644_v41, 7  ;;  %v7646_v37 = vpop.f32.mrb[43].mxu0  ;;  %v8213_v56 = vrot.slane %v8006_v7, 1  ;;  %v10645_v62 = vpop.f32.mrb[74].mxu1 }
 0x867   : > { %v8159_v22 = vadd.f32 %v8130_v45, %v7642_v58  ;;  %v8009_v30 = vpop.f32.mrb[75].mxu1 }
 0x868   : > { %v8129_v1 = vsel %vm1567_vm0, %v8086_v34, %v8087_v17  ;;  %v8214_v24 = vrot.slane %v8009_v30, 1 }
 0x869   : > { %v8271_v60 = vadd.f32 %v15118_v33, %v8159_v22  ;;  %v8160_v4 = vadd.f32 %v8129_v1, %v7646_v37 }
 0x86a   : > { %v15185_v52 = vsel %vm1680_vm1, %v8213_v56, %v8214_v24  ;;  %v15189_v6 = vsel %vm1680_vm1, %v8214_v24, %v8215_v36 }
 0x86b   : > { %v15192_v54 = vadd.f32 %v8271_v60, %v14879_v48  ;;  %v8272_v58 = vadd.f32 %v15122_v5, %v8160_v4  ;;  %v7650_v41 = vpop.f32.mrb[44].mxu0 }
 0x86c   : > { %v7651_v7 = vpop.f32.mrb[45].mxu0  ;;  %v10648_v34 = vpop.f32.mrb[76].mxu1 }
 0x86d   : > { %16394 = vst [vmem:[#allocation61_spill] sm:$0xff] %v15192_v54  ;;  %v15196_v30 = vadd.f32 %v8272_v58, %v14882_v49  ;;  %v7652_v33 = vpop.f32.mrb[46].mxu0  ;;  %v8021_v45 = vpop.f32.mrb[77].mxu1  ;;  %v8218_v37 = vrot.slane %v10648_v34, 1 }
 0x86e   : > { %v7654_v17 = vpop.f32.mrb[47].mxu0  ;;  %v8216_v56 = vrot.slane %v8021_v45, 1  ;;  %v10649_v62 = vpop.f32.mrb[78].mxu1  ;;  %v8088_v24 = vrot.slane %v7652_v33, 7 }
 0x86f   : > { %16395 = vst [vmem:[#allocation62_spill] sm:$0xff] %v15196_v30  ;;  %v8024_v22 = vpop.f32.mrb[79].mxu1 }
 0x870   : > { %v8217_v36 = vrot.slane %v8024_v22, 1 }
 0x872   : > { %v15200_v48 = vsel %vm1680_vm1, %v8216_v56, %v8217_v36  ;;  %v15204_v5 = vsel %vm1680_vm1, %v8217_v36, %v8218_v37 }
 0x873   : > { %v7657_v1 = vpop.f32.mrb[48].mxu0 }
 0x874   : > { %v8089_v49 = vrot.slane %v7657_v1, 7  ;;  %v7659_v60 = vpop.f32.mrb[49].mxu0  ;;  %v10652_v4 = vpop.f32.mrb[80].mxu1 }
 0x875   : > { %v7661_v58 = vpop.f32.mrb[50].mxu0  ;;  %v8036_v41 = vpop.f32.mrb[81].mxu1  ;;  %v8221_v17 = vrot.slane %v10652_v4, 1 }
 0x876   : > { %v8128_v7 = vsel %vm1567_vm0, %v8088_v24, %v8089_v49  ;;  %v8090_v34 = vrot.slane %v7661_v58, 7  ;;  %v7663_v45 = vpop.f32.mrb[51].mxu0  ;;  %v8219_v62 = vrot.slane %v8036_v41, 1  ;;  %v10653_v56 = vpop.f32.mrb[82].mxu1 }
 0x877   : > { %v8161_v22 = vadd.f32 %v8128_v7, %v7659_v60  ;;  %v8039_v30 = vpop.f32.mrb[83].mxu1 }
 0x878   : > { %v8127_v37 = vsel %vm1567_vm0, %v8089_v49, %v8090_v34  ;;  %v8220_v36 = vrot.slane %v8039_v30, 1 }
 0x879   : > { %v8273_v33 = vadd.f32 %v15130_v11, %v8161_v22  ;;  %v8162_v1 = vadd.f32 %v8127_v37, %v7663_v45 }
 0x87a   : > { %v15213_v54 = vsel %vm1680_vm1, %v8219_v62, %v8220_v36  ;;  %v15217_v24 = vsel %vm1680_vm1, %v8220_v36, %v8221_v17 }
 0x87b   : > { %v15220_v4 = vadd.f32 %v8273_v33, %v14901_v13  ;;  %v8274_v60 = vadd.f32 %v15134_v59, %v8162_v1  ;;  %v7667_v58 = vpop.f32.mrb[52].mxu0 }
 0x87c   : > { %v7668_v41 = vpop.f32.mrb[53].mxu0  ;;  %v10656_v49 = vpop.f32.mrb[84].mxu1 }
 0x87d   : > { %v15224_v30 = vadd.f32 %v8274_v60, %v14904_v46  ;;  %v7669_v11 = vpop.f32.mrb[54].mxu0  ;;  %v8051_v7 = vpop.f32.mrb[85].mxu1  ;;  %v8224_v45 = vrot.slane %v10656_v49, 1 }
 0x87e   : > { %v7671_v34 = vpop.f32.mrb[55].mxu0  ;;  %v8222_v62 = vrot.slane %v8051_v7, 1  ;;  %v10657_v56 = vpop.f32.mrb[86].mxu1  ;;  %v8091_v36 = vrot.slane %v7669_v11, 7 }
 0x87f   : > { %16396 = vst [vmem:[#allocation63_spill] sm:$0xff] %v15224_v30  ;;  %v8054_v22 = vpop.f32.mrb[87].mxu1 }
 0x880   : > { %v8223_v17 = vrot.slane %v8054_v22, 1 }
 0x882   : > { %v15228_v13 = vsel %vm1680_vm1, %v8222_v62, %v8223_v17  ;;  %v15232_v59 = vsel %vm1680_vm1, %v8223_v17, %v8224_v45 }
 0x883   : > { %v7674_v37 = vpop.f32.mrb[56].mxu0 }
 0x884   : > { %v8092_v46 = vrot.slane %v7674_v37, 7  ;;  %v7676_v33 = vpop.f32.mrb[57].mxu0 }
 0x885   : > { %v7678_v1 = vpop.f32.mrb[58].mxu0 }
 0x886   : > { %v8126_v60 = vsel %vm1567_vm0, %v8091_v36, %v8092_v46  ;;  %v8093_v58 = vrot.slane %v7678_v1, 7  ;;  %v7680_v41 = vpop.f32.mrb[59].mxu0 }
 0x887   : > { %v8163_v49 = vadd.f32 %v8126_v60, %v7676_v33 }
 0x888   : > { %v8125_v7 = vsel %vm1567_vm0, %v8092_v46, %v8093_v58 }
 0x889   : > { %v8275_v34 = vadd.f32 %v15144_v15, %v8163_v49  ;;  %v8164_v62 = vadd.f32 %v8125_v7, %v7680_v41 }
 0x88b   : > { %v15240_v45 = vadd.f32 %v8275_v34, %v14915_v20  ;;  %v8276_v11 = vadd.f32 %v15148_v23, %v8164_v62  ;;  %v7684_v56 = vpop.f32.mrb[60].mxu0 }
 0x88c   : > { %v7685_v22 = vpop.f32.mrb[61].mxu0 }
 0x88d   : > { %v15244_v17 = vadd.f32 %v8276_v11, %v14918_v38  ;;  %v7686_v37 = vpop.f32.mrb[62].mxu0 }
 0x88e   : > { %v7688_v36 = vpop.f32.mrb[63].mxu0  ;;  %v8094_v33 = vrot.slane %v7686_v37, 7 }
 0x893   : > { %v7691_v1 = vpop.f32.mrb[64].mxu0 }
 0x894   : > { %v8095_v60 = vrot.slane %v7691_v1, 7  ;;  %v7693_v30 = vpop.f32.mrb[65].mxu0 }
 0x895   : > { %v7695_v46 = vpop.f32.mrb[66].mxu0 }
 0x896   : > { %v8124_v15 = vsel %vm1567_vm0, %v8094_v33, %v8095_v60  ;;  %v8096_v58 = vrot.slane %v7695_v46, 7  ;;  %v7697_v20 = vpop.f32.mrb[67].mxu0 }
 0x897   : > { %v8165_v41 = vadd.f32 %v8124_v15, %v7693_v30 }
 0x898   : > { %v8123_v23 = vsel %vm1567_vm0, %v8095_v60, %v8096_v58 }
 0x899   : > { %v8277_v49 = vadd.f32 %v15157_v51, %v8165_v41  ;;  %v8166_v38 = vadd.f32 %v8123_v23, %v7697_v20 }
 0x89b   : > { %v15252_v7 = vadd.f32 %v8277_v49, %v14933_v28  ;;  %v8278_v34 = vadd.f32 %v15161_v8, %v8166_v38  ;;  %v7701_v62 = vpop.f32.mrb[68].mxu0 }
 0x89c   : > { %v7702_v11 = vpop.f32.mrb[69].mxu0 }
 0x89d   : > { %v15256_v56 = vadd.f32 %v8278_v34, %v14936_v35  ;;  %v7703_v22 = vpop.f32.mrb[70].mxu0 }
 0x89e   : > { %v7705_v37 = vpop.f32.mrb[71].mxu0  ;;  %v8097_v30 = vrot.slane %v7703_v22, 7 }
 0x8a3   : > { %v7708_v36 = vpop.f32.mrb[72].mxu0 }
 0x8a4   : > { %v8098_v1 = vrot.slane %v7708_v36, 7  ;;  %v7710_v33 = vpop.f32.mrb[73].mxu0 }
 0x8a5   : > { %v7712_v60 = vpop.f32.mrb[74].mxu0 }
 0x8a6   : > { %v8122_v51 = vsel %vm1567_vm0, %v8097_v30, %v8098_v1  ;;  %v8099_v46 = vrot.slane %v7712_v60, 7  ;;  %v7714_v28 = vpop.f32.mrb[75].mxu0 }
 0x8a7   : > { %v8167_v15 = vadd.f32 %v8122_v51, %v7710_v33 }
 0x8a8   : > { %v8121_v8 = vsel %vm1567_vm0, %v8098_v1, %v8099_v46 }
 0x8a9   : > { %v8279_v58 = vadd.f32 %v15172_v21, %v8167_v15  ;;  %v8168_v35 = vadd.f32 %v8121_v8, %v7714_v28 }
 0x8ab   : > { %v15264_v20 = vadd.f32 %v8279_v58, %v14947_v14  ;;  %v8280_v41 = vadd.f32 %v15176_v43, %v8168_v35  ;;  %v7718_v23 = vpop.f32.mrb[76].mxu0 }
 0x8ac   : > { %v7719_v49 = vpop.f32.mrb[77].mxu0 }
 0x8ad   : > { %v15268_v38 = vadd.f32 %v8280_v41, %v14950_v42  ;;  %v7720_v34 = vpop.f32.mrb[78].mxu0 }
 0x8ae   : > { %v7722_v62 = vpop.f32.mrb[79].mxu0  ;;  %v8100_v22 = vrot.slane %v7720_v34, 7 }
 0x8b3   : > { %v7725_v11 = vpop.f32.mrb[80].mxu0 }
 0x8b4   : > { %v8101_v37 = vrot.slane %v7725_v11, 7  ;;  %v7727_v36 = vpop.f32.mrb[81].mxu0 }
 0x8b5   : > { %v7729_v30 = vpop.f32.mrb[82].mxu0 }
 0x8b6   : > { %v8120_v21 = vsel %vm1567_vm0, %v8100_v22, %v8101_v37  ;;  %v8102_v1 = vrot.slane %v7729_v30, 7  ;;  %v7731_v14 = vpop.f32.mrb[83].mxu0 }
 0x8b7   : > { %v8169_v33 = vadd.f32 %v8120_v21, %v7727_v36 }
 0x8b8   : > { %v8119_v43 = vsel %vm1567_vm0, %v8101_v37, %v8102_v1 }
 0x8b9   : > { %v8281_v60 = vadd.f32 %v15185_v52, %v8169_v33  ;;  %v8170_v42 = vadd.f32 %v8119_v43, %v7731_v14 }
 0x8bb   : > { %v15276_v51 = vadd.f32 %v8281_v60, %v14963_v55  ;;  %v8282_v46 = vadd.f32 %v15189_v6, %v8170_v42  ;;  %v7735_v28 = vpop.f32.mrb[84].mxu0 }
 0x8bc   : > { %v7736_v15 = vpop.f32.mrb[85].mxu0 }
 0x8bd   : > { %v15280_v8 = vadd.f32 %v8282_v46, %v14966_v31  ;;  %v7737_v58 = vpop.f32.mrb[86].mxu0 }
 0x8be   : > { %v7739_v35 = vpop.f32.mrb[87].mxu0  ;;  %v8103_v23 = vrot.slane %v7737_v58, 7 }
 0x8c3   : > { %v7742_v41 = vpop.f32.mrb[88].mxu0 }
 0x8c4   : > { %v8104_v49 = vrot.slane %v7742_v41, 7  ;;  %v7744_v34 = vpop.f32.mrb[89].mxu0 }
 0x8c5   : > { %v7746_v62 = vpop.f32.mrb[90].mxu0 }
 0x8c6   : > { %v8118_v52 = vsel %vm1567_vm0, %v8103_v23, %v8104_v49  ;;  %v8105_v11 = vrot.slane %v7746_v62, 7  ;;  %v7748_v55 = vpop.f32.mrb[91].mxu0 }
 0x8c7   : > { %v8171_v22 = vadd.f32 %v8118_v52, %v7744_v34 }
 0x8c8   : > { %v8117_v6 = vsel %vm1567_vm0, %v8104_v49, %v8105_v11 }
 0x8c9   : > { %v8283_v37 = vadd.f32 %v15200_v48, %v8171_v22  ;;  %v8172_v31 = vadd.f32 %v8117_v6, %v7748_v55 }
 0x8cb   : > { %v15288_v36 = vadd.f32 %v8283_v37, %v14975_v26  ;;  %v8284_v30 = vadd.f32 %v15204_v5, %v8172_v31  ;;  %v7752_v21 = vpop.f32.mrb[92].mxu0 }
 0x8cc   : > { %v7753_v1 = vpop.f32.mrb[93].mxu0 }
 0x8cd   : > { %v15292_v14 = vadd.f32 %v8284_v30, %v14978_v3  ;;  %v7754_v33 = vpop.f32.mrb[94].mxu0 }
 0x8ce   : > { %v7756_v43 = vpop.f32.mrb[95].mxu0  ;;  %v8106_v42 = vrot.slane %v7754_v33, 7 }
 0x8d3   : > { %v7759_v60 = vpop.f32.mrb[96].mxu0 }
 0x8d4   : > { %v8107_v46 = vrot.slane %v7759_v60, 7  ;;  %v7761_v28 = vpop.f32.mrb[97].mxu0 }
 0x8d5   : > { %v7763_v15 = vpop.f32.mrb[98].mxu0 }
 0x8d6   : > { %v8116_v48 = vsel %vm1567_vm0, %v8106_v42, %v8107_v46  ;;  %v8108_v58 = vrot.slane %v7763_v15, 7  ;;  %v7765_v26 = vpop.f32.mrb[99].mxu0 }
 0x8d7   : > { %v8173_v35 = vadd.f32 %v8116_v48, %v7761_v28 }
 0x8d8   : > { %v8115_v5 = vsel %vm1567_vm0, %v8107_v46, %v8108_v58 }
 0x8d9   : > { %v8285_v41 = vadd.f32 %v15213_v54, %v8173_v35  ;;  %v8174_v3 = vadd.f32 %v8115_v5, %v7765_v26  ;;  %v16397_v26 = vrot.slane %v15002_v50, 7 }
 0x8db   : > { %v15300_v23 = vadd.f32 %v8285_v41, %v14991_v57  ;;  %v8286_v49 = vadd.f32 %v15217_v24, %v8174_v3  ;;  %v7769_v34 = vpop.f32.mrb[100].mxu0 }
 0x8dc   : > { %v7770_v62 = vpop.f32.mrb[101].mxu0 }
 0x8dd   : > { %v15304_v52 = vadd.f32 %v8286_v49, %v14994_v2  ;;  %v7771_v11 = vpop.f32.mrb[102].mxu0 }
 0x8de   : > { %v7773_v55 = vpop.f32.mrb[103].mxu0  ;;  %v8109_v6 = vrot.slane %v7771_v11, 7 }
 0x8e3   : > { %v7776_v22 = vpop.f32.mrb[104].mxu0 }
 0x8e4   : > { %v8110_v37 = vrot.slane %v7776_v22, 7  ;;  %v7778_v31 = vpop.f32.mrb[105].mxu0 }
 0x8e5   : > { %v7780_v30 = vpop.f32.mrb[106].mxu0 }
 0x8e6   : > { %v8114_v54 = vsel %vm1567_vm0, %v8109_v6, %v8110_v37  ;;  %v8111_v21 = vrot.slane %v7780_v30, 7  ;;  %v7782_v57 = vpop.f32.mrb[107].mxu0 }
 0x8e7   : > { %v8175_v1 = vadd.f32 %v8114_v54, %v7778_v31 }
 0x8e8   : > { %v8113_v24 = vsel %vm1567_vm0, %v8110_v37, %v8111_v21 }
 0x8e9   : > { %v8287_v33 = vadd.f32 %v15228_v13, %v8175_v1  ;;  %v8176_v2 = vadd.f32 %v8113_v24, %v7782_v57 }
 0x8eb   : > { %v15312_v43 = vadd.f32 %v8287_v33, %v15018_v53  ;;  %v8288_v60 = vadd.f32 %v15232_v59, %v8176_v2  ;;  %v7786_v42 = vpop.f32.mrb[108].mxu0  ;;  %v15326_v53 = vld [vmem:[%s16182_s8] ss:$0 sm:$0xff] }
 0x8ec   : > { %v7787_v46 = vpop.f32.mrb[109].mxu0  ;;  %v15336_v50 = vadd.f32 %v15326_v53, %v15056_v29  ;;  %v15345_v41 = vadd.f32 %v15326_v53, %v15059_v25  ;;  %v15355_v29 = vadd.f32 %v15326_v53, %v15071_v61  ;;  %v15362_v34 = vadd.f32 %v15326_v53, %v15074_v19 }
 0x8ed   : > { %v15316_v28 = vadd.f32 %v8288_v60, %v15021_v63  ;;  %v7788_v15 = vpop.f32.mrb[110].mxu0  ;;  %v15331_v63 = vadd.f32 %v15326_v53, %v15047_v47  ;;  %v15369_v61 = vadd.f32 %v15326_v53, %v15089_v32  ;;  %v15376_v19 = vadd.f32 %v15326_v53, %v15092_v18 }
 0x8ee   : > { %v8112_v48 = vrot.slane %v7788_v15, 7  ;;  %v7790_v58 = vpop.f32.mrb[111].mxu0  ;;  %v8401_v47 = vmul.f32 %v15336_v50, %v15336_v50  ;;  %v8402_v25 = vmul.f32 %v15345_v41, %v15345_v41  ;;  %v8403_v55 = vmul.f32 %v15355_v29, %v15355_v29 }
 0x8ef   : > { %v8404_v37 = vmul.f32 %v15362_v34, %v15362_v34  ;;  %v8405_v54 = vmul.f32 %v15369_v61, %v15369_v61  ;;  %v15383_v32 = vadd.f32 %v15326_v53, %v15111_v27  ;;  %v8406_v1 = vmul.f32 %v15376_v19, %v15376_v19 }
 0x8f0   : > { %v8144_v35 = vsel %vm1567_vm0, %v8112_v48, %v16397_v26  ;;  %v15390_v18 = vadd.f32 %v15326_v53, %v15114_v39  ;;  %v15397_v27 = vadd.f32 %v15326_v53, %v15137_v12  ;;  %v15404_v39 = vadd.f32 %v15326_v53, %v15140_v10 }
 0x8f1   : > { %v8145_v13 = vadd.f32 %v8144_v35, %v15004_v44  ;;  %v8400_v44 = vmul.f32 %v15331_v63, %v15331_v63  ;;  %v8407_v2 = vmul.f32 %v15383_v32, %v15383_v32  ;;  %v15411_v12 = vadd.f32 %v15326_v53, %v15164_v16 }
 0x8f2   : > { %v8408_v46 = vmul.f32 %v15390_v18, %v15390_v18  ;;  %v8409_v58 = vmul.f32 %v15397_v27, %v15397_v27 }
 0x8f3   : > { %v8257_v59 = vadd.f32 %v15044_v9, %v8145_v13  ;;  %v8410_v13 = vmul.f32 %v15404_v39, %v15404_v39 }
 0x8f5   : > { %v8289_v5 = vadd.f32 %v8257_v59, %v15032_v0  ;;  %v16398_v59 = vld [vmem:[#allocation60_spill] sm:$0xff] }
 0x8f6   : > { %v15418_v10 = vadd.f32 %v15326_v53, %v16398_v59 }
 0x8f7   : > { %v15339_v40 = vadd.f32 %v15326_v53, %v8289_v5 }
 0x8f9   : > { %v8362_v9 = vadd.f32 %v15331_v63, %v15339_v40  ;;  %v8399_v0 = vmul.f32 %v15339_v40, %v15339_v40 }
 0x8fb   : > { %v8363_v3 = vadd.f32 %v8362_v9, %v15336_v50  ;;  %v8431_v49 = vadd.f32 %v8400_v44, %v8399_v0  ;;  %v8411_v9 = vmul.f32 %v15411_v12, %v15411_v12  ;;  %v16399_v0 = vld [vmem:[#allocation61_spill] sm:$0xff] }
 0x8fc   : > { %v15425_v16 = vadd.f32 %v15326_v53, %v16399_v0 }
 0x8fd   : > { %v8364_v62 = vadd.f32 %v8363_v3, %v15345_v41  ;;  %v8432_v11 = vadd.f32 %v8431_v49, %v8401_v47  ;;  %v8412_v49 = vmul.f32 %v15418_v10, %v15418_v10 }
 0x8ff   : > { %v8365_v22 = vadd.f32 %v8364_v62, %v15355_v29  ;;  %v8433_v6 = vadd.f32 %v8432_v11, %v8402_v25  ;;  %v16400_v25 = vld [vmem:[#allocation62_spill] sm:$0xff] }
 0x900   : > { %v15432_v62 = vadd.f32 %v15326_v53, %v16400_v25 }
 0x901   : > { %v8366_v31 = vadd.f32 %v8365_v22, %v15362_v34  ;;  %v8434_v30 = vadd.f32 %v8433_v6, %v8403_v55  ;;  %v8413_v22 = vmul.f32 %v15425_v16, %v15425_v16  ;;  %v15439_v6 = vadd.f32 %v15326_v53, %v15220_v4 }
 0x902   : > { %v15453_v4 = vadd.f32 %v15326_v53, %v15240_v45  ;;  %v15467_v45 = vadd.f32 %v15326_v53, %v15252_v7  ;;  %v15481_v7 = vadd.f32 %v15326_v53, %v15264_v20 }
 0x903   : > { %v8367_v21 = vadd.f32 %v8366_v31, %v15369_v61  ;;  %v8435_v57 = vadd.f32 %v8434_v30, %v8404_v37  ;;  %v8414_v30 = vmul.f32 %v15432_v62, %v15432_v62 }
 0x905   : > { %v8368_v24 = vadd.f32 %v8367_v21, %v15376_v19  ;;  %v8436_v33 = vadd.f32 %v8435_v57, %v8405_v54  ;;  %v16401_v54 = vld [vmem:[#allocation63_spill] sm:$0xff] }
 0x906   : > { %v15446_v21 = vadd.f32 %v15326_v53, %v16401_v54 }
 0x907   : > { %v8369_v60 = vadd.f32 %v8368_v24, %v15383_v32  ;;  %v8437_v42 = vadd.f32 %v8436_v33, %v8406_v1  ;;  %v8415_v24 = vmul.f32 %v15439_v6, %v15439_v6 }
 0x909   : > { %v8370_v15 = vadd.f32 %v8369_v60, %v15390_v18  ;;  %v8438_v48 = vadd.f32 %v8437_v42, %v8407_v2  ;;  %v8416_v60 = vmul.f32 %v15446_v21, %v15446_v21  ;;  %v15460_v42 = vadd.f32 %v15326_v53, %v15244_v17 }
 0x90a   : > { %v15474_v17 = vadd.f32 %v15326_v53, %v15256_v56 }
 0x90b   : > { %v8371_v26 = vadd.f32 %v8370_v15, %v15397_v27  ;;  %v8439_v35 = vadd.f32 %v8438_v48, %v8408_v46  ;;  %v8417_v48 = vmul.f32 %v15453_v4, %v15453_v4 }
 0x90c   : > { %v8420_v0 = vmul.f32 %v15474_v17, %v15474_v17 }
 0x90d   : > { %v8372_v5 = vadd.f32 %v8371_v26, %v15404_v39  ;;  %v8440_v44 = vadd.f32 %v8439_v35, %v8409_v58  ;;  %v8418_v35 = vmul.f32 %v15460_v42, %v15460_v42 }
 0x90f   : > { %v8373_v47 = vadd.f32 %v8372_v5, %v15411_v12  ;;  %v8441_v3 = vadd.f32 %v8440_v44, %v8410_v13  ;;  %v8419_v5 = vmul.f32 %v15467_v45, %v15467_v45 }
 0x911   : > { %v8374_v11 = vadd.f32 %v8373_v47, %v15418_v10  ;;  %v8442_v55 = vadd.f32 %v8441_v3, %v8411_v9  ;;  %v8421_v3 = vmul.f32 %v15481_v7, %v15481_v7 }
 0x913   : > { %v8375_v37 = vadd.f32 %v8374_v11, %v15425_v16  ;;  %v8443_v31 = vadd.f32 %v8442_v55, %v8412_v49  ;;  %v15491_v49 = vadd.f32 %v15326_v53, %v15268_v38  ;;  %v15496_v11 = vadd.f32 %v15326_v53, %v15276_v51 }
 0x915   : > { %v8376_v57 = vadd.f32 %v8375_v37, %v15432_v62  ;;  %v8444_v1 = vadd.f32 %v8443_v31, %v8413_v22  ;;  %v8422_v37 = vmul.f32 %v15491_v49, %v15491_v49  ;;  %v15503_v31 = vadd.f32 %v15326_v53, %v15280_v8 }
 0x916   : > { %v15520_v8 = vadd.f32 %v15326_v53, %v15300_v23 }
 0x917   : > { %v8377_v33 = vadd.f32 %v8376_v57, %v15439_v6  ;;  %v8445_v2 = vadd.f32 %v8444_v1, %v8414_v30  ;;  %v15508_v30 = vadd.f32 %v15326_v53, %v15288_v36  ;;  %v8423_v57 = vmul.f32 %v15496_v11, %v15496_v11 }
 0x918   : > { %v15515_v1 = vadd.f32 %v15326_v53, %v15292_v14  ;;  %v15532_v14 = vadd.f32 %v15326_v53, %v15312_v43 }
 0x919   : > { %v8378_v46 = vadd.f32 %v8377_v33, %v15446_v21  ;;  %v8446_v15 = vadd.f32 %v8445_v2, %v8415_v24  ;;  %v8424_v2 = vmul.f32 %v15503_v31, %v15503_v31 }
 0x91b   : > { %v8379_v58 = vadd.f32 %v8378_v46, %v15453_v4  ;;  %v8447_v26 = vadd.f32 %v8446_v15, %v8416_v60  ;;  %v15527_v60 = vadd.f32 %v15326_v53, %v15304_v52 }
 0x91d   : > { %v8380_v13 = vadd.f32 %v8379_v58, %v15460_v42  ;;  %v8448_v59 = vadd.f32 %v8447_v26, %v8417_v48  ;;  %v8425_v48 = vmul.f32 %v15508_v30, %v15508_v30  ;;  %v15539_v58 = vadd.f32 %v15326_v53, %v15316_v28 }
 0x91e   : > { %v8428_v28 = vmul.f32 %v15527_v60, %v15527_v60 }
 0x91f   : > { %v8381_v44 = vadd.f32 %v8380_v13, %v15467_v45  ;;  %v8449_v9 = vadd.f32 %v8448_v59, %v8418_v35  ;;  %v8426_v13 = vmul.f32 %v15515_v1, %v15515_v1 }
 0x921   : > { %v8382_v47 = vadd.f32 %v8381_v44, %v15474_v17  ;;  %v8450_v56 = vadd.f32 %v8449_v9, %v8419_v5  ;;  %v8427_v44 = vmul.f32 %v15520_v8, %v15520_v8 }
 0x923   : > { %v8383_v25 = vadd.f32 %v8382_v47, %v15481_v7  ;;  %v8451_v20 = vadd.f32 %v8450_v56, %v8420_v0 }
 0x925   : > { %v8384_v55 = vadd.f32 %v8383_v25, %v15491_v49  ;;  %v8452_v22 = vadd.f32 %v8451_v20, %v8421_v3  ;;  %v8429_v25 = vmul.f32 %v15532_v14, %v15532_v14  ;;  %v16402_v20 = vld [vmem:[#allocation35_spill] sm:$0xff] }
 0x927   : > { %v8385_v38 = vadd.f32 %v8384_v55, %v15496_v11  ;;  %v8453_v51 = vadd.f32 %v8452_v22, %v8422_v37  ;;  %v16403_v55 = vmov 0.0   ;;  %v16404_v22 = vmov 0.0|0.0  }
 0x929   : > { %v8386_v54 = vadd.f32 %v8385_v38, %v15503_v31  ;;  %v8454_v36 = vadd.f32 %v8453_v51, %v8423_v57  ;;  %v8430_v38 = vmul.f32 %v15539_v58, %v15539_v58  ;;  %v16406_v57 = vld [vmem:[#allocation52_spill] sm:$0xff] }
 0x92b   : > { %v8387_v24 = vadd.f32 %v8386_v54, %v15508_v30  ;;  %v8455_v23 = vadd.f32 %v8454_v36, %v8424_v2  ;;  %v16405_v54 = vld [vmem:[#allocation44_spill] sm:$0xff]  ;;  %v16408_v2 = vld [vmem:[#allocation58_spill] sm:$0xff] }
 0x92d   : > { %v8388_v33 = vadd.f32 %v8387_v24, %v15515_v1  ;;  %v8456_v35 = vadd.f32 %v8455_v23, %v8425_v48  ;;  %v16410_v48 = vld [vmem:[#allocation20_spill] sm:$0xff] }
 0x92f   : > { %v8389_v46 = vadd.f32 %v8388_v33, %v15520_v8  ;;  %v8457_v5 = vadd.f32 %v8456_v35, %v8426_v13  ;;  %v16407_v33 = vld [vmem:[#allocation57_spill] sm:$0xff] }
 0x931   : > { %v8390_v15 = vadd.f32 %v8389_v46, %v15527_v60  ;;  %v8458_v47 = vadd.f32 %v8457_v5, %v8427_v44 }
 0x933   : > { %v8391_v26 = vadd.f32 %v8390_v15, %v15532_v14  ;;  %v8459_v3 = vadd.f32 %v8458_v47, %v8428_v28  ;;  %v16409_v15 = vld [vmem:[#allocation59_spill] sm:$0xff]  ;;  %v16412_v28 = vld [vmem:[#allocation22_spill] sm:$0xff] }
 0x935   : > { %v8392_v52 = vadd.f32 %v8391_v26, %v15539_v58  ;;  %v8460_v37 = vadd.f32 %v8459_v3, %v8429_v25 }
 0x937   : > { %v8393_v43 = vrot.slane %v8392_v52, 4  ;;  %v8461_v51 = vadd.f32 %v8460_v37, %v8430_v38 }
 0x939   : > { %v8394_v59 = vadd.f32 %v8393_v43, %v8392_v52  ;;  %v8462_v24 = vrot.slane %v8461_v51, 4  ;;  %v16411_v52 = vld [vmem:[#allocation21_spill] sm:$0xff] }
 0x93b   : > { %v8395_v9 = vrot.slane %v8394_v59, 2  ;;  %v8463_v36 = vadd.f32 %v8462_v24, %v8461_v51 }
 0x93d   : > { %v8396_v0 = vadd.f32 %v8395_v9, %v8394_v59  ;;  %v8464_v46 = vrot.slane %v8463_v36, 2 }
 0x93f   : > { %v8397_v53 = vrot.slane %v8396_v0, 1  ;;  %v8465_v23 = vadd.f32 %v8464_v46, %v8463_v36 }
 0x941   : > { %v8398_v56 = vadd.f32 %v8397_v53, %v8396_v0  ;;  %v8466_v26 = vrot.slane %v8465_v23, 1 }
 0x943   : > { %10691 = vmatmul.mubr.f32.vlgmr.msra.gmra.mrb[88].mxu1 %v8398_v56  ;;  %v8467_v35 = vadd.f32 %v8466_v26, %v8465_v23 }
 0x944   : > { %10802 = vmatpush3.bf16.msra.mxu1 %v16402_v20  ;;  %10725 = vmatprep.mubr.msk.f32.mxu1 %vm11730_vm2, %v16403_v55 }
 0x945   : > { %10803 = vmatprep.subr.bf16.mxu1 %v16404_v22 }
 0x948   : > { %10805 = vmatpush3.bf16.msra.mxu1 %v16405_v54 }
 0x949   : > { %10806 = vmatprep.subr.bf16.mxu1 %v16404_v22 }
 0x94c   : > { %10808 = vmatpush3.bf16.msra.mxu1 %v16406_v57 }
 0x94d   : > { %10809 = vmatprep.subr.bf16.mxu1 %v16404_v22 }
 0x950   : > { %10811 = vmatpush3.bf16.msra.mxu1 %v16407_v33 }
 0x951   : > { %10812 = vmatprep.subr.bf16.mxu1 %v16404_v22 }
 0x954   : > { %10814 = vmatpush3.bf16.msra.mxu1 %v16408_v2 }
 0x955   : > { %10815 = vmatprep.subr.bf16.mxu1 %v16404_v22 }
 0x958   : > { %10817 = vmatpush3.bf16.msra.mxu1 %v16409_v15 }
 0x959   : > { %10818 = vmatprep.subr.bf16.mxu1 %v16404_v22 }
 0x95c   : > { %10820 = vmatpush3.bf16.msra.mxu1 %v16410_v48 }
 0x95d   : > { %10821 = vmatprep.subr.bf16.mxu1 %v16404_v22 }
 0x960   : > { %10823 = vmatpush3.bf16.msra.mxu1 %v16411_v52 }
 0x963   : > { %10726 = vmatmul.mubr.f32.vlgmr.msra.gmra.mrb[90].mxu1 %v8467_v35 }
 0xa16   : > { %v8534_v13 = vpop.f32.mrb[88].mxu1 }
 0xa17   : > { %v10692_v43 = vpop.f32.mrb[89].mxu1  ;;  %v8608_v59 = vmul.f32 %v8534_v13, %v8534_v13  ;;  %v15571_v53 = vrot.slane %v8534_v13, %v16412_v28 }
 0xa19   : > { %v8615_v56 = vsub.f32 %v15339_v40, %v15571_v53  ;;  %v8616_v3 = vsub.f32 %v15331_v63, %v15571_v53  ;;  %v8617_v25 = vsub.f32 %v15336_v50, %v15571_v53  ;;  %v8618_v20 = vsub.f32 %v15345_v41, %v15571_v53 }
 0xa1a   : > { %v8619_v55 = vsub.f32 %v15355_v29, %v15571_v53  ;;  %v8620_v22 = vsub.f32 %v15362_v34, %v15571_v53  ;;  %v8621_v37 = vsub.f32 %v15369_v61, %v15571_v53  ;;  %v8622_v40 = vsub.f32 %v15376_v19, %v15571_v53 }
 0xa1b   : > { %v8623_v63 = vsub.f32 %v15383_v32, %v15571_v53  ;;  %v8624_v50 = vsub.f32 %v15390_v18, %v15571_v53  ;;  %v8625_v41 = vsub.f32 %v15397_v27, %v15571_v53  ;;  %v8626_v29 = vsub.f32 %v15404_v39, %v15571_v53 }
 0xa1c   : > { %v8627_v34 = vsub.f32 %v15411_v12, %v15571_v53  ;;  %v8628_v61 = vsub.f32 %v15418_v10, %v15571_v53  ;;  %v8629_v19 = vsub.f32 %v15425_v16, %v15571_v53  ;;  %v8630_v32 = vsub.f32 %v15432_v62, %v15571_v53 }
 0xa1d   : > { %v8631_v18 = vsub.f32 %v15439_v6, %v15571_v53  ;;  %v8632_v27 = vsub.f32 %v15446_v21, %v15571_v53  ;;  %v8633_v39 = vsub.f32 %v15453_v4, %v15571_v53  ;;  %v8634_v12 = vsub.f32 %v15460_v42, %v15571_v53 }
 0xa1e   : > { %v8635_v10 = vsub.f32 %v15467_v45, %v15571_v53  ;;  %v8636_v16 = vsub.f32 %v15474_v17, %v15571_v53  ;;  %v8637_v62 = vsub.f32 %v15481_v7, %v15571_v53  ;;  %v8638_v6 = vsub.f32 %v15491_v49, %v15571_v53 }
 0xa1f   : > { %v8639_v21 = vsub.f32 %v15496_v11, %v15571_v53  ;;  %v8640_v4 = vsub.f32 %v15503_v31, %v15571_v53  ;;  %v8641_v42 = vsub.f32 %v15508_v30, %v15571_v53  ;;  %v8642_v45 = vsub.f32 %v15515_v1, %v15571_v53 }
 0xa20   : > { %v8643_v7 = vsub.f32 %v15520_v8, %v15571_v53  ;;  %v8644_v49 = vsub.f32 %v15527_v60, %v15571_v53  ;;  %v8645_v11 = vsub.f32 %v15532_v14, %v15571_v53  ;;  %v8646_v31 = vsub.f32 %v15539_v58, %v15571_v53 }
 0xa36   : > { %v8604_v5 = vpop.f32.mrb[90].mxu1 }
 0xa37   : > { %v8609_v44 = vsub.f32 %v8604_v5, %v8608_v59  ;;  %v10727_v9 = vpop.f32.mrb[91].mxu1 }
 0xa39   : > { %v8610_v0 = vmax.f32 %v8609_v44, 0.0 }
 0xa3b   : > { %v8647_v47 = vadd.f32 1e-05, %v8610_v0 }
 0xa3d   : > { %11368 = vrsqrt.f32 %v8647_v47 }
 0xa47   : > { %v11369_v38 = vpop.eup %11368 }
 0xa48   : > { %v8652_v17 = vrot.slane %v11369_v38, %v16412_v28 }
 0xa4a   : > { %v8653_v54 = vmul.f32 %v8652_v17, %v8615_v56  ;;  %v8654_v51 = vmul.f32 %v8652_v17, %v8616_v3  ;;  %v8655_v30 = vmul.f32 %v8652_v17, %v8617_v25  ;;  %v8656_v57 = vmul.f32 %v8652_v17, %v8618_v20  ;;  %v15669_v25 = vld [vmem:[%s16183_s9] ss:$0 sm:$0xff] }
 0xa4b   : > { %v8657_v24 = vmul.f32 %v8652_v17, %v8619_v55  ;;  %v8658_v1 = vmul.f32 %v8652_v17, %v8620_v22  ;;  %v8659_v33 = vmul.f32 %v8652_v17, %v8621_v37  ;;  %v8660_v36 = vmul.f32 %v8652_v17, %v8622_v40  ;;  %v15677_v37 = vld [vmem:[%s16413_s20] ss:$0 sm:$0xff]  ;;  %s11645_s20 = sshll.u32 %s11732_s21, 4  ;;  %s11646_s20 = int_to_ptr.vmem [resolvable:$false] %s11645_s20 }
 0xa4c   : > { %v8661_v2 = vmul.f32 %v8652_v17, %v8623_v63  ;;  %v8662_v46 = vmul.f32 %v8652_v17, %v8624_v50  ;;  %v8663_v8 = vmul.f32 %v8652_v17, %v8625_v41  ;;  %v8664_v15 = vmul.f32 %v8652_v17, %v8626_v29  ;;  %s11647_s14 = scalar_lea.vmem %s11646_s20, 8192  ;;  %p11648_p12 = scmp.lt.s32.totalorder %s16127_s28, %s11646_s20 }
 0xa4d   : > { %v8665_v23 = vmul.f32 %v8652_v17, %v8627_v34  ;;  %v8666_v60 = vmul.f32 %v8652_v17, %v8628_v61  ;;  %v8667_v48 = vmul.f32 %v8652_v17, %v8629_v19  ;;  %v8668_v26 = vmul.f32 %v8652_v17, %v8630_v32  ;;  %p11649_p1 = scmp.lt.s32.totalorder %s11647_s14, %s11641_s26 }
 0xa4e   : > { %v8669_v14 = vmul.f32 %v8652_v17, %v8631_v18  ;;  %v8670_v52 = vmul.f32 %v8652_v17, %v8632_v27  ;;  %v15638_v35 = vmul.f32 %v8652_v17, %v8633_v39  ;;  %v15640_v58 = vmul.f32 %v8652_v17, %v8634_v12 }
 0xa4f   : > { %v15642_v13 = vmul.f32 %v8652_v17, %v8635_v10  ;;  %v15644_v43 = vmul.f32 %v8652_v17, %v8636_v16  ;;  %v15646_v59 = vmul.f32 %v8652_v17, %v8637_v62  ;;  %v15648_v5 = vmul.f32 %v8652_v17, %v8638_v6  ;;  %p11650_p2 = por %p11649_p1, %p11648_p12 }
 0xa50   : > { %v15650_v44 = vmul.f32 %v8652_v17, %v8639_v21  ;;  %v15652_v9 = vmul.f32 %v8652_v17, %v8640_v4  ;;  %v15654_v0 = vmul.f32 %v8652_v17, %v8641_v42  ;;  %v15656_v47 = vmul.f32 %v8652_v17, %v8642_v45 }
 0xa51   : > { %v15658_v28 = vmul.f32 %v8652_v17, %v8643_v7  ;;  %v15660_v53 = vmul.f32 %v8652_v17, %v8644_v49  ;;  %v15662_v56 = vmul.f32 %v8652_v17, %v8645_v11  ;;  %v15664_v3 = vmul.f32 %v8652_v17, %v8646_v31  ;;  %p11651_p13 = pnand %p11650_p2, %p11644_p7 }
 0xa52   : > { %v8691_v20 = vmul.f32 %v15669_v25, %v8653_v54  ;;  %v8692_v55 = vmul.f32 %v15669_v25, %v8654_v51  ;;  %v8693_v22 = vmul.f32 %v15669_v25, %v8655_v30  ;;  %v8694_v40 = vmul.f32 %v15669_v25, %v8656_v57 }
 0xa53   : > { %v8695_v63 = vmul.f32 %v15669_v25, %v8657_v24  ;;  %v8696_v50 = vmul.f32 %v15669_v25, %v8658_v1  ;;  %v8697_v41 = vmul.f32 %v15669_v25, %v8659_v33  ;;  %v8698_v19 = vmul.f32 %v15669_v25, %v8660_v36 }
 0xa54   : > { %v15684_v29 = vadd.f32 %v15677_v37, %v8691_v20  ;;  %v15687_v34 = vadd.f32 %v15677_v37, %v8692_v55  ;;  %v15690_v61 = vadd.f32 %v15677_v37, %v8693_v22  ;;  %v15694_v32 = vadd.f32 %v15677_v37, %v8694_v40 }
 0xa55   : > { %v8699_v18 = vmul.f32 %v15669_v25, %v8661_v2  ;;  %v15698_v27 = vadd.f32 %v15677_v37, %v8695_v63  ;;  %v8700_v39 = vmul.f32 %v15669_v25, %v8662_v46  ;;  %v8701_v12 = vmul.f32 %v15669_v25, %v8663_v8 }
 0xa56   : > { %v15703_v10 = vadd.f32 %v15677_v37, %v8696_v50  ;;  %v15706_v38 = vadd.f32 %v15677_v37, %v8697_v41  ;;  %v9641_v16 = vmul.f32 -1.442695, %v15684_v29  ;;  %v9642_v62 = vmul.f32 -1.442695, %v15687_v34 }
 0xa57   : > { %v9643_v6 = vmul.f32 -1.442695, %v15690_v61  ;;  %v8702_v21 = vmul.f32 %v15669_v25, %v8664_v15  ;;  %v15713_v4 = vadd.f32 %v15677_v37, %v8698_v19  ;;  %v9644_v42 = vmul.f32 -1.442695, %v15694_v32 }
 0xa58   : > { %v8703_v45 = vmul.f32 %v15669_v25, %v8665_v23  ;;  %v15718_v17 = vadd.f32 %v15677_v37, %v8699_v18  ;;  %11370 = vpow2.f32 %v9641_v16  ;;  %v9645_v7 = vmul.f32 -1.442695, %v15698_v27 }
 0xa59   : > { %v8704_v49 = vmul.f32 %v15669_v25, %v8666_v60  ;;  %v15723_v11 = vadd.f32 %v15677_v37, %v8700_v39  ;;  %11372 = vpow2.f32 %v9642_v62  ;;  %v9646_v31 = vmul.f32 -1.442695, %v15703_v10 }
 0xa5a   : > { %v8705_v54 = vmul.f32 %v15669_v25, %v8667_v48  ;;  %v15728_v51 = vadd.f32 %v15677_v37, %v8701_v12  ;;  %11374 = vpow2.f32 %v9643_v6  ;;  %v9647_v30 = vmul.f32 -1.442695, %v15706_v38 }
 0xa5b   : > { %v8706_v57 = vmul.f32 %v15669_v25, %v8668_v26  ;;  %v15733_v24 = vadd.f32 %v15677_v37, %v8702_v21  ;;  %11376 = vpow2.f32 %v9644_v42  ;;  %v9648_v1 = vmul.f32 -1.442695, %v15713_v4 }
 0xa5c   : > { %v8707_v33 = vmul.f32 %v15669_v25, %v8669_v14  ;;  %v15738_v36 = vadd.f32 %v15677_v37, %v8703_v45  ;;  %11378 = vpow2.f32 %v9645_v7  ;;  %v9649_v2 = vmul.f32 -1.442695, %v15718_v17 }
 0xa5d   : > { %v8708_v46 = vmul.f32 %v15669_v25, %v8670_v52  ;;  %v15743_v8 = vadd.f32 %v15677_v37, %v8704_v49  ;;  %11380 = vpow2.f32 %v9646_v31  ;;  %v9650_v15 = vmul.f32 -1.442695, %v15723_v11 }
 0xa5e   : > { %v8709_v23 = vmul.f32 %v15669_v25, %v15638_v35  ;;  %v15749_v60 = vadd.f32 %v15677_v37, %v8705_v54  ;;  %11382 = vpow2.f32 %v9647_v30  ;;  %v9651_v48 = vmul.f32 -1.442695, %v15728_v51 }
 0xa5f   : > { %v8710_v26 = vmul.f32 %v15669_v25, %v15640_v58  ;;  %v15755_v14 = vadd.f32 %v15677_v37, %v8706_v57  ;;  %11384 = vpow2.f32 %v9648_v1  ;;  %v9652_v52 = vmul.f32 -1.442695, %v15733_v24 }
 0xa60   : > { %v8711_v20 = vmul.f32 %v15669_v25, %v15642_v13  ;;  %v15761_v35 = vadd.f32 %v15677_v37, %v8707_v33  ;;  %11386 = vpow2.f32 %v9649_v2  ;;  %v9653_v55 = vmul.f32 -1.442695, %v15738_v36 }
 0xa61   : > { %v8712_v22 = vmul.f32 %v15669_v25, %v15644_v43  ;;  %v15767_v58 = vadd.f32 %v15677_v37, %v8708_v46  ;;  %11388 = vpow2.f32 %v9650_v15  ;;  %v9654_v40 = vmul.f32 -1.442695, %v15743_v8 }
 0xa62   : > { %16414 = vst [vmem:[#allocation64_spill] sm:$0xff] %v15761_v35  ;;  %v15770_v63 = vpop.eup %11370  ;;  %v8713_v13 = vmul.f32 %v15669_v25, %v15646_v59  ;;  %v15775_v50 = vadd.f32 %v15677_v37, %v8709_v23  ;;  %11390 = vpow2.f32 %v9651_v48  ;;  %v9655_v41 = vmul.f32 -1.442695, %v15749_v60 }
 0xa63   : > { %16415 = vst [vmem:[#allocation65_spill] sm:$0xff] %v15767_v58  ;;  %v15778_v19 = vpop.eup %11372  ;;  %v8714_v43 = vmul.f32 %v15669_v25, %v15648_v5  ;;  %v15783_v18 = vadd.f32 %v15677_v37, %v8710_v26  ;;  %11392 = vpow2.f32 %v9652_v52  ;;  %v9656_v39 = vmul.f32 -1.442695, %v15755_v14 }
 0xa64   : > { %16416 = vst [vmem:[#allocation68_spill] sm:$0xff] %v15775_v50  ;;  %v15786_v12 = vpop.eup %11374  ;;  %v8715_v59 = vmul.f32 %v15669_v25, %v15650_v44  ;;  %v15791_v16 = vadd.f32 %v15677_v37, %v8711_v20  ;;  %11394 = vpow2.f32 %v9653_v55  ;;  %v9657_v62 = vmul.f32 -1.442695, %v15761_v35 }
 0xa65   : > { %16417 = vst [vmem:[#allocation69_spill] sm:$0xff] %v15783_v18  ;;  %v15794_v6 = vpop.eup %11376  ;;  %v8716_v5 = vmul.f32 %v15669_v25, %v15652_v9  ;;  %v15799_v21 = vadd.f32 %v15677_v37, %v8712_v22  ;;  %11396 = vpow2.f32 %v9654_v40  ;;  %v9658_v42 = vmul.f32 -1.442695, %v15767_v58  ;;  %v16447_v58 = vld [vmem:[#allocation39_spill] sm:$0xff] }
 0xa66   : > { %16418 = vst [vmem:[#allocation70_spill] sm:$0xff] %v15791_v16  ;;  %v15802_v45 = vpop.eup %11378  ;;  %v8717_v44 = vmul.f32 %v15669_v25, %v15654_v0  ;;  %v15807_v7 = vadd.f32 %v15677_v37, %v8713_v13  ;;  %11398 = vpow2.f32 %v9655_v41  ;;  %v9659_v49 = vmul.f32 -1.442695, %v15775_v50 }
 0xa67   : > { %16419 = vst [vmem:[#allocation71_spill] sm:$0xff] %v15799_v21  ;;  %v15810_v31 = vpop.eup %11380  ;;  %v8718_v9 = vmul.f32 %v15669_v25, %v15656_v47  ;;  %v15815_v54 = vadd.f32 %v15677_v37, %v8714_v43  ;;  %11400 = vpow2.f32 %v9656_v39  ;;  %v9660_v30 = vmul.f32 -1.442695, %v15783_v18 }
 0xa68   : > { %16420 = vst [vmem:[#allocation72_spill] sm:$0xff] %v15807_v7  ;;  %v15818_v57 = vpop.eup %11382  ;;  %v8719_v0 = vmul.f32 %v15669_v25, %v15658_v28  ;;  %v15823_v1 = vadd.f32 %v15677_v37, %v8715_v59  ;;  %11402 = vpow2.f32 %v9657_v62  ;;  %v9661_v33 = vmul.f32 -1.442695, %v15791_v16 }
 0xa69   : > { %16421 = vst [vmem:[#allocation73_spill] sm:$0xff] %v15815_v54  ;;  %v15826_v2 = vpop.eup %11384  ;;  %v8720_v47 = vmul.f32 %v15669_v25, %v15660_v53  ;;  %v15831_v46 = vadd.f32 %v15677_v37, %v8716_v5  ;;  %11404 = vpow2.f32 %v9658_v42  ;;  %v9662_v15 = vmul.f32 -1.442695, %v15799_v21 }
 0xa6a   : > { %16422 = vst [vmem:[#allocation66_spill] sm:$0xff] %v15823_v1  ;;  %v15834_v23 = vpop.eup %11386  ;;  %v8721_v28 = vmul.f32 %v15669_v25, %v15662_v56  ;;  %v15839_v48 = vadd.f32 %v15677_v37, %v8717_v44  ;;  %11406 = vpow2.f32 %v9659_v49  ;;  %v9663_v26 = vmul.f32 -1.442695, %v15807_v7 }
 0xa6b   : > { %16423 = vst [vmem:[#allocation67_spill] sm:$0xff] %v15831_v46  ;;  %v15842_v52 = vpop.eup %11388  ;;  %v8722_v53 = vmul.f32 %v15669_v25, %v15664_v3  ;;  %v15847_v20 = vadd.f32 %v15677_v37, %v8718_v9  ;;  %11408 = vpow2.f32 %v9660_v30  ;;  %v9664_v55 = vmul.f32 -1.442695, %v15815_v54 }
 0xa6c   : > { %16424 = vst [vmem:[#allocation60_spill] sm:$0xff] %v15839_v48  ;;  %v15850_v22 = vpop.eup %11390  ;;  %v15853_v56 = vadd.f32 %v15677_v37, %v8719_v0  ;;  %11410 = vpow2.f32 %v9661_v33  ;;  %v9665_v40 = vmul.f32 -1.442695, %v15823_v1  ;;  %v15859_v41 = vadd.f32 %v15677_v37, %v8720_v47 }
 0xa6d   : > { %16425 = vst [vmem:[#allocation61_spill] sm:$0xff] %v15847_v20  ;;  %v15856_v13 = vpop.eup %11392  ;;  %11412 = vpow2.f32 %v9662_v15  ;;  %v9666_v3 = vmul.f32 -1.442695, %v15831_v46  ;;  %v15865_v43 = vadd.f32 %v15677_v37, %v8721_v28  ;;  %v9667_v39 = vmul.f32 -1.442695, %v15839_v48 }
 0xa6e   : > { %16426 = vst [vmem:[#allocation62_spill] sm:$0xff] %v15853_v56  ;;  %16427 = vst [vmem:[#allocation63_spill] sm:$0xff] %v15859_v41  ;;  %v15862_v25 = vpop.eup %11394  ;;  %11414 = vpow2.f32 %v9663_v26  ;;  %v15871_v62 = vadd.f32 %v15677_v37, %v8722_v53  ;;  %v9668_v5 = vmul.f32 -1.442695, %v15847_v20  ;;  %v9669_v44 = vmul.f32 -1.442695, %v15853_v56 }
 0xa6f   : > { %16428 = vst [vmem:[#allocation35_spill] sm:$0xff] %v15865_v43  ;;  %v15868_v59 = vpop.eup %11396  ;;  %11416 = vpow2.f32 %v9664_v55  ;;  %v9670_v9 = vmul.f32 -1.442695, %v15859_v41  ;;  %v9671_v0 = vmul.f32 -1.442695, %v15865_v43  ;;  %v8857_v15 = vadd.f32 1.0, %v15770_v63 }
 0xa70   : > { %16429 = vst [vmem:[#allocation44_spill] sm:$0xff] %v15871_v62  ;;  %v15874_v42 = vpop.eup %11398  ;;  %11418 = vpow2.f32 %v9665_v40  ;;  %v9672_v33 = vmul.f32 -1.442695, %v15871_v62  ;;  %v8858_v26 = vadd.f32 1.0, %v15778_v19  ;;  %v8859_v55 = vadd.f32 1.0, %v15786_v12 }
 0xa71   : > { %v15877_v49 = vpop.eup %11400  ;;  %11420 = vpow2.f32 %v9666_v3  ;;  %v8860_v3 = vadd.f32 1.0, %v15794_v6  ;;  %v15903_v63 = vld [vmem:[%s16430_s29] ss:$0 sm:$0xff]  ;;  %v8864_v62 = vadd.f32 1.0, %v15826_v2  ;;  %v8865_v41 = vadd.f32 1.0, %v15834_v23  ;;  %v16437_v23 = vld [vmem:[#allocation29_spill] sm:$0xff] }
 0xa72   : > { %v15880_v30 = vpop.eup %11402  ;;  %11422 = vpow2.f32 %v9667_v39 }
 0xa73   : > { %v15883_v37 = vpop.eup %11404  ;;  %11424 = vpow2.f32 %v9668_v5  ;;  %v8861_v5 = vadd.f32 1.0, %v15802_v45 }
 0xa74   : > { %v15886_v47 = vpop.eup %11406  ;;  %11426 = vpow2.f32 %v9669_v44  ;;  %v8862_v44 = vadd.f32 1.0, %v15810_v31  ;;  %v16433_v31 = vld [vmem:[#allocation25_spill] sm:$0xff] }
 0xa75   : > { %v15889_v28 = vpop.eup %11408  ;;  %11428 = vpow2.f32 %v9670_v9  ;;  %v8863_v9 = vadd.f32 1.0, %v15818_v57 }
 0xa76   : > { %v15892_v53 = vpop.eup %11410  ;;  %11430 = vpow2.f32 %v9671_v0  ;;  %v16431_v0 = vld [vmem:[#allocation23_spill] sm:$0xff] }
 0xa77   : > { %v15895_v40 = vpop.eup %11412  ;;  %11432 = vpow2.f32 %v9672_v33  ;;  %v8992_v33 = vadd.f32 %v15903_v63, %v16431_v0  ;;  %v16435_v0 = vld [vmem:[#allocation27_spill] sm:$0xff] }
 0xa78   : > { %v15898_v39 = vpop.eup %11414  ;;  %11434 = vrcp.f32 %v8857_v15  ;;  %v16432_v15 = vld [vmem:[#allocation24_spill] sm:$0xff]  ;;  %v15930_v2 = vadd.f32 %v15903_v63, %v16435_v0  ;;  %v16438_v0 = vld [vmem:[#allocation30_spill] sm:$0xff] }
 0xa79   : > { %v15906_v19 = vpop.eup %11416  ;;  %11436 = vrcp.f32 %v8858_v26  ;;  %v8993_v43 = vadd.f32 %v15903_v63, %v16432_v15  ;;  %v8994_v26 = vadd.f32 %v15903_v63, %v16433_v31  ;;  %v16436_v15 = vld [vmem:[#allocation28_spill] sm:$0xff] }
 0xa7a   : > { %v15909_v12 = vpop.eup %11418  ;;  %11438 = vrcp.f32 %v8859_v55  ;;  %v16434_v55 = vld [vmem:[#allocation26_spill] sm:$0xff]  ;;  %v15937_v31 = vadd.f32 %v15903_v63, %v16436_v15  ;;  %v8868_v15 = vadd.f32 1.0, %v15856_v13  ;;  %v16444_v13 = vld [vmem:[#allocation36_spill] sm:$0xff] }
 0xa7b   : > { %v15912_v6 = vpop.eup %11420  ;;  %11440 = vrcp.f32 %v8860_v3  ;;  %v8995_v56 = vadd.f32 %v15903_v63, %v16434_v55  ;;  %v8866_v3 = vadd.f32 1.0, %v15842_v52  ;;  %v8867_v55 = vadd.f32 1.0, %v15850_v22  ;;  %v16441_v22 = vld [vmem:[#allocation33_spill] sm:$0xff] }
 0xa7c   : > { %v15917_v45 = vpop.eup %11422  ;;  %11442 = vrcp.f32 %v8861_v5  ;;  %v15941_v5 = vadd.f32 %v15903_v63, %v16437_v23  ;;  %v15948_v52 = vadd.f32 %v15903_v63, %v16438_v0  ;;  %v16440_v23 = vld [vmem:[#allocation32_spill] sm:$0xff]  ;;  %v8869_v0 = vadd.f32 1.0, %v15862_v25 }
 0xa7d   : > { %v15924_v57 = vpop.eup %11424  ;;  %11444 = vrcp.f32 %v8862_v44  ;;  %v16439_v44 = vld [vmem:[#allocation31_spill] sm:$0xff]  ;;  %v15959_v54 = vadd.f32 %v15903_v63, %v16440_v23  ;;  %v8870_v23 = vadd.f32 1.0, %v15868_v59  ;;  %v8872_v59 = vadd.f32 1.0, %v15877_v49 }
 0xa7e   : > { %v15933_v20 = vpop.eup %11426  ;;  %11446 = vrcp.f32 %v8863_v9  ;;  %v15952_v46 = vadd.f32 %v15903_v63, %v16439_v44  ;;  %v15963_v9 = vadd.f32 %v15903_v63, %v16441_v22  ;;  %v16443_v44 = vld [vmem:[#allocation34_spill] sm:$0xff]  ;;  %v16445_v22 = vld [vmem:[#allocation37_spill] sm:$0xff] }
 0xa7f   : > { %v15944_v48 = vpop.eup %11428  ;;  %11448 = vrcp.f32 %v8864_v62  ;;  %v15970_v21 = vadd.f32 %v15903_v63, %v16443_v44  ;;  %v15974_v62 = vadd.f32 %v15903_v63, %v16444_v13  ;;  %v15980_v18 = vadd.f32 %v15903_v63, %v16445_v22  ;;  %v16449_v22 = vld [vmem:[#allocation40_spill] sm:$0xff] }
 0xa80   : > { %v15955_v1 = vpop.eup %11430  ;;  %11450 = vrcp.f32 %v8865_v41  ;;  %v16446_v41 = vld [vmem:[#allocation38_spill] sm:$0xff]  ;;  %v8871_v44 = vadd.f32 1.0, %v15874_v42  ;;  %v15989_v13 = vadd.f32 %v15903_v63, %v16447_v58  ;;  %v8874_v58 = vadd.f32 1.0, %v15883_v37 }
 0xa81   : > { %v15966_v7 = vpop.eup %11432  ;;  %11452 = vrcp.f32 %v8866_v3  ;;  %v15984_v25 = vadd.f32 %v15903_v63, %v16446_v41  ;;  %v8873_v41 = vadd.f32 1.0, %v15880_v30  ;;  %v8876_v30 = vadd.f32 1.0, %v15889_v28 }
 0xa82   : > { %16442 = vst [vmem:[#allocation52_spill] sm:$0xff] %v15966_v7  ;;  %v11435_v16 = vpop.eup %11434  ;;  %11454 = vrcp.f32 %v8867_v55  ;;  %16448 = vst [vmem:[#allocation57_spill] sm:$0xff] %v15989_v13  ;;  %v15995_v7 = vadd.f32 %v15903_v63, %v16449_v22 }
 0xa83   : > { %v11437_v50 = vpop.eup %11436  ;;  %11456 = vrcp.f32 %v8868_v15  ;;  %v8953_v3 = vmul.f32 %v11435_v16, %v15684_v29  ;;  %v8875_v29 = vadd.f32 1.0, %v15886_v47 }
 0xa84   : > { %v11439_v35 = vpop.eup %11438  ;;  %16450 = vst [vmem:[#allocation58_spill] sm:$0xff] %v15995_v7  ;;  %11458 = vrcp.f32 %v8869_v0  ;;  %v8954_v42 = vmul.f32 %v11437_v50, %v15687_v34 }
 0xa85   : > { %v11441_v55 = vpop.eup %11440  ;;  %11460 = vrcp.f32 %v8870_v23  ;;  %v8955_v49 = vmul.f32 %v11439_v35, %v15690_v61  ;;  %v9024_v15 = vadd.f32 %v8992_v33, %v8953_v3  ;;  %v8877_v35 = vadd.f32 1.0, %v15892_v53 }
 0xa86   : > { %v11443_v13 = vpop.eup %11442  ;;  %11462 = vrcp.f32 %v8871_v44  ;;  %v8956_v16 = vmul.f32 %v11441_v55, %v15694_v32  ;;  %v9025_v22 = vadd.f32 %v8993_v43, %v8954_v42  ;;  %v16452_v55 = vld [vmem:[#allocation64_spill] sm:$0xff] }
 0xa87   : > { %v11445_v7 = vpop.eup %11444  ;;  %11464 = vrcp.f32 %v8872_v59  ;;  %v8957_v34 = vmul.f32 %v11443_v13, %v15698_v27  ;;  %v9026_v50 = vadd.f32 %v8994_v26, %v8955_v49  ;;  %9056 = vst [vmem:[%s16007_s1] sm:$0xff] %v9024_v15  ;;  %v8878_v27 = vadd.f32 1.0, %v15895_v40  ;;  %v16453_v49 = vld [vmem:[#allocation41_spill] sm:$0xff] }
 0xa88   : > { %v11447_v61 = vpop.eup %11446  ;;  %11466 = vrcp.f32 %v8873_v41  ;;  %v8958_v32 = vmul.f32 %v11445_v7, %v15703_v10  ;;  %v9027_v43 = vadd.f32 %v8995_v56, %v8956_v16  ;;  %9057 = vst [vmem:[%s16007_s1 + $0x8] sm:$0xff] %v9025_v22  ;;  %v8879_v26 = vadd.f32 1.0, %v15898_v39  ;;  %v16456_v22 = vld [vmem:[#allocation42_spill] sm:$0xff] }
 0xa89   : > { %v11449_v37 = vpop.eup %11448  ;;  %11468 = vrcp.f32 %v8874_v58  ;;  %v8959_v47 = vmul.f32 %v11447_v61, %v15706_v38  ;;  %v9028_v28 = vadd.f32 %v15930_v2, %v8957_v34  ;;  %9058 = vst [vmem:[%s16007_s1 + $0x10] sm:$0xff] %v9026_v50  ;;  %v8880_v56 = vadd.f32 1.0, %v15906_v19  ;;  %v16451_v42 = vld [vmem:[#allocation52_spill] sm:$0xff] }
 0xa8a   : > { %v11451_v33 = vpop.eup %11450  ;;  %11470 = vrcp.f32 %v8875_v29  ;;  %v8960_v53 = vmul.f32 %v11449_v37, %v15713_v4  ;;  %v9029_v10 = vadd.f32 %v15937_v31, %v8958_v32  ;;  %9059 = vst [vmem:[%s16007_s1 + $0x18] sm:$0xff] %v9027_v43  ;;  %v8881_v39 = vadd.f32 1.0, %v15909_v12  ;;  %v16457_v34 = vld [vmem:[#allocation68_spill] sm:$0xff]  ;;  %v16459_v32 = vld [vmem:[#allocation43_spill] sm:$0xff]  ;;  %v16460_v37 = vld [vmem:[#allocation69_spill] sm:$0xff] }
 0xa8b   : > { %v11453_v7 = vpop.eup %11452  ;;  %11472 = vrcp.f32 %v8876_v30  ;;  %v8961_v38 = vmul.f32 %v11451_v33, %v15718_v17  ;;  %v9030_v40 = vadd.f32 %v15941_v5, %v8959_v47  ;;  %9060 = vst [vmem:[%s16007_s1 + $0x20] sm:$0xff] %v9028_v28  ;;  %v8882_v19 = vadd.f32 1.0, %v15912_v6  ;;  %v16458_v50 = vld [vmem:[#allocation58_spill] sm:$0xff]  ;;  %v16461_v33 = vld [vmem:[#allocation45_spill] sm:$0xff] }
 0xa8c   : > { %v11455_v2 = vpop.eup %11454  ;;  %11474 = vrcp.f32 %v8877_v35  ;;  %v8962_v4 = vmul.f32 %v11453_v7, %v15723_v11  ;;  %v9031_v31 = vadd.f32 %v15948_v52, %v8960_v53  ;;  %9061 = vst [vmem:[%s16007_s1 + $0x28] sm:$0xff] %v9029_v10  ;;  %v8883_v12 = vadd.f32 1.0, %v15917_v45  ;;  %v16462_v53 = vld [vmem:[#allocation70_spill] sm:$0xff] }
 0xa8d   : > { %v11457_v0 = vpop.eup %11456  ;;  %11476 = vrcp.f32 %v8878_v27  ;;  %v8963_v17 = vmul.f32 %v11455_v2, %v15728_v51  ;;  %v9032_v5 = vadd.f32 %v15952_v46, %v8961_v38  ;;  %9062 = vst [vmem:[%s16007_s1 + $0x30] sm:$0xff] %v9030_v40  ;;  %v8884_v6 = vadd.f32 1.0, %v15924_v57  ;;  %v16463_v38 = vld [vmem:[#allocation19_spill] sm:$0xff] }
 0xa8e   : > { %v11459_v23 = vpop.eup %11458  ;;  %11478 = vrcp.f32 %v8879_v26  ;;  %v8964_v11 = vmul.f32 %v11457_v0, %v15733_v24  ;;  %v9033_v52 = vadd.f32 %v15959_v54, %v8962_v4  ;;  %9063 = vst [vmem:[%s16007_s1 + $0x38] sm:$0xff] %v9031_v31  ;;  %v8885_v45 = vadd.f32 1.0, %v15933_v20  ;;  %v16464_v2 = vld [vmem:[#allocation71_spill] sm:$0xff]  ;;  %v16465_v0 = vld [vmem:[#allocation46_spill] sm:$0xff] }
 0xa8f   : > { %v11461_v44 = vpop.eup %11460  ;;  %11480 = vrcp.f32 %v8880_v56  ;;  %v8965_v51 = vmul.f32 %v11459_v23, %v15738_v36  ;;  %v9034_v46 = vadd.f32 %v15963_v9, %v8963_v17  ;;  %9064 = vst [vmem:[%s16007_s1 + $0x40] sm:$0xff] %v9032_v5  ;;  %v8886_v57 = vadd.f32 1.0, %v15944_v48  ;;  %v16466_v17 = vld [vmem:[#allocation72_spill] sm:$0xff] }
 0xa90   : > { %v11463_v13 = vpop.eup %11462  ;;  %11482 = vrcp.f32 %v8881_v39  ;;  %v8966_v24 = vmul.f32 %v11461_v44, %v15743_v8  ;;  %v9035_v54 = vadd.f32 %v15970_v21, %v8964_v11  ;;  %9065 = vst [vmem:[%s16007_s1 + $0x48] sm:$0xff] %v9033_v52  ;;  %v8887_v20 = vadd.f32 1.0, %v15955_v1  ;;  %v16467_v11 = vld [vmem:[#allocation47_spill] sm:$0xff]  ;;  %v16468_v44 = vld [vmem:[#allocation73_spill] sm:$0xff] }
 0xa91   : > { %v11465_v59 = vpop.eup %11464  ;;  %11484 = vrcp.f32 %v8882_v19  ;;  %v8967_v36 = vmul.f32 %v11463_v13, %v15749_v60  ;;  %v9036_v9 = vadd.f32 %v15974_v62, %v8965_v51  ;;  %9066 = vst [vmem:[%s16007_s1 + $0x50] sm:$0xff] %v9034_v46  ;;  %v8888_v48 = vadd.f32 1.0, %v16451_v42  ;;  %v16469_v13 = vld [vmem:[#allocation48_spill] sm:$0xff] }
 0xa92   : > { %v11467_v3 = vpop.eup %11466  ;;  %11486 = vrcp.f32 %v8883_v12  ;;  %v8968_v8 = vmul.f32 %v11465_v59, %v15755_v14  ;;  %v9037_v21 = vadd.f32 %v15980_v18, %v8966_v24  ;;  %9067 = vst [vmem:[%s16007_s1 + $0x58] sm:$0xff] %v9035_v54  ;;  %v9009_v1 = vadd.f32 %v15903_v63, %v16453_v49  ;;  %v16454_v14 = vld [vmem:[#allocation65_spill] sm:$0xff]  ;;  %v16470_v24 = vld [vmem:[#allocation66_spill] sm:$0xff] }
 0xa93   : > { %v11469_v41 = vpop.eup %11468  ;;  %11488 = vrcp.f32 %v8884_v6  ;;  %v8969_v60 = vmul.f32 %v11467_v3, %v16452_v55  ;;  %v9038_v62 = vadd.f32 %v15984_v25, %v8967_v36  ;;  %9068 = vst [vmem:[%s16007_s1 + $0x60] sm:$0xff] %v9036_v9  ;;  %v16455_v18 = vld [vmem:[#allocation57_spill] sm:$0xff]  ;;  %v9010_v30 = vadd.f32 %v15903_v63, %v16456_v22  ;;  %v16472_v3 = vld [vmem:[#allocation67_spill] sm:$0xff]  ;;  %v16478_v22 = vld [vmem:[#allocation62_spill] sm:$0xff] }
 0xa94   : > { %v11471_v58 = vpop.eup %11470  ;;  %11490 = vrcp.f32 %v8885_v45  ;;  %v8970_v15 = vmul.f32 %v11469_v41, %v16454_v14  ;;  %v9039_v29 = vadd.f32 %v16455_v18, %v8968_v8  ;;  %9069 = vst [vmem:[%s16007_s1 + $0x68] sm:$0xff] %v9037_v21  ;;  %v9011_v43 = vadd.f32 %v15903_v63, %v16459_v32  ;;  %v16471_v36 = vld [vmem:[#allocation49_spill] sm:$0xff]  ;;  %v16473_v41 = vld [vmem:[#allocation50_spill] sm:$0xff] }
 0xa95   : > { %v11473_v16 = vpop.eup %11472  ;;  %11492 = vrcp.f32 %v8886_v57  ;;  %v8971_v25 = vmul.f32 %v11471_v58, %v16457_v34  ;;  %v9040_v61 = vadd.f32 %v16458_v50, %v8969_v60  ;;  %9070 = vst [vmem:[%s16007_s1 + $0x70] sm:$0xff] %v9038_v62  ;;  %v9012_v26 = vadd.f32 %v15903_v63, %v16461_v33  ;;  %v16475_v58 = vld [vmem:[#allocation51_spill] sm:$0xff]  ;;  %v16479_v50 = vld [vmem:[#allocation54_spill] sm:$0xff] }
 0xa96   : > { %v11475_v35 = vpop.eup %11474  ;;  %11494 = vrcp.f32 %v8887_v20  ;;  %v8972_v27 = vmul.f32 %v11473_v16, %v16460_v37  ;;  %v9041_v47 = vadd.f32 %v9009_v1, %v8970_v15  ;;  %9071 = vst [vmem:[%s16007_s1 + $0x78] sm:$0xff] %v9039_v29  ;;  %v9013_v40 = vadd.f32 %v15903_v63, %v16463_v38  ;;  %v16476_v1 = vld [vmem:[#allocation61_spill] sm:$0xff] }
 0xa97   : > { %v11477_v28 = vpop.eup %11476  ;;  %11496 = vrcp.f32 %v8888_v48  ;;  %v8973_v10 = vmul.f32 %v11475_v35, %v16462_v53  ;;  %v9042_v7 = vadd.f32 %v9010_v30, %v8971_v25  ;;  %9072 = vst [vmem:[%s16007_s1 + $0x80] sm:$0xff] %v9040_v61  ;;  %v9014_v19 = vadd.f32 %v15903_v63, %v16465_v0  ;;  %v16474_v48 = vld [vmem:[#allocation60_spill] sm:$0xff]  ;;  %v16477_v29 = vld [vmem:[#allocation53_spill] sm:$0xff]  ;;  %v16480_v35 = vld [vmem:[#allocation63_spill] sm:$0xff] }
 0xa98   : > { %v11479_v56 = vpop.eup %11478  ;;  %v8974_v39 = vmul.f32 %v11477_v28, %v16464_v2  ;;  %v9043_v4 = vadd.f32 %v9011_v43, %v8972_v27  ;;  %9073 = vst [vmem:[%s16007_s1 + $0x88] sm:$0xff] %v9041_v47  ;;  %v9015_v52 = vadd.f32 %v15903_v63, %v16467_v11  ;;  %v9016_v45 = vadd.f32 %v15903_v63, %v16469_v13  ;;  %v16481_v27 = vld [vmem:[#allocation55_spill] sm:$0xff]  ;;  %v16483_v53 = vld [vmem:[#allocation56_spill] sm:$0xff] }
 0xa99   : > { %v11481_v31 = vpop.eup %11480  ;;  %v8975_v5 = vmul.f32 %v11479_v56, %v16466_v17  ;;  %v9044_v23 = vadd.f32 %v9012_v26, %v8973_v10  ;;  %9074 = vst [vmem:[%s16007_s1 + $0x90] sm:$0xff] %v9042_v7  ;;  %v9017_v9 = vadd.f32 %v15903_v63, %v16471_v36  ;;  %v9018_v42 = vadd.f32 %v15903_v63, %v16473_v41  ;;  %v16482_v28 = vld [vmem:[#allocation35_spill] sm:$0xff]  ;;  %v16484_v7 = vld [vmem:[#allocation44_spill] sm:$0xff] }
 0xa9a   : > { %v11483_v12 = vpop.eup %11482  ;;  %v8976_v6 = vmul.f32 %v11481_v31, %v16468_v44  ;;  %v9045_v51 = vadd.f32 %v9013_v40, %v8974_v39  ;;  %9075 = vst [vmem:[%s16007_s1 + $0x98] sm:$0xff] %v9043_v4  ;;  %v9019_v49 = vadd.f32 %v15903_v63, %v16475_v58  ;;  %v9020_v16 = vadd.f32 %v15903_v63, %v16477_v29 }
 0xa9b   : > { %v11485_v46 = vpop.eup %11484  ;;  %v8977_v54 = vmul.f32 %v11483_v12, %v16470_v24  ;;  %v9046_v59 = vadd.f32 %v9014_v19, %v8975_v5  ;;  %9076 = vst [vmem:[%s16007_s1 + $0xa0] sm:$0xff] %v9044_v23  ;;  %v9021_v61 = vadd.f32 %v15903_v63, %v16479_v50  ;;  %v9022_v47 = vadd.f32 %v15903_v63, %v16481_v27 }
 0xa9c   : > { %v11487_v57 = vpop.eup %11486  ;;  %v8978_v20 = vmul.f32 %v11485_v46, %v16472_v3  ;;  %v9047_v8 = vadd.f32 %v9015_v52, %v8976_v6  ;;  %9077 = vst [vmem:[%s16007_s1 + $0xa8] sm:$0xff] %v9045_v51  ;;  %v9023_v10 = vadd.f32 %v15903_v63, %v16483_v53 }
 0xa9d   : > { %v11489_v21 = vpop.eup %11488  ;;  %v8979_v55 = vmul.f32 %v11487_v57, %v16474_v48  ;;  %v9048_v60 = vadd.f32 %v9016_v45, %v8977_v54  ;;  %9078 = vst [vmem:[%s16007_s1 + $0xb0] sm:$0xff] %v9046_v59 }
 0xa9e   : > { %v11491_v62 = vpop.eup %11490  ;;  %v8980_v14 = vmul.f32 %v11489_v21, %v16476_v1  ;;  %v9049_v15 = vadd.f32 %v9017_v9, %v8978_v20  ;;  %9079 = vst [vmem:[%s16007_s1 + $0xb8] sm:$0xff] %v9047_v8 }
 0xa9f   : > { %v11493_v18 = vpop.eup %11492  ;;  %v8981_v30 = vmul.f32 %v11491_v62, %v16478_v22  ;;  %v9050_v34 = vadd.f32 %v9018_v42, %v8979_v55  ;;  %9080 = vst [vmem:[%s16007_s1 + $0xc0] sm:$0xff] %v9048_v60 }
 0xaa0   : > { %v11495_v25 = vpop.eup %11494  ;;  %v8982_v32 = vmul.f32 %v11493_v18, %v16480_v35  ;;  %v9051_v43 = vadd.f32 %v9019_v49, %v8980_v14  ;;  %9081 = vst [vmem:[%s16007_s1 + $0xc8] sm:$0xff] %v9049_v15 }
 0xaa1   : > { %v11497_v37 = vpop.eup %11496  ;;  %v8983_v33 = vmul.f32 %v11495_v25, %v16482_v28  ;;  %v9052_v26 = vadd.f32 %v9020_v16, %v8981_v30  ;;  %9082 = vst [vmem:[%s16007_s1 + $0xd0] sm:$0xff] %v9050_v34 }
 0xaa2   : > { %v8984_v56 = vmul.f32 %v11497_v37, %v16484_v7  ;;  %v9053_v38 = vadd.f32 %v9021_v61, %v8982_v32  ;;  %9083 = vst [vmem:[%s16007_s1 + $0xd8] sm:$0xff] %v9051_v43 }
 0xaa3   : > { %v9054_v40 = vadd.f32 %v9022_v47, %v8983_v33  ;;  %9084 = vst [vmem:[%s16007_s1 + $0xe0] sm:$0xff] %v9052_v26 }
 0xaa4   : > { %v9055_v2 = vadd.f32 %v9023_v10, %v8984_v56  ;;  %9085 = vst [vmem:[%s16007_s1 + $0xe8] sm:$0xff] %v9053_v38 }
 0xaa5   : > { %9086 = vst [vmem:[%s16007_s1 + $0xf0] sm:$0xff] %v9054_v40 }
 0xaa6   : > { %9087 = vst [vmem:[%s16007_s1 + $0xf8] sm:$0xff] %v9055_v2 }
 0xaa7   : > { %11654 = shalt.err (!%p11651_p13)
}
 0xaa8   : > { %s11655_s27 = scalar_lea.hbm %s16125_s10, 4096  ;;  %s11659_s1 = scalar_lea.hbm %s16485_s30, 8192 }
 0xaa9   : > { %p11656_p9 = scmp.ne.s32.totalorder %s16125_s10, %s11655_s27  ;;  %p11660_p6 = scmp.lt.u32.totalorder %s16125_s10, %s16485_s30 }
 0xaaa   : > { %p11661_p4 = scmp.lt.u32.totalorder %s11659_s1, %s11655_s27  ;;  %p11663_p10 = scmp.lt.u32.totalorder %s11655_s27, %s16125_s10 }
 0xaab   : > { %p11657_p0 = pnand %p11656_p9, %p11975_p3 }
 0xaac   : > { %p11662_p8 = por %p11661_p4, %p11660_p6 }
 0xaad   : > { %p11658_p11 = pneg %p11657_p0 }
 0xaae   : > { %p11664_p5 = por %p11663_p10, %p11662_p8 }
 0xab0   : > { %p11665_p7 = pnand %p11664_p5, %p11658_p11 }
 0xab2   : > { %11668 = shalt.err (!%p11665_p7)
}
 0xab3   : > { %s11733_s11 = smov 128   ;;  %s11734_s26 = smov 8  }
 0xab4   : > { %10861 = dma.vmem_to_hbm [thread:$0]  (%p11975_p3), %s16127_s28, 4096, %s16125_s10, %s9089_s18, %s11733_s11, %s11733_s11, %s11734_s26  }
 0xab5 PF: > { %s16486_s21 = sld [smem:[#allocation17_spill]]  ;;  %s16487_s20 = sld [smem:[#allocation18_spill]] }
 0xab6   : > { %p16489_p1 = scmp.ge.s32.totalorder %s11715_s24, 2 }
 0xabb   : > { %s9117_s14 = sand.u32 1, %s16486_s21   ;;  %p16488_p12 = scmp.ne.s32.totalorder %s16487_s20, 0 }
 0xabc   : > { %s9118_s27 = scalar_lea.sflag [#allocation5], %s9117_s14 }
 0xabd   : > { %p10881_p2 = pnand %p16489_p1, %p16488_p12 }
 0xabf   : > { %11698 = dma.done.wait (!%p10881_p2), %s9118_s27, 4096  }
 0xac0   : > { %11700 = vsyncadd (!%p10881_p2), %s9118_s27, 4294963200  ;;  %p27_p13 = scmp.ge.s32.totalorder %s11962_s19, 4   ;;  %s16490_s21 = smov %s11707_s22 }
 0xac1   : > { %s16491_s22 = smov %s11711_s23  ;;  %s16492_s23 = smov %s11971_s17 }
 0xac2   : > { %s16493_s24 = smov %s11962_s19  ;;  %29 = sbr.rel (!%p27_p13) target bundleno = 12 (0xc), region = 138 }
 0xac9   :  { %9123 = vsyncpa [#allocation4], 1 }
 0xaca   :  { %9125 = vsyncpa [#allocation4 + $0x1], 1 }
 0xacb   :  { %9126 = vsyncpa [#allocation7], 1 }
 0xacc   :  { %9127 = vsyncpa [#allocation10], 1 }
 0xacd   :  { %9128 = vsyncpa [#allocation5], 1 }
 0xace   :  { %9130 = vsyncpa [#allocation5 + $0x1], 1 }

</bundles_post_ra>
